<compile_context>
chip_gen: v5e
topology: v5e:2x2
jax: 0.10.0
libtpu: 0.0.40
codegen_flags: <defaults>
</compile_context>

<pallas_src>
import functools

import jax
import jax.numpy as jnp
import numpy as np
from jax.experimental import pallas as pl
from jax.experimental.pallas import tpu as pltpu

DIM = 64
NEG_SLOPE = 0.01                  # nn.LeakyReLU() default negative_slope
C1, C2, C3 = DIM, 2 * DIM, 4 * DIM
K1 = 32                           # layer-1 patch K (27 zero-padded to 32)
CP = 128                          # lane-padded width of every activation slab
BT_DEFAULT = 8                    # images per grid step (M = 16*BT matmul rows)


def _lrelu(x):
    return jnp.where(x >= 0, x, NEG_SLOPE * x)


def _copy_tap(dst_ref, dc0, src_ref, sc0, sh, sw, bt):
    """Copy one 128-lane activation slab into an im2col slot with a block shift.

    Rows are ordered r = (p*4 + q)*bt + t (final 4x4 block (p,q), image t in
    the tile).  (sh, sw) in {0,-1}^2: destination block (p,q) reads source
    block (p+sh, q+sw); out-of-range blocks get zeros (conv zero padding).
    All slices are static and 128-lane aligned.
    """
    M = 16 * bt
    w = CP
    if sh == 0 and sw == 0:
        dst_ref[:, dc0:dc0 + w] = src_ref[:, sc0:sc0 + w]
        return
    z_brow = jnp.zeros((4 * bt, w), jnp.bfloat16)
    z_blk = jnp.zeros((bt, w), jnp.bfloat16)
    if sh == -1 and sw == 0:
        dst_ref[0:4 * bt, dc0:dc0 + w] = z_brow
        dst_ref[4 * bt:M, dc0:dc0 + w] = src_ref[0:12 * bt, sc0:sc0 + w]
    elif sh == 0 and sw == -1:
        for p in range(4):
            base = p * 4 * bt
            dst_ref[base:base + bt, dc0:dc0 + w] = z_blk
            dst_ref[base + bt:base + 4 * bt, dc0:dc0 + w] = (
                src_ref[base:base + 3 * bt, sc0:sc0 + w])
    else:  # sh == -1 and sw == -1
        dst_ref[0:4 * bt, dc0:dc0 + w] = z_brow
        for p in range(1, 4):
            base = p * 4 * bt
            sbase = (p - 1) * 4 * bt
            dst_ref[base:base + bt, dc0:dc0 + w] = z_blk
            dst_ref[base + bt:base + 4 * bt, dc0:dc0 + w] = (
                src_ref[sbase:sbase + 3 * bt, sc0:sc0 + w])


def _disc_kernel(p1_ref, w1_ref, b1_ref, w2_ref, b2_ref, w3_ref, b3_ref,
                 wlt_ref, sel_ref, bl_ref, out_ref,
                 a1_ref, im_ref, a2_ref, *, bt):
    M = 16 * bt

    # ---- layer 1: 16 sub-position matmuls scattered into the s2d(4) buffer.
    # Per-sub-position processing keeps the live matmul result at [M,128] f32.
    for s in range(16):
        y = jnp.dot(p1_ref[0, s * M:(s + 1) * M, :], w1_ref[...],
                    preferred_element_type=jnp.float32)            # [M, 128]
        y = _lrelu(y + b1_ref[...])
        a1_ref[:, s * CP:(s + 1) * CP] = y.astype(jnp.bfloat16)

    # ---- layer 2: 4 output sub-positions, ONE K=1152 im2col matmul each.
    for a in range(2):
        for b in range(2):
            for kh in range(3):
                for kw in range(3):
                    k = kh * 3 + kw
                    th = 2 * a + kh - 1
                    tw = 2 * b + kw - 1
                    dh, sh = (3, -1) if th < 0 else (th, 0)
                    dw, sw = (3, -1) if tw < 0 else (tw, 0)
                    _copy_tap(im_ref, k * CP, a1_ref, (dh * 4 + dw) * CP,
                              sh, sw, bt)
            y = jnp.dot(im_ref[...], w2_ref[...],
                        preferred_element_type=jnp.float32)         # [M, 128]
            y = _lrelu(y + b2_ref[...])
            a2_ref[:, (a * 2 + b) * C2:(a * 2 + b + 1) * C2] = (
                y.astype(jnp.bfloat16))

    # ---- layer 3: single K=1152 matmul on the re-filled im2col scratch.
    for kh in range(3):
        for kw in range(3):
            k = kh * 3 + kw
            th = kh - 1
            tw = kw - 1
            dh, sh = (1, -1) if th < 0 else (th, 0)
            dw, sw = (1, -1) if tw < 0 else (tw, 0)
            _copy_tap(im_ref, k * CP, a2_ref, (dh * 2 + dw) * C2, sh, sw, bt)
    y = jnp.dot(im_ref[...], w3_ref[...],
                preferred_element_type=jnp.float32)                 # [M, 256]
    h3 = _lrelu(y + b3_ref[...])

    # ---- Linear(4096 -> 1): elementwise weight (f32) + per-image selector dot.
    prod = h3 * wlt_ref[...]                                        # [M, 256]
    per = jnp.dot(sel_ref[...], prod,
                  preferred_element_type=jnp.float32)               # [SR, 256]
    res = jnp.sum(per, axis=1, keepdims=True) + bl_ref[...]         # [SR, 1]
    out_ref[0] = res[0:bt, :]


# ---------------------------------------------------------------------------
# Host-side glue
# ---------------------------------------------------------------------------
def _layer1_patches(x, bt):
    """x: [B,3,32,32] NCHW -> [T, 16*M, 32] bf16 patch tensor, M = 16*bt.

    Per-tile rows ordered (s = dh*4+dw, p, q, t); columns (kh, kw, ci) zero-
    padded 27 -> 32.  Only the tiny 3-channel input image touches XLA glue.
    """
    B = x.shape[0]
    T = -(-B // bt)
    Bp = T * bt
    if Bp != B:
        x = jnp.pad(x, ((0, Bp - B), (0, 0), (0, 0), (0, 0)))
    xn = jnp.transpose(x, (0, 2, 3, 1))                            # [Bp,32,32,3]
    xp = jnp.pad(xn, ((0, 0), (1, 1), (1, 1), (0, 0)))             # [Bp,34,34,3]
    taps = [xp[:, kh:kh + 32:2, kw:kw + 32:2, :]
            for kh in range(3) for kw in range(3)]                 # 9 x [Bp,16,16,3]
    t = jnp.stack(taps, axis=3).reshape(Bp, 16, 16, 27)
    t = t.reshape(T, bt, 4, 4, 4, 4, 27)                           # (T,t,p,dh,q,dw,col)
    t = t.transpose(0, 3, 5, 2, 4, 1, 6)                           # (T,dh,dw,p,q,t,col)
    t = t.reshape(T, 16 * 16 * bt, 27)
    t = jnp.pad(t, ((0, 0), (0, 0), (0, K1 - 27)))
    return t.astype(jnp.bfloat16)


def prepare_params(params):
    """One-time packing of weights into kernel-friendly, lane-aligned layouts."""
    # layer 1: [32, 128] bf16, rows (kh,kw,ci) padded 27->32, cols 64->128.
    w1m = params["w1"].transpose(2, 3, 1, 0).reshape(27, C1)
    w1m = jnp.pad(w1m, ((0, K1 - 27), (0, CP - C1))).astype(jnp.bfloat16)
    b1m = jnp.pad(params["b1"].reshape(1, C1), ((0, 0), (0, CP - C1)))
    # layer 2: [1152, 128] bf16, rows (kh,kw, ci padded 64->128 with zeros).
    w2t = params["w2"].transpose(2, 3, 1, 0).reshape(9, C1, C2)
    w2m = jnp.zeros((9, CP, C2), jnp.float32).at[:, :C1, :].set(w2t)
    w2m = w2m.reshape(9 * CP, C2).astype(jnp.bfloat16)
    # layer 3: [1152, 256] bf16, rows (kh,kw,ci).
    w3m = params["w3"].transpose(2, 3, 1, 0).reshape(9 * C2, C3)
    w3m = w3m.astype(jnp.bfloat16)
    # linear: torch flatten is NCHW -> flat index = c*16 + p*4 + q.
    wl16 = params["wl"].reshape(C3, 16).T                          # [16, 256] f32
    return {
        "w1": w1m, "b1": b1m,
        "w2": w2m, "b2": params["b2"].reshape(1, C2),
        "w3": w3m, "b3": params["b3"].reshape(1, C3),
        "wl16": wl16, "bl": params["bl"].reshape(1, 1),
    }


def discriminator_forward(x, prep, bt=BT_DEFAULT):
    B, Cin, H, W = x.shape
    assert (Cin, H, W) == (3, 32, 32), "module implies 3x32x32 inputs"
    bt = max(1, min(bt, B))
    T = -(-B // bt)
    M = 16 * bt
    SR = max(8, bt)

    p1 = _layer1_patches(x, bt)                                    # [T, 16*M, 32]
    wlt = jnp.repeat(prep["wl16"], bt, axis=0)                     # [M, 256] f32
    sel = jnp.zeros((SR, M), jnp.float32).at[:bt, :].set(
        jnp.tile(jnp.eye(bt, dtype=jnp.float32), (1, 16)))         # [SR, M]

    flops = 2 * T * (16 * M * K1 * CP + 4 * M * 9 * CP * C2
                     + M * 9 * C2 * C3 + SR * M * C3)
    bytes_accessed = (T * 16 * M * K1 * 2 + T * bt * 4
                      + (K1 * CP + 9 * CP * C2 + 9 * C2 * C3) * 2
                      + (M * C3 + SR * M) * 4 + 4096)

    out = pl.pallas_call(
        functools.partial(_disc_kernel, bt=bt),
        out_shape=jax.ShapeDtypeStruct((T, bt, 1), jnp.float32),
        grid=(T,),
        in_specs=[
            pl.BlockSpec((1, 16 * M, K1), lambda g: (g, 0, 0)),    # p1 patches
            pl.BlockSpec((K1, CP), lambda g: (0, 0)),              # w1
            pl.BlockSpec((1, CP), lambda g: (0, 0)),               # b1
            pl.BlockSpec((9 * CP, C2), lambda g: (0, 0)),          # w2
            pl.BlockSpec((1, C2), lambda g: (0, 0)),               # b2
            pl.BlockSpec((9 * C2, C3), lambda g: (0, 0)),          # w3
            pl.BlockSpec((1, C3), lambda g: (0, 0)),               # b3
            pl.BlockSpec((M, C3), lambda g: (0, 0)),               # wlt (linear)
            pl.BlockSpec((SR, M), lambda g: (0, 0)),               # sel
            pl.BlockSpec((1, 1), lambda g: (0, 0)),                # bl
        ],
        out_specs=pl.BlockSpec((1, bt, 1), lambda g: (g, 0, 0)),
        scratch_shapes=[
            pltpu.VMEM((M, 16 * CP), jnp.bfloat16),                # a1 (s2d x4)
            pltpu.VMEM((M, 9 * CP), jnp.bfloat16),                 # shared im2col
            pltpu.VMEM((M, 4 * C2), jnp.bfloat16),                 # a2 (s2d x2)
        ],
        compiler_params=pltpu.CompilerParams(
            dimension_semantics=("parallel",)),
        cost_estimate=pl.CostEstimate(flops=int(flops), transcendentals=0,
                                      bytes_accessed=int(bytes_accessed)),
    )(p1, prep["w1"], prep["b1"], prep["w2"], prep["b2"],
      prep["w3"], prep["b3"], wlt, sel, prep["bl"])

    return out.reshape(T * bt, 1)[:B]                              # [B, 1]


# ---------------------------------------------------------------------------
# Parameters + pure-JAX reference (correctness check only)
# ---------------------------------------------------------------------------
def init_params(key):
    ks = jax.random.split(key, 8)

    def n(k, shape, scale):
        return (scale * jax.random.normal(k, shape)).astype(jnp.float32)

    return {
        "w1": n(ks[0], (DIM, 3, 3, 3), 0.1),
        "b1": n(ks[1], (DIM,), 0.1),
        "w2": n(ks[2], (2 * DIM, DIM, 3, 3), 0.05),
        "b2": n(ks[3], (2 * DIM,), 0.05),
        "w3": n(ks[4], (4 * DIM, 2 * DIM, 3, 3), 0.05),
        "b3": n(ks[5], (4 * DIM,), 0.05),
        "wl": n(ks[6], (1, 4 * 4 * 4 * DIM), 0.02),   # torch Linear weight [out, in]
        "bl": n(ks[7], (1,), 0.02),
    }


def reference_forward(x, params):
    def conv(x, w, b):
        y = jax.lax.conv_general_dilated(
            x, w, window_strides=(2, 2), padding=((1, 1), (1, 1)),
            dimension_numbers=("NCHW", "OIHW", "NCHW"))
        y = y + b[None, :, None, None]
        return jnp.where(y >= 0, y, NEG_SLOPE * y)

    h = conv(x, params["w1"], params["b1"])
    h = conv(h, params["w2"], params["b2"])
    h = conv(h, params["w3"], params["b3"])
    h = h.reshape(h.shape[0], -1)
    return h @ params["wl"].T + params["bl"]


if __name__ == "__main__":
    key = jax.random.PRNGKey(0)
    k_x, k_p = jax.random.split(key)
    # Module implies 3x32x32 inputs (32 -> 16 -> 8 -> 4, 4*4*256 = 4096).
    x = jax.random.normal(k_x, (2, 3, 32, 32), dtype=jnp.float32)
    params = init_params(k_p)
    prep = prepare_params(params)     # one-time weight packing

    fwd = jax.jit(discriminator_forward)
    out = jax.block_until_ready(fwd(x, prep))

    ref = reference_forward(x, params)
    assert out.shape == (2, 1), out.shape
    # bf16 matmul operands (f32 accumulation) -> looser tolerance vs f32 ref.
    np.testing.assert_allclose(np.asarray(out), np.asarray(ref),
                               rtol=5e-2, atol=5e-2)
    print("KERNEL_OK")
</pallas_src>

<mosaic_0001>
module attributes {stable_mosaic.version = 11 : i64} {
  func.func @_disc_kernel(%arg0: i32, %arg1: memref<1x512x32xbf16, #tpu.memory_space<vmem>>, %arg2: memref<32x128xbf16, #tpu.memory_space<vmem>>, %arg3: memref<1x128xf32, #tpu.memory_space<vmem>>, %arg4: memref<1152x128xbf16, #tpu.memory_space<vmem>>, %arg5: memref<1x128xf32, #tpu.memory_space<vmem>>, %arg6: memref<1152x256xbf16, #tpu.memory_space<vmem>>, %arg7: memref<1x256xf32, #tpu.memory_space<vmem>>, %arg8: memref<32x256xf32, #tpu.memory_space<vmem>>, %arg9: memref<8x32xf32, #tpu.memory_space<vmem>>, %arg10: memref<1x1xf32, #tpu.memory_space<vmem>>, %arg11: memref<1x2x1xf32, #tpu.memory_space<vmem>>, %arg12: memref<32x2048xbf16, #tpu.memory_space<vmem>>, %arg13: memref<32x1152xbf16, #tpu.memory_space<vmem>>, %arg14: memref<32x512xbf16, #tpu.memory_space<vmem>>) attributes {dimension_semantics = [#tpu.dimension_semantics<parallel>], iteration_bounds = array<i64: 1>, scalar_prefetch = 0 : i64, scratch_operands = 3 : i64, tpu.core_type = #tpu.core_type<tc>, window_params = [{transform_indices = @transform_0, window_bounds = array<i64: 1, 512, 32>}, {pipeline_mode = #tpu.pipeline_mode<synchronous>, transform_indices = @transform_1, window_bounds = array<i64: 32, 128>}, {pipeline_mode = #tpu.pipeline_mode<synchronous>, transform_indices = @transform_2, window_bounds = array<i64: 1, 128>}, {pipeline_mode = #tpu.pipeline_mode<synchronous>, transform_indices = @transform_3, window_bounds = array<i64: 1152, 128>}, {pipeline_mode = #tpu.pipeline_mode<synchronous>, transform_indices = @transform_4, window_bounds = array<i64: 1, 128>}, {pipeline_mode = #tpu.pipeline_mode<synchronous>, transform_indices = @transform_5, window_bounds = array<i64: 1152, 256>}, {pipeline_mode = #tpu.pipeline_mode<synchronous>, transform_indices = @transform_6, window_bounds = array<i64: 1, 256>}, {pipeline_mode = #tpu.pipeline_mode<synchronous>, transform_indices = @transform_7, window_bounds = array<i64: 32, 256>}, {pipeline_mode = #tpu.pipeline_mode<synchronous>, transform_indices = @transform_8, window_bounds = array<i64: 8, 32>}, {pipeline_mode = #tpu.pipeline_mode<synchronous>, transform_indices = @transform_9, window_bounds = array<i64: 1, 1>}, {transform_indices = @transform_10, window_bounds = array<i64: 1, 2, 1>}]} {
    %c0 = arith.constant 0 : index
    %c0_0 = arith.constant 0 : index
    %c0_1 = arith.constant 0 : index
    %0 = vector.load %arg1[%c0, %c0_0, %c0_1] : memref<1x512x32xbf16, #tpu.memory_space<vmem>>, vector<1x32x32xbf16>
    %1 = vector.shape_cast %0 : vector<1x32x32xbf16> to vector<32x32xbf16>
    %c0_2 = arith.constant 0 : index
    %c0_3 = arith.constant 0 : index
    %2 = vector.load %arg2[%c0_2, %c0_3] : memref<32x128xbf16, #tpu.memory_space<vmem>>, vector<32x128xbf16>
    %cst = arith.constant dense<0.000000e+00> : vector<32x128xf32>
    %3 = tpu.matmul %1, %2, %cst {dimension_numbers = #tpu.dot_dimension_numbers<[1], [0], [0], [1], [0, 0, 1, 1], [], []>} : vector<32x32xbf16>, vector<32x128xbf16>, vector<32x128xf32> -> vector<32x128xf32>
    %c0_4 = arith.constant 0 : index
    %c0_5 = arith.constant 0 : index
    %4 = vector.load %arg3[%c0_4, %c0_5] : memref<1x128xf32, #tpu.memory_space<vmem>>, vector<1x128xf32>
    %5 = vector.broadcast %4 : vector<1x128xf32> to vector<32x128xf32>
    %6 = arith.addf %3, %5 : vector<32x128xf32>
    %cst_6 = arith.constant 0.000000e+00 : f32
    %7 = vector.broadcast %cst_6 : f32 to vector<32x128xf32>
    %8 = arith.cmpf oge, %6, %7 : vector<32x128xf32>
    %cst_7 = arith.constant 0.00999999977 : f32
    %9 = vector.broadcast %cst_7 : f32 to vector<32x128xf32>
    %10 = arith.mulf %9, %6 : vector<32x128xf32>
    %11 = arith.select %8, %6, %10 : vector<32x128xi1>, vector<32x128xf32>
    %12 = arith.truncf %11 : vector<32x128xf32> to vector<32x128xbf16>
    %c0_8 = arith.constant 0 : index
    %c0_9 = arith.constant 0 : index
    %13 = vector.load %arg12[%c0_8, %c0_9] : memref<32x2048xbf16, #tpu.memory_space<vmem>>, vector<32x128xbf16>
    tpu.vector_store %arg12[%c0_8, %c0_9], %12 {strides = array<i32>} : memref<32x2048xbf16, #tpu.memory_space<vmem>>, vector<32x128xbf16>,
    %c0_10 = arith.constant 0 : index
    %c32 = arith.constant 32 : index
    %c0_11 = arith.constant 0 : index
    %14 = vector.load %arg1[%c0_10, %c32, %c0_11] : memref<1x512x32xbf16, #tpu.memory_space<vmem>>, vector<1x32x32xbf16>
    %15 = vector.shape_cast %14 : vector<1x32x32xbf16> to vector<32x32xbf16>
    %c0_12 = arith.constant 0 : index
    %c0_13 = arith.constant 0 : index
    %16 = vector.load %arg2[%c0_12, %c0_13] : memref<32x128xbf16, #tpu.memory_space<vmem>>, vector<32x128xbf16>
    %cst_14 = arith.constant dense<0.000000e+00> : vector<32x128xf32>
    %17 = tpu.matmul %15, %16, %cst_14 {dimension_numbers = #tpu.dot_dimension_numbers<[1], [0], [0], [1], [0, 0, 1, 1], [], []>} : vector<32x32xbf16>, vector<32x128xbf16>, vector<32x128xf32> -> vector<32x128xf32>
    %c0_15 = arith.constant 0 : index
    %c0_16 = arith.constant 0 : index
    %18 = vector.load %arg3[%c0_15, %c0_16] : memref<1x128xf32, #tpu.memory_space<vmem>>, vector<1x128xf32>
    %19 = vector.broadcast %18 : vector<1x128xf32> to vector<32x128xf32>
    %20 = arith.addf %17, %19 : vector<32x128xf32>
    %cst_17 = arith.constant 0.000000e+00 : f32
    %21 = vector.broadcast %cst_17 : f32 to vector<32x128xf32>
    %22 = arith.cmpf oge, %20, %21 : vector<32x128xf32>
    %cst_18 = arith.constant 0.00999999977 : f32
    %23 = vector.broadcast %cst_18 : f32 to vector<32x128xf32>
    %24 = arith.mulf %23, %20 : vector<32x128xf32>
    %25 = arith.select %22, %20, %24 : vector<32x128xi1>, vector<32x128xf32>
    %26 = arith.truncf %25 : vector<32x128xf32> to vector<32x128xbf16>
    %c0_19 = arith.constant 0 : index
    %c128 = arith.constant 128 : index
    %27 = vector.load %arg12[%c0_19, %c128] : memref<32x2048xbf16, #tpu.memory_space<vmem>>, vector<32x128xbf16>
    tpu.vector_store %arg12[%c0_19, %c128], %26 {strides = array<i32>} : memref<32x2048xbf16, #tpu.memory_space<vmem>>, vector<32x128xbf16>,
    %c0_20 = arith.constant 0 : index
    %c64 = arith.constant 64 : index
    %c0_21 = arith.constant 0 : index
    %28 = vector.load %arg1[%c0_20, %c64, %c0_21] : memref<1x512x32xbf16, #tpu.memory_space<vmem>>, vector<1x32x32xbf16>
    %29 = vector.shape_cast %28 : vector<1x32x32xbf16> to vector<32x32xbf16>
    %c0_22 = arith.constant 0 : index
    %c0_23 = arith.constant 0 : index
    %30 = vector.load %arg2[%c0_22, %c0_23] : memref<32x128xbf16, #tpu.memory_space<vmem>>, vector<32x128xbf16>
    %cst_24 = arith.constant dense<0.000000e+00> : vector<32x128xf32>
    %31 = tpu.matmul %29, %30, %cst_24 {dimension_numbers = #tpu.dot_dimension_numbers<[1], [0], [0], [1], [0, 0, 1, 1], [], []>} : vector<32x32xbf16>, vector<32x128xbf16>, vector<32x128xf32> -> vector<32x128xf32>
    %c0_25 = arith.constant 0 : index
    %c0_26 = arith.constant 0 : index
    %32 = vector.load %arg3[%c0_25, %c0_26] : memref<1x128xf32, #tpu.memory_space<vmem>>, vector<1x128xf32>
    %33 = vector.broadcast %32 : vector<1x128xf32> to vector<32x128xf32>
    %34 = arith.addf %31, %33 : vector<32x128xf32>
    %cst_27 = arith.constant 0.000000e+00 : f32
    %35 = vector.broadcast %cst_27 : f32 to vector<32x128xf32>
    %36 = arith.cmpf oge, %34, %35 : vector<32x128xf32>
    %cst_28 = arith.constant 0.00999999977 : f32
    %37 = vector.broadcast %cst_28 : f32 to vector<32x128xf32>
    %38 = arith.mulf %37, %34 : vector<32x128xf32>
    %39 = arith.select %36, %34, %38 : vector<32x128xi1>, vector<32x128xf32>
    %40 = arith.truncf %39 : vector<32x128xf32> to vector<32x128xbf16>
    %c0_29 = arith.constant 0 : index
    %c256 = arith.constant 256 : index
    %41 = vector.load %arg12[%c0_29, %c256] : memref<32x2048xbf16, #tpu.memory_space<vmem>>, vector<32x128xbf16>
    tpu.vector_store %arg12[%c0_29, %c256], %40 {strides = array<i32>} : memref<32x2048xbf16, #tpu.memory_space<vmem>>, vector<32x128xbf16>,
    %c0_30 = arith.constant 0 : index
    %c96 = arith.constant 96 : index
    %c0_31 = arith.constant 0 : index
    %42 = vector.load %arg1[%c0_30, %c96, %c0_31] : memref<1x512x32xbf16, #tpu.memory_space<vmem>>, vector<1x32x32xbf16>
    %43 = vector.shape_cast %42 : vector<1x32x32xbf16> to vector<32x32xbf16>
    %c0_32 = arith.constant 0 : index
    %c0_33 = arith.constant 0 : index
    %44 = vector.load %arg2[%c0_32, %c0_33] : memref<32x128xbf16, #tpu.memory_space<vmem>>, vector<32x128xbf16>
    %cst_34 = arith.constant dense<0.000000e+00> : vector<32x128xf32>
    %45 = tpu.matmul %43, %44, %cst_34 {dimension_numbers = #tpu.dot_dimension_numbers<[1], [0], [0], [1], [0, 0, 1, 1], [], []>} : vector<32x32xbf16>, vector<32x128xbf16>, vector<32x128xf32> -> vector<32x128xf32>
    %c0_35 = arith.constant 0 : index
    %c0_36 = arith.constant 0 : index
    %46 = vector.load %arg3[%c0_35, %c0_36] : memref<1x128xf32, #tpu.memory_space<vmem>>, vector<1x128xf32>
    %47 = vector.broadcast %46 : vector<1x128xf32> to vector<32x128xf32>
    %48 = arith.addf %45, %47 : vector<32x128xf32>
    %cst_37 = arith.constant 0.000000e+00 : f32
    %49 = vector.broadcast %cst_37 : f32 to vector<32x128xf32>
    %50 = arith.cmpf oge, %48, %49 : vector<32x128xf32>
    %cst_38 = arith.constant 0.00999999977 : f32
    %51 = vector.broadcast %cst_38 : f32 to vector<32x128xf32>
    %52 = arith.mulf %51, %48 : vector<32x128xf32>
    %53 = arith.select %50, %48, %52 : vector<32x128xi1>, vector<32x128xf32>
    %54 = arith.truncf %53 : vector<32x128xf32> to vector<32x128xbf16>
    %c0_39 = arith.constant 0 : index
    %c384 = arith.constant 384 : index
    %55 = vector.load %arg12[%c0_39, %c384] : memref<32x2048xbf16, #tpu.memory_space<vmem>>, vector<32x128xbf16>
    tpu.vector_store %arg12[%c0_39, %c384], %54 {strides = array<i32>} : memref<32x2048xbf16, #tpu.memory_space<vmem>>, vector<32x128xbf16>,
    %c0_40 = arith.constant 0 : index
    %c128_41 = arith.constant 128 : index
    %c0_42 = arith.constant 0 : index
    %56 = vector.load %arg1[%c0_40, %c128_41, %c0_42] : memref<1x512x32xbf16, #tpu.memory_space<vmem>>, vector<1x32x32xbf16>
    %57 = vector.shape_cast %56 : vector<1x32x32xbf16> to vector<32x32xbf16>
    %c0_43 = arith.constant 0 : index
    %c0_44 = arith.constant 0 : index
    %58 = vector.load %arg2[%c0_43, %c0_44] : memref<32x128xbf16, #tpu.memory_space<vmem>>, vector<32x128xbf16>
    %cst_45 = arith.constant dense<0.000000e+00> : vector<32x128xf32>
    %59 = tpu.matmul %57, %58, %cst_45 {dimension_numbers = #tpu.dot_dimension_numbers<[1], [0], [0], [1], [0, 0, 1, 1], [], []>} : vector<32x32xbf16>, vector<32x128xbf16>, vector<32x128xf32> -> vector<32x128xf32>
    %c0_46 = arith.constant 0 : index
    %c0_47 = arith.constant 0 : index
    %60 = vector.load %arg3[%c0_46, %c0_47] : memref<1x128xf32, #tpu.memory_space<vmem>>, vector<1x128xf32>
    %61 = vector.broadcast %60 : vector<1x128xf32> to vector<32x128xf32>
    %62 = arith.addf %59, %61 : vector<32x128xf32>
    %cst_48 = arith.constant 0.000000e+00 : f32
    %63 = vector.broadcast %cst_48 : f32 to vector<32x128xf32>
    %64 = arith.cmpf oge, %62, %63 : vector<32x128xf32>
    %cst_49 = arith.constant 0.00999999977 : f32
    %65 = vector.broadcast %cst_49 : f32 to vector<32x128xf32>
    %66 = arith.mulf %65, %62 : vector<32x128xf32>
    %67 = arith.select %64, %62, %66 : vector<32x128xi1>, vector<32x128xf32>
    %68 = arith.truncf %67 : vector<32x128xf32> to vector<32x128xbf16>
    %c0_50 = arith.constant 0 : index
    %c512 = arith.constant 512 : index
    %69 = vector.load %arg12[%c0_50, %c512] : memref<32x2048xbf16, #tpu.memory_space<vmem>>, vector<32x128xbf16>
    tpu.vector_store %arg12[%c0_50, %c512], %68 {strides = array<i32>} : memref<32x2048xbf16, #tpu.memory_space<vmem>>, vector<32x128xbf16>,
    %c0_51 = arith.constant 0 : index
    %c160 = arith.constant 160 : index
    %c0_52 = arith.constant 0 : index
    %70 = vector.load %arg1[%c0_51, %c160, %c0_52] : memref<1x512x32xbf16, #tpu.memory_space<vmem>>, vector<1x32x32xbf16>
    %71 = vector.shape_cast %70 : vector<1x32x32xbf16> to vector<32x32xbf16>
    %c0_53 = arith.constant 0 : index
    %c0_54 = arith.constant 0 : index
    %72 = vector.load %arg2[%c0_53, %c0_54] : memref<32x128xbf16, #tpu.memory_space<vmem>>, vector<32x128xbf16>
    %cst_55 = arith.constant dense<0.000000e+00> : vector<32x128xf32>
    %73 = tpu.matmul %71, %72, %cst_55 {dimension_numbers = #tpu.dot_dimension_numbers<[1], [0], [0], [1], [0, 0, 1, 1], [], []>} : vector<32x32xbf16>, vector<32x128xbf16>, vector<32x128xf32> -> vector<32x128xf32>
    %c0_56 = arith.constant 0 : index
    %c0_57 = arith.constant 0 : index
    %74 = vector.load %arg3[%c0_56, %c0_57] : memref<1x128xf32, #tpu.memory_space<vmem>>, vector<1x128xf32>
    %75 = vector.broadcast %74 : vector<1x128xf32> to vector<32x128xf32>
    %76 = arith.addf %73, %75 : vector<32x128xf32>
    %cst_58 = arith.constant 0.000000e+00 : f32
    %77 = vector.broadcast %cst_58 : f32 to vector<32x128xf32>
    %78 = arith.cmpf oge, %76, %77 : vector<32x128xf32>
    %cst_59 = arith.constant 0.00999999977 : f32
    %79 = vector.broadcast %cst_59 : f32 to vector<32x128xf32>
    %80 = arith.mulf %79, %76 : vector<32x128xf32>
    %81 = arith.select %78, %76, %80 : vector<32x128xi1>, vector<32x128xf32>
    %82 = arith.truncf %81 : vector<32x128xf32> to vector<32x128xbf16>
    %c0_60 = arith.constant 0 : index
    %c640 = arith.constant 640 : index
    %83 = vector.load %arg12[%c0_60, %c640] : memref<32x2048xbf16, #tpu.memory_space<vmem>>, vector<32x128xbf16>
    tpu.vector_store %arg12[%c0_60, %c640], %82 {strides = array<i32>} : memref<32x2048xbf16, #tpu.memory_space<vmem>>, vector<32x128xbf16>,
    %c0_61 = arith.constant 0 : index
    %c192 = arith.constant 192 : index
    %c0_62 = arith.constant 0 : index
    %84 = vector.load %arg1[%c0_61, %c192, %c0_62] : memref<1x512x32xbf16, #tpu.memory_space<vmem>>, vector<1x32x32xbf16>
    %85 = vector.shape_cast %84 : vector<1x32x32xbf16> to vector<32x32xbf16>
    %c0_63 = arith.constant 0 : index
    %c0_64 = arith.constant 0 : index
    %86 = vector.load %arg2[%c0_63, %c0_64] : memref<32x128xbf16, #tpu.memory_space<vmem>>, vector<32x128xbf16>
    %cst_65 = arith.constant dense<0.000000e+00> : vector<32x128xf32>
    %87 = tpu.matmul %85, %86, %cst_65 {dimension_numbers = #tpu.dot_dimension_numbers<[1], [0], [0], [1], [0, 0, 1, 1], [], []>} : vector<32x32xbf16>, vector<32x128xbf16>, vector<32x128xf32> -> vector<32x128xf32>
    %c0_66 = arith.constant 0 : index
    %c0_67 = arith.constant 0 : index
    %88 = vector.load %arg3[%c0_66, %c0_67] : memref<1x128xf32, #tpu.memory_space<vmem>>, vector<1x128xf32>
    %89 = vector.broadcast %88 : vector<1x128xf32> to vector<32x128xf32>
    %90 = arith.addf %87, %89 : vector<32x128xf32>
    %cst_68 = arith.constant 0.000000e+00 : f32
    %91 = vector.broadcast %cst_68 : f32 to vector<32x128xf32>
    %92 = arith.cmpf oge, %90, %91 : vector<32x128xf32>
    %cst_69 = arith.constant 0.00999999977 : f32
    %93 = vector.broadcast %cst_69 : f32 to vector<32x128xf32>
    %94 = arith.mulf %93, %90 : vector<32x128xf32>
    %95 = arith.select %92, %90, %94 : vector<32x128xi1>, vector<32x128xf32>
    %96 = arith.truncf %95 : vector<32x128xf32> to vector<32x128xbf16>
    %c0_70 = arith.constant 0 : index
    %c768 = arith.constant 768 : index
    %97 = vector.load %arg12[%c0_70, %c768] : memref<32x2048xbf16, #tpu.memory_space<vmem>>, vector<32x128xbf16>
    tpu.vector_store %arg12[%c0_70, %c768], %96 {strides = array<i32>} : memref<32x2048xbf16, #tpu.memory_space<vmem>>, vector<32x128xbf16>,
    %c0_71 = arith.constant 0 : index
    %c224 = arith.constant 224 : index
    %c0_72 = arith.constant 0 : index
    %98 = vector.load %arg1[%c0_71, %c224, %c0_72] : memref<1x512x32xbf16, #tpu.memory_space<vmem>>, vector<1x32x32xbf16>
    %99 = vector.shape_cast %98 : vector<1x32x32xbf16> to vector<32x32xbf16>
    %c0_73 = arith.constant 0 : index
    %c0_74 = arith.constant 0 : index
    %100 = vector.load %arg2[%c0_73, %c0_74] : memref<32x128xbf16, #tpu.memory_space<vmem>>, vector<32x128xbf16>
    %cst_75 = arith.constant dense<0.000000e+00> : vector<32x128xf32>
    %101 = tpu.matmul %99, %100, %cst_75 {dimension_numbers = #tpu.dot_dimension_numbers<[1], [0], [0], [1], [0, 0, 1, 1], [], []>} : vector<32x32xbf16>, vector<32x128xbf16>, vector<32x128xf32> -> vector<32x128xf32>
    %c0_76 = arith.constant 0 : index
    %c0_77 = arith.constant 0 : index
    %102 = vector.load %arg3[%c0_76, %c0_77] : memref<1x128xf32, #tpu.memory_space<vmem>>, vector<1x128xf32>
    %103 = vector.broadcast %102 : vector<1x128xf32> to vector<32x128xf32>
    %104 = arith.addf %101, %103 : vector<32x128xf32>
    %cst_78 = arith.constant 0.000000e+00 : f32
    %105 = vector.broadcast %cst_78 : f32 to vector<32x128xf32>
    %106 = arith.cmpf oge, %104, %105 : vector<32x128xf32>
    %cst_79 = arith.constant 0.00999999977 : f32
    %107 = vector.broadcast %cst_79 : f32 to vector<32x128xf32>
    %108 = arith.mulf %107, %104 : vector<32x128xf32>
    %109 = arith.select %106, %104, %108 : vector<32x128xi1>, vector<32x128xf32>
    %110 = arith.truncf %109 : vector<32x128xf32> to vector<32x128xbf16>
    %c0_80 = arith.constant 0 : index
    %c896 = arith.constant 896 : index
    %111 = vector.load %arg12[%c0_80, %c896] : memref<32x2048xbf16, #tpu.memory_space<vmem>>, vector<32x128xbf16>
    tpu.vector_store %arg12[%c0_80, %c896], %110 {strides = array<i32>} : memref<32x2048xbf16, #tpu.memory_space<vmem>>, vector<32x128xbf16>,
    %c0_81 = arith.constant 0 : index
    %c256_82 = arith.constant 256 : index
    %c0_83 = arith.constant 0 : index
    %112 = vector.load %arg1[%c0_81, %c256_82, %c0_83] : memref<1x512x32xbf16, #tpu.memory_space<vmem>>, vector<1x32x32xbf16>
    %113 = vector.shape_cast %112 : vector<1x32x32xbf16> to vector<32x32xbf16>
    %c0_84 = arith.constant 0 : index
    %c0_85 = arith.constant 0 : index
    %114 = vector.load %arg2[%c0_84, %c0_85] : memref<32x128xbf16, #tpu.memory_space<vmem>>, vector<32x128xbf16>
    %cst_86 = arith.constant dense<0.000000e+00> : vector<32x128xf32>
    %115 = tpu.matmul %113, %114, %cst_86 {dimension_numbers = #tpu.dot_dimension_numbers<[1], [0], [0], [1], [0, 0, 1, 1], [], []>} : vector<32x32xbf16>, vector<32x128xbf16>, vector<32x128xf32> -> vector<32x128xf32>
    %c0_87 = arith.constant 0 : index
    %c0_88 = arith.constant 0 : index
    %116 = vector.load %arg3[%c0_87, %c0_88] : memref<1x128xf32, #tpu.memory_space<vmem>>, vector<1x128xf32>
    %117 = vector.broadcast %116 : vector<1x128xf32> to vector<32x128xf32>
    %118 = arith.addf %115, %117 : vector<32x128xf32>
    %cst_89 = arith.constant 0.000000e+00 : f32
    %119 = vector.broadcast %cst_89 : f32 to vector<32x128xf32>
    %120 = arith.cmpf oge, %118, %119 : vector<32x128xf32>
    %cst_90 = arith.constant 0.00999999977 : f32
    %121 = vector.broadcast %cst_90 : f32 to vector<32x128xf32>
    %122 = arith.mulf %121, %118 : vector<32x128xf32>
    %123 = arith.select %120, %118, %122 : vector<32x128xi1>, vector<32x128xf32>
    %124 = arith.truncf %123 : vector<32x128xf32> to vector<32x128xbf16>
    %c0_91 = arith.constant 0 : index
    %c1024 = arith.constant 1024 : index
    %125 = vector.load %arg12[%c0_91, %c1024] : memref<32x2048xbf16, #tpu.memory_space<vmem>>, vector<32x128xbf16>
    tpu.vector_store %arg12[%c0_91, %c1024], %124 {strides = array<i32>} : memref<32x2048xbf16, #tpu.memory_space<vmem>>, vector<32x128xbf16>,
    %c0_92 = arith.constant 0 : index
    %c288 = arith.constant 288 : index
    %c0_93 = arith.constant 0 : index
    %126 = vector.load %arg1[%c0_92, %c288, %c0_93] : memref<1x512x32xbf16, #tpu.memory_space<vmem>>, vector<1x32x32xbf16>
    %127 = vector.shape_cast %126 : vector<1x32x32xbf16> to vector<32x32xbf16>
    %c0_94 = arith.constant 0 : index
    %c0_95 = arith.constant 0 : index
    %128 = vector.load %arg2[%c0_94, %c0_95] : memref<32x128xbf16, #tpu.memory_space<vmem>>, vector<32x128xbf16>
    %cst_96 = arith.constant dense<0.000000e+00> : vector<32x128xf32>
    %129 = tpu.matmul %127, %128, %cst_96 {dimension_numbers = #tpu.dot_dimension_numbers<[1], [0], [0], [1], [0, 0, 1, 1], [], []>} : vector<32x32xbf16>, vector<32x128xbf16>, vector<32x128xf32> -> vector<32x128xf32>
    %c0_97 = arith.constant 0 : index
    %c0_98 = arith.constant 0 : index
    %130 = vector.load %arg3[%c0_97, %c0_98] : memref<1x128xf32, #tpu.memory_space<vmem>>, vector<1x128xf32>
    %131 = vector.broadcast %130 : vector<1x128xf32> to vector<32x128xf32>
    %132 = arith.addf %129, %131 : vector<32x128xf32>
    %cst_99 = arith.constant 0.000000e+00 : f32
    %133 = vector.broadcast %cst_99 : f32 to vector<32x128xf32>
    %134 = arith.cmpf oge, %132, %133 : vector<32x128xf32>
    %cst_100 = arith.constant 0.00999999977 : f32
    %135 = vector.broadcast %cst_100 : f32 to vector<32x128xf32>
    %136 = arith.mulf %135, %132 : vector<32x128xf32>
    %137 = arith.select %134, %132, %136 : vector<32x128xi1>, vector<32x128xf32>
    %138 = arith.truncf %137 : vector<32x128xf32> to vector<32x128xbf16>
    %c0_101 = arith.constant 0 : index
    %c1152 = arith.constant 1152 : index
    %139 = vector.load %arg12[%c0_101, %c1152] : memref<32x2048xbf16, #tpu.memory_space<vmem>>, vector<32x128xbf16>
    tpu.vector_store %arg12[%c0_101, %c1152], %138 {strides = array<i32>} : memref<32x2048xbf16, #tpu.memory_space<vmem>>, vector<32x128xbf16>,
    %c0_102 = arith.constant 0 : index
    %c320 = arith.constant 320 : index
    %c0_103 = arith.constant 0 : index
    %140 = vector.load %arg1[%c0_102, %c320, %c0_103] : memref<1x512x32xbf16, #tpu.memory_space<vmem>>, vector<1x32x32xbf16>
    %141 = vector.shape_cast %140 : vector<1x32x32xbf16> to vector<32x32xbf16>
    %c0_104 = arith.constant 0 : index
    %c0_105 = arith.constant 0 : index
    %142 = vector.load %arg2[%c0_104, %c0_105] : memref<32x128xbf16, #tpu.memory_space<vmem>>, vector<32x128xbf16>
    %cst_106 = arith.constant dense<0.000000e+00> : vector<32x128xf32>
    %143 = tpu.matmul %141, %142, %cst_106 {dimension_numbers = #tpu.dot_dimension_numbers<[1], [0], [0], [1], [0, 0, 1, 1], [], []>} : vector<32x32xbf16>, vector<32x128xbf16>, vector<32x128xf32> -> vector<32x128xf32>
    %c0_107 = arith.constant 0 : index
    %c0_108 = arith.constant 0 : index
    %144 = vector.load %arg3[%c0_107, %c0_108] : memref<1x128xf32, #tpu.memory_space<vmem>>, vector<1x128xf32>
    %145 = vector.broadcast %144 : vector<1x128xf32> to vector<32x128xf32>
    %146 = arith.addf %143, %145 : vector<32x128xf32>
    %cst_109 = arith.constant 0.000000e+00 : f32
    %147 = vector.broadcast %cst_109 : f32 to vector<32x128xf32>
    %148 = arith.cmpf oge, %146, %147 : vector<32x128xf32>
    %cst_110 = arith.constant 0.00999999977 : f32
    %149 = vector.broadcast %cst_110 : f32 to vector<32x128xf32>
    %150 = arith.mulf %149, %146 : vector<32x128xf32>
    %151 = arith.select %148, %146, %150 : vector<32x128xi1>, vector<32x128xf32>
    %152 = arith.truncf %151 : vector<32x128xf32> to vector<32x128xbf16>
    %c0_111 = arith.constant 0 : index
    %c1280 = arith.constant 1280 : index
    %153 = vector.load %arg12[%c0_111, %c1280] : memref<32x2048xbf16, #tpu.memory_space<vmem>>, vector<32x128xbf16>
    tpu.vector_store %arg12[%c0_111, %c1280], %152 {strides = array<i32>} : memref<32x2048xbf16, #tpu.memory_space<vmem>>, vector<32x128xbf16>,
    %c0_112 = arith.constant 0 : index
    %c352 = arith.constant 352 : index
    %c0_113 = arith.constant 0 : index
    %154 = vector.load %arg1[%c0_112, %c352, %c0_113] : memref<1x512x32xbf16, #tpu.memory_space<vmem>>, vector<1x32x32xbf16>
    %155 = vector.shape_cast %154 : vector<1x32x32xbf16> to vector<32x32xbf16>
    %c0_114 = arith.constant 0 : index
    %c0_115 = arith.constant 0 : index
    %156 = vector.load %arg2[%c0_114, %c0_115] : memref<32x128xbf16, #tpu.memory_space<vmem>>, vector<32x128xbf16>
    %cst_116 = arith.constant dense<0.000000e+00> : vector<32x128xf32>
    %157 = tpu.matmul %155, %156, %cst_116 {dimension_numbers = #tpu.dot_dimension_numbers<[1], [0], [0], [1], [0, 0, 1, 1], [], []>} : vector<32x32xbf16>, vector<32x128xbf16>, vector<32x128xf32> -> vector<32x128xf32>
    %c0_117 = arith.constant 0 : index
    %c0_118 = arith.constant 0 : index
    %158 = vector.load %arg3[%c0_117, %c0_118] : memref<1x128xf32, #tpu.memory_space<vmem>>, vector<1x128xf32>
    %159 = vector.broadcast %158 : vector<1x128xf32> to vector<32x128xf32>
    %160 = arith.addf %157, %159 : vector<32x128xf32>
    %cst_119 = arith.constant 0.000000e+00 : f32
    %161 = vector.broadcast %cst_119 : f32 to vector<32x128xf32>
    %162 = arith.cmpf oge, %160, %161 : vector<32x128xf32>
    %cst_120 = arith.constant 0.00999999977 : f32
    %163 = vector.broadcast %cst_120 : f32 to vector<32x128xf32>
    %164 = arith.mulf %163, %160 : vector<32x128xf32>
    %165 = arith.select %162, %160, %164 : vector<32x128xi1>, vector<32x128xf32>
    %166 = arith.truncf %165 : vector<32x128xf32> to vector<32x128xbf16>
    %c0_121 = arith.constant 0 : index
    %c1408 = arith.constant 1408 : index
    %167 = vector.load %arg12[%c0_121, %c1408] : memref<32x2048xbf16, #tpu.memory_space<vmem>>, vector<32x128xbf16>
    tpu.vector_store %arg12[%c0_121, %c1408], %166 {strides = array<i32>} : memref<32x2048xbf16, #tpu.memory_space<vmem>>, vector<32x128xbf16>,
    %c0_122 = arith.constant 0 : index
    %c384_123 = arith.constant 384 : index
    %c0_124 = arith.constant 0 : index
    %168 = vector.load %arg1[%c0_122, %c384_123, %c0_124] : memref<1x512x32xbf16, #tpu.memory_space<vmem>>, vector<1x32x32xbf16>
    %169 = vector.shape_cast %168 : vector<1x32x32xbf16> to vector<32x32xbf16>
    %c0_125 = arith.constant 0 : index
    %c0_126 = arith.constant 0 : index
    %170 = vector.load %arg2[%c0_125, %c0_126] : memref<32x128xbf16, #tpu.memory_space<vmem>>, vector<32x128xbf16>
    %cst_127 = arith.constant dense<0.000000e+00> : vector<32x128xf32>
    %171 = tpu.matmul %169, %170, %cst_127 {dimension_numbers = #tpu.dot_dimension_numbers<[1], [0], [0], [1], [0, 0, 1, 1], [], []>} : vector<32x32xbf16>, vector<32x128xbf16>, vector<32x128xf32> -> vector<32x128xf32>
    %c0_128 = arith.constant 0 : index
    %c0_129 = arith.constant 0 : index
    %172 = vector.load %arg3[%c0_128, %c0_129] : memref<1x128xf32, #tpu.memory_space<vmem>>, vector<1x128xf32>
    %173 = vector.broadcast %172 : vector<1x128xf32> to vector<32x128xf32>
    %174 = arith.addf %171, %173 : vector<32x128xf32>
    %cst_130 = arith.constant 0.000000e+00 : f32
    %175 = vector.broadcast %cst_130 : f32 to vector<32x128xf32>
    %176 = arith.cmpf oge, %174, %175 : vector<32x128xf32>
    %cst_131 = arith.constant 0.00999999977 : f32
    %177 = vector.broadcast %cst_131 : f32 to vector<32x128xf32>
    %178 = arith.mulf %177, %174 : vector<32x128xf32>
    %179 = arith.select %176, %174, %178 : vector<32x128xi1>, vector<32x128xf32>
    %180 = arith.truncf %179 : vector<32x128xf32> to vector<32x128xbf16>
    %c0_132 = arith.constant 0 : index
    %c1536 = arith.constant 1536 : index
    %181 = vector.load %arg12[%c0_132, %c1536] : memref<32x2048xbf16, #tpu.memory_space<vmem>>, vector<32x128xbf16>
    tpu.vector_store %arg12[%c0_132, %c1536], %180 {strides = array<i32>} : memref<32x2048xbf16, #tpu.memory_space<vmem>>, vector<32x128xbf16>,
    %c0_133 = arith.constant 0 : index
    %c416 = arith.constant 416 : index
    %c0_134 = arith.constant 0 : index
    %182 = vector.load %arg1[%c0_133, %c416, %c0_134] : memref<1x512x32xbf16, #tpu.memory_space<vmem>>, vector<1x32x32xbf16>
    %183 = vector.shape_cast %182 : vector<1x32x32xbf16> to vector<32x32xbf16>
    %c0_135 = arith.constant 0 : index
    %c0_136 = arith.constant 0 : index
    %184 = vector.load %arg2[%c0_135, %c0_136] : memref<32x128xbf16, #tpu.memory_space<vmem>>, vector<32x128xbf16>
    %cst_137 = arith.constant dense<0.000000e+00> : vector<32x128xf32>
    %185 = tpu.matmul %183, %184, %cst_137 {dimension_numbers = #tpu.dot_dimension_numbers<[1], [0], [0], [1], [0, 0, 1, 1], [], []>} : vector<32x32xbf16>, vector<32x128xbf16>, vector<32x128xf32> -> vector<32x128xf32>
    %c0_138 = arith.constant 0 : index
    %c0_139 = arith.constant 0 : index
    %186 = vector.load %arg3[%c0_138, %c0_139] : memref<1x128xf32, #tpu.memory_space<vmem>>, vector<1x128xf32>
    %187 = vector.broadcast %186 : vector<1x128xf32> to vector<32x128xf32>
    %188 = arith.addf %185, %187 : vector<32x128xf32>
    %cst_140 = arith.constant 0.000000e+00 : f32
    %189 = vector.broadcast %cst_140 : f32 to vector<32x128xf32>
    %190 = arith.cmpf oge, %188, %189 : vector<32x128xf32>
    %cst_141 = arith.constant 0.00999999977 : f32
    %191 = vector.broadcast %cst_141 : f32 to vector<32x128xf32>
    %192 = arith.mulf %191, %188 : vector<32x128xf32>
    %193 = arith.select %190, %188, %192 : vector<32x128xi1>, vector<32x128xf32>
    %194 = arith.truncf %193 : vector<32x128xf32> to vector<32x128xbf16>
    %c0_142 = arith.constant 0 : index
    %c1664 = arith.constant 1664 : index
    %195 = vector.load %arg12[%c0_142, %c1664] : memref<32x2048xbf16, #tpu.memory_space<vmem>>, vector<32x128xbf16>
    tpu.vector_store %arg12[%c0_142, %c1664], %194 {strides = array<i32>} : memref<32x2048xbf16, #tpu.memory_space<vmem>>, vector<32x128xbf16>,
    %c0_143 = arith.constant 0 : index
    %c448 = arith.constant 448 : index
    %c0_144 = arith.constant 0 : index
    %196 = vector.load %arg1[%c0_143, %c448, %c0_144] : memref<1x512x32xbf16, #tpu.memory_space<vmem>>, vector<1x32x32xbf16>
    %197 = vector.shape_cast %196 : vector<1x32x32xbf16> to vector<32x32xbf16>
    %c0_145 = arith.constant 0 : index
    %c0_146 = arith.constant 0 : index
    %198 = vector.load %arg2[%c0_145, %c0_146] : memref<32x128xbf16, #tpu.memory_space<vmem>>, vector<32x128xbf16>
    %cst_147 = arith.constant dense<0.000000e+00> : vector<32x128xf32>
    %199 = tpu.matmul %197, %198, %cst_147 {dimension_numbers = #tpu.dot_dimension_numbers<[1], [0], [0], [1], [0, 0, 1, 1], [], []>} : vector<32x32xbf16>, vector<32x128xbf16>, vector<32x128xf32> -> vector<32x128xf32>
    %c0_148 = arith.constant 0 : index
    %c0_149 = arith.constant 0 : index
    %200 = vector.load %arg3[%c0_148, %c0_149] : memref<1x128xf32, #tpu.memory_space<vmem>>, vector<1x128xf32>
    %201 = vector.broadcast %200 : vector<1x128xf32> to vector<32x128xf32>
    %202 = arith.addf %199, %201 : vector<32x128xf32>
    %cst_150 = arith.constant 0.000000e+00 : f32
    %203 = vector.broadcast %cst_150 : f32 to vector<32x128xf32>
    %204 = arith.cmpf oge, %202, %203 : vector<32x128xf32>
    %cst_151 = arith.constant 0.00999999977 : f32
    %205 = vector.broadcast %cst_151 : f32 to vector<32x128xf32>
    %206 = arith.mulf %205, %202 : vector<32x128xf32>
    %207 = arith.select %204, %202, %206 : vector<32x128xi1>, vector<32x128xf32>
    %208 = arith.truncf %207 : vector<32x128xf32> to vector<32x128xbf16>
    %c0_152 = arith.constant 0 : index
    %c1792 = arith.constant 1792 : index
    %209 = vector.load %arg12[%c0_152, %c1792] : memref<32x2048xbf16, #tpu.memory_space<vmem>>, vector<32x128xbf16>
    tpu.vector_store %arg12[%c0_152, %c1792], %208 {strides = array<i32>} : memref<32x2048xbf16, #tpu.memory_space<vmem>>, vector<32x128xbf16>,
    %c0_153 = arith.constant 0 : index
    %c480 = arith.constant 480 : index
    %c0_154 = arith.constant 0 : index
    %210 = vector.load %arg1[%c0_153, %c480, %c0_154] : memref<1x512x32xbf16, #tpu.memory_space<vmem>>, vector<1x32x32xbf16>
    %211 = vector.shape_cast %210 : vector<1x32x32xbf16> to vector<32x32xbf16>
    %c0_155 = arith.constant 0 : index
    %c0_156 = arith.constant 0 : index
    %212 = vector.load %arg2[%c0_155, %c0_156] : memref<32x128xbf16, #tpu.memory_space<vmem>>, vector<32x128xbf16>
    %cst_157 = arith.constant dense<0.000000e+00> : vector<32x128xf32>
    %213 = tpu.matmul %211, %212, %cst_157 {dimension_numbers = #tpu.dot_dimension_numbers<[1], [0], [0], [1], [0, 0, 1, 1], [], []>} : vector<32x32xbf16>, vector<32x128xbf16>, vector<32x128xf32> -> vector<32x128xf32>
    %c0_158 = arith.constant 0 : index
    %c0_159 = arith.constant 0 : index
    %214 = vector.load %arg3[%c0_158, %c0_159] : memref<1x128xf32, #tpu.memory_space<vmem>>, vector<1x128xf32>
    %215 = vector.broadcast %214 : vector<1x128xf32> to vector<32x128xf32>
    %216 = arith.addf %213, %215 : vector<32x128xf32>
    %cst_160 = arith.constant 0.000000e+00 : f32
    %217 = vector.broadcast %cst_160 : f32 to vector<32x128xf32>
    %218 = arith.cmpf oge, %216, %217 : vector<32x128xf32>
    %cst_161 = arith.constant 0.00999999977 : f32
    %219 = vector.broadcast %cst_161 : f32 to vector<32x128xf32>
    %220 = arith.mulf %219, %216 : vector<32x128xf32>
    %221 = arith.select %218, %216, %220 : vector<32x128xi1>, vector<32x128xf32>
    %222 = arith.truncf %221 : vector<32x128xf32> to vector<32x128xbf16>
    %c0_162 = arith.constant 0 : index
    %c1920 = arith.constant 1920 : index
    %223 = vector.load %arg12[%c0_162, %c1920] : memref<32x2048xbf16, #tpu.memory_space<vmem>>, vector<32x128xbf16>
    tpu.vector_store %arg12[%c0_162, %c1920], %222 {strides = array<i32>} : memref<32x2048xbf16, #tpu.memory_space<vmem>>, vector<32x128xbf16>,
    %cst_163 = arith.constant 0.000000e+00 : bf16
    %224 = vector.broadcast %cst_163 : bf16 to vector<8x128xbf16>
    %cst_164 = arith.constant 0.000000e+00 : bf16
    %225 = vector.broadcast %cst_164 : bf16 to vector<2x128xbf16>
    %c0_165 = arith.constant 0 : index
    %c0_166 = arith.constant 0 : index
    %226 = vector.load %arg13[%c0_165, %c0_166] : memref<32x1152xbf16, #tpu.memory_space<vmem>>, vector<8x128xbf16>
    tpu.vector_store %arg13[%c0_165, %c0_166], %224 {strides = array<i32>} : memref<32x1152xbf16, #tpu.memory_space<vmem>>, vector<8x128xbf16>,
    %c8 = arith.constant 8 : index
    %c0_167 = arith.constant 0 : index
    %227 = vector.load %arg13[%c8, %c0_167] : memref<32x1152xbf16, #tpu.memory_space<vmem>>, vector<2x128xbf16>
    tpu.vector_store %arg13[%c8, %c0_167], %225 {strides = array<i32>} : memref<32x1152xbf16, #tpu.memory_space<vmem>>, vector<2x128xbf16>,
    %c0_168 = arith.constant 0 : index
    %c1920_169 = arith.constant 1920 : index
    %228 = vector.load %arg12[%c0_168, %c1920_169] : memref<32x2048xbf16, #tpu.memory_space<vmem>>, vector<6x128xbf16>
    %c10 = arith.constant 10 : index
    %c0_170 = arith.constant 0 : index
    %229 = vector.load %arg13[%c10, %c0_170] : memref<32x1152xbf16, #tpu.memory_space<vmem>>, vector<6x128xbf16>
    tpu.vector_store %arg13[%c10, %c0_170], %228 {strides = array<i32>} : memref<32x1152xbf16, #tpu.memory_space<vmem>>, vector<6x128xbf16>,
    %c16 = arith.constant 16 : index
    %c0_171 = arith.constant 0 : index
    %230 = vector.load %arg13[%c16, %c0_171] : memref<32x1152xbf16, #tpu.memory_space<vmem>>, vector<2x128xbf16>
    tpu.vector_store %arg13[%c16, %c0_171], %225 {strides = array<i32>} : memref<32x1152xbf16, #tpu.memory_space<vmem>>, vector<2x128xbf16>,
    %c8_172 = arith.constant 8 : index
    %c1920_173 = arith.constant 1920 : index
    %231 = vector.load %arg12[%c8_172, %c1920_173] : memref<32x2048xbf16, #tpu.memory_space<vmem>>, vector<6x128xbf16>
    %c18 = arith.constant 18 : index
    %c0_174 = arith.constant 0 : index
    %232 = vector.load %arg13[%c18, %c0_174] : memref<32x1152xbf16, #tpu.memory_space<vmem>>, vector<6x128xbf16>
    tpu.vector_store %arg13[%c18, %c0_174], %231 {strides = array<i32>} : memref<32x1152xbf16, #tpu.memory_space<vmem>>, vector<6x128xbf16>,
    %c24 = arith.constant 24 : index
    %c0_175 = arith.constant 0 : index
    %233 = vector.load %arg13[%c24, %c0_175] : memref<32x1152xbf16, #tpu.memory_space<vmem>>, vector<2x128xbf16>
    tpu.vector_store %arg13[%c24, %c0_175], %225 {strides = array<i32>} : memref<32x1152xbf16, #tpu.memory_space<vmem>>, vector<2x128xbf16>,
    %c16_176 = arith.constant 16 : index
    %c1920_177 = arith.constant 1920 : index
    %234 = vector.load %arg12[%c16_176, %c1920_177] : memref<32x2048xbf16, #tpu.memory_space<vmem>>, vector<6x128xbf16>
    %c26 = arith.constant 26 : index
    %c0_178 = arith.constant 0 : index
    %235 = vector.load %arg13[%c26, %c0_178] : memref<32x1152xbf16, #tpu.memory_space<vmem>>, vector<6x128xbf16>
    tpu.vector_store %arg13[%c26, %c0_178], %234 {strides = array<i32>} : memref<32x1152xbf16, #tpu.memory_space<vmem>>, vector<6x128xbf16>,
    %cst_179 = arith.constant 0.000000e+00 : bf16
    %236 = vector.broadcast %cst_179 : bf16 to vector<8x128xbf16>
    %c0_180 = arith.constant 0 : index
    %c128_181 = arith.constant 128 : index
    %237 = vector.load %arg13[%c0_180, %c128_181] : memref<32x1152xbf16, #tpu.memory_space<vmem>>, vector<8x128xbf16>
    tpu.vector_store %arg13[%c0_180, %c128_181], %236 {strides = array<i32>} : memref<32x1152xbf16, #tpu.memory_space<vmem>>, vector<8x128xbf16>,
    %c0_182 = arith.constant 0 : index
    %c1536_183 = arith.constant 1536 : index
    %238 = vector.load %arg12[%c0_182, %c1536_183] : memref<32x2048xbf16, #tpu.memory_space<vmem>>, vector<24x128xbf16>
    %c8_184 = arith.constant 8 : index
    %c128_185 = arith.constant 128 : index
    %239 = vector.load %arg13[%c8_184, %c128_185] : memref<32x1152xbf16, #tpu.memory_space<vmem>>, vector<24x128xbf16>
    tpu.vector_store %arg13[%c8_184, %c128_185], %238 {strides = array<i32>} : memref<32x1152xbf16, #tpu.memory_space<vmem>>, vector<24x128xbf16>,
    %cst_186 = arith.constant 0.000000e+00 : bf16
    %240 = vector.broadcast %cst_186 : bf16 to vector<8x128xbf16>
    %c0_187 = arith.constant 0 : index
    %c256_188 = arith.constant 256 : index
    %241 = vector.load %arg13[%c0_187, %c256_188] : memref<32x1152xbf16, #tpu.memory_space<vmem>>, vector<8x128xbf16>
    tpu.vector_store %arg13[%c0_187, %c256_188], %240 {strides = array<i32>} : memref<32x1152xbf16, #tpu.memory_space<vmem>>, vector<8x128xbf16>,
    %c0_189 = arith.constant 0 : index
    %c1664_190 = arith.constant 1664 : index
    %242 = vector.load %arg12[%c0_189, %c1664_190] : memref<32x2048xbf16, #tpu.memory_space<vmem>>, vector<24x128xbf16>
    %c8_191 = arith.constant 8 : index
    %c256_192 = arith.constant 256 : index
    %243 = vector.load %arg13[%c8_191, %c256_192] : memref<32x1152xbf16, #tpu.memory_space<vmem>>, vector<24x128xbf16>
    tpu.vector_store %arg13[%c8_191, %c256_192], %242 {strides = array<i32>} : memref<32x1152xbf16, #tpu.memory_space<vmem>>, vector<24x128xbf16>,
    %cst_193 = arith.constant 0.000000e+00 : bf16
    %244 = vector.broadcast %cst_193 : bf16 to vector<2x128xbf16>
    %c0_194 = arith.constant 0 : index
    %c384_195 = arith.constant 384 : index
    %245 = vector.load %arg13[%c0_194, %c384_195] : memref<32x1152xbf16, #tpu.memory_space<vmem>>, vector<2x128xbf16>
    tpu.vector_store %arg13[%c0_194, %c384_195], %244 {strides = array<i32>} : memref<32x1152xbf16, #tpu.memory_space<vmem>>, vector<2x128xbf16>,
    %c0_196 = arith.constant 0 : index
    %c384_197 = arith.constant 384 : index
    %246 = vector.load %arg12[%c0_196, %c384_197] : memref<32x2048xbf16, #tpu.memory_space<vmem>>, vector<6x128xbf16>
    %c2 = arith.constant 2 : index
    %c384_198 = arith.constant 384 : index
    %247 = vector.load %arg13[%c2, %c384_198] : memref<32x1152xbf16, #tpu.memory_space<vmem>>, vector<6x128xbf16>
    tpu.vector_store %arg13[%c2, %c384_198], %246 {strides = array<i32>} : memref<32x1152xbf16, #tpu.memory_space<vmem>>, vector<6x128xbf16>,
    %c8_199 = arith.constant 8 : index
    %c384_200 = arith.constant 384 : index
    %248 = vector.load %arg13[%c8_199, %c384_200] : memref<32x1152xbf16, #tpu.memory_space<vmem>>, vector<2x128xbf16>
    tpu.vector_store %arg13[%c8_199, %c384_200], %244 {strides = array<i32>} : memref<32x1152xbf16, #tpu.memory_space<vmem>>, vector<2x128xbf16>,
    %c8_201 = arith.constant 8 : index
    %c384_202 = arith.constant 384 : index
    %249 = vector.load %arg12[%c8_201, %c384_202] : memref<32x2048xbf16, #tpu.memory_space<vmem>>, vector<6x128xbf16>
    %c10_203 = arith.constant 10 : index
    %c384_204 = arith.constant 384 : index
    %250 = vector.load %arg13[%c10_203, %c384_204] : memref<32x1152xbf16, #tpu.memory_space<vmem>>, vector<6x128xbf16>
    tpu.vector_store %arg13[%c10_203, %c384_204], %249 {strides = array<i32>} : memref<32x1152xbf16, #tpu.memory_space<vmem>>, vector<6x128xbf16>,
    %c16_205 = arith.constant 16 : index
    %c384_206 = arith.constant 384 : index
    %251 = vector.load %arg13[%c16_205, %c384_206] : memref<32x1152xbf16, #tpu.memory_space<vmem>>, vector<2x128xbf16>
    tpu.vector_store %arg13[%c16_205, %c384_206], %244 {strides = array<i32>} : memref<32x1152xbf16, #tpu.memory_space<vmem>>, vector<2x128xbf16>,
    %c16_207 = arith.constant 16 : index
    %c384_208 = arith.constant 384 : index
    %252 = vector.load %arg12[%c16_207, %c384_208] : memref<32x2048xbf16, #tpu.memory_space<vmem>>, vector<6x128xbf16>
    %c18_209 = arith.constant 18 : index
    %c384_210 = arith.constant 384 : index
    %253 = vector.load %arg13[%c18_209, %c384_210] : memref<32x1152xbf16, #tpu.memory_space<vmem>>, vector<6x128xbf16>
    tpu.vector_store %arg13[%c18_209, %c384_210], %252 {strides = array<i32>} : memref<32x1152xbf16, #tpu.memory_space<vmem>>, vector<6x128xbf16>,
    %c24_211 = arith.constant 24 : index
    %c384_212 = arith.constant 384 : index
    %254 = vector.load %arg13[%c24_211, %c384_212] : memref<32x1152xbf16, #tpu.memory_space<vmem>>, vector<2x128xbf16>
    tpu.vector_store %arg13[%c24_211, %c384_212], %244 {strides = array<i32>} : memref<32x1152xbf16, #tpu.memory_space<vmem>>, vector<2x128xbf16>,
    %c24_213 = arith.constant 24 : index
    %c384_214 = arith.constant 384 : index
    %255 = vector.load %arg12[%c24_213, %c384_214] : memref<32x2048xbf16, #tpu.memory_space<vmem>>, vector<6x128xbf16>
    %c26_215 = arith.constant 26 : index
    %c384_216 = arith.constant 384 : index
    %256 = vector.load %arg13[%c26_215, %c384_216] : memref<32x1152xbf16, #tpu.memory_space<vmem>>, vector<6x128xbf16>
    tpu.vector_store %arg13[%c26_215, %c384_216], %255 {strides = array<i32>} : memref<32x1152xbf16, #tpu.memory_space<vmem>>, vector<6x128xbf16>,
    %c0_217 = arith.constant 0 : index
    %c0_218 = arith.constant 0 : index
    %257 = vector.load %arg12[%c0_217, %c0_218] : memref<32x2048xbf16, #tpu.memory_space<vmem>>, vector<32x128xbf16>
    %c0_219 = arith.constant 0 : index
    %c512_220 = arith.constant 512 : index
    %258 = vector.load %arg13[%c0_219, %c512_220] : memref<32x1152xbf16, #tpu.memory_space<vmem>>, vector<32x128xbf16>
    tpu.vector_store %arg13[%c0_219, %c512_220], %257 {strides = array<i32>} : memref<32x1152xbf16, #tpu.memory_space<vmem>>, vector<32x128xbf16>,
    %c0_221 = arith.constant 0 : index
    %c128_222 = arith.constant 128 : index
    %259 = vector.load %arg12[%c0_221, %c128_222] : memref<32x2048xbf16, #tpu.memory_space<vmem>>, vector<32x128xbf16>
    %c0_223 = arith.constant 0 : index
    %c640_224 = arith.constant 640 : index
    %260 = vector.load %arg13[%c0_223, %c640_224] : memref<32x1152xbf16, #tpu.memory_space<vmem>>, vector<32x128xbf16>
    tpu.vector_store %arg13[%c0_223, %c640_224], %259 {strides = array<i32>} : memref<32x1152xbf16, #tpu.memory_space<vmem>>, vector<32x128xbf16>,
    %cst_225 = arith.constant 0.000000e+00 : bf16
    %261 = vector.broadcast %cst_225 : bf16 to vector<2x128xbf16>
    %c0_226 = arith.constant 0 : index
    %c768_227 = arith.constant 768 : index
    %262 = vector.load %arg13[%c0_226, %c768_227] : memref<32x1152xbf16, #tpu.memory_space<vmem>>, vector<2x128xbf16>
    tpu.vector_store %arg13[%c0_226, %c768_227], %261 {strides = array<i32>} : memref<32x1152xbf16, #tpu.memory_space<vmem>>, vector<2x128xbf16>,
    %c0_228 = arith.constant 0 : index
    %c896_229 = arith.constant 896 : index
    %263 = vector.load %arg12[%c0_228, %c896_229] : memref<32x2048xbf16, #tpu.memory_space<vmem>>, vector<6x128xbf16>
    %c2_230 = arith.constant 2 : index
    %c768_231 = arith.constant 768 : index
    %264 = vector.load %arg13[%c2_230, %c768_231] : memref<32x1152xbf16, #tpu.memory_space<vmem>>, vector<6x128xbf16>
    tpu.vector_store %arg13[%c2_230, %c768_231], %263 {strides = array<i32>} : memref<32x1152xbf16, #tpu.memory_space<vmem>>, vector<6x128xbf16>,
    %c8_232 = arith.constant 8 : index
    %c768_233 = arith.constant 768 : index
    %265 = vector.load %arg13[%c8_232, %c768_233] : memref<32x1152xbf16, #tpu.memory_space<vmem>>, vector<2x128xbf16>
    tpu.vector_store %arg13[%c8_232, %c768_233], %261 {strides = array<i32>} : memref<32x1152xbf16, #tpu.memory_space<vmem>>, vector<2x128xbf16>,
    %c8_234 = arith.constant 8 : index
    %c896_235 = arith.constant 896 : index
    %266 = vector.load %arg12[%c8_234, %c896_235] : memref<32x2048xbf16, #tpu.memory_space<vmem>>, vector<6x128xbf16>
    %c10_236 = arith.constant 10 : index
    %c768_237 = arith.constant 768 : index
    %267 = vector.load %arg13[%c10_236, %c768_237] : memref<32x1152xbf16, #tpu.memory_space<vmem>>, vector<6x128xbf16>
    tpu.vector_store %arg13[%c10_236, %c768_237], %266 {strides = array<i32>} : memref<32x1152xbf16, #tpu.memory_space<vmem>>, vector<6x128xbf16>,
    %c16_238 = arith.constant 16 : index
    %c768_239 = arith.constant 768 : index
    %268 = vector.load %arg13[%c16_238, %c768_239] : memref<32x1152xbf16, #tpu.memory_space<vmem>>, vector<2x128xbf16>
    tpu.vector_store %arg13[%c16_238, %c768_239], %261 {strides = array<i32>} : memref<32x1152xbf16, #tpu.memory_space<vmem>>, vector<2x128xbf16>,
    %c16_240 = arith.constant 16 : index
    %c896_241 = arith.constant 896 : index
    %269 = vector.load %arg12[%c16_240, %c896_241] : memref<32x2048xbf16, #tpu.memory_space<vmem>>, vector<6x128xbf16>
    %c18_242 = arith.constant 18 : index
    %c768_243 = arith.constant 768 : index
    %270 = vector.load %arg13[%c18_242, %c768_243] : memref<32x1152xbf16, #tpu.memory_space<vmem>>, vector<6x128xbf16>
    tpu.vector_store %arg13[%c18_242, %c768_243], %269 {strides = array<i32>} : memref<32x1152xbf16, #tpu.memory_space<vmem>>, vector<6x128xbf16>,
    %c24_244 = arith.constant 24 : index
    %c768_245 = arith.constant 768 : index
    %271 = vector.load %arg13[%c24_244, %c768_245] : memref<32x1152xbf16, #tpu.memory_space<vmem>>, vector<2x128xbf16>
    tpu.vector_store %arg13[%c24_244, %c768_245], %261 {strides = array<i32>} : memref<32x1152xbf16, #tpu.memory_space<vmem>>, vector<2x128xbf16>,
    %c24_246 = arith.constant 24 : index
    %c896_247 = arith.constant 896 : index
    %272 = vector.load %arg12[%c24_246, %c896_247] : memref<32x2048xbf16, #tpu.memory_space<vmem>>, vector<6x128xbf16>
    %c26_248 = arith.constant 26 : index
    %c768_249 = arith.constant 768 : index
    %273 = vector.load %arg13[%c26_248, %c768_249] : memref<32x1152xbf16, #tpu.memory_space<vmem>>, vector<6x128xbf16>
    tpu.vector_store %arg13[%c26_248, %c768_249], %272 {strides = array<i32>} : memref<32x1152xbf16, #tpu.memory_space<vmem>>, vector<6x128xbf16>,
    %c0_250 = arith.constant 0 : index
    %c512_251 = arith.constant 512 : index
    %274 = vector.load %arg12[%c0_250, %c512_251] : memref<32x2048xbf16, #tpu.memory_space<vmem>>, vector<32x128xbf16>
    %c0_252 = arith.constant 0 : index
    %c896_253 = arith.constant 896 : index
    %275 = vector.load %arg13[%c0_252, %c896_253] : memref<32x1152xbf16, #tpu.memory_space<vmem>>, vector<32x128xbf16>
    tpu.vector_store %arg13[%c0_252, %c896_253], %274 {strides = array<i32>} : memref<32x1152xbf16, #tpu.memory_space<vmem>>, vector<32x128xbf16>,
    %c0_254 = arith.constant 0 : index
    %c640_255 = arith.constant 640 : index
    %276 = vector.load %arg12[%c0_254, %c640_255] : memref<32x2048xbf16, #tpu.memory_space<vmem>>, vector<32x128xbf16>
    %c0_256 = arith.constant 0 : index
    %c1024_257 = arith.constant 1024 : index
    %277 = vector.load %arg13[%c0_256, %c1024_257] : memref<32x1152xbf16, #tpu.memory_space<vmem>>, vector<32x128xbf16>
    tpu.vector_store %arg13[%c0_256, %c1024_257], %276 {strides = array<i32>} : memref<32x1152xbf16, #tpu.memory_space<vmem>>, vector<32x128xbf16>,
    %c0_258 = arith.constant 0 : index
    %c0_259 = arith.constant 0 : index
    %278 = vector.load %arg13[%c0_258, %c0_259] : memref<32x1152xbf16, #tpu.memory_space<vmem>>, vector<32x1152xbf16>
    %c0_260 = arith.constant 0 : index
    %c0_261 = arith.constant 0 : index
    %279 = vector.load %arg4[%c0_260, %c0_261] : memref<1152x128xbf16, #tpu.memory_space<vmem>>, vector<1152x128xbf16>
    %cst_262 = arith.constant dense<0.000000e+00> : vector<32x128xf32>
    %280 = tpu.matmul %278, %279, %cst_262 {dimension_numbers = #tpu.dot_dimension_numbers<[1], [0], [0], [1], [0, 0, 1, 1], [], []>} : vector<32x1152xbf16>, vector<1152x128xbf16>, vector<32x128xf32> -> vector<32x128xf32>
    %c0_263 = arith.constant 0 : index
    %c0_264 = arith.constant 0 : index
    %281 = vector.load %arg5[%c0_263, %c0_264] : memref<1x128xf32, #tpu.memory_space<vmem>>, vector<1x128xf32>
    %282 = vector.broadcast %281 : vector<1x128xf32> to vector<32x128xf32>
    %283 = arith.addf %280, %282 : vector<32x128xf32>
    %cst_265 = arith.constant 0.000000e+00 : f32
    %284 = vector.broadcast %cst_265 : f32 to vector<32x128xf32>
    %285 = arith.cmpf oge, %283, %284 : vector<32x128xf32>
    %cst_266 = arith.constant 0.00999999977 : f32
    %286 = vector.broadcast %cst_266 : f32 to vector<32x128xf32>
    %287 = arith.mulf %286, %283 : vector<32x128xf32>
    %288 = arith.select %285, %283, %287 : vector<32x128xi1>, vector<32x128xf32>
    %289 = arith.truncf %288 : vector<32x128xf32> to vector<32x128xbf16>
    %c0_267 = arith.constant 0 : index
    %c0_268 = arith.constant 0 : index
    %290 = vector.load %arg14[%c0_267, %c0_268] : memref<32x512xbf16, #tpu.memory_space<vmem>>, vector<32x128xbf16>
    tpu.vector_store %arg14[%c0_267, %c0_268], %289 {strides = array<i32>} : memref<32x512xbf16, #tpu.memory_space<vmem>>, vector<32x128xbf16>,
    %cst_269 = arith.constant 0.000000e+00 : bf16
    %291 = vector.broadcast %cst_269 : bf16 to vector<8x128xbf16>
    %c0_270 = arith.constant 0 : index
    %c0_271 = arith.constant 0 : index
    %292 = vector.load %arg13[%c0_270, %c0_271] : memref<32x1152xbf16, #tpu.memory_space<vmem>>, vector<8x128xbf16>
    tpu.vector_store %arg13[%c0_270, %c0_271], %291 {strides = array<i32>} : memref<32x1152xbf16, #tpu.memory_space<vmem>>, vector<8x128xbf16>,
    %c0_272 = arith.constant 0 : index
    %c1664_273 = arith.constant 1664 : index
    %293 = vector.load %arg12[%c0_272, %c1664_273] : memref<32x2048xbf16, #tpu.memory_space<vmem>>, vector<24x128xbf16>
    %c8_274 = arith.constant 8 : index
    %c0_275 = arith.constant 0 : index
    %294 = vector.load %arg13[%c8_274, %c0_275] : memref<32x1152xbf16, #tpu.memory_space<vmem>>, vector<24x128xbf16>
    tpu.vector_store %arg13[%c8_274, %c0_275], %293 {strides = array<i32>} : memref<32x1152xbf16, #tpu.memory_space<vmem>>, vector<24x128xbf16>,
    %cst_276 = arith.constant 0.000000e+00 : bf16
    %295 = vector.broadcast %cst_276 : bf16 to vector<8x128xbf16>
    %c0_277 = arith.constant 0 : index
    %c128_278 = arith.constant 128 : index
    %296 = vector.load %arg13[%c0_277, %c128_278] : memref<32x1152xbf16, #tpu.memory_space<vmem>>, vector<8x128xbf16>
    tpu.vector_store %arg13[%c0_277, %c128_278], %295 {strides = array<i32>} : memref<32x1152xbf16, #tpu.memory_space<vmem>>, vector<8x128xbf16>,
    %c0_279 = arith.constant 0 : index
    %c1792_280 = arith.constant 1792 : index
    %297 = vector.load %arg12[%c0_279, %c1792_280] : memref<32x2048xbf16, #tpu.memory_space<vmem>>, vector<24x128xbf16>
    %c8_281 = arith.constant 8 : index
    %c128_282 = arith.constant 128 : index
    %298 = vector.load %arg13[%c8_281, %c128_282] : memref<32x1152xbf16, #tpu.memory_space<vmem>>, vector<24x128xbf16>
    tpu.vector_store %arg13[%c8_281, %c128_282], %297 {strides = array<i32>} : memref<32x1152xbf16, #tpu.memory_space<vmem>>, vector<24x128xbf16>,
    %cst_283 = arith.constant 0.000000e+00 : bf16
    %299 = vector.broadcast %cst_283 : bf16 to vector<8x128xbf16>
    %c0_284 = arith.constant 0 : index
    %c256_285 = arith.constant 256 : index
    %300 = vector.load %arg13[%c0_284, %c256_285] : memref<32x1152xbf16, #tpu.memory_space<vmem>>, vector<8x128xbf16>
    tpu.vector_store %arg13[%c0_284, %c256_285], %299 {strides = array<i32>} : memref<32x1152xbf16, #tpu.memory_space<vmem>>, vector<8x128xbf16>,
    %c0_286 = arith.constant 0 : index
    %c1920_287 = arith.constant 1920 : index
    %301 = vector.load %arg12[%c0_286, %c1920_287] : memref<32x2048xbf16, #tpu.memory_space<vmem>>, vector<24x128xbf16>
    %c8_288 = arith.constant 8 : index
    %c256_289 = arith.constant 256 : index
    %302 = vector.load %arg13[%c8_288, %c256_289] : memref<32x1152xbf16, #tpu.memory_space<vmem>>, vector<24x128xbf16>
    tpu.vector_store %arg13[%c8_288, %c256_289], %301 {strides = array<i32>} : memref<32x1152xbf16, #tpu.memory_space<vmem>>, vector<24x128xbf16>,
    %c0_290 = arith.constant 0 : index
    %c128_291 = arith.constant 128 : index
    %303 = vector.load %arg12[%c0_290, %c128_291] : memref<32x2048xbf16, #tpu.memory_space<vmem>>, vector<32x128xbf16>
    %c0_292 = arith.constant 0 : index
    %c384_293 = arith.constant 384 : index
    %304 = vector.load %arg13[%c0_292, %c384_293] : memref<32x1152xbf16, #tpu.memory_space<vmem>>, vector<32x128xbf16>
    tpu.vector_store %arg13[%c0_292, %c384_293], %303 {strides = array<i32>} : memref<32x1152xbf16, #tpu.memory_space<vmem>>, vector<32x128xbf16>,
    %c0_294 = arith.constant 0 : index
    %c256_295 = arith.constant 256 : index
    %305 = vector.load %arg12[%c0_294, %c256_295] : memref<32x2048xbf16, #tpu.memory_space<vmem>>, vector<32x128xbf16>
    %c0_296 = arith.constant 0 : index
    %c512_297 = arith.constant 512 : index
    %306 = vector.load %arg13[%c0_296, %c512_297] : memref<32x1152xbf16, #tpu.memory_space<vmem>>, vector<32x128xbf16>
    tpu.vector_store %arg13[%c0_296, %c512_297], %305 {strides = array<i32>} : memref<32x1152xbf16, #tpu.memory_space<vmem>>, vector<32x128xbf16>,
    %c0_298 = arith.constant 0 : index
    %c384_299 = arith.constant 384 : index
    %307 = vector.load %arg12[%c0_298, %c384_299] : memref<32x2048xbf16, #tpu.memory_space<vmem>>, vector<32x128xbf16>
    %c0_300 = arith.constant 0 : index
    %c640_301 = arith.constant 640 : index
    %308 = vector.load %arg13[%c0_300, %c640_301] : memref<32x1152xbf16, #tpu.memory_space<vmem>>, vector<32x128xbf16>
    tpu.vector_store %arg13[%c0_300, %c640_301], %307 {strides = array<i32>} : memref<32x1152xbf16, #tpu.memory_space<vmem>>, vector<32x128xbf16>,
    %c0_302 = arith.constant 0 : index
    %c640_303 = arith.constant 640 : index
    %309 = vector.load %arg12[%c0_302, %c640_303] : memref<32x2048xbf16, #tpu.memory_space<vmem>>, vector<32x128xbf16>
    %c0_304 = arith.constant 0 : index
    %c768_305 = arith.constant 768 : index
    %310 = vector.load %arg13[%c0_304, %c768_305] : memref<32x1152xbf16, #tpu.memory_space<vmem>>, vector<32x128xbf16>
    tpu.vector_store %arg13[%c0_304, %c768_305], %309 {strides = array<i32>} : memref<32x1152xbf16, #tpu.memory_space<vmem>>, vector<32x128xbf16>,
    %c0_306 = arith.constant 0 : index
    %c768_307 = arith.constant 768 : index
    %311 = vector.load %arg12[%c0_306, %c768_307] : memref<32x2048xbf16, #tpu.memory_space<vmem>>, vector<32x128xbf16>
    %c0_308 = arith.constant 0 : index
    %c896_309 = arith.constant 896 : index
    %312 = vector.load %arg13[%c0_308, %c896_309] : memref<32x1152xbf16, #tpu.memory_space<vmem>>, vector<32x128xbf16>
    tpu.vector_store %arg13[%c0_308, %c896_309], %311 {strides = array<i32>} : memref<32x1152xbf16, #tpu.memory_space<vmem>>, vector<32x128xbf16>,
    %c0_310 = arith.constant 0 : index
    %c896_311 = arith.constant 896 : index
    %313 = vector.load %arg12[%c0_310, %c896_311] : memref<32x2048xbf16, #tpu.memory_space<vmem>>, vector<32x128xbf16>
    %c0_312 = arith.constant 0 : index
    %c1024_313 = arith.constant 1024 : index
    %314 = vector.load %arg13[%c0_312, %c1024_313] : memref<32x1152xbf16, #tpu.memory_space<vmem>>, vector<32x128xbf16>
    tpu.vector_store %arg13[%c0_312, %c1024_313], %313 {strides = array<i32>} : memref<32x1152xbf16, #tpu.memory_space<vmem>>, vector<32x128xbf16>,
    %c0_314 = arith.constant 0 : index
    %c0_315 = arith.constant 0 : index
    %315 = vector.load %arg13[%c0_314, %c0_315] : memref<32x1152xbf16, #tpu.memory_space<vmem>>, vector<32x1152xbf16>
    %c0_316 = arith.constant 0 : index
    %c0_317 = arith.constant 0 : index
    %316 = vector.load %arg4[%c0_316, %c0_317] : memref<1152x128xbf16, #tpu.memory_space<vmem>>, vector<1152x128xbf16>
    %cst_318 = arith.constant dense<0.000000e+00> : vector<32x128xf32>
    %317 = tpu.matmul %315, %316, %cst_318 {dimension_numbers = #tpu.dot_dimension_numbers<[1], [0], [0], [1], [0, 0, 1, 1], [], []>} : vector<32x1152xbf16>, vector<1152x128xbf16>, vector<32x128xf32> -> vector<32x128xf32>
    %c0_319 = arith.constant 0 : index
    %c0_320 = arith.constant 0 : index
    %318 = vector.load %arg5[%c0_319, %c0_320] : memref<1x128xf32, #tpu.memory_space<vmem>>, vector<1x128xf32>
    %319 = vector.broadcast %318 : vector<1x128xf32> to vector<32x128xf32>
    %320 = arith.addf %317, %319 : vector<32x128xf32>
    %cst_321 = arith.constant 0.000000e+00 : f32
    %321 = vector.broadcast %cst_321 : f32 to vector<32x128xf32>
    %322 = arith.cmpf oge, %320, %321 : vector<32x128xf32>
    %cst_322 = arith.constant 0.00999999977 : f32
    %323 = vector.broadcast %cst_322 : f32 to vector<32x128xf32>
    %324 = arith.mulf %323, %320 : vector<32x128xf32>
    %325 = arith.select %322, %320, %324 : vector<32x128xi1>, vector<32x128xf32>
    %326 = arith.truncf %325 : vector<32x128xf32> to vector<32x128xbf16>
    %c0_323 = arith.constant 0 : index
    %c128_324 = arith.constant 128 : index
    %327 = vector.load %arg14[%c0_323, %c128_324] : memref<32x512xbf16, #tpu.memory_space<vmem>>, vector<32x128xbf16>
    tpu.vector_store %arg14[%c0_323, %c128_324], %326 {strides = array<i32>} : memref<32x512xbf16, #tpu.memory_space<vmem>>, vector<32x128xbf16>,
    %cst_325 = arith.constant 0.000000e+00 : bf16
    %328 = vector.broadcast %cst_325 : bf16 to vector<2x128xbf16>
    %c0_326 = arith.constant 0 : index
    %c0_327 = arith.constant 0 : index
    %329 = vector.load %arg13[%c0_326, %c0_327] : memref<32x1152xbf16, #tpu.memory_space<vmem>>, vector<2x128xbf16>
    tpu.vector_store %arg13[%c0_326, %c0_327], %328 {strides = array<i32>} : memref<32x1152xbf16, #tpu.memory_space<vmem>>, vector<2x128xbf16>,
    %c0_328 = arith.constant 0 : index
    %c896_329 = arith.constant 896 : index
    %330 = vector.load %arg12[%c0_328, %c896_329] : memref<32x2048xbf16, #tpu.memory_space<vmem>>, vector<6x128xbf16>
    %c2_330 = arith.constant 2 : index
    %c0_331 = arith.constant 0 : index
    %331 = vector.load %arg13[%c2_330, %c0_331] : memref<32x1152xbf16, #tpu.memory_space<vmem>>, vector<6x128xbf16>
    tpu.vector_store %arg13[%c2_330, %c0_331], %330 {strides = array<i32>} : memref<32x1152xbf16, #tpu.memory_space<vmem>>, vector<6x128xbf16>,
    %c8_332 = arith.constant 8 : index
    %c0_333 = arith.constant 0 : index
    %332 = vector.load %arg13[%c8_332, %c0_333] : memref<32x1152xbf16, #tpu.memory_space<vmem>>, vector<2x128xbf16>
    tpu.vector_store %arg13[%c8_332, %c0_333], %328 {strides = array<i32>} : memref<32x1152xbf16, #tpu.memory_space<vmem>>, vector<2x128xbf16>,
    %c8_334 = arith.constant 8 : index
    %c896_335 = arith.constant 896 : index
    %333 = vector.load %arg12[%c8_334, %c896_335] : memref<32x2048xbf16, #tpu.memory_space<vmem>>, vector<6x128xbf16>
    %c10_336 = arith.constant 10 : index
    %c0_337 = arith.constant 0 : index
    %334 = vector.load %arg13[%c10_336, %c0_337] : memref<32x1152xbf16, #tpu.memory_space<vmem>>, vector<6x128xbf16>
    tpu.vector_store %arg13[%c10_336, %c0_337], %333 {strides = array<i32>} : memref<32x1152xbf16, #tpu.memory_space<vmem>>, vector<6x128xbf16>,
    %c16_338 = arith.constant 16 : index
    %c0_339 = arith.constant 0 : index
    %335 = vector.load %arg13[%c16_338, %c0_339] : memref<32x1152xbf16, #tpu.memory_space<vmem>>, vector<2x128xbf16>
    tpu.vector_store %arg13[%c16_338, %c0_339], %328 {strides = array<i32>} : memref<32x1152xbf16, #tpu.memory_space<vmem>>, vector<2x128xbf16>,
    %c16_340 = arith.constant 16 : index
    %c896_341 = arith.constant 896 : index
    %336 = vector.load %arg12[%c16_340, %c896_341] : memref<32x2048xbf16, #tpu.memory_space<vmem>>, vector<6x128xbf16>
    %c18_342 = arith.constant 18 : index
    %c0_343 = arith.constant 0 : index
    %337 = vector.load %arg13[%c18_342, %c0_343] : memref<32x1152xbf16, #tpu.memory_space<vmem>>, vector<6x128xbf16>
    tpu.vector_store %arg13[%c18_342, %c0_343], %336 {strides = array<i32>} : memref<32x1152xbf16, #tpu.memory_space<vmem>>, vector<6x128xbf16>,
    %c24_344 = arith.constant 24 : index
    %c0_345 = arith.constant 0 : index
    %338 = vector.load %arg13[%c24_344, %c0_345] : memref<32x1152xbf16, #tpu.memory_space<vmem>>, vector<2x128xbf16>
    tpu.vector_store %arg13[%c24_344, %c0_345], %328 {strides = array<i32>} : memref<32x1152xbf16, #tpu.memory_space<vmem>>, vector<2x128xbf16>,
    %c24_346 = arith.constant 24 : index
    %c896_347 = arith.constant 896 : index
    %339 = vector.load %arg12[%c24_346, %c896_347] : memref<32x2048xbf16, #tpu.memory_space<vmem>>, vector<6x128xbf16>
    %c26_348 = arith.constant 26 : index
    %c0_349 = arith.constant 0 : index
    %340 = vector.load %arg13[%c26_348, %c0_349] : memref<32x1152xbf16, #tpu.memory_space<vmem>>, vector<6x128xbf16>
    tpu.vector_store %arg13[%c26_348, %c0_349], %339 {strides = array<i32>} : memref<32x1152xbf16, #tpu.memory_space<vmem>>, vector<6x128xbf16>,
    %c0_350 = arith.constant 0 : index
    %c512_351 = arith.constant 512 : index
    %341 = vector.load %arg12[%c0_350, %c512_351] : memref<32x2048xbf16, #tpu.memory_space<vmem>>, vector<32x128xbf16>
    %c0_352 = arith.constant 0 : index
    %c128_353 = arith.constant 128 : index
    %342 = vector.load %arg13[%c0_352, %c128_353] : memref<32x1152xbf16, #tpu.memory_space<vmem>>, vector<32x128xbf16>
    tpu.vector_store %arg13[%c0_352, %c128_353], %341 {strides = array<i32>} : memref<32x1152xbf16, #tpu.memory_space<vmem>>, vector<32x128xbf16>,
    %c0_354 = arith.constant 0 : index
    %c640_355 = arith.constant 640 : index
    %343 = vector.load %arg12[%c0_354, %c640_355] : memref<32x2048xbf16, #tpu.memory_space<vmem>>, vector<32x128xbf16>
    %c0_356 = arith.constant 0 : index
    %c256_357 = arith.constant 256 : index
    %344 = vector.load %arg13[%c0_356, %c256_357] : memref<32x1152xbf16, #tpu.memory_space<vmem>>, vector<32x128xbf16>
    tpu.vector_store %arg13[%c0_356, %c256_357], %343 {strides = array<i32>} : memref<32x1152xbf16, #tpu.memory_space<vmem>>, vector<32x128xbf16>,
    %cst_358 = arith.constant 0.000000e+00 : bf16
    %345 = vector.broadcast %cst_358 : bf16 to vector<2x128xbf16>
    %c0_359 = arith.constant 0 : index
    %c384_360 = arith.constant 384 : index
    %346 = vector.load %arg13[%c0_359, %c384_360] : memref<32x1152xbf16, #tpu.memory_space<vmem>>, vector<2x128xbf16>
    tpu.vector_store %arg13[%c0_359, %c384_360], %345 {strides = array<i32>} : memref<32x1152xbf16, #tpu.memory_space<vmem>>, vector<2x128xbf16>,
    %c0_361 = arith.constant 0 : index
    %c1408_362 = arith.constant 1408 : index
    %347 = vector.load %arg12[%c0_361, %c1408_362] : memref<32x2048xbf16, #tpu.memory_space<vmem>>, vector<6x128xbf16>
    %c2_363 = arith.constant 2 : index
    %c384_364 = arith.constant 384 : index
    %348 = vector.load %arg13[%c2_363, %c384_364] : memref<32x1152xbf16, #tpu.memory_space<vmem>>, vector<6x128xbf16>
    tpu.vector_store %arg13[%c2_363, %c384_364], %347 {strides = array<i32>} : memref<32x1152xbf16, #tpu.memory_space<vmem>>, vector<6x128xbf16>,
    %c8_365 = arith.constant 8 : index
    %c384_366 = arith.constant 384 : index
    %349 = vector.load %arg13[%c8_365, %c384_366] : memref<32x1152xbf16, #tpu.memory_space<vmem>>, vector<2x128xbf16>
    tpu.vector_store %arg13[%c8_365, %c384_366], %345 {strides = array<i32>} : memref<32x1152xbf16, #tpu.memory_space<vmem>>, vector<2x128xbf16>,
    %c8_367 = arith.constant 8 : index
    %c1408_368 = arith.constant 1408 : index
    %350 = vector.load %arg12[%c8_367, %c1408_368] : memref<32x2048xbf16, #tpu.memory_space<vmem>>, vector<6x128xbf16>
    %c10_369 = arith.constant 10 : index
    %c384_370 = arith.constant 384 : index
    %351 = vector.load %arg13[%c10_369, %c384_370] : memref<32x1152xbf16, #tpu.memory_space<vmem>>, vector<6x128xbf16>
    tpu.vector_store %arg13[%c10_369, %c384_370], %350 {strides = array<i32>} : memref<32x1152xbf16, #tpu.memory_space<vmem>>, vector<6x128xbf16>,
    %c16_371 = arith.constant 16 : index
    %c384_372 = arith.constant 384 : index
    %352 = vector.load %arg13[%c16_371, %c384_372] : memref<32x1152xbf16, #tpu.memory_space<vmem>>, vector<2x128xbf16>
    tpu.vector_store %arg13[%c16_371, %c384_372], %345 {strides = array<i32>} : memref<32x1152xbf16, #tpu.memory_space<vmem>>, vector<2x128xbf16>,
    %c16_373 = arith.constant 16 : index
    %c1408_374 = arith.constant 1408 : index
    %353 = vector.load %arg12[%c16_373, %c1408_374] : memref<32x2048xbf16, #tpu.memory_space<vmem>>, vector<6x128xbf16>
    %c18_375 = arith.constant 18 : index
    %c384_376 = arith.constant 384 : index
    %354 = vector.load %arg13[%c18_375, %c384_376] : memref<32x1152xbf16, #tpu.memory_space<vmem>>, vector<6x128xbf16>
    tpu.vector_store %arg13[%c18_375, %c384_376], %353 {strides = array<i32>} : memref<32x1152xbf16, #tpu.memory_space<vmem>>, vector<6x128xbf16>,
    %c24_377 = arith.constant 24 : index
    %c384_378 = arith.constant 384 : index
    %355 = vector.load %arg13[%c24_377, %c384_378] : memref<32x1152xbf16, #tpu.memory_space<vmem>>, vector<2x128xbf16>
    tpu.vector_store %arg13[%c24_377, %c384_378], %345 {strides = array<i32>} : memref<32x1152xbf16, #tpu.memory_space<vmem>>, vector<2x128xbf16>,
    %c24_379 = arith.constant 24 : index
    %c1408_380 = arith.constant 1408 : index
    %356 = vector.load %arg12[%c24_379, %c1408_380] : memref<32x2048xbf16, #tpu.memory_space<vmem>>, vector<6x128xbf16>
    %c26_381 = arith.constant 26 : index
    %c384_382 = arith.constant 384 : index
    %357 = vector.load %arg13[%c26_381, %c384_382] : memref<32x1152xbf16, #tpu.memory_space<vmem>>, vector<6x128xbf16>
    tpu.vector_store %arg13[%c26_381, %c384_382], %356 {strides = array<i32>} : memref<32x1152xbf16, #tpu.memory_space<vmem>>, vector<6x128xbf16>,
    %c0_383 = arith.constant 0 : index
    %c1024_384 = arith.constant 1024 : index
    %358 = vector.load %arg12[%c0_383, %c1024_384] : memref<32x2048xbf16, #tpu.memory_space<vmem>>, vector<32x128xbf16>
    %c0_385 = arith.constant 0 : index
    %c512_386 = arith.constant 512 : index
    %359 = vector.load %arg13[%c0_385, %c512_386] : memref<32x1152xbf16, #tpu.memory_space<vmem>>, vector<32x128xbf16>
    tpu.vector_store %arg13[%c0_385, %c512_386], %358 {strides = array<i32>} : memref<32x1152xbf16, #tpu.memory_space<vmem>>, vector<32x128xbf16>,
    %c0_387 = arith.constant 0 : index
    %c1152_388 = arith.constant 1152 : index
    %360 = vector.load %arg12[%c0_387, %c1152_388] : memref<32x2048xbf16, #tpu.memory_space<vmem>>, vector<32x128xbf16>
    %c0_389 = arith.constant 0 : index
    %c640_390 = arith.constant 640 : index
    %361 = vector.load %arg13[%c0_389, %c640_390] : memref<32x1152xbf16, #tpu.memory_space<vmem>>, vector<32x128xbf16>
    tpu.vector_store %arg13[%c0_389, %c640_390], %360 {strides = array<i32>} : memref<32x1152xbf16, #tpu.memory_space<vmem>>, vector<32x128xbf16>,
    %cst_391 = arith.constant 0.000000e+00 : bf16
    %362 = vector.broadcast %cst_391 : bf16 to vector<2x128xbf16>
    %c0_392 = arith.constant 0 : index
    %c768_393 = arith.constant 768 : index
    %363 = vector.load %arg13[%c0_392, %c768_393] : memref<32x1152xbf16, #tpu.memory_space<vmem>>, vector<2x128xbf16>
    tpu.vector_store %arg13[%c0_392, %c768_393], %362 {strides = array<i32>} : memref<32x1152xbf16, #tpu.memory_space<vmem>>, vector<2x128xbf16>,
    %c0_394 = arith.constant 0 : index
    %c1920_395 = arith.constant 1920 : index
    %364 = vector.load %arg12[%c0_394, %c1920_395] : memref<32x2048xbf16, #tpu.memory_space<vmem>>, vector<6x128xbf16>
    %c2_396 = arith.constant 2 : index
    %c768_397 = arith.constant 768 : index
    %365 = vector.load %arg13[%c2_396, %c768_397] : memref<32x1152xbf16, #tpu.memory_space<vmem>>, vector<6x128xbf16>
    tpu.vector_store %arg13[%c2_396, %c768_397], %364 {strides = array<i32>} : memref<32x1152xbf16, #tpu.memory_space<vmem>>, vector<6x128xbf16>,
    %c8_398 = arith.constant 8 : index
    %c768_399 = arith.constant 768 : index
    %366 = vector.load %arg13[%c8_398, %c768_399] : memref<32x1152xbf16, #tpu.memory_space<vmem>>, vector<2x128xbf16>
    tpu.vector_store %arg13[%c8_398, %c768_399], %362 {strides = array<i32>} : memref<32x1152xbf16, #tpu.memory_space<vmem>>, vector<2x128xbf16>,
    %c8_400 = arith.constant 8 : index
    %c1920_401 = arith.constant 1920 : index
    %367 = vector.load %arg12[%c8_400, %c1920_401] : memref<32x2048xbf16, #tpu.memory_space<vmem>>, vector<6x128xbf16>
    %c10_402 = arith.constant 10 : index
    %c768_403 = arith.constant 768 : index
    %368 = vector.load %arg13[%c10_402, %c768_403] : memref<32x1152xbf16, #tpu.memory_space<vmem>>, vector<6x128xbf16>
    tpu.vector_store %arg13[%c10_402, %c768_403], %367 {strides = array<i32>} : memref<32x1152xbf16, #tpu.memory_space<vmem>>, vector<6x128xbf16>,
    %c16_404 = arith.constant 16 : index
    %c768_405 = arith.constant 768 : index
    %369 = vector.load %arg13[%c16_404, %c768_405] : memref<32x1152xbf16, #tpu.memory_space<vmem>>, vector<2x128xbf16>
    tpu.vector_store %arg13[%c16_404, %c768_405], %362 {strides = array<i32>} : memref<32x1152xbf16, #tpu.memory_space<vmem>>, vector<2x128xbf16>,
    %c16_406 = arith.constant 16 : index
    %c1920_407 = arith.constant 1920 : index
    %370 = vector.load %arg12[%c16_406, %c1920_407] : memref<32x2048xbf16, #tpu.memory_space<vmem>>, vector<6x128xbf16>
    %c18_408 = arith.constant 18 : index
    %c768_409 = arith.constant 768 : index
    %371 = vector.load %arg13[%c18_408, %c768_409] : memref<32x1152xbf16, #tpu.memory_space<vmem>>, vector<6x128xbf16>
    tpu.vector_store %arg13[%c18_408, %c768_409], %370 {strides = array<i32>} : memref<32x1152xbf16, #tpu.memory_space<vmem>>, vector<6x128xbf16>,
    %c24_410 = arith.constant 24 : index
    %c768_411 = arith.constant 768 : index
    %372 = vector.load %arg13[%c24_410, %c768_411] : memref<32x1152xbf16, #tpu.memory_space<vmem>>, vector<2x128xbf16>
    tpu.vector_store %arg13[%c24_410, %c768_411], %362 {strides = array<i32>} : memref<32x1152xbf16, #tpu.memory_space<vmem>>, vector<2x128xbf16>,
    %c24_412 = arith.constant 24 : index
    %c1920_413 = arith.constant 1920 : index
    %373 = vector.load %arg12[%c24_412, %c1920_413] : memref<32x2048xbf16, #tpu.memory_space<vmem>>, vector<6x128xbf16>
    %c26_414 = arith.constant 26 : index
    %c768_415 = arith.constant 768 : index
    %374 = vector.load %arg13[%c26_414, %c768_415] : memref<32x1152xbf16, #tpu.memory_space<vmem>>, vector<6x128xbf16>
    tpu.vector_store %arg13[%c26_414, %c768_415], %373 {strides = array<i32>} : memref<32x1152xbf16, #tpu.memory_space<vmem>>, vector<6x128xbf16>,
    %c0_416 = arith.constant 0 : index
    %c1536_417 = arith.constant 1536 : index
    %375 = vector.load %arg12[%c0_416, %c1536_417] : memref<32x2048xbf16, #tpu.memory_space<vmem>>, vector<32x128xbf16>
    %c0_418 = arith.constant 0 : index
    %c896_419 = arith.constant 896 : index
    %376 = vector.load %arg13[%c0_418, %c896_419] : memref<32x1152xbf16, #tpu.memory_space<vmem>>, vector<32x128xbf16>
    tpu.vector_store %arg13[%c0_418, %c896_419], %375 {strides = array<i32>} : memref<32x1152xbf16, #tpu.memory_space<vmem>>, vector<32x128xbf16>,
    %c0_420 = arith.constant 0 : index
    %c1664_421 = arith.constant 1664 : index
    %377 = vector.load %arg12[%c0_420, %c1664_421] : memref<32x2048xbf16, #tpu.memory_space<vmem>>, vector<32x128xbf16>
    %c0_422 = arith.constant 0 : index
    %c1024_423 = arith.constant 1024 : index
    %378 = vector.load %arg13[%c0_422, %c1024_423] : memref<32x1152xbf16, #tpu.memory_space<vmem>>, vector<32x128xbf16>
    tpu.vector_store %arg13[%c0_422, %c1024_423], %377 {strides = array<i32>} : memref<32x1152xbf16, #tpu.memory_space<vmem>>, vector<32x128xbf16>,
    %c0_424 = arith.constant 0 : index
    %c0_425 = arith.constant 0 : index
    %379 = vector.load %arg13[%c0_424, %c0_425] : memref<32x1152xbf16, #tpu.memory_space<vmem>>, vector<32x1152xbf16>
    %c0_426 = arith.constant 0 : index
    %c0_427 = arith.constant 0 : index
    %380 = vector.load %arg4[%c0_426, %c0_427] : memref<1152x128xbf16, #tpu.memory_space<vmem>>, vector<1152x128xbf16>
    %cst_428 = arith.constant dense<0.000000e+00> : vector<32x128xf32>
    %381 = tpu.matmul %379, %380, %cst_428 {dimension_numbers = #tpu.dot_dimension_numbers<[1], [0], [0], [1], [0, 0, 1, 1], [], []>} : vector<32x1152xbf16>, vector<1152x128xbf16>, vector<32x128xf32> -> vector<32x128xf32>
    %c0_429 = arith.constant 0 : index
    %c0_430 = arith.constant 0 : index
    %382 = vector.load %arg5[%c0_429, %c0_430] : memref<1x128xf32, #tpu.memory_space<vmem>>, vector<1x128xf32>
    %383 = vector.broadcast %382 : vector<1x128xf32> to vector<32x128xf32>
    %384 = arith.addf %381, %383 : vector<32x128xf32>
    %cst_431 = arith.constant 0.000000e+00 : f32
    %385 = vector.broadcast %cst_431 : f32 to vector<32x128xf32>
    %386 = arith.cmpf oge, %384, %385 : vector<32x128xf32>
    %cst_432 = arith.constant 0.00999999977 : f32
    %387 = vector.broadcast %cst_432 : f32 to vector<32x128xf32>
    %388 = arith.mulf %387, %384 : vector<32x128xf32>
    %389 = arith.select %386, %384, %388 : vector<32x128xi1>, vector<32x128xf32>
    %390 = arith.truncf %389 : vector<32x128xf32> to vector<32x128xbf16>
    %c0_433 = arith.constant 0 : index
    %c256_434 = arith.constant 256 : index
    %391 = vector.load %arg14[%c0_433, %c256_434] : memref<32x512xbf16, #tpu.memory_space<vmem>>, vector<32x128xbf16>
    tpu.vector_store %arg14[%c0_433, %c256_434], %390 {strides = array<i32>} : memref<32x512xbf16, #tpu.memory_space<vmem>>, vector<32x128xbf16>,
    %c0_435 = arith.constant 0 : index
    %c640_436 = arith.constant 640 : index
    %392 = vector.load %arg12[%c0_435, %c640_436] : memref<32x2048xbf16, #tpu.memory_space<vmem>>, vector<32x128xbf16>
    %c0_437 = arith.constant 0 : index
    %c0_438 = arith.constant 0 : index
    %393 = vector.load %arg13[%c0_437, %c0_438] : memref<32x1152xbf16, #tpu.memory_space<vmem>>, vector<32x128xbf16>
    tpu.vector_store %arg13[%c0_437, %c0_438], %392 {strides = array<i32>} : memref<32x1152xbf16, #tpu.memory_space<vmem>>, vector<32x128xbf16>,
    %c0_439 = arith.constant 0 : index
    %c768_440 = arith.constant 768 : index
    %394 = vector.load %arg12[%c0_439, %c768_440] : memref<32x2048xbf16, #tpu.memory_space<vmem>>, vector<32x128xbf16>
    %c0_441 = arith.constant 0 : index
    %c128_442 = arith.constant 128 : index
    %395 = vector.load %arg13[%c0_441, %c128_442] : memref<32x1152xbf16, #tpu.memory_space<vmem>>, vector<32x128xbf16>
    tpu.vector_store %arg13[%c0_441, %c128_442], %394 {strides = array<i32>} : memref<32x1152xbf16, #tpu.memory_space<vmem>>, vector<32x128xbf16>,
    %c0_443 = arith.constant 0 : index
    %c896_444 = arith.constant 896 : index
    %396 = vector.load %arg12[%c0_443, %c896_444] : memref<32x2048xbf16, #tpu.memory_space<vmem>>, vector<32x128xbf16>
    %c0_445 = arith.constant 0 : index
    %c256_446 = arith.constant 256 : index
    %397 = vector.load %arg13[%c0_445, %c256_446] : memref<32x1152xbf16, #tpu.memory_space<vmem>>, vector<32x128xbf16>
    tpu.vector_store %arg13[%c0_445, %c256_446], %396 {strides = array<i32>} : memref<32x1152xbf16, #tpu.memory_space<vmem>>, vector<32x128xbf16>,
    %c0_447 = arith.constant 0 : index
    %c1152_448 = arith.constant 1152 : index
    %398 = vector.load %arg12[%c0_447, %c1152_448] : memref<32x2048xbf16, #tpu.memory_space<vmem>>, vector<32x128xbf16>
    %c0_449 = arith.constant 0 : index
    %c384_450 = arith.constant 384 : index
    %399 = vector.load %arg13[%c0_449, %c384_450] : memref<32x1152xbf16, #tpu.memory_space<vmem>>, vector<32x128xbf16>
    tpu.vector_store %arg13[%c0_449, %c384_450], %398 {strides = array<i32>} : memref<32x1152xbf16, #tpu.memory_space<vmem>>, vector<32x128xbf16>,
    %c0_451 = arith.constant 0 : index
    %c1280_452 = arith.constant 1280 : index
    %400 = vector.load %arg12[%c0_451, %c1280_452] : memref<32x2048xbf16, #tpu.memory_space<vmem>>, vector<32x128xbf16>
    %c0_453 = arith.constant 0 : index
    %c512_454 = arith.constant 512 : index
    %401 = vector.load %arg13[%c0_453, %c512_454] : memref<32x1152xbf16, #tpu.memory_space<vmem>>, vector<32x128xbf16>
    tpu.vector_store %arg13[%c0_453, %c512_454], %400 {strides = array<i32>} : memref<32x1152xbf16, #tpu.memory_space<vmem>>, vector<32x128xbf16>,
    %c0_455 = arith.constant 0 : index
    %c1408_456 = arith.constant 1408 : index
    %402 = vector.load %arg12[%c0_455, %c1408_456] : memref<32x2048xbf16, #tpu.memory_space<vmem>>, vector<32x128xbf16>
    %c0_457 = arith.constant 0 : index
    %c640_458 = arith.constant 640 : index
    %403 = vector.load %arg13[%c0_457, %c640_458] : memref<32x1152xbf16, #tpu.memory_space<vmem>>, vector<32x128xbf16>
    tpu.vector_store %arg13[%c0_457, %c640_458], %402 {strides = array<i32>} : memref<32x1152xbf16, #tpu.memory_space<vmem>>, vector<32x128xbf16>,
    %c0_459 = arith.constant 0 : index
    %c1664_460 = arith.constant 1664 : index
    %404 = vector.load %arg12[%c0_459, %c1664_460] : memref<32x2048xbf16, #tpu.memory_space<vmem>>, vector<32x128xbf16>
    %c0_461 = arith.constant 0 : index
    %c768_462 = arith.constant 768 : index
    %405 = vector.load %arg13[%c0_461, %c768_462] : memref<32x1152xbf16, #tpu.memory_space<vmem>>, vector<32x128xbf16>
    tpu.vector_store %arg13[%c0_461, %c768_462], %404 {strides = array<i32>} : memref<32x1152xbf16, #tpu.memory_space<vmem>>, vector<32x128xbf16>,
    %c0_463 = arith.constant 0 : index
    %c1792_464 = arith.constant 1792 : index
    %406 = vector.load %arg12[%c0_463, %c1792_464] : memref<32x2048xbf16, #tpu.memory_space<vmem>>, vector<32x128xbf16>
    %c0_465 = arith.constant 0 : index
    %c896_466 = arith.constant 896 : index
    %407 = vector.load %arg13[%c0_465, %c896_466] : memref<32x1152xbf16, #tpu.memory_space<vmem>>, vector<32x128xbf16>
    tpu.vector_store %arg13[%c0_465, %c896_466], %406 {strides = array<i32>} : memref<32x1152xbf16, #tpu.memory_space<vmem>>, vector<32x128xbf16>,
    %c0_467 = arith.constant 0 : index
    %c1920_468 = arith.constant 1920 : index
    %408 = vector.load %arg12[%c0_467, %c1920_468] : memref<32x2048xbf16, #tpu.memory_space<vmem>>, vector<32x128xbf16>
    %c0_469 = arith.constant 0 : index
    %c1024_470 = arith.constant 1024 : index
    %409 = vector.load %arg13[%c0_469, %c1024_470] : memref<32x1152xbf16, #tpu.memory_space<vmem>>, vector<32x128xbf16>
    tpu.vector_store %arg13[%c0_469, %c1024_470], %408 {strides = array<i32>} : memref<32x1152xbf16, #tpu.memory_space<vmem>>, vector<32x128xbf16>,
    %c0_471 = arith.constant 0 : index
    %c0_472 = arith.constant 0 : index
    %410 = vector.load %arg13[%c0_471, %c0_472] : memref<32x1152xbf16, #tpu.memory_space<vmem>>, vector<32x1152xbf16>
    %c0_473 = arith.constant 0 : index
    %c0_474 = arith.constant 0 : index
    %411 = vector.load %arg4[%c0_473, %c0_474] : memref<1152x128xbf16, #tpu.memory_space<vmem>>, vector<1152x128xbf16>
    %cst_475 = arith.constant dense<0.000000e+00> : vector<32x128xf32>
    %412 = tpu.matmul %410, %411, %cst_475 {dimension_numbers = #tpu.dot_dimension_numbers<[1], [0], [0], [1], [0, 0, 1, 1], [], []>} : vector<32x1152xbf16>, vector<1152x128xbf16>, vector<32x128xf32> -> vector<32x128xf32>
    %c0_476 = arith.constant 0 : index
    %c0_477 = arith.constant 0 : index
    %413 = vector.load %arg5[%c0_476, %c0_477] : memref<1x128xf32, #tpu.memory_space<vmem>>, vector<1x128xf32>
    %414 = vector.broadcast %413 : vector<1x128xf32> to vector<32x128xf32>
    %415 = arith.addf %412, %414 : vector<32x128xf32>
    %cst_478 = arith.constant 0.000000e+00 : f32
    %416 = vector.broadcast %cst_478 : f32 to vector<32x128xf32>
    %417 = arith.cmpf oge, %415, %416 : vector<32x128xf32>
    %cst_479 = arith.constant 0.00999999977 : f32
    %418 = vector.broadcast %cst_479 : f32 to vector<32x128xf32>
    %419 = arith.mulf %418, %415 : vector<32x128xf32>
    %420 = arith.select %417, %415, %419 : vector<32x128xi1>, vector<32x128xf32>
    %421 = arith.truncf %420 : vector<32x128xf32> to vector<32x128xbf16>
    %c0_480 = arith.constant 0 : index
    %c384_481 = arith.constant 384 : index
    %422 = vector.load %arg14[%c0_480, %c384_481] : memref<32x512xbf16, #tpu.memory_space<vmem>>, vector<32x128xbf16>
    tpu.vector_store %arg14[%c0_480, %c384_481], %421 {strides = array<i32>} : memref<32x512xbf16, #tpu.memory_space<vmem>>, vector<32x128xbf16>,
    %cst_482 = arith.constant 0.000000e+00 : bf16
    %423 = vector.broadcast %cst_482 : bf16 to vector<8x128xbf16>
    %cst_483 = arith.constant 0.000000e+00 : bf16
    %424 = vector.broadcast %cst_483 : bf16 to vector<2x128xbf16>
    %c0_484 = arith.constant 0 : index
    %c0_485 = arith.constant 0 : index
    %425 = vector.load %arg13[%c0_484, %c0_485] : memref<32x1152xbf16, #tpu.memory_space<vmem>>, vector<8x128xbf16>
    tpu.vector_store %arg13[%c0_484, %c0_485], %423 {strides = array<i32>} : memref<32x1152xbf16, #tpu.memory_space<vmem>>, vector<8x128xbf16>,
    %c8_486 = arith.constant 8 : index
    %c0_487 = arith.constant 0 : index
    %426 = vector.load %arg13[%c8_486, %c0_487] : memref<32x1152xbf16, #tpu.memory_space<vmem>>, vector<2x128xbf16>
    tpu.vector_store %arg13[%c8_486, %c0_487], %424 {strides = array<i32>} : memref<32x1152xbf16, #tpu.memory_space<vmem>>, vector<2x128xbf16>,
    %c0_488 = arith.constant 0 : index
    %c384_489 = arith.constant 384 : index
    %427 = vector.load %arg14[%c0_488, %c384_489] : memref<32x512xbf16, #tpu.memory_space<vmem>>, vector<6x128xbf16>
    %c10_490 = arith.constant 10 : index
    %c0_491 = arith.constant 0 : index
    %428 = vector.load %arg13[%c10_490, %c0_491] : memref<32x1152xbf16, #tpu.memory_space<vmem>>, vector<6x128xbf16>
    tpu.vector_store %arg13[%c10_490, %c0_491], %427 {strides = array<i32>} : memref<32x1152xbf16, #tpu.memory_space<vmem>>, vector<6x128xbf16>,
    %c16_492 = arith.constant 16 : index
    %c0_493 = arith.constant 0 : index
    %429 = vector.load %arg13[%c16_492, %c0_493] : memref<32x1152xbf16, #tpu.memory_space<vmem>>, vector<2x128xbf16>
    tpu.vector_store %arg13[%c16_492, %c0_493], %424 {strides = array<i32>} : memref<32x1152xbf16, #tpu.memory_space<vmem>>, vector<2x128xbf16>,
    %c8_494 = arith.constant 8 : index
    %c384_495 = arith.constant 384 : index
    %430 = vector.load %arg14[%c8_494, %c384_495] : memref<32x512xbf16, #tpu.memory_space<vmem>>, vector<6x128xbf16>
    %c18_496 = arith.constant 18 : index
    %c0_497 = arith.constant 0 : index
    %431 = vector.load %arg13[%c18_496, %c0_497] : memref<32x1152xbf16, #tpu.memory_space<vmem>>, vector<6x128xbf16>
    tpu.vector_store %arg13[%c18_496, %c0_497], %430 {strides = array<i32>} : memref<32x1152xbf16, #tpu.memory_space<vmem>>, vector<6x128xbf16>,
    %c24_498 = arith.constant 24 : index
    %c0_499 = arith.constant 0 : index
    %432 = vector.load %arg13[%c24_498, %c0_499] : memref<32x1152xbf16, #tpu.memory_space<vmem>>, vector<2x128xbf16>
    tpu.vector_store %arg13[%c24_498, %c0_499], %424 {strides = array<i32>} : memref<32x1152xbf16, #tpu.memory_space<vmem>>, vector<2x128xbf16>,
    %c16_500 = arith.constant 16 : index
    %c384_501 = arith.constant 384 : index
    %433 = vector.load %arg14[%c16_500, %c384_501] : memref<32x512xbf16, #tpu.memory_space<vmem>>, vector<6x128xbf16>
    %c26_502 = arith.constant 26 : index
    %c0_503 = arith.constant 0 : index
    %434 = vector.load %arg13[%c26_502, %c0_503] : memref<32x1152xbf16, #tpu.memory_space<vmem>>, vector<6x128xbf16>
    tpu.vector_store %arg13[%c26_502, %c0_503], %433 {strides = array<i32>} : memref<32x1152xbf16, #tpu.memory_space<vmem>>, vector<6x128xbf16>,
    %cst_504 = arith.constant 0.000000e+00 : bf16
    %435 = vector.broadcast %cst_504 : bf16 to vector<8x128xbf16>
    %c0_505 = arith.constant 0 : index
    %c128_506 = arith.constant 128 : index
    %436 = vector.load %arg13[%c0_505, %c128_506] : memref<32x1152xbf16, #tpu.memory_space<vmem>>, vector<8x128xbf16>
    tpu.vector_store %arg13[%c0_505, %c128_506], %435 {strides = array<i32>} : memref<32x1152xbf16, #tpu.memory_space<vmem>>, vector<8x128xbf16>,
    %c0_507 = arith.constant 0 : index
    %c256_508 = arith.constant 256 : index
    %437 = vector.load %arg14[%c0_507, %c256_508] : memref<32x512xbf16, #tpu.memory_space<vmem>>, vector<24x128xbf16>
    %c8_509 = arith.constant 8 : index
    %c128_510 = arith.constant 128 : index
    %438 = vector.load %arg13[%c8_509, %c128_510] : memref<32x1152xbf16, #tpu.memory_space<vmem>>, vector<24x128xbf16>
    tpu.vector_store %arg13[%c8_509, %c128_510], %437 {strides = array<i32>} : memref<32x1152xbf16, #tpu.memory_space<vmem>>, vector<24x128xbf16>,
    %cst_511 = arith.constant 0.000000e+00 : bf16
    %439 = vector.broadcast %cst_511 : bf16 to vector<8x128xbf16>
    %c0_512 = arith.constant 0 : index
    %c256_513 = arith.constant 256 : index
    %440 = vector.load %arg13[%c0_512, %c256_513] : memref<32x1152xbf16, #tpu.memory_space<vmem>>, vector<8x128xbf16>
    tpu.vector_store %arg13[%c0_512, %c256_513], %439 {strides = array<i32>} : memref<32x1152xbf16, #tpu.memory_space<vmem>>, vector<8x128xbf16>,
    %c0_514 = arith.constant 0 : index
    %c384_515 = arith.constant 384 : index
    %441 = vector.load %arg14[%c0_514, %c384_515] : memref<32x512xbf16, #tpu.memory_space<vmem>>, vector<24x128xbf16>
    %c8_516 = arith.constant 8 : index
    %c256_517 = arith.constant 256 : index
    %442 = vector.load %arg13[%c8_516, %c256_517] : memref<32x1152xbf16, #tpu.memory_space<vmem>>, vector<24x128xbf16>
    tpu.vector_store %arg13[%c8_516, %c256_517], %441 {strides = array<i32>} : memref<32x1152xbf16, #tpu.memory_space<vmem>>, vector<24x128xbf16>,
    %cst_518 = arith.constant 0.000000e+00 : bf16
    %443 = vector.broadcast %cst_518 : bf16 to vector<2x128xbf16>
    %c0_519 = arith.constant 0 : index
    %c384_520 = arith.constant 384 : index
    %444 = vector.load %arg13[%c0_519, %c384_520] : memref<32x1152xbf16, #tpu.memory_space<vmem>>, vector<2x128xbf16>
    tpu.vector_store %arg13[%c0_519, %c384_520], %443 {strides = array<i32>} : memref<32x1152xbf16, #tpu.memory_space<vmem>>, vector<2x128xbf16>,
    %c0_521 = arith.constant 0 : index
    %c128_522 = arith.constant 128 : index
    %445 = vector.load %arg14[%c0_521, %c128_522] : memref<32x512xbf16, #tpu.memory_space<vmem>>, vector<6x128xbf16>
    %c2_523 = arith.constant 2 : index
    %c384_524 = arith.constant 384 : index
    %446 = vector.load %arg13[%c2_523, %c384_524] : memref<32x1152xbf16, #tpu.memory_space<vmem>>, vector<6x128xbf16>
    tpu.vector_store %arg13[%c2_523, %c384_524], %445 {strides = array<i32>} : memref<32x1152xbf16, #tpu.memory_space<vmem>>, vector<6x128xbf16>,
    %c8_525 = arith.constant 8 : index
    %c384_526 = arith.constant 384 : index
    %447 = vector.load %arg13[%c8_525, %c384_526] : memref<32x1152xbf16, #tpu.memory_space<vmem>>, vector<2x128xbf16>
    tpu.vector_store %arg13[%c8_525, %c384_526], %443 {strides = array<i32>} : memref<32x1152xbf16, #tpu.memory_space<vmem>>, vector<2x128xbf16>,
    %c8_527 = arith.constant 8 : index
    %c128_528 = arith.constant 128 : index
    %448 = vector.load %arg14[%c8_527, %c128_528] : memref<32x512xbf16, #tpu.memory_space<vmem>>, vector<6x128xbf16>
    %c10_529 = arith.constant 10 : index
    %c384_530 = arith.constant 384 : index
    %449 = vector.load %arg13[%c10_529, %c384_530] : memref<32x1152xbf16, #tpu.memory_space<vmem>>, vector<6x128xbf16>
    tpu.vector_store %arg13[%c10_529, %c384_530], %448 {strides = array<i32>} : memref<32x1152xbf16, #tpu.memory_space<vmem>>, vector<6x128xbf16>,
    %c16_531 = arith.constant 16 : index
    %c384_532 = arith.constant 384 : index
    %450 = vector.load %arg13[%c16_531, %c384_532] : memref<32x1152xbf16, #tpu.memory_space<vmem>>, vector<2x128xbf16>
    tpu.vector_store %arg13[%c16_531, %c384_532], %443 {strides = array<i32>} : memref<32x1152xbf16, #tpu.memory_space<vmem>>, vector<2x128xbf16>,
    %c16_533 = arith.constant 16 : index
    %c128_534 = arith.constant 128 : index
    %451 = vector.load %arg14[%c16_533, %c128_534] : memref<32x512xbf16, #tpu.memory_space<vmem>>, vector<6x128xbf16>
    %c18_535 = arith.constant 18 : index
    %c384_536 = arith.constant 384 : index
    %452 = vector.load %arg13[%c18_535, %c384_536] : memref<32x1152xbf16, #tpu.memory_space<vmem>>, vector<6x128xbf16>
    tpu.vector_store %arg13[%c18_535, %c384_536], %451 {strides = array<i32>} : memref<32x1152xbf16, #tpu.memory_space<vmem>>, vector<6x128xbf16>,
    %c24_537 = arith.constant 24 : index
    %c384_538 = arith.constant 384 : index
    %453 = vector.load %arg13[%c24_537, %c384_538] : memref<32x1152xbf16, #tpu.memory_space<vmem>>, vector<2x128xbf16>
    tpu.vector_store %arg13[%c24_537, %c384_538], %443 {strides = array<i32>} : memref<32x1152xbf16, #tpu.memory_space<vmem>>, vector<2x128xbf16>,
    %c24_539 = arith.constant 24 : index
    %c128_540 = arith.constant 128 : index
    %454 = vector.load %arg14[%c24_539, %c128_540] : memref<32x512xbf16, #tpu.memory_space<vmem>>, vector<6x128xbf16>
    %c26_541 = arith.constant 26 : index
    %c384_542 = arith.constant 384 : index
    %455 = vector.load %arg13[%c26_541, %c384_542] : memref<32x1152xbf16, #tpu.memory_space<vmem>>, vector<6x128xbf16>
    tpu.vector_store %arg13[%c26_541, %c384_542], %454 {strides = array<i32>} : memref<32x1152xbf16, #tpu.memory_space<vmem>>, vector<6x128xbf16>,
    %c0_543 = arith.constant 0 : index
    %c0_544 = arith.constant 0 : index
    %456 = vector.load %arg14[%c0_543, %c0_544] : memref<32x512xbf16, #tpu.memory_space<vmem>>, vector<32x128xbf16>
    %c0_545 = arith.constant 0 : index
    %c512_546 = arith.constant 512 : index
    %457 = vector.load %arg13[%c0_545, %c512_546] : memref<32x1152xbf16, #tpu.memory_space<vmem>>, vector<32x128xbf16>
    tpu.vector_store %arg13[%c0_545, %c512_546], %456 {strides = array<i32>} : memref<32x1152xbf16, #tpu.memory_space<vmem>>, vector<32x128xbf16>,
    %c0_547 = arith.constant 0 : index
    %c128_548 = arith.constant 128 : index
    %458 = vector.load %arg14[%c0_547, %c128_548] : memref<32x512xbf16, #tpu.memory_space<vmem>>, vector<32x128xbf16>
    %c0_549 = arith.constant 0 : index
    %c640_550 = arith.constant 640 : index
    %459 = vector.load %arg13[%c0_549, %c640_550] : memref<32x1152xbf16, #tpu.memory_space<vmem>>, vector<32x128xbf16>
    tpu.vector_store %arg13[%c0_549, %c640_550], %458 {strides = array<i32>} : memref<32x1152xbf16, #tpu.memory_space<vmem>>, vector<32x128xbf16>,
    %cst_551 = arith.constant 0.000000e+00 : bf16
    %460 = vector.broadcast %cst_551 : bf16 to vector<2x128xbf16>
    %c0_552 = arith.constant 0 : index
    %c768_553 = arith.constant 768 : index
    %461 = vector.load %arg13[%c0_552, %c768_553] : memref<32x1152xbf16, #tpu.memory_space<vmem>>, vector<2x128xbf16>
    tpu.vector_store %arg13[%c0_552, %c768_553], %460 {strides = array<i32>} : memref<32x1152xbf16, #tpu.memory_space<vmem>>, vector<2x128xbf16>,
    %c0_554 = arith.constant 0 : index
    %c384_555 = arith.constant 384 : index
    %462 = vector.load %arg14[%c0_554, %c384_555] : memref<32x512xbf16, #tpu.memory_space<vmem>>, vector<6x128xbf16>
    %c2_556 = arith.constant 2 : index
    %c768_557 = arith.constant 768 : index
    %463 = vector.load %arg13[%c2_556, %c768_557] : memref<32x1152xbf16, #tpu.memory_space<vmem>>, vector<6x128xbf16>
    tpu.vector_store %arg13[%c2_556, %c768_557], %462 {strides = array<i32>} : memref<32x1152xbf16, #tpu.memory_space<vmem>>, vector<6x128xbf16>,
    %c8_558 = arith.constant 8 : index
    %c768_559 = arith.constant 768 : index
    %464 = vector.load %arg13[%c8_558, %c768_559] : memref<32x1152xbf16, #tpu.memory_space<vmem>>, vector<2x128xbf16>
    tpu.vector_store %arg13[%c8_558, %c768_559], %460 {strides = array<i32>} : memref<32x1152xbf16, #tpu.memory_space<vmem>>, vector<2x128xbf16>,
    %c8_560 = arith.constant 8 : index
    %c384_561 = arith.constant 384 : index
    %465 = vector.load %arg14[%c8_560, %c384_561] : memref<32x512xbf16, #tpu.memory_space<vmem>>, vector<6x128xbf16>
    %c10_562 = arith.constant 10 : index
    %c768_563 = arith.constant 768 : index
    %466 = vector.load %arg13[%c10_562, %c768_563] : memref<32x1152xbf16, #tpu.memory_space<vmem>>, vector<6x128xbf16>
    tpu.vector_store %arg13[%c10_562, %c768_563], %465 {strides = array<i32>} : memref<32x1152xbf16, #tpu.memory_space<vmem>>, vector<6x128xbf16>,
    %c16_564 = arith.constant 16 : index
    %c768_565 = arith.constant 768 : index
    %467 = vector.load %arg13[%c16_564, %c768_565] : memref<32x1152xbf16, #tpu.memory_space<vmem>>, vector<2x128xbf16>
    tpu.vector_store %arg13[%c16_564, %c768_565], %460 {strides = array<i32>} : memref<32x1152xbf16, #tpu.memory_space<vmem>>, vector<2x128xbf16>,
    %c16_566 = arith.constant 16 : index
    %c384_567 = arith.constant 384 : index
    %468 = vector.load %arg14[%c16_566, %c384_567] : memref<32x512xbf16, #tpu.memory_space<vmem>>, vector<6x128xbf16>
    %c18_568 = arith.constant 18 : index
    %c768_569 = arith.constant 768 : index
    %469 = vector.load %arg13[%c18_568, %c768_569] : memref<32x1152xbf16, #tpu.memory_space<vmem>>, vector<6x128xbf16>
    tpu.vector_store %arg13[%c18_568, %c768_569], %468 {strides = array<i32>} : memref<32x1152xbf16, #tpu.memory_space<vmem>>, vector<6x128xbf16>,
    %c24_570 = arith.constant 24 : index
    %c768_571 = arith.constant 768 : index
    %470 = vector.load %arg13[%c24_570, %c768_571] : memref<32x1152xbf16, #tpu.memory_space<vmem>>, vector<2x128xbf16>
    tpu.vector_store %arg13[%c24_570, %c768_571], %460 {strides = array<i32>} : memref<32x1152xbf16, #tpu.memory_space<vmem>>, vector<2x128xbf16>,
    %c24_572 = arith.constant 24 : index
    %c384_573 = arith.constant 384 : index
    %471 = vector.load %arg14[%c24_572, %c384_573] : memref<32x512xbf16, #tpu.memory_space<vmem>>, vector<6x128xbf16>
    %c26_574 = arith.constant 26 : index
    %c768_575 = arith.constant 768 : index
    %472 = vector.load %arg13[%c26_574, %c768_575] : memref<32x1152xbf16, #tpu.memory_space<vmem>>, vector<6x128xbf16>
    tpu.vector_store %arg13[%c26_574, %c768_575], %471 {strides = array<i32>} : memref<32x1152xbf16, #tpu.memory_space<vmem>>, vector<6x128xbf16>,
    %c0_576 = arith.constant 0 : index
    %c256_577 = arith.constant 256 : index
    %473 = vector.load %arg14[%c0_576, %c256_577] : memref<32x512xbf16, #tpu.memory_space<vmem>>, vector<32x128xbf16>
    %c0_578 = arith.constant 0 : index
    %c896_579 = arith.constant 896 : index
    %474 = vector.load %arg13[%c0_578, %c896_579] : memref<32x1152xbf16, #tpu.memory_space<vmem>>, vector<32x128xbf16>
    tpu.vector_store %arg13[%c0_578, %c896_579], %473 {strides = array<i32>} : memref<32x1152xbf16, #tpu.memory_space<vmem>>, vector<32x128xbf16>,
    %c0_580 = arith.constant 0 : index
    %c384_581 = arith.constant 384 : index
    %475 = vector.load %arg14[%c0_580, %c384_581] : memref<32x512xbf16, #tpu.memory_space<vmem>>, vector<32x128xbf16>
    %c0_582 = arith.constant 0 : index
    %c1024_583 = arith.constant 1024 : index
    %476 = vector.load %arg13[%c0_582, %c1024_583] : memref<32x1152xbf16, #tpu.memory_space<vmem>>, vector<32x128xbf16>
    tpu.vector_store %arg13[%c0_582, %c1024_583], %475 {strides = array<i32>} : memref<32x1152xbf16, #tpu.memory_space<vmem>>, vector<32x128xbf16>,
    %c0_584 = arith.constant 0 : index
    %c0_585 = arith.constant 0 : index
    %477 = vector.load %arg13[%c0_584, %c0_585] : memref<32x1152xbf16, #tpu.memory_space<vmem>>, vector<32x1152xbf16>
    %c0_586 = arith.constant 0 : index
    %c0_587 = arith.constant 0 : index
    %478 = vector.load %arg6[%c0_586, %c0_587] : memref<1152x256xbf16, #tpu.memory_space<vmem>>, vector<1152x256xbf16>
    %cst_588 = arith.constant dense<0.000000e+00> : vector<32x256xf32>
    %479 = tpu.matmul %477, %478, %cst_588 {dimension_numbers = #tpu.dot_dimension_numbers<[1], [0], [0], [1], [0, 0, 1, 1], [], []>} : vector<32x1152xbf16>, vector<1152x256xbf16>, vector<32x256xf32> -> vector<32x256xf32>
    %c0_589 = arith.constant 0 : index
    %c0_590 = arith.constant 0 : index
    %480 = vector.load %arg7[%c0_589, %c0_590] : memref<1x256xf32, #tpu.memory_space<vmem>>, vector<1x256xf32>
    %481 = vector.broadcast %480 : vector<1x256xf32> to vector<32x256xf32>
    %482 = arith.addf %479, %481 : vector<32x256xf32>
    %cst_591 = arith.constant 0.000000e+00 : f32
    %483 = vector.broadcast %cst_591 : f32 to vector<32x256xf32>
    %484 = arith.cmpf oge, %482, %483 : vector<32x256xf32>
    %cst_592 = arith.constant 0.00999999977 : f32
    %485 = vector.broadcast %cst_592 : f32 to vector<32x256xf32>
    %486 = arith.mulf %485, %482 : vector<32x256xf32>
    %487 = arith.select %484, %482, %486 : vector<32x256xi1>, vector<32x256xf32>
    %c0_593 = arith.constant 0 : index
    %c0_594 = arith.constant 0 : index
    %488 = vector.load %arg8[%c0_593, %c0_594] : memref<32x256xf32, #tpu.memory_space<vmem>>, vector<32x256xf32>
    %489 = arith.mulf %487, %488 : vector<32x256xf32>
    %c0_595 = arith.constant 0 : index
    %c0_596 = arith.constant 0 : index
    %490 = vector.load %arg9[%c0_595, %c0_596] : memref<8x32xf32, #tpu.memory_space<vmem>>, vector<8x32xf32>
    %cst_597 = arith.constant dense<0.000000e+00> : vector<8x256xf32>
    %491 = tpu.matmul %490, %489, %cst_597 {dimension_numbers = #tpu.dot_dimension_numbers<[1], [0], [0], [1], [0, 0, 1, 1], [], []>} : vector<8x32xf32>, vector<32x256xf32>, vector<8x256xf32> -> vector<8x256xf32>
    %cst_598 = arith.constant dense<0.000000e+00> : vector<8xf32>
    %492 = vector.multi_reduction <add>, %491, %cst_598 [1] : vector<8x256xf32> to vector<8xf32>
    %493 = vector.shape_cast %492 : vector<8xf32> to vector<8x1xf32>
    %c0_599 = arith.constant 0 : index
    %c0_600 = arith.constant 0 : index
    %494 = vector.load %arg10[%c0_599, %c0_600] : memref<1x1xf32, #tpu.memory_space<vmem>>, vector<1x1xf32>
    %495 = vector.broadcast %494 : vector<1x1xf32> to vector<8x1xf32>
    %496 = arith.addf %493, %495 : vector<8x1xf32>
    %497 = vector.extract_strided_slice %496 {offsets = [0, 0], sizes = [2, 1], strides = [1, 1]} : vector<8x1xf32> to vector<2x1xf32>
    %c0_601 = arith.constant 0 : index
    %c0_602 = arith.constant 0 : index
    %c0_603 = arith.constant 0 : index
    %498 = vector.load %arg11[%c0_601, %c0_602, %c0_603] : memref<1x2x1xf32, #tpu.memory_space<vmem>>, vector<1x2x1xf32>
    %499 = vector.shape_cast %498 : vector<1x2x1xf32> to vector<2x1xf32>
    %500 = vector.shape_cast %497 : vector<2x1xf32> to vector<1x2x1xf32>
    tpu.vector_store %arg11[%c0_601, %c0_602, %c0_603], %500 {strides = array<i32>} : memref<1x2x1xf32, #tpu.memory_space<vmem>>, vector<1x2x1xf32>,
    return
  }
  func.func @transform_0(%arg0: i32) -> (i32, i32, i32) {
    %c0_i32 = arith.constant 0 : i32
    %c0_i32_0 = arith.constant 0 : i32
    %c0_i32_1 = arith.constant 0 : i32
    return %arg0, %c0_i32, %c0_i32_0 : i32, i32, i32
  }
  func.func @transform_1(%arg0: i32) -> (i32, i32) {
    %c0_i32 = arith.constant 0 : i32
    %c0_i32_0 = arith.constant 0 : i32
    %c0_i32_1 = arith.constant 0 : i32
    return %c0_i32, %c0_i32_0 : i32, i32
  }
  func.func @transform_2(%arg0: i32) -> (i32, i32) {
    %c0_i32 = arith.constant 0 : i32
    %c0_i32_0 = arith.constant 0 : i32
    %c0_i32_1 = arith.constant 0 : i32
    return %c0_i32, %c0_i32_0 : i32, i32
  }
  func.func @transform_3(%arg0: i32) -> (i32, i32) {
    %c0_i32 = arith.constant 0 : i32
    %c0_i32_0 = arith.constant 0 : i32
    %c0_i32_1 = arith.constant 0 : i32
    return %c0_i32, %c0_i32_0 : i32, i32
  }
  func.func @transform_4(%arg0: i32) -> (i32, i32) {
    %c0_i32 = arith.constant 0 : i32
    %c0_i32_0 = arith.constant 0 : i32
    %c0_i32_1 = arith.constant 0 : i32
    return %c0_i32, %c0_i32_0 : i32, i32
  }
  func.func @transform_5(%arg0: i32) -> (i32, i32) {
    %c0_i32 = arith.constant 0 : i32
    %c0_i32_0 = arith.constant 0 : i32
    %c0_i32_1 = arith.constant 0 : i32
    return %c0_i32, %c0_i32_0 : i32, i32
  }
  func.func @transform_6(%arg0: i32) -> (i32, i32) {
    %c0_i32 = arith.constant 0 : i32
    %c0_i32_0 = arith.constant 0 : i32
    %c0_i32_1 = arith.constant 0 : i32
    return %c0_i32, %c0_i32_0 : i32, i32
  }
  func.func @transform_7(%arg0: i32) -> (i32, i32) {
    %c0_i32 = arith.constant 0 : i32
    %c0_i32_0 = arith.constant 0 : i32
    %c0_i32_1 = arith.constant 0 : i32
    return %c0_i32, %c0_i32_0 : i32, i32
  }
  func.func @transform_8(%arg0: i32) -> (i32, i32) {
    %c0_i32 = arith.constant 0 : i32
    %c0_i32_0 = arith.constant 0 : i32
    %c0_i32_1 = arith.constant 0 : i32
    return %c0_i32, %c0_i32_0 : i32, i32
  }
  func.func @transform_9(%arg0: i32) -> (i32, i32) {
    %c0_i32 = arith.constant 0 : i32
    %c0_i32_0 = arith.constant 0 : i32
    %c0_i32_1 = arith.constant 0 : i32
    return %c0_i32, %c0_i32_0 : i32, i32
  }
  func.func @transform_10(%arg0: i32) -> (i32, i32, i32) {
    %c0_i32 = arith.constant 0 : i32
    %c0_i32_0 = arith.constant 0 : i32
    %c0_i32_1 = arith.constant 0 : i32
    return %arg0, %c0_i32, %c0_i32_0 : i32, i32, i32
  }
}

</mosaic_0001>

<bundles_post_ra>
// kernel: discriminator_forward.1
= control target key start
LH: loop header
LB: loop body
LE: loop exit
PB: predicated region body
PF: predicated region fallthrough
CT: control target
= control target key end

     0   :  { %vm72_vm0 = vcmask 261120   ;;  %s12683_s1 = inlined_call_operand.vmem [shape: bf16[32,128], index: 1, kind: input, shape index: {}]   ;;  %s12684_s0 = inlined_call_operand.vmem [shape: bf16[1,512,32], index: 0, kind: input, shape index: {}]   ;;  %s12685_s2 = inlined_call_operand.vmem [shape: f32[1,128], index: 2, kind: input, shape index: {}]   ;;  %s12686_s3 = inlined_call_operand.vmem [shape: bf16[1152,128], index: 3, kind: input, shape index: {}]   ;;  %s12687_s4 = inlined_call_operand.vmem [shape: f32[1,128], index: 4, kind: input, shape index: {}]   ;;  %s12688_s5 = inlined_call_operand.vmem [shape: bf16[1152,256], index: 5, kind: input, shape index: {}]   ;;  %s12689_s6 = inlined_call_operand.vmem [shape: f32[1,256], index: 6, kind: input, shape index: {}]   ;;  %s12690_s7 = inlined_call_operand.vmem [shape: f32[32,256], index: 7, kind: input, shape index: {}]   ;;  %s12691_s8 = inlined_call_operand.vmem [shape: f32[8,32], index: 8, kind: input, shape index: {}]   ;;  %s12692_s9 = inlined_call_operand.<no memory space> [shape: f32[1,1], index: 9, kind: input, shape index: {}]   ;;  %s12693_s10 = inlined_call_operand.vmem [shape: f32[1,2,1], index: 10, kind: output, shape index: {}]  }
   0x1   :  { %v9125_v0 = vld [vmem:[%s12683_s1 + $0x8] sm:$0xff]  ;;  %v9124_v2 = vld [vmem:[%s12683_s1] sm:$0xff]  ;;  %v9126_v8 = vld [vmem:[%s12684_s0 + $0x10] sm:$0xff] }
   0x2   :  { %v9129_v1 = vld [vmem:[%s12683_s1 + $0x8] sm:$0xff]  ;;  %85 = vmatpush.bf16.msra.mxu0 %v9125_v0  ;;  %9708 = vmatpush.bf16.msra.mxu2 %v9125_v0  ;;  %v9128_v3 = vld [vmem:[%s12683_s1] sm:$0xff]  ;;  %v9127_v9 = vld [vmem:[%s12684_s0 + $0x18] sm:$0xff] }
   0x3   :  { %164 = vmatpush.bf16.msra.mxu1 %v9129_v1  ;;  %9710 = vmatpush.bf16.msra.mxu3 %v9129_v1  ;;  %v9133_v4 = vld [vmem:[%s12683_s1 + $0x8] sm:$0xff]  ;;  %v9122_v6 = vld [vmem:[%s12684_s0] sm:$0xff]  ;;  %v9134_v26 = vld [vmem:[%s12684_s0 + $0x30] sm:$0xff] }
   0x4   :  { %v9137_v5 = vld [vmem:[%s12683_s1 + $0x8] sm:$0xff]  ;;  %v9132_v12 = vld [vmem:[%s12683_s1] sm:$0xff]  ;;  %v9142_v27 = vld [vmem:[%s12684_s0 + $0x50] sm:$0xff] }
   0x5   :  { %v9123_v7 = vld [vmem:[%s12684_s0 + $0x8] sm:$0xff]  ;;  %v9136_v13 = vld [vmem:[%s12683_s1] sm:$0xff]  ;;  %v9135_v30 = vld [vmem:[%s12684_s0 + $0x38] sm:$0xff] }
   0x6   :  { %86 = vmatpush.bf16.msra.mxu0 %v9124_v2  ;;  %9709 = vmatpush.bf16.msra.mxu2 %v9124_v2  ;;  %v9141_v10 = vld [vmem:[%s12683_s1 + $0x8] sm:$0xff]  ;;  %v9140_v16 = vld [vmem:[%s12683_s1] sm:$0xff]  ;;  %v9143_v31 = vld [vmem:[%s12684_s0 + $0x58] sm:$0xff] }
   0x7   :  { %v9145_v11 = vld [vmem:[%s12683_s1 + $0x8] sm:$0xff]  ;;  %165 = vmatpush.bf16.msra.mxu1 %v9128_v3  ;;  %9711 = vmatpush.bf16.msra.mxu3 %v9128_v3  ;;  %v9144_v17 = vld [vmem:[%s12683_s1] sm:$0xff]  ;;  %v9150_v42 = vld [vmem:[%s12684_s0 + $0x70] sm:$0xff] }
   0x8   :  { %v9149_v14 = vld [vmem:[%s12683_s1 + $0x8] sm:$0xff]  ;;  %v9148_v20 = vld [vmem:[%s12683_s1] sm:$0xff]  ;;  %v9158_v43 = vld [vmem:[%s12684_s0 + $0x90] sm:$0xff] }
   0x9   :  { %6760 = vmatmul.msk.bf16.vlgmr.msra.gmra.mxu0 %vm72_vm0, %v9122_v6  ;;  %6761 = vmatmul.msk.bf16.vlgmr.msra.gmra.mxu2 %vm72_vm0, %v9123_v7  ;;  %v9153_v15 = vld [vmem:[%s12683_s1 + $0x8] sm:$0xff]  ;;  %v9152_v21 = vld [vmem:[%s12683_s1] sm:$0xff]  ;;  %v9151_v46 = vld [vmem:[%s12684_s0 + $0x78] sm:$0xff] }
   0xa   :  { %243 = vmatpush.bf16.msrb.mxu2 %v9133_v4  ;;  %6778 = vmatmul.msk.bf16.vlgmr.msra.gmra.mxu1 %vm72_vm0, %v9126_v8  ;;  %v9157_v18 = vld [vmem:[%s12683_s1 + $0x8] sm:$0xff]  ;;  %v9156_v22 = vld [vmem:[%s12683_s1] sm:$0xff]  ;;  %v9159_v47 = vld [vmem:[%s12684_s0 + $0x98] sm:$0xff] }
   0xb   :  { %322 = vmatpush.bf16.msrb.mxu3 %v9137_v5  ;;  %401 = vmatpush.bf16.msrb.mxu0 %v9141_v10  ;;  %v9161_v19 = vld [vmem:[%s12683_s1 + $0x8] sm:$0xff]  ;;  %v9160_v23 = vld [vmem:[%s12683_s1] sm:$0xff]  ;;  %v9166_v54 = vld [vmem:[%s12684_s0 + $0xb0] sm:$0xff] }
   0xc   :  { %6779 = vmatmul.msk.bf16.vlgmr.msra.gmra.mxu3 %vm72_vm0, %v9127_v9  ;;  %480 = vmatpush.bf16.msrb.mxu1 %v9145_v11  ;;  %v9130_v24 = vld [vmem:[%s12684_s0 + $0x20] sm:$0xff]  ;;  %v9131_v28 = vld [vmem:[%s12684_s0 + $0x28] sm:$0xff]  ;;  %v9174_v55 = vld [vmem:[%s12684_s0 + $0xd0] sm:$0xff] }
   0xd   :  { %v9138_v25 = vld [vmem:[%s12684_s0 + $0x40] sm:$0xff]  ;;  %v9139_v29 = vld [vmem:[%s12684_s0 + $0x48] sm:$0xff]  ;;  %v9167_v58 = vld [vmem:[%s12684_s0 + $0xb8] sm:$0xff] }
   0xe   :  { %244 = vmatpush.bf16.msrb.mxu2 %v9132_v12  ;;  %v9165_v32 = vld [vmem:[%s12683_s1 + $0x8] sm:$0xff]  ;;  %v9164_v36 = vld [vmem:[%s12683_s1] sm:$0xff]  ;;  %v9175_v59 = vld [vmem:[%s12684_s0 + $0xd8] sm:$0xff] }
   0xf   :  { %323 = vmatpush.bf16.msrb.mxu3 %v9136_v13  ;;  %402 = vmatpush.bf16.msrb.mxu0 %v9140_v16  ;;  %v9169_v33 = vld [vmem:[%s12683_s1 + $0x8] sm:$0xff]  ;;  %v9168_v37 = vld [vmem:[%s12683_s1] sm:$0xff]  ;;  %v9182_v61 = vld [vmem:[%s12684_s0 + $0xf0] sm:$0xff] }
  0x10   :  { %481 = vmatpush.bf16.msrb.mxu1 %v9144_v17  ;;  %v9173_v34 = vld [vmem:[%s12683_s1 + $0x8] sm:$0xff]  ;;  %v9172_v38 = vld [vmem:[%s12683_s1] sm:$0xff]  ;;  %v9235_v62 = vld [vmem:[%s12686_s3 + $0xf8] sm:$0xff] }
  0x11   :  { %v9177_v35 = vld [vmem:[%s12683_s1 + $0x8] sm:$0xff]  ;;  %v9176_v39 = vld [vmem:[%s12683_s1] sm:$0xff]  ;;  %v9234_v63 = vld [vmem:[%s12686_s3 + $0xf0] sm:$0xff] }
  0x12   :  { %559 = vmatpush.bf16.msra.mxu2 %v9149_v14  ;;  %v9146_v40 = vld [vmem:[%s12684_s0 + $0x60] sm:$0xff]  ;;  %v9147_v44 = vld [vmem:[%s12684_s0 + $0x68] sm:$0xff]  ;;  %v9183_v4 = vld [vmem:[%s12684_s0 + $0xf8] sm:$0xff] }
  0x13   :  { %638 = vmatpush.bf16.msra.mxu3 %v9153_v15  ;;  %717 = vmatpush.bf16.msra.mxu0 %v9157_v18  ;;  %v9154_v41 = vld [vmem:[%s12684_s0 + $0x80] sm:$0xff]  ;;  %v9155_v45 = vld [vmem:[%s12684_s0 + $0x88] sm:$0xff] }
  0x14   :  { %796 = vmatpush.bf16.msra.mxu1 %v9161_v19  ;;  %v9181_v48 = vld [vmem:[%s12683_s1 + $0x8] sm:$0xff]  ;;  %v9180_v50 = vld [vmem:[%s12683_s1] sm:$0xff] }
  0x15   :  { %v9185_v49 = vld [vmem:[%s12683_s1 + $0x8] sm:$0xff]  ;;  %v9184_v51 = vld [vmem:[%s12683_s1] sm:$0xff] }
  0x16   :  { %560 = vmatpush.bf16.msra.mxu2 %v9148_v20  ;;  %v9162_v52 = vld [vmem:[%s12684_s0 + $0xa0] sm:$0xff]  ;;  %v9163_v56 = vld [vmem:[%s12684_s0 + $0xa8] sm:$0xff] }
  0x17   :  { %639 = vmatpush.bf16.msra.mxu3 %v9152_v21  ;;  %718 = vmatpush.bf16.msra.mxu0 %v9156_v22  ;;  %v9170_v53 = vld [vmem:[%s12684_s0 + $0xc0] sm:$0xff]  ;;  %v9171_v57 = vld [vmem:[%s12684_s0 + $0xc8] sm:$0xff] }
  0x18   :  { %797 = vmatpush.bf16.msra.mxu1 %v9160_v23  ;;  %v9178_v60 = vld [vmem:[%s12684_s0 + $0xe0] sm:$0xff]  ;;  %v9179_v1 = vld [vmem:[%s12684_s0 + $0xe8] sm:$0xff] }
  0x19   :  { %6796 = vmatmul.msk.bf16.vlgmr.msrb.gmra.mxu2 %vm72_vm0, %v9130_v24  ;;  %6832 = vmatmul.msk.bf16.vlgmr.msrb.gmra.mxu0 %vm72_vm0, %v9138_v25  ;;  %v9713_v0 = vld [vmem:[%s12685_s2] ss:$0 sm:$0xff]  ;;  %v9233_v8 = vld [vmem:[%s12686_s3 + $0xe8] sm:$0xff] }
  0x1a   :  { %6850 = vmatmul.msk.bf16.vlgmr.msrb.gmra.mxu1 %vm72_vm0, %v9142_v27  ;;  %875 = vmatpush.bf16.msrb.mxu2 %v9165_v32  ;;  %v9714_v3 = vld [vmem:[%s12685_s2] ss:$0 sm:$0xff]  ;;  %v12694_v27 = vmov 0  }
  0x1b   :  { %1033 = vmatpush.bf16.msrb.mxu0 %v9173_v34  ;;  %v9232_v15 = vld [vmem:[%s12686_s3 + $0xe0] sm:$0xff]  ;;  %1336 = vst [vmem:[#allocation3 + $0xc] sm:$0x1] %v12694_v27 }
  0x1c   :  { %6814 = vmatmul.msk.bf16.vlgmr.msrb.gmra.mxu3 %vm72_vm0, %v9134_v26  ;;  %1112 = vmatpush.bf16.msrb.mxu1 %v9177_v35  ;;  %v9231_v26 = vld [vmem:[%s12686_s3 + $0xd8] sm:$0xff]  ;;  %1342 = vst [vmem:[#allocation3 + $0x30] sm:$0x1] %v12694_v27  ;;  %v10041_v35 = vld [vmem:[%s12685_s2] ss:$0 sm:$0xff] }
  0x1d   :  { %954 = vmatpush.bf16.msrb.mxu3 %v9169_v33  ;;  %1303 = vst [vmem:[#allocation3] sm:$0xf] %v12694_v27 }
  0x1e   :  { %876 = vmatpush.bf16.msrb.mxu2 %v9164_v36  ;;  %1304 = vst [vmem:[#allocation3 + $0x24] sm:$0x1] %v12694_v27 }
  0x1f   :  { %1034 = vmatpush.bf16.msrb.mxu0 %v9172_v38  ;;  %1310 = vst [vmem:[#allocation3 + $0x48] sm:$0x1] %v12694_v27 }
  0x20   :  { %1113 = vmatpush.bf16.msrb.mxu1 %v9176_v39  ;;  %v10047_v39 = vld [vmem:[%s12685_s2] ss:$0 sm:$0xff]  ;;  %1316 = vst [vmem:[#allocation3 + $0x6c] sm:$0x1] %v12694_v27 }
  0x21   :  { %955 = vmatpush.bf16.msrb.mxu3 %v9168_v37  ;;  %1322 = vst [vmem:[#allocation3 + $0x4] sm:$0xf] %v12694_v27 }
  0x22   :  { %1329 = vst [vmem:[#allocation3 + $0x8] sm:$0xf] %v12694_v27 }
  0x23   :  { %1348 = vst [vmem:[#allocation3 + $0x54] sm:$0x1] %v12694_v27 }
  0x24   :  { %1354 = vst [vmem:[#allocation3 + $0x78] sm:$0x1] %v12694_v27 }
  0x25   :  { %1376 = vst [vmem:[#allocation3 + $0x18] sm:$0x1] %v12694_v27 }
  0x26   :  { %1382 = vst [vmem:[#allocation3 + $0x3c] sm:$0x1] %v12694_v27 }
  0x27   :  { %1388 = vst [vmem:[#allocation3 + $0x60] sm:$0x1] %v12694_v27 }
  0x28   :  { %1394 = vst [vmem:[#allocation3 + $0x84] sm:$0x1] %v12694_v27 }
  0x29   :  { %6797 = vmatmul.msk.bf16.gmra.mxu2 %vm72_vm0, %v9131_v28  ;;  %6833 = vmatmul.msk.bf16.gmra.mxu0 %vm72_vm0, %v9139_v29 }
  0x2a   :  { %6851 = vmatmul.msk.bf16.gmra.mxu1 %vm72_vm0, %v9143_v31 }
  0x2c   :  { %6815 = vmatmul.msk.bf16.gmra.mxu3 %vm72_vm0, %v9135_v30 }
  0x39   :  { %6868 = vmatmul.msk.bf16.vlgmr.msra.gmra.mxu2 %vm72_vm0, %v9146_v40  ;;  %6904 = vmatmul.msk.bf16.vlgmr.msra.gmra.mxu0 %vm72_vm0, %v9154_v41  ;;  %v9230_v40 = vld [vmem:[%s12686_s3 + $0xd0] sm:$0xff] }
  0x3a   :  { %6922 = vmatmul.msk.bf16.vlgmr.msra.gmra.mxu1 %vm72_vm0, %v9158_v43  ;;  %1191 = vmatpush.bf16.msra.mxu2 %v9181_v48 }
  0x3c   :  { %6886 = vmatmul.msk.bf16.vlgmr.msra.gmra.mxu3 %vm72_vm0, %v9150_v42 }
  0x3d   :  { %1270 = vmatpush.bf16.msra.mxu3 %v9185_v49  ;;  %v10056_v49 = vld [vmem:[%s12685_s2] ss:$0 sm:$0xff] }
  0x3e   :  { %1192 = vmatpush.bf16.msra.mxu2 %v9180_v50 }
  0x41   :  { %1271 = vmatpush.bf16.msra.mxu3 %v9184_v51 }
  0x49   :  { %6869 = vmatmul.msk.bf16.gmra.mxu2 %vm72_vm0, %v9147_v44  ;;  %6905 = vmatmul.msk.bf16.gmra.mxu0 %vm72_vm0, %v9155_v45 }
  0x4a   :  { %6923 = vmatmul.msk.bf16.gmra.mxu1 %vm72_vm0, %v9159_v47 }
  0x4c   :  { %6887 = vmatmul.msk.bf16.gmra.mxu3 %vm72_vm0, %v9151_v46 }
  0x59   :  { %6940 = vmatmul.msk.bf16.vlgmr.msrb.gmra.mxu2 %vm72_vm0, %v9162_v52  ;;  %6976 = vmatmul.msk.bf16.vlgmr.msrb.gmra.mxu0 %vm72_vm0, %v9170_v53  ;;  %v10062_v52 = vld [vmem:[%s12685_s2] ss:$0 sm:$0xff]  ;;  %v9229_v53 = vld [vmem:[%s12686_s3 + $0xc8] sm:$0xff] }
  0x5a   :  { %6994 = vmatmul.msk.bf16.vlgmr.msrb.gmra.mxu1 %vm72_vm0, %v9174_v55 }
  0x5c   :  { %6958 = vmatmul.msk.bf16.vlgmr.msrb.gmra.mxu3 %vm72_vm0, %v9166_v54 }
  0x5d   :  { %2165 = vmatpush.bf16.msrb.mxu3 %v9235_v62 }
  0x61   :  { %2166 = vmatpush.bf16.msrb.mxu3 %v9234_v63 }
  0x65   :  { %2167 = vmatpush.bf16.msrb.mxu3 %v9233_v8 }
  0x69   :  { %6941 = vmatmul.msk.bf16.gmra.mxu2 %vm72_vm0, %v9163_v56  ;;  %6977 = vmatmul.msk.bf16.gmra.mxu0 %vm72_vm0, %v9171_v57 }
  0x6a   :  { %6995 = vmatmul.msk.bf16.gmra.mxu1 %vm72_vm0, %v9175_v59  ;;  %2168 = vmatpush.bf16.msrb.mxu3 %v9232_v15 }
  0x6c   :  { %6959 = vmatmul.msk.bf16.gmra.mxu3 %vm72_vm0, %v9167_v58 }
  0x6e   :  { %2169 = vmatpush.bf16.msrb.mxu3 %v9231_v26 }
  0x72   :  { %2170 = vmatpush.bf16.msrb.mxu3 %v9230_v40 }
  0x76   :  { %2171 = vmatpush.bf16.msrb.mxu3 %v9229_v53 }
  0x79   :  { %7012 = vmatmul.msk.bf16.vlgmr.msra.gmra.mxu2 %vm72_vm0, %v9178_v60 }
  0x7c   :  { %7030 = vmatmul.msk.bf16.vlgmr.msra.gmra.mxu3 %vm72_vm0, %v9182_v61 }
  0x86   :  { %v88_v2 = vpop.f32.mrf.mxu0 }
  0x87   :  { %v89_v5 = vadd.f32 %v9713_v0, %v88_v2  ;;  %v167_v6 = vpop.f32.mrf.mxu1 }
  0x88   :  { %v168_v7 = vadd.f32 %v9714_v3, %v167_v6 }
  0x89   :  { %vm98_vm1 = vcmp.ge.f32.partialorder %v89_v5, 0.0  ;;  %v102_v9 = vmul.f32 0.01, %v89_v5  ;;  %7013 = vmatmul.msk.bf16.gmra.mxu2 %vm72_vm0, %v9179_v1 }
  0x8a   :  { %vm177_vm2 = vcmp.ge.f32.partialorder %v168_v7, 0.0  ;;  %v181_v10 = vmul.f32 0.01, %v168_v7 }
  0x8b   :  { %v106_v11 = vsel %vm98_vm1, %v89_v5, %v102_v9 }
  0x8c   :  { %7031 = vmatmul.msk.bf16.gmra.mxu3 %vm72_vm0, %v9183_v4  ;;  %v110_v12 = vpack.c.bf16 %v106_v11, %v106_v11  ;;  %v185_v13 = vsel %vm177_vm2, %v168_v7, %v181_v10  ;;  %v93_v14 = vpop.f32.mrf.mxu2 }
  0x8d   :  { %v189_v16 = vpack.c.bf16 %v185_v13, %v185_v13  ;;  %v94_v17 = vadd.f32 %v9713_v0, %v93_v14 }
  0x8e   :  { %114 = vst [vmem:[#allocation2] sm:$0xf] %v110_v12  ;;  %v90_v20 = vpop.f32.mrf.mxu0 }
  0x8f   :  { %v172_v18 = vpop.f32.mrf.mxu3  ;;  %193 = vst [vmem:[#allocation2 + $0x4] sm:$0xf] %v189_v16  ;;  %vm100_vm3 = vcmp.ge.f32.partialorder %v94_v17, 0.0  ;;  %v104_v21 = vmul.f32 0.01, %v94_v17  ;;  %v91_v22 = vadd.f32 %v9713_v0, %v90_v20  ;;  %v169_v23 = vpop.f32.mrf.mxu1 }
  0x90   :  { %v173_v19 = vadd.f32 %v9714_v3, %v172_v18  ;;  %v170_v25 = vadd.f32 %v9714_v3, %v169_v23 }
  0x91   :  { %v108_v28 = vsel %vm100_vm3, %v94_v17, %v104_v21  ;;  %vm99_vm5 = vcmp.ge.f32.partialorder %v91_v22, 0.0  ;;  %v103_v29 = vmul.f32 0.01, %v91_v22 }
  0x92   :  { %vm179_vm4 = vcmp.ge.f32.partialorder %v173_v19, 0.0  ;;  %v183_v24 = vmul.f32 0.01, %v173_v19  ;;  %v112_v30 = vpack.c.bf16 %v108_v28, %v108_v28  ;;  %vm178_vm6 = vcmp.ge.f32.partialorder %v170_v25, 0.0 }
  0x93   :  { %v182_v32 = vmul.f32 0.01, %v170_v25  ;;  %v107_v34 = vsel %vm99_vm5, %v91_v22, %v103_v29 }
  0x94   :  { %v187_v31 = vsel %vm179_vm4, %v173_v19, %v183_v24  ;;  %116 = vst [vmem:[#allocation2 + $0x80] sm:$0xf] %v112_v30  ;;  %v111_v36 = vpack.c.bf16 %v107_v34, %v107_v34  ;;  %v95_v38 = vpop.f32.mrf.mxu2  ;;  %v9267_v34 = vld [vmem:[%s12686_s3 + $0x1f8] sm:$0xff] }
  0x95   :  { %v191_v33 = vpack.c.bf16 %v187_v31, %v187_v31  ;;  %v186_v37 = vsel %vm178_vm6, %v170_v25, %v182_v32  ;;  %v96_v42 = vadd.f32 %v9713_v0, %v95_v38 }
  0x96   :  { %v190_v41 = vpack.c.bf16 %v186_v37, %v186_v37  ;;  %115 = vst [vmem:[#allocation2 + $0x40] sm:$0xf] %v111_v36  ;;  %v404_v45 = vpop.f32.mrf.mxu0  ;;  %v1368_v4 = vld [vmem:[#allocation2] sm:$0xff]  }
  0x97   :  { %195 = vst [vmem:[#allocation2 + $0x84] sm:$0xf] %v191_v33  ;;  %v174_v43 = vpop.f32.mrf.mxu3  ;;  %vm101_vm7 = vcmp.ge.f32.partialorder %v96_v42, 0.0  ;;  %v105_v46 = vmul.f32 0.01, %v96_v42  ;;  %v405_v47 = vadd.f32 %v10041_v35, %v404_v45  ;;  %v483_v48 = vpop.f32.mrf.mxu1 }
  0x98   :  { %v175_v44 = vadd.f32 %v9714_v3, %v174_v43  ;;  %194 = vst [vmem:[#allocation2 + $0x44] sm:$0xf] %v190_v41  ;;  %v484_v51 = vadd.f32 %v10047_v39, %v483_v48  ;;  %v9228_v3 = vld [vmem:[%s12686_s3 + $0xc0] sm:$0xff]  ;;  %v9266_v48 = vld [vmem:[%s12686_s3 + $0x1f0] sm:$0xff] }
  0x99   :  { %v109_v54 = vsel %vm101_vm7, %v96_v42, %v105_v46  ;;  %vm414_vm9 = vcmp.ge.f32.partialorder %v405_v47, 0.0  ;;  %v418_v55 = vmul.f32 0.01, %v405_v47  ;;  %2172 = vmatpush.bf16.msrb.mxu3 %v9228_v3  ;;  %1372 = vst [vmem:[#allocation3 + $0x10] sm:$0xff] %v1368_v4  }
  0x9a   :  { %vm180_vm8 = vcmp.ge.f32.partialorder %v175_v44, 0.0  ;;  %v184_v50 = vmul.f32 0.01, %v175_v44  ;;  %v113_v56 = vpack.c.bf16 %v109_v54, %v109_v54  ;;  %vm493_vm10 = vcmp.ge.f32.partialorder %v484_v51, 0.0 }
  0x9b   :  { %v497_v58 = vmul.f32 0.01, %v484_v51  ;;  %v422_v60 = vsel %vm414_vm9, %v405_v47, %v418_v55 }
  0x9c   :  { %v188_v57 = vsel %vm180_vm8, %v175_v44, %v184_v50  ;;  %117 = vst [vmem:[#allocation2 + $0xc0] sm:$0xf] %v113_v56  ;;  %v426_v61 = vpack.c.bf16 %v422_v60, %v422_v60  ;;  %v246_v63 = vpop.f32.mrf.mxu2  ;;  %v9265_v60 = vld [vmem:[%s12686_s3 + $0x1e8] sm:$0xff] }
  0x9d   :  { %v192_v59 = vpack.c.bf16 %v188_v57, %v188_v57  ;;  %v501_v62 = vsel %vm493_vm10, %v484_v51, %v497_v58  ;;  %v247_v1 = vadd.f32 %v10056_v49, %v246_v63  ;;  %2241 = vmatpush.bf16.msra.mxu3 %v9267_v34 }
  0x9e   :  { %v505_v0 = vpack.c.bf16 %v501_v62, %v501_v62  ;;  %430 = vst [vmem:[#allocation2 + $0x10] sm:$0xf] %v426_v61  ;;  %v406_v6 = vpop.f32.mrf.mxu0 }
  0x9f   :  { %196 = vst [vmem:[#allocation2 + $0xc4] sm:$0xf] %v192_v59  ;;  %v325_v2 = vpop.f32.mrf.mxu3  ;;  %vm256_vm11 = vcmp.ge.f32.partialorder %v247_v1, 0.0  ;;  %v260_v7 = vmul.f32 0.01, %v247_v1  ;;  %v407_v8 = vadd.f32 %v10041_v35, %v406_v6  ;;  %v485_v9 = vpop.f32.mrf.mxu1  ;;  %v1369_v28 = vld [vmem:[#allocation2 + $0x40] sm:$0xff]  }
  0xa0   :  { %v326_v5 = vadd.f32 %v10062_v52, %v325_v2  ;;  %509 = vst [vmem:[#allocation2 + $0x14] sm:$0xf] %v505_v0  ;;  %v486_v11 = vadd.f32 %v10047_v39, %v485_v9 }
  0xa1   :  { %v264_v12 = vsel %vm256_vm11, %v247_v1, %v260_v7  ;;  %vm415_vm13 = vcmp.ge.f32.partialorder %v407_v8, 0.0  ;;  %v419_v13 = vmul.f32 0.01, %v407_v8  ;;  %1373 = vst [vmem:[#allocation3 + $0x34] sm:$0xff] %v1369_v28   ;;  %2242 = vmatpush.bf16.msra.mxu3 %v9266_v48 }
  0xa2   :  { %vm335_vm12 = vcmp.ge.f32.partialorder %v326_v5, 0.0  ;;  %v339_v10 = vmul.f32 0.01, %v326_v5  ;;  %v268_v14 = vpack.c.bf16 %v264_v12, %v264_v12  ;;  %vm494_vm14 = vcmp.ge.f32.partialorder %v486_v11, 0.0 }
  0xa3   :  { %v498_v16 = vmul.f32 0.01, %v486_v11  ;;  %v423_v18 = vsel %vm415_vm13, %v407_v8, %v419_v13 }
  0xa4   :  { %v343_v15 = vsel %vm335_vm12, %v326_v5, %v339_v10  ;;  %272 = vst [vmem:[#allocation2 + $0x8] sm:$0xf] %v268_v14  ;;  %v427_v19 = vpack.c.bf16 %v423_v18, %v423_v18  ;;  %v248_v21 = vpop.f32.mrf.mxu2  ;;  %v10103_v5 = vld [vmem:[%s12685_s2] ss:$0 sm:$0xff] }
  0xa5   :  { %v347_v17 = vpack.c.bf16 %v343_v15, %v343_v15  ;;  %v502_v20 = vsel %vm494_vm14, %v486_v11, %v498_v16  ;;  %v249_v23 = vadd.f32 %v10056_v49, %v248_v21  ;;  %2243 = vmatpush.bf16.msra.mxu3 %v9265_v60  ;;  %v9264_v10 = vld [vmem:[%s12686_s3 + $0x1e0] sm:$0xff] }
  0xa6   :  { %v506_v22 = vpack.c.bf16 %v502_v20, %v502_v20  ;;  %431 = vst [vmem:[#allocation2 + $0x50] sm:$0xf] %v427_v19  ;;  %v409_v26 = vpop.f32.mrf.mxu0  ;;  %v1400_v19 = vld [vmem:[#allocation2 + $0x10] sm:$0xf] }
  0xa7   :  { %351 = vst [vmem:[#allocation2 + $0xc] sm:$0xf] %v347_v17  ;;  %v327_v24 = vpop.f32.mrf.mxu3  ;;  %vm257_vm15 = vcmp.ge.f32.partialorder %v249_v23, 0.0  ;;  %v261_v29 = vmul.f32 0.01, %v249_v23  ;;  %v410_v30 = vadd.f32 %v10041_v35, %v409_v26  ;;  %v488_v31 = vpop.f32.mrf.mxu1 }
  0xa8   :  { %v328_v25 = vadd.f32 %v10062_v52, %v327_v24  ;;  %510 = vst [vmem:[#allocation2 + $0x54] sm:$0xf] %v506_v22  ;;  %v489_v33 = vadd.f32 %v10047_v39, %v488_v31 }
  0xa9   :  { %v265_v36 = vsel %vm257_vm15, %v249_v23, %v261_v29  ;;  %vm416_vm2 = vcmp.ge.f32.partialorder %v410_v30, 0.0  ;;  %v420_v37 = vmul.f32 0.01, %v410_v30  ;;  %2244 = vmatpush.bf16.msra.mxu3 %v9264_v10  ;;  %v10120_v23 = vld [vmem:[%s12685_s2] ss:$0 sm:$0xff]  ;;  %v9227_v29 = vld [vmem:[%s12686_s3 + $0xb8] sm:$0xff] }
  0xaa   :  { %vm336_vm1 = vcmp.ge.f32.partialorder %v328_v25, 0.0  ;;  %v340_v32 = vmul.f32 0.01, %v328_v25  ;;  %v269_v38 = vpack.c.bf16 %v265_v36, %v265_v36  ;;  %vm495_vm3 = vcmp.ge.f32.partialorder %v489_v33, 0.0  ;;  %2146 = vmatpush.bf16.msrb.mxu2 %v9227_v29  ;;  %1404 = vst [vmem:[#allocation3 + $0x1c] sm:$0xf] %v1400_v19 }
  0xab   :  { %v499_v41 = vmul.f32 0.01, %v489_v33  ;;  %v424_v43 = vsel %vm416_vm2, %v410_v30, %v420_v37  ;;  %v9260_v29 = vld [vmem:[%s12686_s3 + $0x1c0] sm:$0xff] }
  0xac   :  { %v344_v40 = vsel %vm336_vm1, %v328_v25, %v340_v32  ;;  %273 = vst [vmem:[#allocation2 + $0x48] sm:$0xf] %v269_v38  ;;  %v428_v44 = vpack.c.bf16 %v424_v43, %v424_v43  ;;  %v251_v46 = vpop.f32.mrf.mxu2  ;;  %v9219_v25 = vld [vmem:[%s12686_s3 + $0x78] sm:$0xff]  ;;  %v9226_v43 = vld [vmem:[%s12686_s3 + $0xb0] sm:$0xff] }
  0xad   :  { %v348_v42 = vpack.c.bf16 %v344_v40, %v344_v40  ;;  %v503_v45 = vsel %vm495_vm3, %v489_v33, %v499_v41  ;;  %v252_v51 = vadd.f32 %v10056_v49, %v251_v46  ;;  %2127 = vmatpush.bf16.msra.mxu1 %v9219_v25  ;;  %v9263_v33 = vld [vmem:[%s12686_s3 + $0x1d8] sm:$0xff] }
  0xae   :  { %v1337_v47 = vld [vmem:[#allocation2 + $0xc] sm:$0x7]  ;;  %v507_v50 = vpack.c.bf16 %v503_v45, %v503_v45  ;;  %432 = vst [vmem:[#allocation2 + $0x90] sm:$0xf] %v428_v44  ;;  %v411_v56 = vpop.f32.mrf.mxu0  ;;  %2245 = vmatpush.bf16.msra.mxu3 %v9263_v33  ;;  %2147 = vmatpush.bf16.msrb.mxu2 %v9226_v43 }
  0xaf   :  { %352 = vst [vmem:[#allocation2 + $0x4c] sm:$0xf] %v348_v42  ;;  %v330_v53 = vpop.f32.mrf.mxu3  ;;  %v1339_v54 = vrot.slane %v1337_v47, 7  ;;  %vm258_vm4 = vcmp.ge.f32.partialorder %v252_v51, 0.0  ;;  %v262_v57 = vmul.f32 0.01, %v252_v51  ;;  %v412_v58 = vadd.f32 %v10041_v35, %v411_v56  ;;  %v490_v59 = vpop.f32.mrf.mxu1 }
  0xb0   :  { %v331_v55 = vadd.f32 %v10062_v52, %v330_v53  ;;  %511 = vst [vmem:[#allocation2 + $0x94] sm:$0xf] %v507_v50  ;;  %v491_v62 = vadd.f32 %v10047_v39, %v490_v59  ;;  %v10108_v39 = vld [vmem:[%s12685_s2] ss:$0 sm:$0xff]  ;;  %v9218_v42 = vld [vmem:[%s12686_s3 + $0x70] sm:$0xff] }
  0xb1   :  { %1341 = vst [vmem:[#allocation3 + $0xc] sm:$0xe] %v1339_v54  ;;  %v266_v63 = vsel %vm258_vm4, %v252_v51, %v262_v57  ;;  %vm417_vm6 = vcmp.ge.f32.partialorder %v412_v58, 0.0  ;;  %v421_v0 = vmul.f32 0.01, %v412_v58  ;;  %v9262_v47 = vld [vmem:[%s12686_s3 + $0x1d0] sm:$0xff]  ;;  %2128 = vmatpush.bf16.msra.mxu1 %v9218_v42 }
  0xb2   :  { %vm337_vm5 = vcmp.ge.f32.partialorder %v331_v55, 0.0  ;;  %v341_v61 = vmul.f32 0.01, %v331_v55  ;;  %v270_v1 = vpack.c.bf16 %v266_v63, %v266_v63  ;;  %vm496_vm7 = vcmp.ge.f32.partialorder %v491_v62, 0.0  ;;  %v2320_v53 = vld [vmem:[#allocation2 + $0x4] sm:$0xf]  ;;  %2246 = vmatpush.bf16.msra.mxu3 %v9262_v47 }
  0xb3   :  { %v500_v3 = vmul.f32 0.01, %v491_v62  ;;  %v425_v4 = vsel %vm417_vm6, %v412_v58, %v421_v0 }
  0xb4   :  { %v345_v2 = vsel %vm337_vm5, %v331_v55, %v341_v61  ;;  %274 = vst [vmem:[#allocation2 + $0x88] sm:$0xf] %v270_v1  ;;  %v429_v6 = vpack.c.bf16 %v425_v4, %v425_v4  ;;  %v253_v8 = vpop.f32.mrf.mxu2  ;;  %v9217_v1 = vld [vmem:[%s12686_s3 + $0x68] sm:$0xff] }
  0xb5   :  { %v349_v35 = vpack.c.bf16 %v345_v2, %v345_v2  ;;  %v504_v7 = vsel %vm496_vm7, %v491_v62, %v500_v3  ;;  %v1402_v11 = vld [vmem:[#allocation2 + $0x90] sm:$0xf]  ;;  %v254_v13 = vadd.f32 %v10056_v49, %v253_v8  ;;  %v2321_v62 = vld [vmem:[#allocation2 + $0x44] sm:$0xf]  ;;  %2129 = vmatpush.bf16.msra.mxu1 %v9217_v1  ;;  %v9213_v1 = vld [vmem:[%s12686_s3 + $0x48] sm:$0xff] }
  0xb6   :  { %v1343_v9 = vld [vmem:[#allocation2 + $0x4c] sm:$0x7]  ;;  %v508_v12 = vpack.c.bf16 %v504_v7, %v504_v7  ;;  %1406 = vst [vmem:[#allocation3 + $0x64] sm:$0xf] %v1402_v11  ;;  %v720_v18 = vpop.f32.mrf.mxu0 }
  0xb7   :  { %353 = vst [vmem:[#allocation2 + $0x8c] sm:$0xf] %v349_v35  ;;  %v332_v14 = vpop.f32.mrf.mxu3  ;;  %v1345_v15 = vrot.slane %v1343_v9, 7  ;;  %v1410_v16 = vld [vmem:[#allocation2 + $0x94] sm:$0xf]  ;;  %vm259_vm8 = vcmp.ge.f32.partialorder %v254_v13, 0.0  ;;  %v721_v21 = vadd.f32 %v10103_v5, %v720_v18  ;;  %v799_v22 = vpop.f32.mrf.mxu1 }
  0xb8   :  { %v333_v17 = vadd.f32 %v10062_v52, %v332_v14  ;;  %1414 = vst [vmem:[#allocation3 + $0x68] sm:$0xf] %v1410_v16  ;;  %v263_v20 = vmul.f32 0.01, %v254_v13  ;;  %v800_v24 = vadd.f32 %v10108_v39, %v799_v22  ;;  %v10126_v52 = vld [vmem:[%s12685_s2] ss:$0 sm:$0xff] }
  0xb9   :  { %433 = vst [vmem:[#allocation2 + $0xd0] sm:$0xf] %v429_v6  ;;  %vm730_vm10 = vcmp.ge.f32.partialorder %v721_v21, 0.0  ;;  %v734_v28 = vmul.f32 0.01, %v721_v21  ;;  %v9225_v11 = vld [vmem:[%s12686_s3 + $0xa8] sm:$0xff] }
  0xba   :  { %vm338_vm9 = vcmp.ge.f32.partialorder %v333_v17, 0.0  ;;  %v342_v49 = vmul.f32 0.01, %v333_v17  ;;  %512 = vst [vmem:[#allocation2 + $0xd4] sm:$0xf] %v508_v12  ;;  %v267_v26 = vsel %vm259_vm8, %v254_v13, %v263_v20  ;;  %vm809_vm11 = vcmp.ge.f32.partialorder %v800_v24, 0.0  ;;  %2148 = vmatpush.bf16.msrb.mxu2 %v9225_v11 }
  0xbb   :  { %v271_v30 = vpack.c.bf16 %v267_v26, %v267_v26  ;;  %v813_v32 = vmul.f32 0.01, %v800_v24  ;;  %1347 = vst [vmem:[#allocation3 + $0x30] sm:$0xe] %v1345_v15  ;;  %v738_v36 = vsel %vm730_vm10, %v721_v21, %v734_v28  ;;  %v9187_v60 = vld [vmem:[#allocation3 + $0xc] sm:$0xf] }
  0xbc   :  { %v346_v31 = vsel %vm338_vm9, %v333_v17, %v342_v49  ;;  %v742_v38 = vpack.c.bf16 %v738_v36, %v738_v36  ;;  %v562_v41 = vpop.f32.mrf.mxu2  ;;  %2324 = vst [vmem:[#allocation3 + $0xc] sm:$0xf] %v2320_v53  ;;  %v9261_v12 = vld [vmem:[%s12686_s3 + $0x1c8] sm:$0xff]  ;;  %v9216_v18 = vld [vmem:[%s12686_s3 + $0x60] sm:$0xff]  ;;  %v1401_v49 = vld [vmem:[#allocation2 + $0x50] sm:$0xf] }
  0xbd   :  { %v350_v34 = vpack.c.bf16 %v346_v31, %v346_v31  ;;  %275 = vst [vmem:[#allocation2 + $0xc8] sm:$0xf] %v271_v30  ;;  %v817_v40 = vsel %vm809_vm11, %v800_v24, %v813_v32  ;;  %v563_v45 = vadd.f32 %v10120_v23, %v562_v41  ;;  %v9224_v22 = vld [vmem:[%s12686_s3 + $0xa0] sm:$0xff]  ;;  %2247 = vmatpush.bf16.msra.mxu3 %v9261_v12  ;;  %v9215_v32 = vld [vmem:[%s12686_s3 + $0x58] sm:$0xff] }
  0xbe   :  { %v1349_v37 = vld [vmem:[#allocation2 + $0x8c] sm:$0x7]  ;;  %746 = vst [vmem:[#allocation2 + $0x20] sm:$0xf] %v742_v38  ;;  %v821_v48 = vpack.c.bf16 %v817_v40, %v817_v40  ;;  %v722_v51 = vpop.f32.mrf.mxu0  ;;  %v1370_v24 = vld [vmem:[#allocation2 + $0x80] sm:$0xff]   ;;  %2130 = vmatpush.bf16.msra.mxu1 %v9216_v18  ;;  %2149 = vmatpush.bf16.msrb.mxu2 %v9224_v22  ;;  %v9223_v40 = vld [vmem:[%s12686_s3 + $0x98] sm:$0xff] }
  0xbf   :  { %v1351_v44 = vrot.slane %v1349_v37, 7  ;;  %354 = vst [vmem:[#allocation2 + $0xcc] sm:$0xf] %v350_v34  ;;  %v641_v46 = vpop.f32.mrf.mxu3  ;;  %vm572_vm12 = vcmp.ge.f32.partialorder %v563_v45, 0.0  ;;  %v723_v55 = vadd.f32 %v10103_v5, %v722_v51  ;;  %v801_v56 = vpop.f32.mrf.mxu1  ;;  %v576_v58 = vmul.f32 0.01, %v563_v45 }
  0xc0   :  { %v642_v50 = vadd.f32 %v10126_v52, %v641_v46  ;;  %v1403_v54 = vld [vmem:[#allocation2 + $0xd0] sm:$0xf]  ;;  %v802_v59 = vadd.f32 %v10108_v39, %v801_v56  ;;  %825 = vst [vmem:[#allocation2 + $0x24] sm:$0xf] %v821_v48  ;;  %v10184_v51 = vld [vmem:[#allocation3 + $0x4] sm:$0xf] }
  0xc1   :  { %1353 = vst [vmem:[#allocation3 + $0x54] sm:$0xe] %v1351_v44  ;;  %v1411_v57 = vld [vmem:[#allocation2 + $0xd4] sm:$0xf]  ;;  %vm731_vm14 = vcmp.ge.f32.partialorder %v723_v55, 0.0  ;;  %v580_v63 = vsel %vm572_vm12, %v563_v45, %v576_v58  ;;  %2248 = vmatpush.bf16.msra.mxu3 %v9260_v29  ;;  %v1371_v53 = vld [vmem:[#allocation2 + $0xc0] sm:$0xff]  }
  0xc2   :  { %1407 = vst [vmem:[#allocation3 + $0x88] sm:$0xf] %v1403_v54  ;;  %vm651_vm13 = vcmp.ge.f32.partialorder %v642_v50, 0.0  ;;  %v655_v61 = vmul.f32 0.01, %v642_v50  ;;  %vm810_vm15 = vcmp.ge.f32.partialorder %v802_v59, 0.0  ;;  %v584_v2 = vpack.c.bf16 %v580_v63, %v580_v63  ;;  %2131 = vmatpush.bf16.msra.mxu1 %v9215_v32  ;;  %2150 = vmatpush.bf16.msrb.mxu2 %v9223_v40 }
  0xc3   :  { %1415 = vst [vmem:[#allocation3 + $0x8c] sm:$0xf] %v1411_v57  ;;  %v735_v0 = vmul.f32 0.01, %v723_v55  ;;  %v814_v35 = vmul.f32 0.01, %v802_v59 }
  0xc4   :  { %v659_v3 = vsel %vm651_vm13, %v642_v50, %v655_v61  ;;  %v7044_v4 = vld [vmem:[#allocation3 + $0x2c] sm:$0xf0]  ;;  %v564_v10 = vpop.f32.mrf.mxu2  ;;  %588 = vst [vmem:[#allocation2 + $0x18] sm:$0xf] %v584_v2  ;;  %v10216_v18 = vld [vmem:[#allocation3 + $0x1c] sm:$0xf] }
  0xc5   :  { %v663_v7 = vpack.c.bf16 %v659_v3, %v659_v3  ;;  %v739_v8 = vsel %vm731_vm14, %v723_v55, %v735_v0  ;;  %v7047_v9 = vor.u32 %v9187_v60, %v7044_v4  ;;  %2325 = vst [vmem:[#allocation3 + $0x30] sm:$0xf] %v2321_v62  ;;  %v818_v15 = vsel %vm810_vm15, %v802_v59, %v814_v35  ;;  %v9214_v46 = vld [vmem:[%s12686_s3 + $0x50] sm:$0xff]  ;;  %v10190_v59 = vld [vmem:[#allocation3 + $0x8] sm:$0xf]  ;;  %v9251_v32 = vld [vmem:[%s12686_s3 + $0x178] sm:$0xff] }
  0xc6   :  { %v1355_v6 = vld [vmem:[#allocation2 + $0xcc] sm:$0x7]  ;;  %v743_v14 = vpack.c.bf16 %v739_v8, %v739_v8  ;;  %v565_v16 = vadd.f32 %v10120_v23, %v564_v10  ;;  %v822_v19 = vpack.c.bf16 %v818_v15, %v818_v15  ;;  %v725_v21 = vpop.f32.mrf.mxu0  ;;  %1374 = vst [vmem:[#allocation3 + $0x58] sm:$0xff] %v1370_v24   ;;  %v9222_v58 = vld [vmem:[%s12686_s3 + $0x90] sm:$0xff]  ;;  %2132 = vmatpush.bf16.msra.mxu1 %v9214_v46  ;;  %v9220_v24 = vld [vmem:[%s12686_s3 + $0x80] sm:$0xff] }
  0xc7   :  { %v1357_v13 = vrot.slane %v1355_v6, 7  ;;  %v643_v17 = vpop.f32.mrf.mxu3  ;;  %667 = vst [vmem:[#allocation2 + $0x1c] sm:$0xf] %v663_v7  ;;  %2173 = vmatmul.bf16.vlgmr.msrb.gmra.mxu3 %v7047_v9  ;;  %v726_v26 = vadd.f32 %v10103_v5, %v725_v21  ;;  %v804_v28 = vpop.f32.mrf.mxu1  ;;  %2151 = vmatpush.bf16.msrb.mxu2 %v9222_v58  ;;  %v10204_v9 = vld [vmem:[%s12685_s2] ss:$0 sm:$0xff]  ;;  %v9258_v58 = vld [vmem:[%s12686_s3 + $0x1b0] sm:$0xff] }
  0xc8   :  { %v644_v20 = vadd.f32 %v10126_v52, %v643_v17  ;;  %vm573_vm1 = vcmp.ge.f32.partialorder %v565_v16, 0.0  ;;  %v577_v25 = vmul.f32 0.01, %v565_v16  ;;  %747 = vst [vmem:[#allocation2 + $0x60] sm:$0xf] %v743_v14  ;;  %v805_v31 = vadd.f32 %v10108_v39, %v804_v28  ;;  %v9212_v14 = vld [vmem:[%s12686_s3 + $0x40] sm:$0xff] }
  0xc9   :  { %1359 = vst [vmem:[#allocation3 + $0x78] sm:$0xe] %v1357_v13  ;;  %vm732_vm3 = vcmp.ge.f32.partialorder %v726_v26, 0.0  ;;  %v736_v34 = vmul.f32 0.01, %v726_v26 }
  0xca   :  { %vm652_vm2 = vcmp.ge.f32.partialorder %v644_v20, 0.0  ;;  %v656_v30 = vmul.f32 0.01, %v644_v20  ;;  %826 = vst [vmem:[#allocation2 + $0x64] sm:$0xf] %v822_v19  ;;  %v581_v33 = vsel %vm573_vm1, %v565_v16, %v577_v25  ;;  %vm811_vm4 = vcmp.ge.f32.partialorder %v805_v31, 0.0  ;;  %2133 = vmatpush.bf16.msra.mxu1 %v9213_v1 }
  0xcb   :  { %v585_v36 = vpack.c.bf16 %v581_v33, %v581_v33  ;;  %v815_v38 = vmul.f32 0.01, %v805_v31  ;;  %v740_v42 = vsel %vm732_vm3, %v726_v26, %v736_v34  ;;  %1405 = vst [vmem:[#allocation3 + $0x40] sm:$0xf] %v1401_v49  ;;  %v9196_v56 = vld [vmem:[#allocation3 + $0x54] sm:$0xf] }
  0xcc   :  { %v660_v37 = vsel %vm652_vm2, %v644_v20, %v656_v30  ;;  %v744_v43 = vpack.c.bf16 %v740_v42, %v740_v42  ;;  %v567_v45 = vpop.f32.mrf.mxu2  ;;  %1375 = vst [vmem:[#allocation3 + $0x7c] sm:$0xff] %v1371_v53   ;;  %v10210_v13 = vld [vmem:[%s12685_s2] ss:$0 sm:$0xff]  ;;  %v2352_v19 = vld [vmem:[#allocation2 + $0x18] sm:$0xf] }
  0xcd   :  { %v664_v41 = vpack.c.bf16 %v660_v37, %v660_v37  ;;  %589 = vst [vmem:[#allocation2 + $0x58] sm:$0xf] %v585_v36  ;;  %v819_v44 = vsel %vm811_vm4, %v805_v31, %v815_v38  ;;  %v568_v48 = vadd.f32 %v10120_v23, %v567_v45  ;;  %v10224_v25 = vld [vmem:[#allocation3 + $0x14] sm:$0xf]  ;;  %v9259_v36 = vld [vmem:[%s12686_s3 + $0x1b8] sm:$0xff] }
  0xce   :  { %v823_v47 = vpack.c.bf16 %v819_v44, %v819_v44  ;;  %748 = vst [vmem:[#allocation2 + $0xa0] sm:$0xf] %v744_v43  ;;  %v727_v55 = vpop.f32.mrf.mxu0  ;;  %2134 = vmatpush.bf16.msra.mxu1 %v9212_v14 }
  0xcf   :  { %668 = vst [vmem:[#allocation2 + $0x5c] sm:$0xf] %v664_v41  ;;  %v646_v50 = vpop.f32.mrf.mxu3  ;;  %vm574_vm5 = vcmp.ge.f32.partialorder %v568_v48, 0.0  ;;  %v578_v60 = vmul.f32 0.01, %v568_v48  ;;  %v728_v61 = vadd.f32 %v10103_v5, %v727_v55  ;;  %v806_v62 = vpop.f32.mrf.mxu1 }
  0xd0   :  { %v647_v54 = vadd.f32 %v10126_v52, %v646_v50  ;;  %v7080_v57 = vld [vmem:[#allocation3 + $0x74] sm:$0xf0]  ;;  %827 = vst [vmem:[#allocation2 + $0xa4] sm:$0xf] %v823_v47  ;;  %v807_v0 = vadd.f32 %v10108_v39, %v806_v62  ;;  %v9221_v39 = vld [vmem:[%s12686_s3 + $0x88] sm:$0xff] }
  0xd1   :  { %v582_v2 = vsel %vm574_vm5, %v568_v48, %v578_v60  ;;  %vm733_vm7 = vcmp.ge.f32.partialorder %v728_v61, 0.0  ;;  %v737_v3 = vmul.f32 0.01, %v728_v61  ;;  %v7083_v35 = vor.u32 %v9196_v56, %v7080_v57  ;;  %2306 = vst [vmem:[#allocation3 + $0x4] sm:$0xf] %v12694_v27  ;;  %2152 = vmatpush.bf16.msrb.mxu2 %v9221_v39  ;;  %v9250_v57 = vld [vmem:[%s12686_s3 + $0x170] sm:$0xff] }
  0xd2   :  { %vm653_vm6 = vcmp.ge.f32.partialorder %v647_v54, 0.0  ;;  %v657_v63 = vmul.f32 0.01, %v647_v54  ;;  %v586_v4 = vpack.c.bf16 %v582_v2, %v582_v2  ;;  %vm812_vm8 = vcmp.ge.f32.partialorder %v807_v0, 0.0  ;;  %2313 = vst [vmem:[#allocation3 + $0x8] sm:$0xf] %v12694_v27  ;;  %2203 = vmatpush.bf16.msrb.mxu1 %v9251_v32 }
  0xd3   :  { %v816_v5 = vmul.f32 0.01, %v807_v0  ;;  %v741_v8 = vsel %vm733_vm7, %v728_v61, %v737_v3  ;;  %v10219_v22 = vld [vmem:[#allocation3 + $0x3c] sm:$0xf0]  ;;  %2356 = vst [vmem:[#allocation3 + $0x1c] sm:$0xf] %v2352_v19 }
  0xd4   :  { %v661_v6 = vsel %vm653_vm6, %v647_v54, %v657_v63  ;;  %590 = vst [vmem:[#allocation2 + $0x98] sm:$0xf] %v586_v4  ;;  %v745_v10 = vpack.c.bf16 %v741_v8, %v741_v8  ;;  %v569_v12 = vpop.f32.mrf.mxu2  ;;  %v2353_v49 = vld [vmem:[#allocation2 + $0x58] sm:$0xf]  ;;  %v10242_v41 = vld [vmem:[%s12685_s2] ss:$0 sm:$0xff]  ;;  %v7063_v19 = vor.u32 %v10216_v18, %v10219_v22 }
  0xd5   :  { %v665_v7 = vpack.c.bf16 %v661_v6, %v661_v6  ;;  %v820_v11 = vsel %vm812_vm8, %v807_v0, %v816_v5  ;;  %v570_v16 = vadd.f32 %v10120_v23, %v569_v12  ;;  %v2336_v23 = vld [vmem:[#allocation2 + $0xc] sm:$0xf]  ;;  %2357 = vst [vmem:[#allocation3 + $0x40] sm:$0xf] %v2353_v49  ;;  %2153 = vmatpush.bf16.msrb.mxu2 %v9220_v24  ;;  %v9317_v60 = vld [vmem:[%s12686_s3 + $0xb8] sm:$0xff] }
  0xd6   :  { %v824_v15 = vpack.c.bf16 %v820_v11, %v820_v11  ;;  %749 = vst [vmem:[#allocation2 + $0xe0] sm:$0xf] %v745_v10  ;;  %v1036_v21 = vpop.f32.mrf.mxu0  ;;  %v10255_v61 = vld [vmem:[#allocation3 + $0x34] sm:$0xf0]  ;;  %v2337_v62 = vld [vmem:[#allocation2 + $0x4c] sm:$0xf]  ;;  %2204 = vmatpush.bf16.msrb.mxu1 %v9250_v57  ;;  %3098 = vmatpush.bf16.msrb.mxu3 %v9317_v60 }
  0xd7   :  { %669 = vst [vmem:[#allocation2 + $0x9c] sm:$0xf] %v665_v7  ;;  %v648_v17 = vpop.f32.mrf.mxu3  ;;  %2178 = vmatmul.bf16.gmra.mxu3 %v7083_v35  ;;  %vm575_vm9 = vcmp.ge.f32.partialorder %v570_v16, 0.0  ;;  %v579_v26 = vmul.f32 0.01, %v570_v16  ;;  %v1037_v28 = vadd.f32 %v10204_v9, %v1036_v21  ;;  %v1115_v29 = vpop.f32.mrf.mxu1  ;;  %v9211_v2 = vld [vmem:[%s12686_s3 + $0x38] sm:$0xff] }
  0xd8   :  { %v649_v20 = vadd.f32 %v10126_v52, %v648_v17  ;;  %828 = vst [vmem:[#allocation2 + $0xe4] sm:$0xf] %v824_v15  ;;  %v10230_v52 = vld [vmem:[%s12685_s2] ss:$0 sm:$0xff]  ;;  %v1116_v31 = vadd.f32 %v10210_v13, %v1115_v29  ;;  %v9249_v4 = vld [vmem:[%s12686_s3 + $0x168] sm:$0xff]  ;;  %2108 = vmatpush.bf16.msra.mxu0 %v9211_v2  ;;  %v9316_v7 = vld [vmem:[%s12686_s3 + $0xb0] sm:$0xff] }
  0xd9   :  { %v583_v33 = vsel %vm575_vm9, %v570_v16, %v579_v26  ;;  %vm1046_vm11 = vcmp.ge.f32.partialorder %v1037_v28, 0.0  ;;  %v1050_v34 = vmul.f32 0.01, %v1037_v28  ;;  %2222 = vmatpush.bf16.msra.mxu2 %v9259_v36  ;;  %2340 = vst [vmem:[#allocation3 + $0x14] sm:$0xf] %v2336_v23  ;;  %v9257_v39 = vld [vmem:[%s12686_s3 + $0x1a8] sm:$0xff] }
  0xda   :  { %vm654_vm10 = vcmp.ge.f32.partialorder %v649_v20, 0.0  ;;  %v658_v30 = vmul.f32 0.01, %v649_v20  ;;  %v587_v37 = vpack.c.bf16 %v583_v33, %v583_v33  ;;  %vm1125_vm12 = vcmp.ge.f32.partialorder %v1116_v31, 0.0  ;;  %2341 = vst [vmem:[#allocation3 + $0x38] sm:$0xf] %v2337_v62  ;;  %2205 = vmatpush.bf16.msrb.mxu1 %v9249_v4  ;;  %3099 = vmatpush.bf16.msrb.mxu3 %v9316_v7 }
  0xdb   :  { %v1129_v40 = vmul.f32 0.01, %v1116_v31  ;;  %v1054_v43 = vsel %vm1046_vm11, %v1037_v28, %v1050_v34  ;;  %v1377_v15 = vld [vmem:[#allocation2 + $0x1c] sm:$0x7]  ;;  %v10280_v62 = vld [vmem:[#allocation3 + $0x8] sm:$0xf] }
  0xdc   :  { %v662_v38 = vsel %vm654_vm10, %v649_v20, %v658_v30  ;;  %591 = vst [vmem:[#allocation2 + $0xd8] sm:$0xf] %v587_v37  ;;  %v1058_v45 = vpack.c.bf16 %v1054_v43, %v1054_v43  ;;  %v878_v47 = vpop.f32.mrf.mxu2  ;;  %v1383_v21 = vld [vmem:[#allocation2 + $0x5c] sm:$0x7]  ;;  %v1379_v33 = vrot.slane %v1377_v15, 7 }
  0xdd   :  { %v666_v42 = vpack.c.bf16 %v662_v38, %v662_v38  ;;  %v1133_v46 = vsel %vm1125_vm12, %v1116_v31, %v1129_v40  ;;  %v879_v53 = vadd.f32 %v10230_v52, %v878_v47  ;;  %2223 = vmatpush.bf16.msra.mxu2 %v9258_v58  ;;  %v1385_v37 = vrot.slane %v1383_v21, 7  ;;  %v7096_v2 = vld [vmem:[#allocation3 + $0x84] sm:$0xf0]  ;;  %v9247_v15 = vld [vmem:[%s12686_s3 + $0x158] sm:$0xff]  ;;  %v9314_v21 = vld [vmem:[%s12686_s3 + $0xa0] sm:$0xff] }
  0xde   :  { %v1389_v44 = vld [vmem:[#allocation2 + $0x9c] sm:$0x7]  ;;  %v1137_v50 = vpack.c.bf16 %v1133_v46, %v1133_v46  ;;  %1062 = vst [vmem:[#allocation2 + $0x30] sm:$0xf] %v1058_v45  ;;  %v1038_v56 = vpop.f32.mrf.mxu0 }
  0xdf   :  { %v1391_v48 = vrot.slane %v1389_v44, 7  ;;  %670 = vst [vmem:[#allocation2 + $0xdc] sm:$0xf] %v666_v42  ;;  %v957_v54 = vpop.f32.mrf.mxu3  ;;  %vm888_vm13 = vcmp.ge.f32.partialorder %v879_v53, 0.0  ;;  %v892_v63 = vmul.f32 0.01, %v879_v53  ;;  %v1039_v0 = vadd.f32 %v10204_v9, %v1038_v56  ;;  %v1117_v1 = vpop.f32.mrf.mxu1 }
  0xe0   :  { %v958_v55 = vadd.f32 %v10242_v41, %v957_v54  ;;  %1141 = vst [vmem:[#allocation2 + $0x34] sm:$0xf] %v1137_v50  ;;  %v1118_v35 = vadd.f32 %v10210_v13, %v1117_v1  ;;  %v9198_v1 = vld [vmem:[#allocation3 + $0x64] sm:$0xf] }
  0xe1   :  { %1393 = vst [vmem:[#allocation3 + $0x60] sm:$0xe] %v1391_v48  ;;  %v896_v6 = vsel %vm888_vm13, %v879_v53, %v892_v63  ;;  %vm1047_vm15 = vcmp.ge.f32.partialorder %v1039_v0, 0.0  ;;  %v1051_v5 = vmul.f32 0.01, %v1039_v0  ;;  %2224 = vmatpush.bf16.msra.mxu2 %v9257_v39 }
  0xe2   :  { %vm967_vm14 = vcmp.ge.f32.partialorder %v958_v55, 0.0  ;;  %v971_v3 = vmul.f32 0.01, %v958_v55  ;;  %v900_v8 = vpack.c.bf16 %v896_v6, %v896_v6  ;;  %vm1126_vm1 = vcmp.ge.f32.partialorder %v1118_v35, 0.0  ;;  %1381 = vst [vmem:[#allocation3 + $0x18] sm:$0xe] %v1379_v33 }
  0xe3   :  { %v1130_v11 = vmul.f32 0.01, %v1118_v35  ;;  %v1055_v14 = vsel %vm1047_vm15, %v1039_v0, %v1051_v5  ;;  %1387 = vst [vmem:[#allocation3 + $0x3c] sm:$0xe] %v1385_v37  ;;  %v3283_v63 = vld [vmem:[#allocation2 + $0x14] sm:$0xf] }
  0xe4   :  { %v975_v10 = vsel %vm967_vm14, %v958_v55, %v971_v3  ;;  %904 = vst [vmem:[#allocation2 + $0x28] sm:$0xf] %v900_v8  ;;  %v880_v20 = vpop.f32.mrf.mxu2  ;;  %v1059_v23 = vpack.c.bf16 %v1055_v14, %v1055_v14  ;;  %v9210_v3 = vld [vmem:[%s12686_s3 + $0x30] sm:$0xff]  ;;  %v9256_v8 = vld [vmem:[%s12686_s3 + $0x1a0] sm:$0xff]  ;;  %v9209_v14 = vld [vmem:[%s12686_s3 + $0x28] sm:$0xff] }
  0xe5   :  { %v979_v12 = vpack.c.bf16 %v975_v10, %v975_v10  ;;  %v1134_v17 = vsel %vm1126_vm1, %v1118_v35, %v1130_v11  ;;  %v1323_v24 = vld [vmem:[#allocation2 + $0x30] sm:$0xf]  ;;  %v881_v26 = vadd.f32 %v10230_v52, %v880_v20  ;;  %2109 = vmatpush.bf16.msra.mxu0 %v9210_v3  ;;  %v9315_v10 = vld [vmem:[%s12686_s3 + $0xa8] sm:$0xff]  ;;  %3287 = vst [vmem:[#allocation3 + $0x8] sm:$0xf] %v3283_v63 }
  0xe6   :  { %v1395_v16 = vld [vmem:[#allocation2 + $0xdc] sm:$0x7]  ;;  %1326 = vst [vmem:[#allocation3 + $0x28] sm:$0xf] %v1323_v24  ;;  %v1138_v29 = vpack.c.bf16 %v1134_v17, %v1134_v17  ;;  %v1041_v31 = vpop.f32.mrf.mxu0  ;;  %2225 = vmatpush.bf16.msra.mxu2 %v9256_v8  ;;  %3100 = vmatpush.bf16.msrb.mxu3 %v9315_v10  ;;  %v2345_v37 = vld [vmem:[#allocation2 + $0x54] sm:$0xf] }
  0xe7   :  { %v1397_v49 = vrot.slane %v1395_v16, 7  ;;  %983 = vst [vmem:[#allocation2 + $0x2c] sm:$0xf] %v979_v12  ;;  %v959_v28 = vpop.f32.mrf.mxu3  ;;  %2249 = vmatmul.bf16.vlgmr.msra.gmra.mxu3 %v7063_v19  ;;  %v1330_v18 = vld [vmem:[#allocation2 + $0x34] sm:$0xf]  ;;  %vm889_vm2 = vcmp.ge.f32.partialorder %v881_v26, 0.0  ;;  %v1042_v22 = vadd.f32 %v10204_v9, %v1041_v31  ;;  %v1120_v32 = vpop.f32.mrf.mxu1  ;;  %v7099_v19 = vor.u32 %v9198_v1, %v7096_v2 }
  0xe8   :  { %v960_v30 = vadd.f32 %v10242_v41, %v959_v28  ;;  %1333 = vst [vmem:[#allocation3 + $0x2c] sm:$0xf] %v1330_v18  ;;  %v893_v34 = vmul.f32 0.01, %v881_v26  ;;  %v1121_v36 = vadd.f32 %v10210_v13, %v1120_v32  ;;  %v2344_v16 = vld [vmem:[#allocation2 + $0x14] sm:$0xf] }
  0xe9   :  { %1399 = vst [vmem:[#allocation3 + $0x84] sm:$0xe] %v1397_v49  ;;  %vm1048_vm4 = vcmp.ge.f32.partialorder %v1042_v22, 0.0  ;;  %v1052_v42 = vmul.f32 0.01, %v1042_v22  ;;  %2110 = vmatpush.bf16.msra.mxu0 %v9209_v14  ;;  %v9246_v32 = vld [vmem:[%s12686_s3 + $0x150] sm:$0xff] }
  0xea   :  { %vm968_vm3 = vcmp.ge.f32.partialorder %v960_v30, 0.0  ;;  %1063 = vst [vmem:[#allocation2 + $0x70] sm:$0xf] %v1059_v23  ;;  %v972_v38 = vmul.f32 0.01, %v960_v30  ;;  %v897_v40 = vsel %vm889_vm2, %v881_v26, %v893_v34  ;;  %vm1127_vm5 = vcmp.ge.f32.partialorder %v1121_v36, 0.0  ;;  %3101 = vmatpush.bf16.msrb.mxu3 %v9314_v21 }
  0xeb   :  { %1142 = vst [vmem:[#allocation2 + $0x74] sm:$0xf] %v1138_v29  ;;  %v901_v43 = vpack.c.bf16 %v897_v40, %v897_v40  ;;  %v1131_v45 = vmul.f32 0.01, %v1121_v36  ;;  %v1056_v47 = vsel %vm1048_vm4, %v1042_v22, %v1052_v42  ;;  %v10307_v49 = vld [vmem:[#allocation3 + $0x18] sm:$0xf] }
  0xec   :  { %v976_v44 = vsel %vm968_vm3, %v960_v30, %v972_v38  ;;  %v883_v48 = vpop.f32.mrf.mxu2  ;;  %v1060_v50 = vpack.c.bf16 %v1056_v47, %v1056_v47  ;;  %2348 = vst [vmem:[#allocation3 + $0x18] sm:$0xf] %v2344_v16  ;;  %v10311_v29 = vld [vmem:[#allocation3 + $0x38] sm:$0xf0]  ;;  %v10316_v31 = vld [vmem:[%s12685_s2] ss:$0 sm:$0xff] }
  0xed   :  { %v980_v46 = vpack.c.bf16 %v976_v44, %v976_v44  ;;  %905 = vst [vmem:[#allocation2 + $0x68] sm:$0xf] %v901_v43  ;;  %v1135_v53 = vsel %vm1127_vm5, %v1121_v36, %v1131_v45  ;;  %v884_v54 = vadd.f32 %v10230_v52, %v883_v48  ;;  %v7036_v56 = vld [vmem:[#allocation3 + $0x24] sm:$0xf0]  ;;  %v10321_v22 = vld [vmem:[#allocation3] sm:$0xf] }
  0xee   :  { %v1139_v57 = vpack.c.bf16 %v1135_v53, %v1135_v53  ;;  %v7039_v60 = vor.u32 %v10184_v51, %v7036_v56  ;;  %1064 = vst [vmem:[#allocation2 + $0xb0] sm:$0xf] %v1060_v50  ;;  %v9248_v51 = vld [vmem:[%s12686_s3 + $0x160] sm:$0xff]  ;;  %v9254_v40 = vld [vmem:[%s12686_s3 + $0x190] sm:$0xff]  ;;  %v9313_v42 = vld [vmem:[%s12686_s3 + $0x98] sm:$0xff] }
  0xef   :  { %v962_v55 = vpop.f32.mrf.mxu3  ;;  %984 = vst [vmem:[#allocation2 + $0x6c] sm:$0xf] %v980_v46  ;;  %vm890_vm6 = vcmp.ge.f32.partialorder %v884_v54, 0.0  ;;  %v894_v0 = vmul.f32 0.01, %v884_v54  ;;  %2206 = vmatpush.bf16.msrb.mxu1 %v9248_v51  ;;  %v1122_v18 = vpop.f32.mrf.mxu1  ;;  %v9245_v46 = vld [vmem:[%s12686_s3 + $0x148] sm:$0xff]  ;;  %3102 = vmatpush.bf16.msrb.mxu3 %v9313_v42 }
  0xf0   :  { %v963_v58 = vadd.f32 %v10242_v41, %v962_v55  ;;  %1143 = vst [vmem:[#allocation2 + $0xb4] sm:$0xf] %v1139_v57  ;;  %2135 = vmatmul.bf16.vlgmr.msra.gmra.mxu1 %v7039_v60  ;;  %v9191_v7 = vld [vmem:[#allocation3 + $0x28] sm:$0xf0]  ;;  %v1123_v33 = vadd.f32 %v10210_v13, %v1122_v18  ;;  %v10330_v36 = vld [vmem:[%s12685_s2] ss:$0 sm:$0xff] }
  0xf1   :  { %v1324_v35 = vld [vmem:[#allocation2 + $0x70] sm:$0xf]  ;;  %v898_v6 = vsel %vm890_vm6, %v884_v54, %v894_v0  ;;  %v7043_v12 = vor.u32 %v9191_v7, %v10190_v59  ;;  %v9255_v59 = vld [vmem:[%s12686_s3 + $0x198] sm:$0xff]  ;;  %2349 = vst [vmem:[#allocation3 + $0x3c] sm:$0xf] %v2345_v37  ;;  %v9253_v53 = vld [vmem:[%s12686_s3 + $0x188] sm:$0xff] }
  0xf2   :  { %vm969_vm7 = vcmp.ge.f32.partialorder %v963_v58, 0.0  ;;  %1327 = vst [vmem:[#allocation3 + $0x4c] sm:$0xf] %v1324_v35  ;;  %v1331_v4 = vld [vmem:[#allocation2 + $0x74] sm:$0xf]  ;;  %v902_v39 = vpack.c.bf16 %v898_v6, %v898_v6  ;;  %2226 = vmatpush.bf16.msra.mxu2 %v9255_v59  ;;  %v9207_v13 = vld [vmem:[%s12686_s3 + $0x18] sm:$0xff] }
  0xf3   :  { %v973_v5 = vmul.f32 0.01, %v963_v58  ;;  %1334 = vst [vmem:[#allocation3 + $0x50] sm:$0xf] %v1331_v4  ;;  %2154 = vmatmul.bf16.vlgmr.msrb.gmra.mxu2 %v7043_v12  ;;  %2207 = vmatpush.bf16.msrb.mxu1 %v9247_v15  ;;  %vm1128_vm10 = vcmp.ge.f32.partialorder %v1123_v33, 0.0  ;;  %v9312_v55 = vld [vmem:[%s12686_s3 + $0x90] sm:$0xff] }
  0xf4   :  { %906 = vst [vmem:[#allocation2 + $0xa8] sm:$0xf] %v902_v39  ;;  %v885_v20 = vpop.f32.mrf.mxu2  ;;  %v1132_v43 = vmul.f32 0.01, %v1123_v33  ;;  %v2338_v60 = vld [vmem:[#allocation2 + $0x8c] sm:$0xf]  ;;  %3103 = vmatpush.bf16.msrb.mxu3 %v9312_v55 }
  0xf5   :  { %v977_v11 = vsel %vm969_vm7, %v963_v58, %v973_v5  ;;  %v886_v24 = vadd.f32 %v10230_v52, %v885_v20  ;;  %v1325_v26 = vld [vmem:[#allocation2 + $0xb0] sm:$0xf]  ;;  %v9208_v52 = vld [vmem:[%s12686_s3 + $0x20] sm:$0xff]  ;;  %2299 = vst [vmem:[#allocation3] sm:$0xf] %v12694_v27  ;;  %v1043_v5 = vpop.f32.mrf.mxu0  ;;  %v9311_v15 = vld [vmem:[%s12686_s3 + $0x88] sm:$0xff] }
  0xf6   :  { %v981_v17 = vpack.c.bf16 %v977_v11, %v977_v11  ;;  %1328 = vst [vmem:[#allocation3 + $0x70] sm:$0xf] %v1325_v26  ;;  %2111 = vmatpush.bf16.msra.mxu0 %v9208_v52  ;;  %2227 = vmatpush.bf16.msra.mxu2 %v9254_v40  ;;  %v1136_v54 = vsel %vm1128_vm10, %v1123_v33, %v1132_v43  ;;  %v10355_v2 = vld [vmem:[#allocation3 + $0x5c] sm:$0xf]  ;;  %v2339_v3 = vld [vmem:[#allocation2 + $0xcc] sm:$0xf] }
  0xf7   :  { %v964_v23 = vpop.f32.mrf.mxu3  ;;  %2254 = vmatmul.bf16.gmra.mxu3 %v7099_v19  ;;  %v1332_v30 = vld [vmem:[#allocation2 + $0xb4] sm:$0xf]  ;;  %vm891_vm8 = vcmp.ge.f32.partialorder %v886_v24, 0.0  ;;  %2208 = vmatpush.bf16.msrb.mxu1 %v9246_v32  ;;  %v1140_v58 = vpack.c.bf16 %v1136_v54, %v1136_v54  ;;  %v9244_v7 = vld [vmem:[%s12686_s3 + $0x140] sm:$0xff]  ;;  %v1044_v8 = vadd.f32 %v10204_v9, %v1043_v5  ;;  %v9205_v16 = vld [vmem:[%s12686_s3 + $0x8] sm:$0xff] }
  0xf8   :  { %985 = vst [vmem:[#allocation2 + $0xac] sm:$0xf] %v981_v17  ;;  %v965_v28 = vadd.f32 %v10242_v41, %v964_v23  ;;  %v895_v41 = vmul.f32 0.01, %v886_v24  ;;  %v9206_v6 = vld [vmem:[%s12686_s3 + $0x10] sm:$0xff]  ;;  %v9252_v14 = vld [vmem:[%s12686_s3 + $0x180] sm:$0xff]  ;;  %3104 = vmatpush.bf16.msrb.mxu3 %v9311_v15 }
  0xf9   :  { %1335 = vst [vmem:[#allocation3 + $0x74] sm:$0xf] %v1332_v30  ;;  %v9195_v50 = vld [vmem:[#allocation3 + $0x4c] sm:$0xf]  ;;  %v10364_v10 = vld [vmem:[#allocation3 + $0x7c] sm:$0xf0] }
  0xfa   :  { %vm970_vm9 = vcmp.ge.f32.partialorder %v965_v28, 0.0  ;;  %v974_v34 = vmul.f32 0.01, %v965_v28  ;;  %v899_v38 = vsel %vm891_vm8, %v886_v24, %v895_v41  ;;  %2112 = vmatpush.bf16.msra.mxu0 %v9207_v13  ;;  %v7078_v1 = vld [vmem:[#allocation3 + $0x50] sm:$0xf]  ;;  %2228 = vmatpush.bf16.msra.mxu2 %v9253_v53  ;;  %vm1049_vm13 = vcmp.ge.f32.partialorder %v1044_v8, 0.0 }
  0xfb   :  { %v903_v44 = vpack.c.bf16 %v899_v38, %v899_v38  ;;  %2209 = vmatpush.bf16.msrb.mxu1 %v9245_v46  ;;  %1144 = vst [vmem:[#allocation2 + $0xf4] sm:$0xf] %v1140_v58  ;;  %v1053_v19 = vmul.f32 0.01, %v1044_v8  ;;  %v9301_v20 = vld [vmem:[%s12686_s3 + $0x38] sm:$0xff]  ;;  %v9310_v30 = vld [vmem:[%s12686_s3 + $0x80] sm:$0xff] }
  0xfc   :  { %v978_v45 = vsel %vm970_vm9, %v965_v28, %v974_v34  ;;  %v1194_v48 = vpop.f32.mrf.mxu2  ;;  %2342 = vst [vmem:[#allocation3 + $0x5c] sm:$0xf] %v2338_v60  ;;  %v9309_v59 = vld [vmem:[%s12686_s3 + $0x78] sm:$0xff]  ;;  %v10382_v24 = vld [vmem:[#allocation3 + $0x4] sm:$0xf]  ;;  %v9300_v37 = vld [vmem:[%s12686_s3 + $0x30] sm:$0xff]  ;;  %3105 = vmatpush.bf16.msrb.mxu3 %v9310_v30 }
  0xfd   :  { %v982_v47 = vpack.c.bf16 %v978_v45, %v978_v45  ;;  %907 = vst [vmem:[#allocation2 + $0xe8] sm:$0xf] %v903_v44  ;;  %v1195_v56 = vadd.f32 %v10316_v31, %v1194_v48  ;;  %v7072_v0 = vld [vmem:[#allocation3 + $0x6c] sm:$0xf0]  ;;  %v1057_v28 = vsel %vm1049_vm13, %v1044_v8, %v1053_v19  ;;  %v9204_v32 = vld [vmem:[%s12686_s3] sm:$0xff]  ;;  %v9349_v33 = vld [vmem:[%s12686_s3 + $0x1b8] sm:$0xff] }
  0xfe   :  { %v7075_v51 = vor.u32 %v9195_v50, %v7072_v0  ;;  %2113 = vmatpush.bf16.msra.mxu0 %v9206_v6  ;;  %2343 = vst [vmem:[#allocation3 + $0x80] sm:$0xf] %v2339_v3  ;;  %v3275_v23 = vld [vmem:[#allocation2 + $0x10] sm:$0xf]  ;;  %2229 = vmatpush.bf16.msra.mxu2 %v9252_v14  ;;  %v1061_v41 = vpack.c.bf16 %v1057_v28, %v1057_v28  ;;  %v9243_v42 = vld [vmem:[%s12686_s3 + $0x138] sm:$0xff]  ;;  %v9307_v48 = vld [vmem:[%s12686_s3 + $0x68] sm:$0xff] }
  0xff   :  { %v1273_v57 = vpop.f32.mrf.mxu3  ;;  %986 = vst [vmem:[#allocation2 + $0xec] sm:$0xf] %v982_v47  ;;  %vm1204_vm11 = vcmp.ge.f32.partialorder %v1195_v56, 0.0  ;;  %v1208_v35 = vmul.f32 0.01, %v1195_v56  ;;  %2210 = vmatpush.bf16.msrb.mxu1 %v9244_v7  ;;  %v9308_v38 = vld [vmem:[%s12686_s3 + $0x70] sm:$0xff]  ;;  %v7055_v6 = vor.u32 %v10224_v25, %v10255_v61 }
 0x100   :  { %v1274_v63 = vadd.f32 %v10330_v36, %v1273_v57  ;;  %v9200_v4 = vld [vmem:[#allocation3 + $0x70] sm:$0xf0]  ;;  %2140 = vmatmul.bf16.gmra.mxu1 %v7075_v51  ;;  %3279 = vst [vmem:[#allocation3 + $0x4] sm:$0xf] %v3275_v23  ;;  %3174 = vmatpush.bf16.msra.mxu3 %v9349_v33  ;;  %v9299_v47 = vld [vmem:[%s12686_s3 + $0x28] sm:$0xff]  ;;  %v9298_v3 = vld [vmem:[%s12686_s3 + $0x20] sm:$0xff] }
 0x101   :  { %v1212_v11 = vsel %vm1204_vm11, %v1195_v56, %v1208_v35  ;;  %v7079_v12 = vor.u32 %v9200_v4, %v7078_v1  ;;  %1065 = vst [vmem:[#allocation2 + $0xf0] sm:$0xf] %v1061_v41  ;;  %v9348_v44 = vld [vmem:[%s12686_s3 + $0x1b0] sm:$0xff]  ;;  %v3252_v54 = vld [vmem:[#allocation2 + $0x1c] sm:$0x7]  ;;  %v9347_v0 = vld [vmem:[%s12686_s3 + $0x1a8] sm:$0xff] }
 0x102   :  { %vm1283_vm12 = vcmp.ge.f32.partialorder %v1274_v63, 0.0  ;;  %v1287_v39 = vmul.f32 0.01, %v1274_v63  ;;  %v1216_v9 = vpack.c.bf16 %v1212_v11, %v1212_v11  ;;  %2114 = vmatpush.bf16.msra.mxu0 %v9205_v16  ;;  %3079 = vmatpush.bf16.msrb.mxu2 %v9309_v59  ;;  %v9242_v53 = vld [vmem:[%s12686_s3 + $0x130] sm:$0xff]  ;;  %v9306_v35 = vld [vmem:[%s12686_s3 + $0x60] sm:$0xff]  ;;  %v3254_v51 = vrot.slane %v3252_v54, 7 }
 0x103   :  { %2159 = vmatmul.bf16.gmra.mxu2 %v7079_v12  ;;  %3060 = vmatpush.bf16.msra.mxu1 %v9301_v20  ;;  %v9241_v5 = vld [vmem:[%s12686_s3 + $0x128] sm:$0xff]  ;;  %v9346_v8 = vld [vmem:[%s12686_s3 + $0x1a0] sm:$0xff]  ;;  %v9297_v25 = vld [vmem:[%s12686_s3 + $0x18] sm:$0xff]  ;;  %v7059_v16 = vor.u32 %v10311_v29, %v10307_v49 }
 0x104   :  { %v1291_v17 = vsel %vm1283_vm12, %v1274_v63, %v1287_v39  ;;  %1220 = vst [vmem:[#allocation2 + $0x38] sm:$0xf] %v1216_v9  ;;  %v1196_v26 = vpop.f32.mrf.mxu2  ;;  %3175 = vmatpush.bf16.msra.mxu3 %v9348_v44  ;;  %v10435_v11 = vld [vmem:[#allocation3] sm:$0xf]  ;;  %v9305_v61 = vld [vmem:[%s12686_s3 + $0x58] sm:$0xff]  ;;  %v9296_v20 = vld [vmem:[%s12686_s3 + $0x10] sm:$0xff] }
 0x105   :  { %v1295_v21 = vpack.c.bf16 %v1291_v17, %v1291_v17  ;;  %v1197_v52 = vadd.f32 %v10316_v31, %v1196_v26  ;;  %3251 = vst [vmem:[#allocation3] sm:$0x1] %v12694_v27  ;;  %v3284_v9 = vld [vmem:[#allocation2 + $0x54] sm:$0xf]  ;;  %v9240_v17 = vld [vmem:[%s12686_s3 + $0x120] sm:$0xff]  ;;  %v9345_v26 = vld [vmem:[%s12686_s3 + $0x198] sm:$0xff] }
 0x106   :  { %2115 = vmatpush.bf16.msra.mxu0 %v9204_v32  ;;  %3080 = vmatpush.bf16.msrb.mxu2 %v9308_v38  ;;  %3256 = vst [vmem:[#allocation3] sm:$0xe] %v3254_v51  ;;  %v9304_v59 = vld [vmem:[%s12686_s3 + $0x50] sm:$0xff]  ;;  %v9239_v32 = vld [vmem:[%s12686_s3 + $0x118] sm:$0xff]  ;;  %v9343_v54 = vld [vmem:[%s12686_s3 + $0x188] sm:$0xff] }
 0x107   :  { %1299 = vst [vmem:[#allocation2 + $0x3c] sm:$0xf] %v1295_v21  ;;  %v1275_v18 = vpop.f32.mrf.mxu3  ;;  %vm1205_vm14 = vcmp.ge.f32.partialorder %v1197_v52, 0.0  ;;  %v1209_v40 = vmul.f32 0.01, %v1197_v52  ;;  %3061 = vmatpush.bf16.msra.mxu1 %v9300_v37 }
 0x108   :  { %v1276_v34 = vadd.f32 %v10330_v36, %v1275_v18  ;;  %3176 = vmatpush.bf16.msra.mxu3 %v9347_v0  ;;  %v10467_v37 = vld [vmem:[#allocation3 + $0x18] sm:$0xf]  ;;  %v10479_v44 = vld [vmem:[#allocation3 + $0x38] sm:$0xf0] }
 0x109   :  { %v1213_v43 = vsel %vm1205_vm14, %v1197_v52, %v1209_v40  ;;  %v9295_v40 = vld [vmem:[%s12686_s3 + $0x8] sm:$0xff]  ;;  %3331 = vst [vmem:[#allocation3 + $0x18] sm:$0x1] %v12694_v27 }
 0x10a   :  { %vm1284_vm15 = vcmp.ge.f32.partialorder %v1276_v34, 0.0  ;;  %v1288_v13 = vmul.f32 0.01, %v1276_v34  ;;  %v1217_v45 = vpack.c.bf16 %v1213_v43, %v1213_v43  ;;  %2184 = vmatpush.bf16.msrb.mxu0 %v9243_v42  ;;  %3081 = vmatpush.bf16.msrb.mxu2 %v9307_v48  ;;  %v9303_v42 = vld [vmem:[%s12686_s3 + $0x48] sm:$0xff]  ;;  %3337 = vst [vmem:[#allocation3 + $0x3c] sm:$0x1] %v12694_v27 }
 0x10b   :  { %3062 = vmatpush.bf16.msra.mxu1 %v9299_v47 }
 0x10c   :  { %v1292_v46 = vsel %vm1284_vm15, %v1276_v34, %v1288_v13  ;;  %1221 = vst [vmem:[#allocation2 + $0x78] sm:$0xf] %v1217_v45  ;;  %v1199_v56 = vpop.f32.mrf.mxu2  ;;  %3177 = vmatpush.bf16.msra.mxu3 %v9346_v8  ;;  %v2300_v34 = vld [vmem:[#allocation2 + $0x34] sm:$0xff]  }
 0x10d   :  { %v1296_v50 = vpack.c.bf16 %v1292_v46, %v1292_v46  ;;  %v1200_v58 = vadd.f32 %v10316_v31, %v1199_v56  ;;  %v9238_v13 = vld [vmem:[%s12686_s3 + $0x110] sm:$0xff]  ;;  %v9302_v56 = vld [vmem:[%s12686_s3 + $0x40] sm:$0xff] }
 0x10e   :  { %v1305_v55 = vld [vmem:[#allocation2 + $0x3c] sm:$0x7]  ;;  %2185 = vmatpush.bf16.msrb.mxu0 %v9242_v53  ;;  %3082 = vmatpush.bf16.msrb.mxu2 %v9306_v35  ;;  %v9294_v53 = vld [vmem:[%s12686_s3] sm:$0xff]  ;;  %v3286_v8 = vld [vmem:[#allocation2 + $0xd4] sm:$0xf] }
 0x10f   :  { %v1307_v57 = vrot.slane %v1305_v55, 7  ;;  %1300 = vst [vmem:[#allocation2 + $0x7c] sm:$0xf] %v1296_v50  ;;  %v1278_v60 = vpop.f32.mrf.mxu3  ;;  %v2314_v63 = vld [vmem:[#allocation2 + $0x3c] sm:$0xf]  ;;  %vm1206_vm1 = vcmp.ge.f32.partialorder %v1200_v58, 0.0  ;;  %3063 = vmatpush.bf16.msra.mxu1 %v9298_v3 }
 0x110   :  { %v1279_v1 = vadd.f32 %v10330_v36, %v1278_v60  ;;  %2317 = vst [vmem:[#allocation3 + $0x2c] sm:$0xf] %v2314_v63  ;;  %v1210_v4 = vmul.f32 0.01, %v1200_v58  ;;  %2211 = vmatmul.bf16.vlgmr.msrb.gmra.mxu1 %v7055_v6  ;;  %v3332_v28 = vld [vmem:[#allocation2 + $0x3c] sm:$0x7]  ;;  %3178 = vmatpush.bf16.msra.mxu3 %v9345_v26  ;;  %v7091_v63 = vor.u32 %v10355_v2, %v10364_v10 }
 0x111   :  { %1309 = vst [vmem:[#allocation3 + $0x24] sm:$0xe] %v1307_v57  ;;  %v3285_v50 = vld [vmem:[#allocation2 + $0x94] sm:$0xf]  ;;  %v9202_v55 = vld [vmem:[#allocation3 + $0x80] sm:$0xf0] }
 0x112   :  { %vm1285_vm2 = vcmp.ge.f32.partialorder %v1279_v1, 0.0  ;;  %v1289_v39 = vmul.f32 0.01, %v1279_v1  ;;  %v1214_v7 = vsel %vm1206_vm1, %v1200_v58, %v1210_v4  ;;  %2186 = vmatpush.bf16.msrb.mxu0 %v9241_v5  ;;  %3083 = vmatpush.bf16.msrb.mxu2 %v9305_v61  ;;  %v9237_v58 = vld [vmem:[%s12686_s3 + $0x108] sm:$0xff]  ;;  %v9333_v60 = vld [vmem:[%s12686_s3 + $0x138] sm:$0xff]  ;;  %v9342_v2 = vld [vmem:[%s12686_s3 + $0x180] sm:$0xff] }
 0x113   :  { %v1218_v12 = vpack.c.bf16 %v1214_v7, %v1214_v7  ;;  %2230 = vmatmul.bf16.vlgmr.msra.gmra.mxu2 %v7059_v16  ;;  %3064 = vmatpush.bf16.msra.mxu1 %v9297_v25  ;;  %v7094_v35 = vld [vmem:[#allocation3 + $0x60] sm:$0xf]  ;;  %v3276_v6 = vld [vmem:[#allocation2 + $0x50] sm:$0xf]  ;;  %v9399_v10 = vld [vmem:[%s12686_s3 + $0x78] sm:$0xff] }
 0x114   :  { %v1293_v14 = vsel %vm1285_vm2, %v1279_v1, %v1289_v39  ;;  %v9341_v1 = vld [vmem:[%s12686_s3 + $0x178] sm:$0xff]  ;;  %v10513_v5 = vld [vmem:[#allocation3 + $0x10] sm:$0xf]  ;;  %v2328_v39 = vld [vmem:[#allocation2 + $0x8] sm:$0xf]  ;;  %v7095_v7 = vor.u32 %v9202_v55, %v7094_v35 }
 0x115   :  { %v1297_v15 = vpack.c.bf16 %v1293_v14, %v1293_v14  ;;  %1222 = vst [vmem:[#allocation2 + $0xb8] sm:$0xf] %v1218_v12  ;;  %v9236_v12 = vld [vmem:[%s12686_s3 + $0x100] sm:$0xff]  ;;  %v9332_v14 = vld [vmem:[%s12686_s3 + $0x130] sm:$0xff] }
 0x116   :  { %v1311_v19 = vld [vmem:[#allocation2 + $0x7c] sm:$0x7]  ;;  %2187 = vmatpush.bf16.msrb.mxu0 %v9240_v17  ;;  %3084 = vmatpush.bf16.msrb.mxu2 %v9304_v59  ;;  %v9340_v25 = vld [vmem:[%s12686_s3 + $0x170] sm:$0xff]  ;;  %2332 = vst [vmem:[#allocation3 + $0x10] sm:$0xf] %v2328_v39 }
 0x117   :  { %v2315_v21 = vld [vmem:[#allocation2 + $0x7c] sm:$0xf]  ;;  %v1313_v23 = vrot.slane %v1311_v19, 7  ;;  %1301 = vst [vmem:[#allocation2 + $0xbc] sm:$0xf] %v1297_v15  ;;  %v1280_v49 = vpop.f32.mrf.mxu3  ;;  %3065 = vmatpush.bf16.msra.mxu1 %v9296_v20  ;;  %v9398_v59 = vld [vmem:[%s12686_s3 + $0x70] sm:$0xff] }
 0x118   :  { %v9281_v29 = vld [vmem:[#allocation3 + $0x28] sm:$0xf0]  ;;  %v1281_v30 = vadd.f32 %v10330_v36, %v1280_v49  ;;  %v9190_v18 = vld [vmem:[#allocation3 + $0x20] sm:$0xf0]  ;;  %2318 = vst [vmem:[#allocation3 + $0x50] sm:$0xf] %v2315_v21 }
 0x119   :  { %v7403_v52 = vor.u32 %v9281_v29, %v10280_v62  ;;  %3288 = vst [vmem:[#allocation3 + $0x2c] sm:$0xf] %v3284_v9  ;;  %v7035_v41 = vor.u32 %v9190_v18, %v10321_v22  ;;  %v9344_v62 = vld [vmem:[%s12686_s3 + $0x190] sm:$0xff]  ;;  %v3258_v36 = vld [vmem:[#allocation2 + $0x5c] sm:$0x7]  ;;  %v3334_v22 = vrot.slane %v3332_v28, 7 }
 0x11a   :  { %1315 = vst [vmem:[#allocation3 + $0x48] sm:$0xe] %v1313_v23  ;;  %vm1286_vm3 = vcmp.ge.f32.partialorder %v1281_v30, 0.0  ;;  %v1290_v33 = vmul.f32 0.01, %v1281_v30  ;;  %2188 = vmatpush.bf16.msrb.mxu0 %v9239_v32  ;;  %3179 = vmatpush.bf16.msra.mxu3 %v9344_v62  ;;  %v3260_v57 = vrot.slane %v3258_v36, 7 }
 0x11b   :  { %3106 = vmatmul.bf16.vlgmr.msrb.gmra.mxu3 %v7403_v52  ;;  %2116 = vmatmul.bf16.vlgmr.msra.gmra.mxu0 %v7035_v41  ;;  %2303 = vst [vmem:[#allocation3 + $0x24] sm:$0xff] %v2300_v34   ;;  %v3338_v45 = vld [vmem:[#allocation2 + $0x7c] sm:$0x7]  ;;  %v10524_v61 = vld [vmem:[#allocation3 + $0x30] sm:$0xf0]  ;;  %v9331_v23 = vld [vmem:[%s12686_s3 + $0x128] sm:$0xff]  ;;  %v1201_v41 = vpop.f32.mrf.mxu2 }
 0x11c   :  { %v1294_v38 = vsel %vm1286_vm3, %v1281_v30, %v1290_v33  ;;  %3336 = vst [vmem:[#allocation3 + $0x18] sm:$0xe] %v3334_v22  ;;  %3066 = vmatpush.bf16.msra.mxu1 %v9295_v40  ;;  %3085 = vmatpush.bf16.msrb.mxu2 %v9303_v42  ;;  %v3340_v3 = vrot.slane %v3338_v45, 7  ;;  %v2329_v15 = vld [vmem:[#allocation2 + $0x48] sm:$0xf]  ;;  %v9275_v20 = vld [vmem:[%s12686_s3 + $0x238] sm:$0xff] }
 0x11d   :  { %v1298_v43 = vpack.c.bf16 %v1294_v38, %v1294_v38  ;;  %2333 = vst [vmem:[#allocation3 + $0x34] sm:$0xf] %v2329_v15  ;;  %v2301_v49 = vld [vmem:[#allocation2 + $0x74] sm:$0xff]   ;;  %v9339_v29 = vld [vmem:[%s12686_s3 + $0x168] sm:$0xff]  ;;  %v3264_v28 = vld [vmem:[#allocation2 + $0x9c] sm:$0x7]  ;;  %v1202_v38 = vadd.f32 %v10316_v31, %v1201_v41 }
 0x11e   :  { %v1317_v46 = vld [vmem:[#allocation2 + $0xbc] sm:$0x7]  ;;  %2189 = vmatpush.bf16.msrb.mxu0 %v9238_v13  ;;  %3180 = vmatpush.bf16.msra.mxu3 %v9343_v54  ;;  %3342 = vst [vmem:[#allocation3 + $0x3c] sm:$0xe] %v3340_v3  ;;  %v2302_v26 = vld [vmem:[#allocation2 + $0xb4] sm:$0xff]   ;;  %v9397_v52 = vld [vmem:[%s12686_s3 + $0x68] sm:$0xff] }
 0x11f   :  { %v2316_v47 = vld [vmem:[#allocation2 + $0xbc] sm:$0xf]  ;;  %v1319_v48 = vrot.slane %v1317_v46, 7  ;;  %1302 = vst [vmem:[#allocation2 + $0xfc] sm:$0xf] %v1298_v43  ;;  %v9274_v30 = vld [vmem:[%s12686_s3 + $0x230] sm:$0xff] }
 0x120   :  { %2319 = vst [vmem:[#allocation3 + $0x74] sm:$0xf] %v2316_v47  ;;  %v7438_v0 = vld [vmem:[#allocation3 + $0x50] sm:$0xf]  ;;  %2216 = vmatmul.bf16.gmra.mxu1 %v7091_v63  ;;  %3086 = vmatpush.bf16.msrb.mxu2 %v9302_v56  ;;  %v2346_v18 = vld [vmem:[#allocation2 + $0x94] sm:$0xf] }
 0x121   :  { %1321 = vst [vmem:[#allocation3 + $0x6c] sm:$0xe] %v1319_v48  ;;  %3067 = vmatpush.bf16.msra.mxu1 %v9294_v53  ;;  %v7070_v9 = vld [vmem:[#allocation3 + $0x48] sm:$0xf]  ;;  %v3270_v32 = vld [vmem:[#allocation2 + $0xdc] sm:$0x7] }
 0x122   :  { %3289 = vst [vmem:[#allocation3 + $0x50] sm:$0xf] %v3285_v50  ;;  %v10502_v51 = vld [vmem:[#allocation3 + $0x20] sm:$0xf0]  ;;  %v10504_v4 = vld [vmem:[#allocation3 + $0x24] sm:$0xf0]  ;;  %2190 = vmatpush.bf16.msrb.mxu0 %v9237_v58  ;;  %3181 = vmatpush.bf16.msra.mxu3 %v9342_v2 }
 0x123   :  { %3257 = vst [vmem:[#allocation3 + $0x24] sm:$0x1] %v12694_v27  ;;  %2235 = vmatmul.bf16.gmra.mxu2 %v7095_v7  ;;  %v2347_v33 = vld [vmem:[#allocation2 + $0xd4] sm:$0xf]  ;;  %v10544_v34 = vld [vmem:[#allocation3 + $0x58] sm:$0xf]  ;;  %v7395_v50 = vor.u32 %v10502_v51, %v10435_v11 }
 0x124   :  { %3262 = vst [vmem:[#allocation3 + $0x24] sm:$0xe] %v3260_v57  ;;  %3155 = vmatpush.bf16.msra.mxu2 %v9341_v1  ;;  %v9330_v62 = vld [vmem:[%s12686_s3 + $0x120] sm:$0xff]  ;;  %v3266_v22 = vrot.slane %v3264_v28, 7  ;;  %v2330_v40 = vld [vmem:[#allocation2 + $0x88] sm:$0xf] }
 0x125   :  { %3280 = vst [vmem:[#allocation3 + $0x28] sm:$0xf] %v3276_v6  ;;  %3136 = vmatpush.bf16.msrb.mxu1 %v9333_v60  ;;  %v9338_v36 = vld [vmem:[%s12686_s3 + $0x160] sm:$0xff]  ;;  %v2331_v42 = vld [vmem:[#allocation2 + $0xc8] sm:$0xf]  ;;  %v3272_v43 = vrot.slane %v3270_v32, 7 }
 0x126   :  { %4082 = vmatpush.bf16.msrb.mxu3 %v9399_v10  ;;  %2191 = vmatpush.bf16.msrb.mxu0 %v9236_v12  ;;  %2304 = vst [vmem:[#allocation3 + $0x48] sm:$0xff] %v2301_v49   ;;  %v1408_v13 = vld [vmem:[#allocation2 + $0x14] sm:$0xf]  ;;  %v9273_v45 = vld [vmem:[%s12686_s3 + $0x228] sm:$0xff]  ;;  %v10556_v46 = vld [vmem:[#allocation3 + $0x78] sm:$0xf0]  ;;  %v7419_v10 = vor.u32 %v10479_v44, %v10467_v37  ;;  %v7051_v12 = vor.u32 %v10524_v61, %v10513_v5 }
 0x127   :  { %v9290_v16 = vld [vmem:[#allocation3 + $0x70] sm:$0xf0]  ;;  %2350 = vst [vmem:[#allocation3 + $0x60] sm:$0xf] %v2346_v18  ;;  %v9329_v47 = vld [vmem:[%s12686_s3 + $0x118] sm:$0xff]  ;;  %v9396_v31 = vld [vmem:[%s12686_s3 + $0x60] sm:$0xff] }
 0x128   :  { %v7439_v17 = vor.u32 %v9290_v16, %v7438_v0  ;;  %3290 = vst [vmem:[#allocation3 + $0x74] sm:$0xf] %v3286_v8  ;;  %v9199_v19 = vld [vmem:[#allocation3 + $0x68] sm:$0xf0]  ;;  %3156 = vmatpush.bf16.msra.mxu2 %v9340_v25  ;;  %v3344_v48 = vld [vmem:[#allocation2 + $0xbc] sm:$0x7]  ;;  %v7399_v0 = vor.u32 %v10382_v24, %v10504_v4 }
 0x129   :  { %v7071_v21 = vor.u32 %v9199_v19, %v7070_v9  ;;  %3137 = vmatpush.bf16.msrb.mxu1 %v9332_v14  ;;  %2305 = vst [vmem:[#allocation3 + $0x6c] sm:$0xff] %v2302_v26   ;;  %v1211_v54 = vmul.f32 0.01, %v1202_v38  ;;  %v9337_v56 = vld [vmem:[%s12686_s3 + $0x158] sm:$0xff]  ;;  %vm1207_vm4 = vcmp.ge.f32.partialorder %v1202_v38, 0.0  ;;  %v9272_v11 = vld [vmem:[%s12686_s3 + $0x220] sm:$0xff] }
 0x12a   :  { %2260 = vmatpush.bf16.msra.mxu0 %v9275_v20  ;;  %4083 = vmatpush.bf16.msrb.mxu3 %v9398_v59  ;;  %2351 = vst [vmem:[#allocation3 + $0x84] sm:$0xf] %v2347_v33  ;;  %v9395_v58 = vld [vmem:[%s12686_s3 + $0x58] sm:$0xff]  ;;  %v3277_v1 = vld [vmem:[#allocation2 + $0x90] sm:$0xf]  ;;  %v3346_v35 = vrot.slane %v3344_v48, 7 }
 0x12b   :  { %3111 = vmatmul.bf16.gmra.mxu3 %v7439_v17  ;;  %2121 = vmatmul.bf16.gmra.mxu0 %v7071_v21  ;;  %2334 = vst [vmem:[#allocation3 + $0x58] sm:$0xf] %v2330_v40  ;;  %v3350_v63 = vld [vmem:[#allocation2 + $0xfc] sm:$0x7]  ;;  %v9328_v3 = vld [vmem:[%s12686_s3 + $0x110] sm:$0xff]  ;;  %v1215_v51 = vsel %vm1207_vm4, %v1202_v38, %v1211_v54  ;;  %v9327_v37 = vld [vmem:[%s12686_s3 + $0x108] sm:$0xff] }
 0x12c   :  { %3157 = vmatpush.bf16.msra.mxu2 %v9339_v29  ;;  %2335 = vst [vmem:[#allocation3 + $0x7c] sm:$0xf] %v2331_v42  ;;  %v3278_v6 = vld [vmem:[#allocation2 + $0xd0] sm:$0xf]  ;;  %v3352_v4 = vrot.slane %v3350_v63, 7  ;;  %v9271_v39 = vld [vmem:[%s12686_s3 + $0x218] sm:$0xff]  ;;  %v1219_v7 = vpack.c.bf16 %v1215_v51, %v1215_v51 }
 0x12d   :  { %3138 = vmatpush.bf16.msrb.mxu1 %v9331_v23  ;;  %v10566_v53 = vld [vmem:[#allocation3 + $0x48] sm:$0xf]  ;;  %1412 = vst [vmem:[#allocation3 + $0x20] sm:$0xf] %v1408_v13  ;;  %v10574_v57 = vld [vmem:[#allocation3 + $0x4c] sm:$0xf] }
 0x12e   :  { %2261 = vmatpush.bf16.msra.mxu0 %v9274_v30  ;;  %4084 = vmatpush.bf16.msrb.mxu3 %v9397_v52  ;;  %3263 = vst [vmem:[#allocation3 + $0x48] sm:$0x1] %v12694_v27  ;;  %v9336_v2 = vld [vmem:[%s12686_s3 + $0x150] sm:$0xff]  ;;  %v10594_v24 = vld [vmem:[#allocation3 + $0x60] sm:$0xf]  ;;  %v9335_v44 = vld [vmem:[%s12686_s3 + $0x148] sm:$0xff] }
 0x12f   :  { %3268 = vst [vmem:[#allocation3 + $0x48] sm:$0xe] %v3266_v22  ;;  %v9394_v8 = vld [vmem:[%s12686_s3 + $0x50] sm:$0xff]  ;;  %v3315_v15 = vld [vmem:[#allocation2 + $0x20] sm:$0xf]  ;;  %v9393_v9 = vld [vmem:[%s12686_s3 + $0x48] sm:$0xff] }
 0x130   :  { %3158 = vmatpush.bf16.msra.mxu2 %v9338_v36  ;;  %v10568_v55 = vld [vmem:[#allocation3 + $0x68] sm:$0xf0]  ;;  %3068 = vmatmul.bf16.vlgmr.msra.gmra.mxu1 %v7395_v50  ;;  %v10583_v60 = vld [vmem:[#allocation3 + $0x6c] sm:$0xf0]  ;;  %3281 = vst [vmem:[#allocation3 + $0x4c] sm:$0xf] %v3277_v1 }
 0x131   :  { %3139 = vmatpush.bf16.msrb.mxu1 %v9330_v62  ;;  %3269 = vst [vmem:[#allocation3 + $0x6c] sm:$0x1] %v12694_v27  ;;  %v10607_v14 = vld [vmem:[#allocation3 + $0x80] sm:$0xf0]  ;;  %v10616_v25 = vld [vmem:[#allocation3 + $0x10] sm:$0xf]  ;;  %v7431_v62 = vor.u32 %v10568_v55, %v10566_v53 }
 0x132   :  { %2262 = vmatpush.bf16.msra.mxu0 %v9273_v45  ;;  %4085 = vmatpush.bf16.msrb.mxu3 %v9396_v31  ;;  %3274 = vst [vmem:[#allocation3 + $0x6c] sm:$0xe] %v3272_v43  ;;  %v10618_v5 = vld [vmem:[#allocation3 + $0x30] sm:$0xf0]  ;;  %v3316_v61 = vld [vmem:[#allocation2 + $0x60] sm:$0xf] }
 0x133   :  { %3087 = vmatmul.bf16.vlgmr.msrb.gmra.mxu2 %v7399_v0  ;;  %3282 = vst [vmem:[#allocation3 + $0x70] sm:$0xf] %v3278_v6  ;;  %v9270_v16 = vld [vmem:[%s12686_s3 + $0x210] sm:$0xff]  ;;  %v3323_v19 = vld [vmem:[#allocation2 + $0x24] sm:$0xf]  ;;  %v9365_v49 = vld [vmem:[%s12686_s3 + $0x238] sm:$0xff]  ;;  %v7087_v0 = vor.u32 %v10556_v46, %v10544_v34 }
 0x134   :  { %3159 = vmatpush.bf16.msra.mxu2 %v9337_v56  ;;  %3343 = vst [vmem:[#allocation3 + $0x60] sm:$0x1] %v12694_v27  ;;  %v10626_v17 = vld [vmem:[#allocation3 + $0x14] sm:$0xf]  ;;  %v9326_v20 = vld [vmem:[%s12686_s3 + $0x100] sm:$0xff]  ;;  %v9391_v30 = vld [vmem:[%s12686_s3 + $0x38] sm:$0xff] }
 0x135   :  { %3140 = vmatpush.bf16.msrb.mxu1 %v9329_v47  ;;  %3348 = vst [vmem:[#allocation3 + $0x60] sm:$0xe] %v3346_v35  ;;  %v10631_v59 = vld [vmem:[#allocation3 + $0x34] sm:$0xf0]  ;;  %v3324_v21 = vld [vmem:[#allocation2 + $0x64] sm:$0xf]  ;;  %v7435_v47 = vor.u32 %v10574_v57, %v10583_v60 }
 0x136   :  { %2263 = vmatpush.bf16.msra.mxu0 %v9272_v11  ;;  %4086 = vmatpush.bf16.msrb.mxu3 %v9395_v58  ;;  %3349 = vst [vmem:[#allocation3 + $0x84] sm:$0x1] %v12694_v27  ;;  %v9334_v23 = vld [vmem:[%s12686_s3 + $0x140] sm:$0xff]  ;;  %v4262_v26 = vld [vmem:[#allocation2 + $0x18] sm:$0xf]  ;;  %v9269_v41 = vld [vmem:[%s12686_s3 + $0x208] sm:$0xff]  ;;  %v7455_v58 = vor.u32 %v10607_v14, %v10594_v24 }
 0x137   :  { %3354 = vst [vmem:[#allocation3 + $0x84] sm:$0xe] %v3352_v4  ;;  %v10639_v29 = vld [vmem:[#allocation3 + $0x4] sm:$0xf]  ;;  %v1409_v28 = vld [vmem:[#allocation2 + $0x54] sm:$0xf] }
 0x138   :  { %3160 = vmatpush.bf16.msra.mxu2 %v9336_v2  ;;  %1223 = vst [vmem:[#allocation2 + $0xf8] sm:$0xf] %v1219_v7  ;;  %v10644_v52 = vld [vmem:[#allocation3 + $0x24] sm:$0xf0]  ;;  %v2360_v18 = vld [vmem:[#allocation2 + $0x1c] sm:$0xf] }
 0x139   :  { %3141 = vmatpush.bf16.msrb.mxu1 %v9328_v3  ;;  %3319 = vst [vmem:[#allocation3 + $0x10] sm:$0xf] %v3315_v15  ;;  %v9392_v32 = vld [vmem:[%s12686_s3 + $0x40] sm:$0xff]  ;;  %v4263_v36 = vld [vmem:[#allocation2 + $0x58] sm:$0xf]  ;;  %v9364_v38 = vld [vmem:[%s12686_s3 + $0x230] sm:$0xff] }
 0x13a   :  { %2264 = vmatpush.bf16.msra.mxu0 %v9271_v39  ;;  %4087 = vmatpush.bf16.msrb.mxu3 %v9394_v8  ;;  %3320 = vst [vmem:[#allocation3 + $0x34] sm:$0xf] %v3316_v61  ;;  %v10652_v33 = vld [vmem:[#allocation3 + $0x20] sm:$0xf]  ;;  %v9431_v22 = vld [vmem:[%s12686_s3 + $0x178] sm:$0xff]  ;;  %v9390_v42 = vld [vmem:[%s12686_s3 + $0x30] sm:$0xff] }
 0x13b   :  { %3182 = vmatmul.bf16.vlgmr.msra.gmra.mxu3 %v7419_v10  ;;  %2192 = vmatmul.bf16.vlgmr.msrb.gmra.mxu0 %v7051_v12  ;;  %3327 = vst [vmem:[#allocation3 + $0x14] sm:$0xf] %v3323_v19  ;;  %v9268_v40 = vld [vmem:[%s12686_s3 + $0x200] sm:$0xff]  ;;  %v9325_v13 = vld [vmem:[%s12686_s3 + $0xf8] sm:$0xff]  ;;  %v9430_v43 = vld [vmem:[%s12686_s3 + $0x170] sm:$0xff] }
 0x13c   :  { %3161 = vmatpush.bf16.msra.mxu2 %v9335_v44  ;;  %3328 = vst [vmem:[#allocation3 + $0x38] sm:$0xf] %v3324_v21  ;;  %v10674_v45 = vld [vmem:[#allocation3 + $0x58] sm:$0xf]  ;;  %v10678_v31 = vld [vmem:[#allocation3 + $0x78] sm:$0xf0] }
 0x13d   :  { %3142 = vmatpush.bf16.msrb.mxu1 %v9327_v37  ;;  %4266 = vst [vmem:[#allocation3 + $0x4] sm:$0xf] %v4262_v26  ;;  %v3317_v48 = vld [vmem:[#allocation2 + $0xa0] sm:$0xf]  ;;  %v10680_v53 = vld [vmem:[#allocation3 + $0x5c] sm:$0xf] }
 0x13e   :  { %2265 = vmatpush.bf16.msra.mxu0 %v9270_v16  ;;  %4088 = vmatpush.bf16.msrb.mxu3 %v9393_v9  ;;  %4267 = vst [vmem:[#allocation3 + $0x28] sm:$0xf] %v4263_v36  ;;  %v3318_v50 = vld [vmem:[#allocation2 + $0xe0] sm:$0xf]  ;;  %v9363_v54 = vld [vmem:[%s12686_s3 + $0x228] sm:$0xff]  ;;  %v9324_v1 = vld [vmem:[%s12686_s3 + $0xf0] sm:$0xff]  ;;  %v7415_v36 = vor.u32 %v10626_v17, %v10631_v59  ;;  %v7759_v17 = vor.u32 %v10639_v29, %v10644_v52 }
 0x13f   :  { %1413 = vst [vmem:[#allocation3 + $0x44] sm:$0xf] %v1409_v28  ;;  %v10685_v55 = vld [vmem:[#allocation3 + $0x7c] sm:$0xf0]  ;;  %v3325_v57 = vld [vmem:[#allocation2 + $0xa4] sm:$0xf] }
 0x140   :  { %3162 = vmatpush.bf16.msra.mxu2 %v9334_v23  ;;  %3073 = vmatmul.bf16.gmra.mxu1 %v7431_v62  ;;  %2364 = vst [vmem:[#allocation3 + $0x20] sm:$0xf] %v2360_v18  ;;  %v10687_v56 = vld [vmem:[#allocation3] sm:$0xf]  ;;  %v3326_v11 = vld [vmem:[#allocation2 + $0xe4] sm:$0xf] }
 0x141   :  { %3143 = vmatpush.bf16.msrb.mxu1 %v9326_v20  ;;  %3321 = vst [vmem:[#allocation3 + $0x58] sm:$0xf] %v3317_v48  ;;  %v2361_v60 = vld [vmem:[#allocation2 + $0x5c] sm:$0xf]  ;;  %v9389_v63 = vld [vmem:[%s12686_s3 + $0x28] sm:$0xff]  ;;  %v9362_v34 = vld [vmem:[%s12686_s3 + $0x220] sm:$0xff]  ;;  %v7411_v20 = vor.u32 %v10618_v5, %v10616_v25 }
 0x142   :  { %2266 = vmatpush.bf16.msra.mxu0 %v9269_v41  ;;  %4089 = vmatpush.bf16.msrb.mxu3 %v9392_v32  ;;  %3322 = vst [vmem:[#allocation3 + $0x7c] sm:$0xf] %v3318_v50  ;;  %v9429_v3 = vld [vmem:[%s12686_s3 + $0x168] sm:$0xff]  ;;  %v4254_v35 = vld [vmem:[#allocation2 + $0x14] sm:$0xf]  ;;  %v9388_v6 = vld [vmem:[%s12686_s3 + $0x20] sm:$0xff] }
 0x143   :  { %3092 = vmatmul.bf16.gmra.mxu2 %v7435_v47  ;;  %3329 = vst [vmem:[#allocation3 + $0x5c] sm:$0xf] %v3325_v57  ;;  %v3292_v46 = vld [vmem:[#allocation2 + $0x2c] sm:$0x7]  ;;  %v10715_v4 = vld [vmem:[#allocation3 + $0x6c] sm:$0xf0] }
 0x144   :  { %4063 = vmatpush.bf16.msrb.mxu2 %v9391_v30  ;;  %3330 = vst [vmem:[#allocation3 + $0x80] sm:$0xf] %v3326_v11  ;;  %v9323_v2 = vld [vmem:[%s12686_s3 + $0xe8] sm:$0xff]  ;;  %v10717_v10 = vld [vmem:[#allocation3 + $0x14] sm:$0xf]  ;;  %v9428_v39 = vld [vmem:[%s12686_s3 + $0x160] sm:$0xff] }
 0x145   :  { %3212 = vmatpush.bf16.msra.mxu1 %v9365_v49  ;;  %4258 = vst [vmem:[#allocation3] sm:$0xf] %v4254_v35  ;;  %v10713_v24 = vld [vmem:[#allocation3 + $0x4c] sm:$0xf]  ;;  %v4264_v7 = vld [vmem:[#allocation2 + $0x98] sm:$0xf] }
 0x146   :  { %4158 = vmatpush.bf16.msra.mxu3 %v9431_v22  ;;  %2267 = vmatpush.bf16.msra.mxu0 %v9268_v40  ;;  %v10702_v51 = vld [vmem:[#allocation3 + $0x40] sm:$0xf0]  ;;  %v4294_v8 = vld [vmem:[#allocation2 + $0x2c] sm:$0xf]  ;;  %v9361_v12 = vld [vmem:[%s12686_s3 + $0x218] sm:$0xff]  ;;  %v3294_v9 = vrot.slane %v3292_v46, 7  ;;  %v7447_v46 = vor.u32 %v10678_v31, %v10674_v45 }
 0x147   :  { %2365 = vst [vmem:[#allocation3 + $0x44] sm:$0xf] %v2361_v60  ;;  %v9387_v14 = vld [vmem:[%s12686_s3 + $0x18] sm:$0xff]  ;;  %v9322_v44 = vld [vmem:[%s12686_s3 + $0xe0] sm:$0xff]  ;;  %v10736_v16 = vld [vmem:[#allocation3 + $0xc] sm:$0xf]  ;;  %v7067_v50 = vor.u32 %v10702_v51, %v10652_v33 }
 0x148   :  { %4064 = vmatpush.bf16.msrb.mxu2 %v9390_v42  ;;  %v4265_v37 = vld [vmem:[#allocation2 + $0xd8] sm:$0xf]  ;;  %4268 = vst [vmem:[#allocation3 + $0x4c] sm:$0xf] %v4264_v7  ;;  %v4295_v19 = vld [vmem:[#allocation2 + $0x6c] sm:$0xf] }
 0x149   :  { %3213 = vmatpush.bf16.msra.mxu1 %v9364_v38  ;;  %4269 = vst [vmem:[#allocation3 + $0x70] sm:$0xf] %v4265_v37  ;;  %v9427_v15 = vld [vmem:[%s12686_s3 + $0x158] sm:$0xff]  ;;  %v10740_v21 = vld [vmem:[#allocation3 + $0x2c] sm:$0xf0]  ;;  %v9359_v40 = vld [vmem:[%s12686_s3 + $0x208] sm:$0xff] }
 0x14a   :  { %3117 = vmatpush.bf16.msrb.mxu0 %v9325_v13  ;;  %4159 = vmatpush.bf16.msra.mxu3 %v9430_v43  ;;  %v10734_v61 = vld [vmem:[#allocation3 + $0x34] sm:$0xf0]  ;;  %4298 = vst [vmem:[#allocation3 + $0x14] sm:$0xf] %v4294_v8  ;;  %v9360_v23 = vld [vmem:[%s12686_s3 + $0x210] sm:$0xff]  ;;  %v9385_v59 = vld [vmem:[%s12686_s3 + $0x8] sm:$0xff]  ;;  %v10779_v48 = vpop.f32.mrf.mxu3 }
 0x14b   :  { %3187 = vmatmul.bf16.gmra.mxu3 %v7455_v58  ;;  %2197 = vmatmul.bf16.gmra.mxu0 %v7087_v0  ;;  %4299 = vst [vmem:[#allocation3 + $0x38] sm:$0xf] %v4295_v19  ;;  %v9386_v49 = vld [vmem:[%s12686_s3 + $0x10] sm:$0xff]  ;;  %v3298_v26 = vld [vmem:[#allocation2 + $0x6c] sm:$0x7]  ;;  %v9321_v25 = vld [vmem:[%s12686_s3 + $0xd8] sm:$0xff]  ;;  %v7451_v19 = vor.u32 %v10680_v53, %v10685_v55 }
 0x14c   :  { %4065 = vmatpush.bf16.msrb.mxu2 %v9389_v63  ;;  %3291 = vst [vmem:[#allocation3 + $0xc] sm:$0x1] %v12694_v27  ;;  %v10752_v5 = vld [vmem:[#allocation3 + $0x20] sm:$0xf]  ;;  %v10756_v30 = vld [vmem:[#allocation3 + $0x68] sm:$0xf] }
 0x14d   :  { %3214 = vmatpush.bf16.msra.mxu1 %v9363_v54  ;;  %3296 = vst [vmem:[#allocation3 + $0xc] sm:$0xe] %v3294_v9  ;;  %v9426_v18 = vld [vmem:[%s12686_s3 + $0x150] sm:$0xff]  ;;  %v3300_v62 = vrot.slane %v3298_v26, 7  ;;  %v10764_v38 = vld [vmem:[#allocation3 + $0x20] sm:$0xf0] }
 0x14e   :  { %3118 = vmatpush.bf16.msrb.mxu0 %v9324_v1  ;;  %4160 = vmatpush.bf16.msra.mxu3 %v9429_v3  ;;  %v10754_v28 = vld [vmem:[#allocation3 + $0x40] sm:$0xf0]  ;;  %v3363_v41 = vld [vmem:[#allocation2 + $0x34] sm:$0xf]  ;;  %3297 = vst [vmem:[#allocation3 + $0x30] sm:$0x1] %v12694_v27 }
 0x14f   :  { %v4255_v32 = vld [vmem:[#allocation2 + $0x54] sm:$0xf]  ;;  %3367 = vst [vmem:[#allocation3 + $0x20] sm:$0xf] %v3363_v41  ;;  %v2362_v42 = vld [vmem:[#allocation2 + $0x9c] sm:$0xf] }
 0x150   :  { %4066 = vmatpush.bf16.msrb.mxu2 %v9388_v6  ;;  %3144 = vmatmul.bf16.vlgmr.msrb.gmra.mxu1 %v7411_v20  ;;  %v3364_v22 = vld [vmem:[#allocation2 + $0x74] sm:$0xf]  ;;  %v10769_v13 = vld [vmem:[#allocation3 + $0x88] sm:$0xf0]  ;;  %4259 = vst [vmem:[#allocation3 + $0x24] sm:$0xf] %v4255_v32 }
 0x151   :  { %3215 = vmatpush.bf16.msra.mxu1 %v9362_v34  ;;  %3368 = vst [vmem:[#allocation3 + $0x44] sm:$0xf] %v3364_v22  ;;  %v2363_v43 = vld [vmem:[#allocation2 + $0xdc] sm:$0xf]  ;;  %v9320_v47 = vld [vmem:[%s12686_s3 + $0xd0] sm:$0xff]  ;;  %v9358_v29 = vld [vmem:[%s12686_s3 + $0x200] sm:$0xff]  ;;  %v7103_v32 = vor.u32 %v10769_v13, %v10756_v30 }
 0x152   :  { %3119 = vmatpush.bf16.msrb.mxu0 %v9323_v2  ;;  %4161 = vmatpush.bf16.msra.mxu3 %v9428_v39  ;;  %3302 = vst [vmem:[#allocation3 + $0x30] sm:$0xe] %v3300_v62  ;;  %v9425_v52 = vld [vmem:[%s12686_s3 + $0x148] sm:$0xff]  ;;  %v2322_v54 = vld [vmem:[#allocation2 + $0x84] sm:$0xf]  ;;  %v9415_v58 = vld [vmem:[%s12686_s3 + $0xf8] sm:$0xff] }
 0x153   :  { %3163 = vmatmul.bf16.vlgmr.msra.gmra.mxu2 %v7415_v36  ;;  %2366 = vst [vmem:[#allocation3 + $0x68] sm:$0xf] %v2362_v42  ;;  %v10789_v57 = vld [vmem:[#allocation3 + $0x8] sm:$0xf]  ;;  %v10791_v11 = vld [vmem:[#allocation3 + $0x5c] sm:$0xf] }
 0x154   :  { %4067 = vmatpush.bf16.msrb.mxu2 %v9387_v14  ;;  %2367 = vst [vmem:[#allocation3 + $0x8c] sm:$0xf] %v2363_v43  ;;  %v4296_v33 = vld [vmem:[#allocation2 + $0xac] sm:$0xf]  ;;  %v4270_v60 = vld [vmem:[#allocation2 + $0x1c] sm:$0xf] }
 0x155   :  { %3216 = vmatpush.bf16.msra.mxu1 %v9361_v12  ;;  %4300 = vst [vmem:[#allocation3 + $0x5c] sm:$0xf] %v4296_v33  ;;  %v9384_v63 = vld [vmem:[%s12686_s3] sm:$0xff]  ;;  %v9319_v1 = vld [vmem:[%s12686_s3 + $0xc8] sm:$0xff]  ;;  %v9423_v3 = vld [vmem:[%s12686_s3 + $0x138] sm:$0xff]  ;;  %v10827_v12 = vpop.f32.mrf.mxu3  ;;  %v7427_v33 = vor.u32 %v10754_v28, %v10752_v5 }
 0x156   :  { %3120 = vmatpush.bf16.msrb.mxu0 %v9322_v44  ;;  %4162 = vmatpush.bf16.msra.mxu3 %v9427_v15  ;;  %v2323_v0 = vld [vmem:[#allocation2 + $0xc4] sm:$0xf]  ;;  %2326 = vst [vmem:[#allocation3 + $0x54] sm:$0xf] %v2322_v54  ;;  %v9481_v51 = vld [vmem:[%s12686_s3 + $0x38] sm:$0xff]  ;;  %v9414_v34 = vld [vmem:[%s12686_s3 + $0xf0] sm:$0xff] }
 0x157   :  { %2327 = vst [vmem:[#allocation3 + $0x78] sm:$0xf] %v2323_v0  ;;  %v9424_v35 = vld [vmem:[%s12686_s3 + $0x140] sm:$0xff]  ;;  %v9422_v2 = vld [vmem:[%s12686_s3 + $0x130] sm:$0xff]  ;;  %v9357_v39 = vld [vmem:[%s12686_s3 + $0x1f8] sm:$0xff] }
 0x158   :  { %4068 = vmatpush.bf16.msrb.mxu2 %v9386_v49  ;;  %4274 = vst [vmem:[#allocation3 + $0x8] sm:$0xf] %v4270_v60  ;;  %v9318_v6 = vld [vmem:[%s12686_s3 + $0xc0] sm:$0xff]  ;;  %v4297_v8 = vld [vmem:[#allocation2 + $0xec] sm:$0xf]  ;;  %v9480_v14 = vld [vmem:[%s12686_s3 + $0x30] sm:$0xff] }
 0x159   :  { %3217 = vmatpush.bf16.msra.mxu1 %v9360_v23  ;;  %v10825_v7 = vld [vmem:[#allocation3 + $0x7c] sm:$0xf0]  ;;  %v9413_v45 = vld [vmem:[%s12686_s3 + $0xe8] sm:$0xff]  ;;  %v3365_v15 = vld [vmem:[#allocation2 + $0xb4] sm:$0xf] }
 0x15a   :  { %3121 = vmatpush.bf16.msrb.mxu0 %v9321_v25  ;;  %4163 = vmatpush.bf16.msra.mxu3 %v9426_v18  ;;  %v9421_v31 = vld [vmem:[%s12686_s3 + $0x128] sm:$0xff]  ;;  %4301 = vst [vmem:[#allocation3 + $0x80] sm:$0xf] %v4297_v8  ;;  %v4256_v9 = vld [vmem:[#allocation2 + $0x94] sm:$0xf]  ;;  %v7795_v25 = vor.u32 %v10713_v24, %v10715_v4  ;;  %v9412_v18 = vld [vmem:[%s12686_s3 + $0xe0] sm:$0xff]  ;;  %v7775_v8 = vor.u32 %v10717_v10, %v10734_v61 }
 0x15b   :  { %4090 = vmatmul.bf16.vlgmr.msrb.gmra.mxu3 %v7759_v17  ;;  %2268 = vmatmul.bf16.vlgmr.msra.gmra.mxu0 %v7067_v50  ;;  %v10838_v37 = vld [vmem:[#allocation3 + $0x68] sm:$0xf]  ;;  %v10840_v44 = vld [vmem:[#allocation3 + $0x88] sm:$0xf0]  ;;  %v3366_v20 = vld [vmem:[#allocation2 + $0xf4] sm:$0xf] }
 0x15c   :  { %4069 = vmatpush.bf16.msrb.mxu2 %v9385_v59  ;;  %3369 = vst [vmem:[#allocation3 + $0x68] sm:$0xf] %v3365_v15  ;;  %v10844_v23 = vld [vmem:[#allocation3 + $0x48] sm:$0xf]  ;;  %v9356_v49 = vld [vmem:[%s12686_s3 + $0x1f0] sm:$0xff]  ;;  %v9420_v62 = vld [vmem:[%s12686_s3 + $0x120] sm:$0xff] }
 0x15d   :  { %3218 = vmatpush.bf16.msra.mxu1 %v9359_v40  ;;  %3370 = vst [vmem:[#allocation3 + $0x8c] sm:$0xf] %v3366_v20  ;;  %v10849_v26 = vld [vmem:[#allocation3 + $0x68] sm:$0xf0]  ;;  %v4257_v55 = vld [vmem:[#allocation2 + $0xd4] sm:$0xf]  ;;  %v10884_v17 = vpop.f32.mrf.mxu3 }
 0x15e   :  { %3122 = vmatpush.bf16.msrb.mxu0 %v9320_v47  ;;  %4164 = vmatpush.bf16.msra.mxu3 %v9425_v52  ;;  %v9479_v53 = vld [vmem:[%s12686_s3 + $0x28] sm:$0xff]  ;;  %4260 = vst [vmem:[#allocation3 + $0x48] sm:$0xf] %v4256_v9  ;;  %v10859_v41 = vld [vmem:[#allocation3 + $0x54] sm:$0xf]  ;;  %v9478_v30 = vld [vmem:[%s12686_s3 + $0x20] sm:$0xff] }
 0x15f   :  { %4261 = vst [vmem:[#allocation3 + $0x6c] sm:$0xf] %v4257_v55  ;;  %v10866_v36 = vld [vmem:[#allocation3 + $0x74] sm:$0xf0]  ;;  %v9355_v24 = vld [vmem:[%s12686_s3 + $0x1e8] sm:$0xff]  ;;  %v9354_v50 = vld [vmem:[%s12686_s3 + $0x1e0] sm:$0xff] }
 0x160   :  { %4070 = vmatpush.bf16.msrb.mxu2 %v9384_v63  ;;  %3149 = vmatmul.bf16.gmra.mxu1 %v7447_v46  ;;  %3303 = vst [vmem:[#allocation3 + $0x54] sm:$0x1] %v12694_v27  ;;  %v10873_v4 = vld [vmem:[#allocation3] sm:$0xf]  ;;  %v3304_v22 = vld [vmem:[#allocation2 + $0xac] sm:$0x7] }
 0x161   :  { %3219 = vmatpush.bf16.msra.mxu1 %v9358_v29  ;;  %3309 = vst [vmem:[#allocation3 + $0x78] sm:$0x1] %v12694_v27  ;;  %v9411_v40 = vld [vmem:[%s12686_s3 + $0xd8] sm:$0xff]  ;;  %v3306_v42 = vrot.slane %v3304_v22, 7  ;;  %v3310_v13 = vld [vmem:[#allocation2 + $0xec] sm:$0x7] }
 0x162   :  { %3123 = vmatpush.bf16.msrb.mxu0 %v9319_v1  ;;  %4165 = vmatpush.bf16.msra.mxu3 %v9424_v35  ;;  %5209 = vst [vmem:[#allocation3] sm:$0xf] %v12694_v27  ;;  %v10882_v43 = vld [vmem:[#allocation3 + $0x8] sm:$0xf]  ;;  %v9419_v59 = vld [vmem:[%s12686_s3 + $0x118] sm:$0xff]  ;;  %v3312_v47 = vrot.slane %v3310_v13, 7 }
 0x163   :  { %3168 = vmatmul.bf16.gmra.mxu2 %v7451_v19  ;;  %5235 = vst [vmem:[#allocation3 + $0x8] sm:$0xf] %v12694_v27  ;;  %v9477_v52 = vld [vmem:[%s12686_s3 + $0x18] sm:$0xff]  ;;  %v9410_v54 = vld [vmem:[%s12686_s3 + $0xd0] sm:$0xff]  ;;  %v10912_v0 = vld [vmem:[#allocation3 + $0xc] sm:$0xf] }
 0x164   :  { %4139 = vmatpush.bf16.msra.mxu2 %v9423_v3  ;;  %3308 = vst [vmem:[#allocation3 + $0x54] sm:$0xe] %v3306_v42  ;;  %v9353_v60 = vld [vmem:[%s12686_s3 + $0x1d8] sm:$0xff]  ;;  %v9476_v63 = vld [vmem:[%s12686_s3 + $0x10] sm:$0xff]  ;;  %v9409_v5 = vld [vmem:[%s12686_s3 + $0xc8] sm:$0xff]  ;;  %v7755_v3 = vor.u32 %v10764_v38, %v10687_v56 }
 0x165   :  { %4120 = vmatpush.bf16.msrb.mxu1 %v9415_v58  ;;  %3314 = vst [vmem:[#allocation3 + $0x78] sm:$0xe] %v3312_v47  ;;  %v9418_v58 = vld [vmem:[%s12686_s3 + $0x110] sm:$0xff]  ;;  %v4278_v1 = vld [vmem:[#allocation2 + $0x24] sm:$0xf]  ;;  %v9417_v35 = vld [vmem:[%s12686_s3 + $0x108] sm:$0xff] }
 0x166   :  { %5018 = vmatpush.bf16.msrb.mxu3 %v9481_v51  ;;  %3124 = vmatpush.bf16.msrb.mxu0 %v9318_v6  ;;  %v10917_v28 = vld [vmem:[#allocation3 + $0x2c] sm:$0xf0]  ;;  %v4279_v51 = vld [vmem:[#allocation2 + $0x64] sm:$0xf]  ;;  %4282 = vst [vmem:[#allocation3 + $0xc] sm:$0xf] %v4278_v1  ;;  %v10930_v6 = vpop.f32.mrf.mxu3 }
 0x167   :  { %v9475_v46 = vld [vmem:[%s12686_s3 + $0x8] sm:$0xff]  ;;  %4283 = vst [vmem:[#allocation3 + $0x30] sm:$0xf] %v4279_v51  ;;  %v10934_v38 = vld [vmem:[#allocation3 + $0x10] sm:$0xf]  ;;  %v9416_v15 = vld [vmem:[%s12686_s3 + $0x100] sm:$0xff] }
 0x168   :  { %4140 = vmatpush.bf16.msra.mxu2 %v9422_v2  ;;  %v4286_v2 = vld [vmem:[#allocation2 + $0x28] sm:$0xf]  ;;  %v9447_v10 = vld [vmem:[%s12686_s3 + $0x1f8] sm:$0xff]  ;;  %v9446_v19 = vld [vmem:[%s12686_s3 + $0x1f0] sm:$0xff] }
 0x169   :  { %4121 = vmatpush.bf16.msrb.mxu1 %v9414_v34  ;;  %v9352_v34 = vld [vmem:[%s12686_s3 + $0x1d0] sm:$0xff]  ;;  %4290 = vst [vmem:[#allocation3 + $0x10] sm:$0xf] %v4286_v2  ;;  %v9351_v9 = vld [vmem:[%s12686_s3 + $0x1c8] sm:$0xff]  ;;  %v10965_v20 = vld [vmem:[#allocation3 + $0x20] sm:$0xf0] }
 0x16a   :  { %3193 = vmatpush.bf16.msra.mxu0 %v9357_v39  ;;  %5019 = vmatpush.bf16.msrb.mxu3 %v9480_v14  ;;  %v4287_v39 = vld [vmem:[#allocation2 + $0x68] sm:$0xf]  ;;  %v7407_v14 = vor.u32 %v10736_v16, %v10740_v21  ;;  %v9455_v16 = vld [vmem:[%s12686_s3 + $0x238] sm:$0xff]  ;;  %v9474_v21 = vld [vmem:[%s12686_s3] sm:$0xff]  ;;  %5210 = vst [vmem:[#allocation3 + $0x24] sm:$0x1] %v12694_v27 }
 0x16b   :  { %4095 = vmatmul.bf16.gmra.mxu3 %v7795_v25  ;;  %2273 = vmatmul.bf16.gmra.mxu0 %v7103_v32  ;;  %v10973_v55 = vld [vmem:[#allocation3 + $0x3c] sm:$0xf0]  ;;  %v3355_v25 = vld [vmem:[#allocation2 + $0x30] sm:$0xf]  ;;  %v9445_v42 = vld [vmem:[%s12686_s3 + $0x1e8] sm:$0xff] }
 0x16c   :  { %4141 = vmatpush.bf16.msra.mxu2 %v9421_v31  ;;  %v10941_v31 = vld [vmem:[#allocation3 + $0x30] sm:$0xf0]  ;;  %v4288_v1 = vld [vmem:[#allocation2 + $0xa8] sm:$0xf] }
 0x16d   :  { %4122 = vmatpush.bf16.msrb.mxu1 %v9413_v45  ;;  %v10893_v29 = vpop.f32.mrf.mxu1  ;;  %v9408_v45 = vld [vmem:[%s12686_s3 + $0xc0] sm:$0xff]  ;;  %4291 = vst [vmem:[#allocation3 + $0x34] sm:$0xf] %v4287_v39  ;;  %v9454_v32 = vld [vmem:[%s12686_s3 + $0x230] sm:$0xff]  ;;  %v9405_v51 = vld [vmem:[%s12686_s3 + $0xa8] sm:$0xff] }
 0x16e   :  { %3194 = vmatpush.bf16.msra.mxu0 %v9356_v49  ;;  %5020 = vmatpush.bf16.msrb.mxu3 %v9479_v53  ;;  %v9513_v49 = vld [vmem:[%s12686_s3 + $0x138] sm:$0xff]  ;;  %v10986_v22 = vpop.f32.mrf.mxu3  ;;  %v9512_v47 = vld [vmem:[%s12686_s3 + $0x130] sm:$0xff]  ;;  %v11035_v2 = vld [vmem:[#allocation3 + $0xc] sm:$0xf] }
 0x16f   :  { %v10970_v53 = vld [vmem:[#allocation3 + $0x1c] sm:$0xf]  ;;  %5242 = vst [vmem:[#allocation3 + $0xc] sm:$0x1] %v12694_v27  ;;  %v9404_v39 = vld [vmem:[%s12686_s3 + $0xa0] sm:$0xff] }
 0x170   :  { %4142 = vmatpush.bf16.msra.mxu2 %v9420_v62  ;;  %3220 = vmatmul.bf16.vlgmr.msra.gmra.mxu1 %v7427_v33  ;;  %v3356_v62 = vld [vmem:[#allocation2 + $0x70] sm:$0xf]  ;;  %3359 = vst [vmem:[#allocation3 + $0x1c] sm:$0xf] %v3355_v25  ;;  %v9444_v33 = vld [vmem:[%s12686_s3 + $0x1e0] sm:$0xff]  ;;  %v7767_v25 = vor.u32 %v10912_v0, %v10917_v28 }
 0x171   :  { %4123 = vmatpush.bf16.msrb.mxu1 %v9412_v18  ;;  %v9350_v18 = vld [vmem:[%s12686_s3 + $0x1c0] sm:$0xff]  ;;  %3360 = vst [vmem:[#allocation3 + $0x40] sm:$0xf] %v3356_v62  ;;  %v9449_v62 = vld [vmem:[%s12686_s3 + $0x208] sm:$0xff]  ;;  %v3357_v0 = vld [vmem:[#allocation2 + $0xb0] sm:$0xf] }
 0x172   :  { %3195 = vmatpush.bf16.msra.mxu0 %v9355_v24  ;;  %5021 = vmatpush.bf16.msrb.mxu3 %v9478_v30  ;;  %v9407_v24 = vld [vmem:[%s12686_s3 + $0xb8] sm:$0xff]  ;;  %v3358_v28 = vld [vmem:[#allocation2 + $0xf0] sm:$0xf] }
 0x173   :  { %4071 = vmatmul.bf16.vlgmr.msrb.gmra.mxu2 %v7755_v3  ;;  %v7811_v3 = vor.u32 %v10791_v11, %v10825_v7  ;;  %v9451_v7 = vld [vmem:[%s12686_s3 + $0x218] sm:$0xff] }
 0x174   :  { %4143 = vmatpush.bf16.msra.mxu2 %v9419_v59  ;;  %v9453_v59 = vld [vmem:[%s12686_s3 + $0x228] sm:$0xff] }
 0x175   :  { %4124 = vmatpush.bf16.msrb.mxu1 %v9411_v40  ;;  %v10932_v56 = vpop.f32.mrf.mxu1  ;;  %v7463_v40 = vor.u32 %v10840_v44, %v10838_v37  ;;  %v9406_v37 = vld [vmem:[%s12686_s3 + $0xb0] sm:$0xff]  ;;  %v9511_v44 = vld [vmem:[%s12686_s3 + $0x128] sm:$0xff] }
 0x176   :  { %3196 = vmatpush.bf16.msra.mxu0 %v9354_v50  ;;  %5022 = vmatpush.bf16.msrb.mxu3 %v9477_v52  ;;  %v10951_v61 = vpop.f32.mrf.mxu2  ;;  %v11007_v50 = vld [vmem:[#allocation3 + $0x54] sm:$0xf]  ;;  %v11009_v52 = vld [vmem:[#allocation3 + $0x74] sm:$0xf0] }
 0x178   :  { %4144 = vmatpush.bf16.msra.mxu2 %v9418_v58  ;;  %v9452_v58 = vld [vmem:[%s12686_s3 + $0x220] sm:$0xff] }
 0x179   :  { %4125 = vmatpush.bf16.msrb.mxu1 %v9410_v54  ;;  %v7791_v54 = vor.u32 %v10849_v26, %v10844_v23  ;;  %v4289_v23 = vld [vmem:[#allocation2 + $0xe8] sm:$0xf] }
 0x17a   :  { %3197 = vmatpush.bf16.msra.mxu0 %v9353_v60  ;;  %5023 = vmatpush.bf16.msrb.mxu3 %v9476_v63  ;;  %v4280_v60 = vld [vmem:[#allocation2 + $0xa4] sm:$0xf] }
 0x17b   :  { %4166 = vmatmul.bf16.vlgmr.msra.gmra.mxu3 %v7775_v8  ;;  %3125 = vmatmul.bf16.vlgmr.msrb.gmra.mxu0 %v7407_v14  ;;  %v4281_v63 = vld [vmem:[#allocation2 + $0xe4] sm:$0xf]  ;;  %4284 = vst [vmem:[#allocation3 + $0x54] sm:$0xf] %v4280_v60  ;;  %v9442_v8 = vld [vmem:[%s12686_s3 + $0x1d0] sm:$0xff] }
 0x17c   :  { %4145 = vmatpush.bf16.msra.mxu2 %v9417_v35  ;;  %4285 = vst [vmem:[#allocation3 + $0x78] sm:$0xf] %v4281_v63  ;;  %v11025_v35 = vld [vmem:[#allocation3 + $0x78] sm:$0xf0]  ;;  %v11056_v14 = vld [vmem:[#allocation3 + $0x68] sm:$0xf0] }
 0x17d   :  { %4126 = vmatpush.bf16.msrb.mxu1 %v9409_v5  ;;  %v10984_v30 = vpop.f32.mrf.mxu1  ;;  %v11019_v5 = vld [vmem:[#allocation3 + $0x58] sm:$0xf]  ;;  %4293 = vst [vmem:[#allocation3 + $0x7c] sm:$0xf] %v4289_v23  ;;  %v11107_v60 = vld [vmem:[#allocation3 + $0x3c] sm:$0xf0] }
 0x17e   :  { %3198 = vmatpush.bf16.msra.mxu0 %v9352_v34  ;;  %5024 = vmatpush.bf16.msrb.mxu3 %v9475_v46  ;;  %v10993_v13 = vpop.f32.mrf.mxu2  ;;  %4292 = vst [vmem:[#allocation3 + $0x58] sm:$0xf] %v4288_v1  ;;  %v7443_v34 = vor.u32 %v10859_v41, %v10866_v36  ;;  %v9443_v46 = vld [vmem:[%s12686_s3 + $0x1d8] sm:$0xff]  ;;  %v9510_v41 = vld [vmem:[%s12686_s3 + $0x120] sm:$0xff]  ;;  %v11046_v36 = vpop.f32.mrf.mxu3 }
 0x17f   :  { %5222 = vst [vmem:[#allocation3 + $0x6c] sm:$0x1] %v12694_v27  ;;  %v4311_v63 = vld [vmem:[#allocation2 + $0x78] sm:$0xf] }
 0x180   :  { %4146 = vmatpush.bf16.msra.mxu2 %v9416_v15  ;;  %3225 = vmatmul.bf16.gmra.mxu1 %v7463_v40  ;;  %v9509_v15 = vld [vmem:[%s12686_s3 + $0x118] sm:$0xff]  ;;  %v9402_v40 = vld [vmem:[%s12686_s3 + $0x90] sm:$0xff]  ;;  %4315 = vst [vmem:[#allocation3 + $0x40] sm:$0xf] %v4311_v63 }
 0x181   :  { %4127 = vmatpush.bf16.msrb.mxu1 %v9408_v45  ;;  %v11054_v45 = vld [vmem:[#allocation3 + $0x48] sm:$0xf]  ;;  %v9544_v63 = vld [vmem:[%s12686_s3 + $0x230] sm:$0xff] }
 0x182   :  { %3199 = vmatpush.bf16.msra.mxu0 %v9351_v9  ;;  %5025 = vmatpush.bf16.msrb.mxu3 %v9474_v21  ;;  %5216 = vst [vmem:[#allocation3 + $0x48] sm:$0x1] %v12694_v27  ;;  %v2355_v9 = vld [vmem:[#allocation2 + $0xd8] sm:$0xf] }
 0x183   :  { %4076 = vmatmul.bf16.gmra.mxu2 %v7791_v54  ;;  %2359 = vst [vmem:[#allocation3 + $0x88] sm:$0xf] %v2355_v9  ;;  %v11103_v54 = vld [vmem:[#allocation3 + $0x1c] sm:$0xf] }
 0x184   :  { %4215 = vmatpush.bf16.msrb.mxu2 %v9455_v16  ;;  %v9450_v16 = vld [vmem:[%s12686_s3 + $0x210] sm:$0xff]  ;;  %v9545_v9 = vld [vmem:[%s12686_s3 + $0x238] sm:$0xff] }
 0x185   :  { %4196 = vmatpush.bf16.msra.mxu1 %v9447_v10  ;;  %v11021_v26 = vpop.f32.mrf.mxu1  ;;  %v2354_v10 = vld [vmem:[#allocation2 + $0x98] sm:$0xf] }
 0x186   :  { %5094 = vmatpush.bf16.msra.mxu3 %v9513_v49  ;;  %3200 = vmatpush.bf16.msra.mxu0 %v9350_v18  ;;  %v11037_v11 = vpop.f32.mrf.mxu2  ;;  %2358 = vst [vmem:[#allocation3 + $0x64] sm:$0xf] %v2354_v10  ;;  %v11071_v49 = vld [vmem:[#allocation3 + $0x2c] sm:$0xf0]  ;;  %v9441_v18 = vld [vmem:[%s12686_s3 + $0x1c8] sm:$0xff] }
 0x187   :  { %5248 = vst [vmem:[#allocation3 + $0x30] sm:$0x1] %v12694_v27  ;;  %v4271_v10 = vld [vmem:[#allocation2 + $0x5c] sm:$0xf] }
 0x188   :  { %4216 = vmatpush.bf16.msrb.mxu2 %v9454_v32 }
 0x189   :  { %4197 = vmatpush.bf16.msra.mxu1 %v9446_v19  ;;  %v9403_v19 = vld [vmem:[%s12686_s3 + $0x98] sm:$0xff] }
 0x18a   :  { %4101 = vmatpush.bf16.msrb.mxu0 %v9407_v24  ;;  %5095 = vmatpush.bf16.msra.mxu3 %v9512_v47  ;;  %v9508_v24 = vld [vmem:[%s12686_s3 + $0x110] sm:$0xff]  ;;  %v11096_v47 = vpop.f32.mrf.mxu3  ;;  %v11109_v1 = vld [vmem:[#allocation3 + $0x84] sm:$0xf0] }
 0x18b   :  { %4171 = vmatmul.bf16.gmra.mxu3 %v7811_v3  ;;  %3130 = vmatmul.bf16.gmra.mxu0 %v7443_v34  ;;  %v8115_v3 = vor.u32 %v10965_v20, %v10873_v4  ;;  %3362 = vst [vmem:[#allocation3 + $0x88] sm:$0xf] %v3358_v28  ;;  %v4319_v34 = vld [vmem:[#allocation2 + $0x7c] sm:$0xf] }
 0x18c   :  { %4217 = vmatpush.bf16.msrb.mxu2 %v9453_v59  ;;  %v9507_v59 = vld [vmem:[%s12686_s3 + $0x108] sm:$0xff]  ;;  %v9505_v4 = vld [vmem:[%s12686_s3 + $0xf8] sm:$0xff] }
 0x18d   :  { %4198 = vmatpush.bf16.msra.mxu1 %v9445_v42  ;;  %v11066_v21 = vpop.f32.mrf.mxu1  ;;  %v9440_v42 = vld [vmem:[%s12686_s3 + $0x1c0] sm:$0xff] }
 0x18e   :  { %4102 = vmatpush.bf16.msrb.mxu0 %v9406_v37  ;;  %5096 = vmatpush.bf16.msra.mxu3 %v9511_v44  ;;  %v11079_v32 = vpop.f32.mrf.mxu2  ;;  %v7771_v37 = vor.u32 %v10941_v31, %v10934_v38  ;;  %v9448_v44 = vld [vmem:[%s12686_s3 + $0x200] sm:$0xff] }
 0x18f   :  { %v11111_v38 = vld [vmem:[#allocation3 + $0x20] sm:$0xf] }
 0x190   :  { %4218 = vmatpush.bf16.msrb.mxu2 %v9452_v58  ;;  %4128 = vmatmul.bf16.vlgmr.msrb.gmra.mxu1 %v7767_v25  ;;  %v11105_v58 = vld [vmem:[#allocation3 + $0x64] sm:$0xf]  ;;  %v11154_v25 = vld [vmem:[#allocation3 + $0x54] sm:$0xf] }
 0x191   :  { %4199 = vmatpush.bf16.msra.mxu1 %v9444_v33  ;;  %v4310_v33 = vld [vmem:[#allocation2 + $0x38] sm:$0xf]  ;;  %3361 = vst [vmem:[#allocation3 + $0x64] sm:$0xf] %v3357_v0 }
 0x192   :  { %4103 = vmatpush.bf16.msrb.mxu0 %v9405_v51  ;;  %5097 = vmatpush.bf16.msra.mxu3 %v9510_v41  ;;  %4314 = vst [vmem:[#allocation3 + $0x1c] sm:$0xf] %v4310_v33  ;;  %v4318_v51 = vld [vmem:[#allocation2 + $0x3c] sm:$0xf] }
 0x193   :  { %4147 = vmatmul.bf16.vlgmr.msra.gmra.mxu2 %v7771_v37  ;;  %v9497_v41 = vld [vmem:[%s12686_s3 + $0xb8] sm:$0xff]  ;;  %4322 = vst [vmem:[#allocation3 + $0x20] sm:$0xf] %v4318_v51  ;;  %v7803_v37 = vor.u32 %v11007_v50, %v11009_v52  ;;  %v9494_v50 = vld [vmem:[%s12686_s3 + $0xa0] sm:$0xff]  ;;  %v9543_v51 = vld [vmem:[%s12686_s3 + $0x228] sm:$0xff] }
 0x194   :  { %4219 = vmatpush.bf16.msrb.mxu2 %v9451_v7  ;;  %v9401_v7 = vld [vmem:[%s12686_s3 + $0x88] sm:$0xff]  ;;  %5254 = vst [vmem:[#allocation3 + $0x54] sm:$0x1] %v12694_v27  ;;  %v9502_v52 = vld [vmem:[%s12686_s3 + $0xe0] sm:$0xff] }
 0x195   :  { %4200 = vmatpush.bf16.msra.mxu1 %v9443_v46  ;;  %v11115_v23 = vpop.f32.mrf.mxu1  ;;  %v7423_v46 = vor.u32 %v10970_v53, %v10973_v55  ;;  %v9506_v53 = vld [vmem:[%s12686_s3 + $0x100] sm:$0xff]  ;;  %v9496_v55 = vld [vmem:[%s12686_s3 + $0xb0] sm:$0xff] }
 0x196   :  { %4104 = vmatpush.bf16.msrb.mxu0 %v9404_v39  ;;  %5098 = vmatpush.bf16.msra.mxu3 %v9509_v15  ;;  %v11130_v20 = vpop.f32.mrf.mxu2  ;;  %v11132_v39 = vld [vmem:[#allocation3 + $0x40] sm:$0xf0]  ;;  %v9504_v15 = vld [vmem:[%s12686_s3 + $0xf0] sm:$0xff] }
 0x197   :  { %4323 = vst [vmem:[#allocation3 + $0x44] sm:$0xf] %v4319_v34 }
 0x198   :  { %4220 = vmatpush.bf16.msrb.mxu2 %v9450_v16  ;;  %v11113_v31 = vpop.f32.mrf.mxu0  ;;  %v11149_v16 = vld [vmem:[#allocation3 + $0x28] sm:$0xf0]  ;;  %v11196_v34 = vld [vmem:[#allocation3 + $0x64] sm:$0xf] }
 0x199   :  { %4201 = vmatpush.bf16.msra.mxu1 %v9442_v8  ;;  %v9400_v8 = vld [vmem:[%s12686_s3 + $0x80] sm:$0xff]  ;;  %4275 = vst [vmem:[#allocation3 + $0x2c] sm:$0xf] %v4271_v10  ;;  %v4321_v10 = vld [vmem:[#allocation2 + $0xfc] sm:$0xf] }
 0x19a   :  { %4105 = vmatpush.bf16.msrb.mxu0 %v9403_v19  ;;  %5099 = vmatpush.bf16.msra.mxu3 %v9508_v24  ;;  %v9439_v19 = vld [vmem:[%s12686_s3 + $0x1b8] sm:$0xff]  ;;  %v11159_v24 = vld [vmem:[#allocation3 + $0x4] sm:$0xf] }
 0x19b   :  { %5026 = vmatmul.bf16.vlgmr.msrb.gmra.mxu3 %v8115_v3  ;;  %3201 = vmatmul.bf16.vlgmr.msra.gmra.mxu0 %v7423_v46  ;;  %5228 = vst [vmem:[#allocation3 + $0x4] sm:$0xf] %v12694_v27  ;;  %v9438_v3 = vld [vmem:[%s12686_s3 + $0x1b0] sm:$0xff]  ;;  %v7807_v46 = vor.u32 %v11025_v35, %v11019_v5  ;;  %v8151_v35 = vor.u32 %v11056_v14, %v11054_v45  ;;  %v11225_v45 = vld [vmem:[#allocation3 + $0x38] sm:$0xf0] }
 0x19c   :  { %4221 = vmatpush.bf16.msrb.mxu2 %v9449_v62  ;;  %v4302_v62 = vld [vmem:[#allocation2 + $0x34] sm:$0xf] }
 0x19d   :  { %4202 = vmatpush.bf16.msra.mxu1 %v9441_v18  ;;  %v11156_v18 = vpop.f32.mrf.mxu3  ;;  %v11163_v28 = vpop.f32.mrf.mxu1  ;;  %v4303_v14 = vld [vmem:[#allocation2 + $0x74] sm:$0xf] }
 0x19e   :  { %4106 = vmatpush.bf16.msrb.mxu0 %v9402_v40  ;;  %5100 = vmatpush.bf16.msra.mxu3 %v9507_v59  ;;  %v9495_v40 = vld [vmem:[%s12686_s3 + $0xa8] sm:$0xff]  ;;  %v11171_v59 = vld [vmem:[#allocation3 + $0x18] sm:$0xf]  ;;  %v11178_v33 = vpop.f32.mrf.mxu2  ;;  %4307 = vst [vmem:[#allocation3 + $0x3c] sm:$0xf] %v4303_v14  ;;  %v7783_v14 = vor.u32 %v11103_v54, %v11107_v60  ;;  %v9434_v54 = vld [vmem:[%s12686_s3 + $0x190] sm:$0xff] }
 0x19f   :  { %4306 = vst [vmem:[#allocation3 + $0x18] sm:$0xf] %v4302_v62  ;;  %v9493_v62 = vld [vmem:[%s12686_s3 + $0x98] sm:$0xff]  ;;  %v9490_v60 = vld [vmem:[%s12686_s3 + $0x80] sm:$0xff] }
 0x1a0   :  { %4222 = vmatpush.bf16.msrb.mxu2 %v9448_v44  ;;  %v11161_v0 = vpop.f32.mrf.mxu0  ;;  %v11176_v44 = vld [vmem:[#allocation3 + $0x74] sm:$0xf0]  ;;  %4133 = vmatmul.bf16.gmra.mxu1 %v7803_v37 }
 0x1a1   :  { %4203 = vmatpush.bf16.msra.mxu1 %v9440_v42  ;;  %v9503_v42 = vld [vmem:[%s12686_s3 + $0xe8] sm:$0xff]  ;;  %5260 = vst [vmem:[#allocation3 + $0x78] sm:$0x1] %v12694_v27 }
 0x1a2   :  { %4107 = vmatpush.bf16.msrb.mxu0 %v9401_v7  ;;  %5101 = vmatpush.bf16.msra.mxu3 %v9506_v53  ;;  %v11200_v7 = vld [vmem:[#allocation3 + $0x84] sm:$0xf0] }
 0x1a3   :  { %v11202_v53 = vld [vmem:[#allocation3 + $0x68] sm:$0xf]  ;;  %4152 = vmatmul.bf16.gmra.mxu2 %v7807_v46  ;;  %v11246_v46 = vld [vmem:[#allocation3 + $0x70] sm:$0xf0] }
 0x1a4   :  { %5075 = vmatpush.bf16.msra.mxu2 %v9505_v4  ;;  %v4313_v4 = vld [vmem:[#allocation2 + $0xf8] sm:$0xf] }
 0x1a5   :  { %5056 = vmatpush.bf16.msrb.mxu1 %v9497_v41  ;;  %v4312_v41 = vld [vmem:[#allocation2 + $0xb8] sm:$0xf]  ;;  %4317 = vst [vmem:[#allocation3 + $0x88] sm:$0xf] %v4313_v4  ;;  %v11210_v5 = vpop.f32.mrf.mxu1 }
 0x1a6   :  { %5170 = vmatpush.bf16.msrb.mxu3 %v9545_v9  ;;  %4108 = vmatpush.bf16.msrb.mxu0 %v9400_v8  ;;  %4316 = vst [vmem:[#allocation3 + $0x64] sm:$0xf] %v4312_v41  ;;  %v11206_v8 = vpop.f32.mrf.mxu3  ;;  %v11227_v37 = vpop.f32.mrf.mxu2  ;;  %v4273_v41 = vld [vmem:[#allocation2 + $0xdc] sm:$0xf] }
 0x1a7   :  { %12696 = vst [vmem:[#allocation6_spill] sm:$0xff] %v11206_v8  ;;  %v9435_v4 = vld [vmem:[%s12686_s3 + $0x198] sm:$0xff] }
 0x1a8   :  { %5076 = vmatpush.bf16.msra.mxu2 %v9504_v15  ;;  %v4320_v15 = vld [vmem:[#allocation2 + $0xbc] sm:$0xf]  ;;  %v11208_v9 = vpop.f32.mrf.mxu0  ;;  %4277 = vst [vmem:[#allocation3 + $0x74] sm:$0xf] %v4273_v41  ;;  %v8130_v41 = vld [vmem:[#allocation3 + $0x10] sm:$0xf] }
 0x1a9   :  { %5057 = vmatpush.bf16.msrb.mxu1 %v9496_v55  ;;  %v11204_v55 = vld [vmem:[#allocation3 + $0x88] sm:$0xf0]  ;;  %4324 = vst [vmem:[#allocation3 + $0x68] sm:$0xf] %v4320_v15  ;;  %v4304_v15 = vld [vmem:[#allocation2 + $0xb4] sm:$0xf] }
 0x1aa   :  { %4177 = vmatpush.bf16.msra.mxu0 %v9439_v19  ;;  %5171 = vmatpush.bf16.msrb.mxu3 %v9544_v63  ;;  %v9437_v19 = vld [vmem:[%s12686_s3 + $0x1a8] sm:$0xff]  ;;  %4325 = vst [vmem:[#allocation3 + $0x8c] sm:$0xf] %v4321_v10  ;;  %v9542_v63 = vld [vmem:[%s12686_s3 + $0x220] sm:$0xff] }
 0x1ab   :  { %5031 = vmatmul.bf16.gmra.mxu3 %v8151_v35 }
 0x1ac   :  { %5077 = vmatpush.bf16.msra.mxu2 %v9503_v42  ;;  %v7459_v42 = vor.u32 %v11105_v58, %v11109_v1  ;;  %v9492_v58 = vld [vmem:[%s12686_s3 + $0x90] sm:$0xff] }
 0x1ad   :  { %5058 = vmatpush.bf16.msrb.mxu1 %v9495_v40  ;;  %v9501_v40 = vld [vmem:[%s12686_s3 + $0xd8] sm:$0xff]  ;;  %v9500_v1 = vld [vmem:[%s12686_s3 + $0xd0] sm:$0xff]  ;;  %v11253_v35 = vpop.f32.mrf.mxu1 }
 0x1ae   :  { %4178 = vmatpush.bf16.msra.mxu0 %v9438_v3  ;;  %5172 = vmatpush.bf16.msrb.mxu3 %v9543_v51  ;;  %v9436_v3 = vld [vmem:[%s12686_s3 + $0x1a0] sm:$0xff]  ;;  %v11244_v51 = vld [vmem:[#allocation3 + $0x50] sm:$0xf] }
 0x1af   :  { %3206 = vmatmul.bf16.gmra.mxu0 %v7459_v42  ;;  %v11263_v42 = vpop.f32.mrf.mxu3 }
 0x1b0   :  { %5078 = vmatpush.bf16.msra.mxu2 %v9502_v52  ;;  %v9541_v52 = vld [vmem:[%s12686_s3 + $0x218] sm:$0xff]  ;;  %v11251_v10 = vpop.f32.mrf.mxu0  ;;  %12697 = vst [vmem:[#allocation7_spill] sm:$0xff] %v11263_v42  ;;  %4204 = vmatmul.bf16.vlgmr.msra.gmra.mxu1 %v7783_v14  ;;  %v7763_v42 = vor.u32 %v11149_v16, %v10789_v57 }
 0x1b1   :  { %5059 = vmatpush.bf16.msrb.mxu1 %v9494_v50  ;;  %v4272_v50 = vld [vmem:[#allocation2 + $0x9c] sm:$0xf] }
 0x1b2   :  { %4179 = vmatpush.bf16.msra.mxu0 %v9437_v19  ;;  %5173 = vmatpush.bf16.msrb.mxu3 %v9542_v63  ;;  %4276 = vst [vmem:[#allocation3 + $0x50] sm:$0xf] %v4272_v50  ;;  %v9491_v19 = vld [vmem:[%s12686_s3 + $0x88] sm:$0xff]  ;;  %v11267_v63 = vld [vmem:[#allocation3 + $0x18] sm:$0xf]  ;;  %v9498_v50 = vld [vmem:[%s12686_s3 + $0xc0] sm:$0xff] }
 0x1b3   :  { %5282 = vst [vmem:[#allocation3 + $0x18] sm:$0x1] %v12694_v27 }
 0x1b4   :  { %5079 = vmatpush.bf16.msra.mxu2 %v9501_v40  ;;  %v11261_v40 = vld [vmem:[#allocation3 + $0x60] sm:$0xf] }
 0x1b5   :  { %5060 = vmatpush.bf16.msrb.mxu1 %v9493_v62  ;;  %v9499_v62 = vld [vmem:[%s12686_s3 + $0xc8] sm:$0xff]  ;;  %4308 = vst [vmem:[#allocation3 + $0x60] sm:$0xf] %v4304_v15  ;;  %v11301_v14 = vpop.f32.mrf.mxu1 }
 0x1b6   :  { %4180 = vmatpush.bf16.msra.mxu0 %v9436_v3  ;;  %5174 = vmatpush.bf16.msrb.mxu3 %v9541_v52  ;;  %v11269_v3 = vpop.f32.mrf.mxu2  ;;  %v7787_v52 = vor.u32 %v11132_v39, %v11111_v38  ;;  %v9539_v15 = vld [vmem:[%s12686_s3 + $0x208] sm:$0xff]  ;;  %v9537_v38 = vld [vmem:[%s12686_s3 + $0x1f8] sm:$0xff]  ;;  %12698 = vst [vmem:[#allocation8_spill] sm:$0xff] %v11301_v14 }
 0x1b8   :  { %5080 = vmatpush.bf16.msra.mxu2 %v9500_v1  ;;  %v9540_v1 = vld [vmem:[%s12686_s3 + $0x210] sm:$0xff]  ;;  %v2193_v39 = vpop.f32.mrf.mxu0 }
 0x1b9   :  { %5061 = vmatpush.bf16.msrb.mxu1 %v9492_v58  ;;  %v11271_v58 = vld [vmem:[#allocation3 + $0x38] sm:$0xf0]  ;;  %4223 = vmatmul.bf16.vlgmr.msrb.gmra.mxu2 %v7787_v52  ;;  %v4305_v52 = vld [vmem:[#allocation2 + $0xf4] sm:$0xf] }
 0x1ba   :  { %4181 = vmatpush.bf16.msra.mxu0 %v9435_v4  ;;  %5288 = vst [vmem:[#allocation3 + $0x3c] sm:$0x1] %v12694_v27  ;;  %v9462_v4 = vld [vmem:[#allocation3 + $0x30] sm:$0xf0]  ;;  %5175 = vmatpush.bf16.msrb.mxu3 %v9540_v1  ;;  %v11308_v27 = vld [vmem:[%s12687_s4] ss:$0 sm:$0xff] }
 0x1bb   :  { %v8131_v1 = vor.u32 %v9462_v4, %v8130_v41  ;;  %v11320_v41 = vpop.f32.mrf.mxu3  ;;  %v2118_v57 = vadd.f32 %v11308_v27, %v11113_v31 }
 0x1bc   :  { %5081 = vmatpush.bf16.msra.mxu2 %v9499_v62  ;;  %v9529_v62 = vld [vmem:[%s12686_s3 + $0x1b8] sm:$0xff]  ;;  %v11312_v8 = vld [vmem:[#allocation3 + $0x60] sm:$0xf] }
 0x1bd   :  { %5062 = vmatpush.bf16.msrb.mxu1 %v9491_v19  ;;  %v9433_v19 = vld [vmem:[%s12686_s3 + $0x188] sm:$0xff]  ;;  %5102 = vmatmul.bf16.vlgmr.msra.gmra.mxu3 %v8131_v1  ;;  %v11324_v4 = vpop.f32.mrf.mxu1 }
 0x1be   :  { %4182 = vmatpush.bf16.msra.mxu0 %v9434_v54  ;;  %v11303_v54 = vld [vmem:[#allocation3 + $0x80] sm:$0xf0]  ;;  %5176 = vmatpush.bf16.msrb.mxu3 %v9539_v15  ;;  %v11314_v14 = vpop.f32.mrf.mxu2 }
 0x1bf   :  { %4309 = vst [vmem:[#allocation3 + $0x84] sm:$0xf] %v4305_v52  ;;  %4109 = vmatmul.bf16.vlgmr.msrb.gmra.mxu0 %v7763_v42  ;;  %v2120_v42 = vadd.f32 %v11308_v27, %v11161_v0  ;;  %v7823_v52 = vor.u32 %v11204_v55, %v11202_v53  ;;  %v9528_v0 = vld [vmem:[%s12686_s3 + $0x1b0] sm:$0xff] }
 0x1c0   :  { %5082 = vmatpush.bf16.msra.mxu2 %v9498_v50  ;;  %v12699_v50 = vmov 0   ;;  %v2195_v16 = vpop.f32.mrf.mxu0 }
 0x1c1   :  { %5063 = vmatpush.bf16.msrb.mxu1 %v9490_v60  ;;  %v9538_v60 = vld [vmem:[%s12686_s3 + $0x200] sm:$0xff]  ;;  %5294 = vst [vmem:[#allocation3 + $0x60] sm:$0x1] %v12699_v50  ;;  %v2139_v53 = vadd.f32 %v10932_v56, %v2120_v42  ;;  %v9527_v56 = vld [vmem:[%s12686_s3 + $0x1a8] sm:$0xff] }
 0x1c2   :  { %4183 = vmatpush.bf16.msra.mxu0 %v9433_v19  ;;  %5177 = vmatpush.bf16.msrb.mxu3 %v9538_v60  ;;  %v2137_v19 = vadd.f32 %v10893_v29, %v2118_v57  ;;  %v8166_v60 = vld [vmem:[#allocation3 + $0x58] sm:$0xf]  ;;  %v9471_v29 = vld [vmem:[#allocation3 + $0x78] sm:$0xf0]  ;;  %v9461_v42 = vld [vmem:[#allocation3 + $0x28] sm:$0xf0] }
 0x1c3   :  { %v11336_v31 = vpop.f32.mrf.mxu3 }
 0x1c4   :  { %5151 = vmatpush.bf16.msrb.mxu2 %v9537_v38  ;;  %v2156_v38 = vadd.f32 %v10951_v61, %v2137_v19  ;;  %v9536_v61 = vld [vmem:[%s12686_s3 + $0x1f0] sm:$0xff]  ;;  %v7799_v19 = vor.u32 %v11246_v46, %v11244_v51  ;;  %v2123_v51 = vadd.f32 %v11308_v27, %v11208_v9  ;;  %v2158_v46 = vadd.f32 %v10993_v13, %v2139_v53  ;;  %v9534_v9 = vld [vmem:[%s12686_s3 + $0x1e0] sm:$0xff] }
 0x1c5   :  { %5132 = vmatpush.bf16.msra.mxu1 %v9529_v62  ;;  %v7819_v62 = vor.u32 %v11196_v34, %v11200_v7  ;;  %v11343_v34 = vpop.f32.mrf.mxu1  ;;  %v8167_v7 = vor.u32 %v9471_v29, %v8166_v60  ;;  %v9488_v13 = vld [vmem:[%s12686_s3 + $0x70] sm:$0xff] }
 0x1c6   :  { %v11326_v15 = vld [vmem:[#allocation3 + $0x80] sm:$0xf0]  ;;  %v11332_v1 = vpop.f32.mrf.mxu2  ;;  %v2175_v55 = vadd.f32 %v10779_v48, %v2156_v38  ;;  %v9535_v48 = vld [vmem:[%s12686_s3 + $0x1e8] sm:$0xff] }
 0x1c7   :  { %5300 = vst [vmem:[#allocation3 + $0x84] sm:$0x1] %v12699_v50  ;;  %4209 = vmatmul.bf16.gmra.mxu1 %v7819_v62  ;;  %v9432_v50 = vld [vmem:[%s12686_s3 + $0x180] sm:$0xff]  ;;  %v9489_v62 = vld [vmem:[%s12686_s3 + $0x78] sm:$0xff] }
 0x1c8   :  { %v11341_v57 = vpop.f32.mrf.mxu0  ;;  %4184 = vmatpush.bf16.msra.mxu0 %v9432_v50  ;;  %v2194_v60 = vadd.f32 %v2193_v39, %v2175_v55  ;;  %5152 = vmatpush.bf16.msrb.mxu2 %v9536_v61  ;;  %v2142_v50 = vadd.f32 %v10984_v30, %v2123_v51  ;;  %v8123_v61 = vor.u32 %v9461_v42, %v10882_v43  ;;  %v9487_v43 = vld [vmem:[%s12686_s3 + $0x68] sm:$0xff]  ;;  %v9525_v30 = vld [vmem:[%s12686_s3 + $0x198] sm:$0xff]  ;;  %v8146_v51 = vld [vmem:[#allocation3 + $0x20] sm:$0xf] }
 0x1c9   :  { %4228 = vmatmul.bf16.gmra.mxu2 %v7823_v52  ;;  %5133 = vmatpush.bf16.msra.mxu1 %v9528_v0  ;;  %v2177_v0 = vadd.f32 %v10827_v12, %v2158_v46 }
 0x1ca   :  { %v2213_v39 = vadd.f32 %v11066_v21, %v2194_v60  ;;  %v9526_v21 = vld [vmem:[%s12686_s3 + $0x1a0] sm:$0xff] }
 0x1cb   :  { %v11373_v38 = vpop.f32.mrf.mxu3  ;;  %v2196_v55 = vadd.f32 %v2195_v16, %v2177_v0  ;;  %v2125_v16 = vadd.f32 %v11308_v27, %v11251_v10  ;;  %v9464_v60 = vld [vmem:[#allocation3 + $0x40] sm:$0xf0]  ;;  %v9532_v10 = vld [vmem:[%s12686_s3 + $0x1d0] sm:$0xff] }
 0x1cc   :  { %5037 = vmatpush.bf16.msrb.mxu0 %v9489_v62  ;;  %5153 = vmatpush.bf16.msrb.mxu2 %v9535_v48  ;;  %v2232_v12 = vadd.f32 %v11130_v20, %v2213_v39  ;;  %v2161_v20 = vadd.f32 %v11037_v11, %v2142_v50  ;;  %v8127_v62 = vor.u32 %v11035_v2, %v11071_v49  ;;  %v9486_v27 = vld [vmem:[%s12686_s3 + $0x60] sm:$0xff]  ;;  %v9524_v2 = vld [vmem:[%s12686_s3 + $0x190] sm:$0xff] }
 0x1cd   :  { %5107 = vmatmul.bf16.gmra.mxu3 %v8167_v7  ;;  %5134 = vmatpush.bf16.msra.mxu1 %v9527_v56  ;;  %v11377_v7 = vpop.f32.mrf.mxu1  ;;  %v2215_v56 = vadd.f32 %v11115_v23, %v2196_v55  ;;  %v8147_v39 = vor.u32 %v9464_v60, %v8146_v51  ;;  %v2144_v11 = vadd.f32 %v11021_v26, %v2125_v16  ;;  %v9485_v26 = vld [vmem:[%s12686_s3 + $0x58] sm:$0xff] }
 0x1ce   :  { %v11361_v52 = vpop.f32.mrf.mxu2  ;;  %v2251_v48 = vadd.f32 %v10986_v22, %v2232_v12  ;;  %v2180_v22 = vadd.f32 %v10884_v17, %v2161_v20  ;;  %v7779_v23 = vor.u32 %v11225_v45, %v11171_v59  ;;  %v9523_v59 = vld [vmem:[%s12686_s3 + $0x188] sm:$0xff] }
 0x1cf   :  { %4114 = vmatmul.bf16.gmra.mxu0 %v7799_v19  ;;  %v9533_v19 = vld [vmem:[%s12686_s3 + $0x1d8] sm:$0xff]  ;;  %v2234_v17 = vadd.f32 %v11178_v33, %v2215_v56  ;;  %v2163_v45 = vadd.f32 %v11079_v32, %v2144_v11  ;;  %v9470_v33 = vld [vmem:[#allocation3 + $0x70] sm:$0xf0] }
 0x1d0   :  { %v11375_v29 = vpop.f32.mrf.mxu0  ;;  %5038 = vmatpush.bf16.msrb.mxu0 %v9488_v13  ;;  %5154 = vmatpush.bf16.msrb.mxu2 %v9534_v9 }
 0x1d1   :  { %5135 = vmatpush.bf16.msra.mxu1 %v9526_v21  ;;  %v2253_v12 = vadd.f32 %v11046_v36, %v2234_v17  ;;  %v2182_v32 = vadd.f32 %v10930_v6, %v2163_v45  ;;  %v9522_v36 = vld [vmem:[%s12686_s3 + $0x180] sm:$0xff] }
 0x1d3   :  { %v11425_v50 = vpop.f32.mrf.mxu3  ;;  %v2201_v56 = vadd.f32 %v11375_v29, %v2182_v32 }
 0x1d4   :  { %5039 = vmatpush.bf16.msrb.mxu0 %v9487_v43  ;;  %5155 = vmatpush.bf16.msrb.mxu2 %v9533_v19  ;;  %v8158_v19 = vld [vmem:[#allocation3 + $0x50] sm:$0xf] }
 0x1d5   :  { %v11410_v42 = vpop.f32.mrf.mxu1  ;;  %5136 = vmatpush.bf16.msra.mxu1 %v9525_v30  ;;  %v8159_v20 = vor.u32 %v9470_v33, %v8158_v19  ;;  %v2220_v11 = vadd.f32 %v11210_v5, %v2201_v56  ;;  %v9521_v5 = vld [vmem:[%s12686_s3 + $0x178] sm:$0xff]  ;;  %v8140_v19 = vld [vmem:[#allocation3 + $0x3c] sm:$0xf0] }
 0x1d6   :  { %v11391_v53 = vpop.f32.mrf.mxu2 }
 0x1d7   :  { %5064 = vmatmul.bf16.vlgmr.msrb.gmra.mxu1 %v8123_v61  ;;  %v2199_v61 = vadd.f32 %v11341_v57, %v2180_v22  ;;  %v9531_v57 = vld [vmem:[%s12686_s3 + $0x1c8] sm:$0xff] }
 0x1d8   :  { %v2269_v46 = vpop.f32.mrf.mxu0  ;;  %5040 = vmatpush.bf16.msrb.mxu0 %v9486_v27  ;;  %5156 = vmatpush.bf16.msrb.mxu2 %v9532_v10  ;;  %v8163_v27 = vor.u32 %v11154_v25, %v11176_v44  ;;  %v7815_v44 = vor.u32 %v11303_v54, %v11261_v40  ;;  %v9520_v40 = vld [vmem:[%s12686_s3 + $0x170] sm:$0xff] }
 0x1d9   :  { %5083 = vmatmul.bf16.vlgmr.msra.gmra.mxu2 %v8127_v62  ;;  %v2270_v49 = vadd.f32 %v2269_v46, %v2251_v48  ;;  %5137 = vmatpush.bf16.msra.mxu1 %v9524_v2  ;;  %v2218_v55 = vadd.f32 %v11163_v28, %v2199_v61  ;;  %v9484_v62 = vld [vmem:[%s12686_s3 + $0x50] sm:$0xff]  ;;  %v9530_v28 = vld [vmem:[%s12686_s3 + $0x1c0] sm:$0xff]  ;;  %v9483_v46 = vld [vmem:[%s12686_s3 + $0x48] sm:$0xff] }
 0x1da   :  { %v9473_v2 = vld [vmem:[#allocation3 + $0x88] sm:$0xf0]  ;;  %v9482_v61 = vld [vmem:[%s12686_s3 + $0x40] sm:$0xff] }
 0x1db   :  { %vm2279_vm5 = vcmp.ge.f32.partialorder %v2270_v49, 0.0  ;;  %v2283_v13 = vmul.f32 0.01, %v2270_v49  ;;  %v2237_v48 = vadd.f32 %v11227_v37, %v2218_v55  ;;  %v11459_v51 = vpop.f32.mrf.mxu3  ;;  %v9519_v55 = vld [vmem:[%s12686_s3 + $0x168] sm:$0xff] }
 0x1dc   :  { %5041 = vmatpush.bf16.msrb.mxu0 %v9485_v26  ;;  %5157 = vmatpush.bf16.msrb.mxu2 %v9531_v57  ;;  %v2239_v26 = vadd.f32 %v11269_v3, %v2220_v11  ;;  %v8139_v3 = vor.u32 %v11271_v58, %v11267_v63  ;;  %v9518_v63 = vld [vmem:[%s12686_s3 + $0x160] sm:$0xff]  ;;  %v8175_v11 = vor.u32 %v11326_v15, %v11312_v8 }
 0x1dd   :  { %5178 = vmatmul.bf16.vlgmr.msrb.gmra.mxu3 %v8147_v39  ;;  %v2287_v21 = vsel %vm2279_vm5, %v2270_v49, %v2283_v13  ;;  %v11443_v30 = vpop.f32.mrf.mxu1  ;;  %5138 = vmatpush.bf16.msra.mxu1 %v9523_v59  ;;  %v2256_v37 = vadd.f32 %v11096_v47, %v2237_v48  ;;  %v8182_v49 = vld [vmem:[#allocation3 + $0x68] sm:$0xf]  ;;  %v9517_v48 = vld [vmem:[%s12686_s3 + $0x158] sm:$0xff] }
 0x1de   :  { %v11427_v0 = vpop.f32.mrf.mxu2  ;;  %v2291_v9 = vpack.c.bf16 %v2287_v21, %v2287_v21  ;;  %v8183_v10 = vor.u32 %v9473_v2, %v8182_v49  ;;  %v2258_v21 = vadd.f32 %v11156_v18, %v2239_v26  ;;  %v9730_v2 = vld [vmem:[%s12687_s4] ss:$0 sm:$0xff]  ;;  %v12700_v26 = vld [vmem:[#allocation6_spill] sm:$0xff] }
 0x1df   :  { %4185 = vmatmul.bf16.vlgmr.msra.gmra.mxu0 %v7779_v23 }
 0x1e0   :  { %2295 = vst [vmem:[#allocation4] sm:$0xf] %v2291_v9  ;;  %v2271_v43 = vpop.f32.mrf.mxu0  ;;  %5042 = vmatpush.bf16.msrb.mxu0 %v9484_v62  ;;  %5158 = vmatpush.bf16.msrb.mxu2 %v9530_v28  ;;  %v8116_v62 = vld [vmem:[#allocation3 + $0x24] sm:$0xf0] }
 0x1e1   :  { %v2272_v16 = vadd.f32 %v2271_v43, %v2253_v12  ;;  %5139 = vmatpush.bf16.msra.mxu1 %v9522_v36  ;;  %v9459_v43 = vld [vmem:[#allocation3 + $0x1c] sm:$0xf] }
 0x1e3   :  { %vm2280_vm6 = vcmp.ge.f32.partialorder %v2272_v16, 0.0  ;;  %v2284_v6 = vmul.f32 0.01, %v2272_v16  ;;  %v11484_v54 = vpop.f32.mrf.mxu3 }
 0x1e4   :  { %5043 = vmatpush.bf16.msrb.mxu0 %v9483_v46 }
 0x1e5   :  { %v2288_v39 = vsel %vm2280_vm6, %v2272_v16, %v2284_v6  ;;  %v11478_v47 = vpop.f32.mrf.mxu1  ;;  %v8119_v6 = vor.u32 %v11159_v24, %v8116_v62 }
 0x1e6   :  { %v11455_v60 = vpop.f32.mrf.mxu2  ;;  %v2292_v29 = vpack.c.bf16 %v2288_v39, %v2288_v39  ;;  %v9516_v39 = vld [vmem:[%s12686_s3 + $0x150] sm:$0xff] }
 0x1e7   :  { %5069 = vmatmul.bf16.gmra.mxu1 %v8159_v20  ;;  %v5266_v22 = vld [vmem:[#allocation4] sm:$0xf]  ;;  %v8143_v20 = vor.u32 %v9459_v43, %v8140_v19 }
 0x1e8   :  { %5270 = vst [vmem:[#allocation3 + $0x10] sm:$0xf] %v5266_v22  ;;  %v2274_v23 = vpop.f32.mrf.mxu0  ;;  %5044 = vmatpush.bf16.msrb.mxu0 %v9482_v61  ;;  %v9515_v22 = vld [vmem:[%s12686_s3 + $0x148] sm:$0xff]  ;;  %v3070_v61 = vadd.f32 %v9730_v2, %v11253_v35 }
 0x1e9   :  { %5088 = vmatmul.bf16.gmra.mxu2 %v8163_v27  ;;  %2296 = vst [vmem:[#allocation4 + $0x10] sm:$0xf] %v2292_v29  ;;  %v2275_v25 = vadd.f32 %v2274_v23, %v2256_v37  ;;  %v9468_v23 = vld [vmem:[#allocation3 + $0x64] sm:$0xf] }
 0x1eb   :  { %vm2281_vm7 = vcmp.ge.f32.partialorder %v2275_v25, 0.0  ;;  %v2285_v17 = vmul.f32 0.01, %v2275_v25  ;;  %v11499_v28 = vpop.f32.mrf.mxu3 }
 0x1ec   :  { %5113 = vmatpush.bf16.msra.mxu0 %v9521_v5  ;;  %v8152_v5 = vld [vmem:[#allocation3 + $0x6c] sm:$0xf0] }
 0x1ed   :  { %5183 = vmatmul.bf16.gmra.mxu3 %v8183_v10  ;;  %v2289_v59 = vsel %vm2281_vm7, %v2275_v25, %v2285_v17  ;;  %v11494_v18 = vpop.f32.mrf.mxu1  ;;  %v8176_v10 = vld [vmem:[#allocation3 + $0x84] sm:$0xf0]  ;;  %v3089_v25 = vadd.f32 %v11314_v14, %v3070_v61  ;;  %v9465_v17 = vld [vmem:[#allocation3 + $0x4c] sm:$0xf]  ;;  %v9514_v14 = vld [vmem:[%s12686_s3 + $0x140] sm:$0xff] }
 0x1ee   :  { %v11476_v13 = vpop.f32.mrf.mxu2  ;;  %v2293_v45 = vpack.c.bf16 %v2289_v59, %v2289_v59 }
 0x1ef   :  { %4190 = vmatmul.bf16.gmra.mxu0 %v7815_v44  ;;  %v8179_v44 = vor.u32 %v9468_v23, %v8176_v10  ;;  %v3108_v59 = vadd.f32 %v12700_v26, %v3089_v25 }
 0x1f0   :  { %v5267_v57 = vld [vmem:[#allocation4 + $0x10] sm:$0xf]  ;;  %2297 = vst [vmem:[#allocation4 + $0x20] sm:$0xf] %v2293_v45  ;;  %v2276_v9 = vpop.f32.mrf.mxu0  ;;  %5114 = vmatpush.bf16.msra.mxu0 %v9520_v40  ;;  %v8155_v40 = vor.u32 %v9465_v17, %v8152_v5 }
 0x1f1   :  { %5271 = vst [vmem:[#allocation3 + $0x34] sm:$0xf] %v5267_v57  ;;  %v2277_v33 = vadd.f32 %v2276_v9, %v2258_v21  ;;  %v12701_v21 = vld [vmem:[#allocation8_spill] sm:$0xff] }
 0x1f2   :  { %v3072_v57 = vadd.f32 %v9730_v2, %v12701_v21 }
 0x1f3   :  { %vm2282_vm8 = vcmp.ge.f32.partialorder %v2277_v33, 0.0  ;;  %v2286_v32 = vmul.f32 0.01, %v2277_v33  ;;  %v11520_v37 = vpop.f32.mrf.mxu3 }
 0x1f4   :  { %5115 = vmatpush.bf16.msra.mxu0 %v9519_v55  ;;  %v9627_v55 = vld [vmem:[%s12688_s5 + $0x1f4] sm:$0xf0] }
 0x1f5   :  { %v2290_v16 = vsel %vm2282_vm8, %v2277_v33, %v2286_v32  ;;  %v11510_v27 = vpop.f32.mrf.mxu1  ;;  %v8794_v33 = vld [vmem:[%s12688_s5 + $0x1f0] sm:$0xf] }
 0x1f6   :  { %v11492_v12 = vpop.f32.mrf.mxu2  ;;  %v2294_v58 = vpack.c.bf16 %v2290_v16, %v2290_v16  ;;  %v8795_v43 = vor.u32 %v9627_v55, %v8794_v33  ;;  %v12702_v16 = vld [vmem:[#allocation7_spill] sm:$0xff] }
 0x1f7   :  { %5140 = vmatmul.bf16.vlgmr.msra.gmra.mxu1 %v8139_v3  ;;  %v5268_v36 = vld [vmem:[#allocation4 + $0x20] sm:$0xf]  ;;  %v3091_v3 = vadd.f32 %v11332_v1, %v3072_v57 }
 0x1f8   :  { %5272 = vst [vmem:[#allocation3 + $0x58] sm:$0xf] %v5268_v36  ;;  %v3126_v56 = vpop.f32.mrf.mxu0  ;;  %5116 = vmatpush.bf16.msra.mxu0 %v9518_v63  ;;  %6361 = vmatpush.bf16.msra.mxu3 %v8795_v43 }
 0x1f9   :  { %5159 = vmatmul.bf16.vlgmr.msrb.gmra.mxu2 %v8143_v20  ;;  %2298 = vst [vmem:[#allocation4 + $0x30] sm:$0xf] %v2294_v58  ;;  %v3127_v9 = vadd.f32 %v3126_v56, %v3108_v59  ;;  %v3110_v20 = vadd.f32 %v12702_v16, %v3091_v3  ;;  %v3075_v58 = vadd.f32 %v9730_v2, %v11324_v4 }
 0x1fb   :  { %v11532_v35 = vpop.f32.mrf.mxu3  ;;  %v3146_v19 = vadd.f32 %v11377_v7, %v3127_v9  ;;  %v3094_v56 = vadd.f32 %v11361_v52, %v3075_v58  ;;  %v9625_v7 = vld [vmem:[%s12688_s5 + $0x1e4] sm:$0xf0]  ;;  %v9623_v52 = vld [vmem:[%s12688_s5 + $0x1d4] sm:$0xf0] }
 0x1fc   :  { %5117 = vmatpush.bf16.msra.mxu0 %v9517_v48  ;;  %v8778_v48 = vld [vmem:[%s12688_s5 + $0x1d0] sm:$0xf] }
 0x1fd   :  { %v11526_v8 = vpop.f32.mrf.mxu1  ;;  %v3165_v36 = vadd.f32 %v11427_v0, %v3146_v19  ;;  %v8779_v23 = vor.u32 %v9623_v52, %v8778_v48  ;;  %v3113_v10 = vadd.f32 %v11320_v41, %v3094_v56  ;;  %v9621_v41 = vld [vmem:[%s12688_s5 + $0x1c4] sm:$0xf0] }
 0x1fe   :  { %v11505_v46 = vpop.f32.mrf.mxu2 }
 0x1ff   :  { %5045 = vmatmul.bf16.vlgmr.msrb.gmra.mxu0 %v8119_v6  ;;  %v8786_v6 = vld [vmem:[%s12688_s5 + $0x1e0] sm:$0xf] }
 0x200   :  { %v5269_v24 = vld [vmem:[#allocation4 + $0x30] sm:$0xf]  ;;  %v3128_v29 = vpop.f32.mrf.mxu0  ;;  %5118 = vmatpush.bf16.msra.mxu0 %v9516_v39  ;;  %v8132_v39 = vld [vmem:[#allocation3 + $0x34] sm:$0xf0]  ;;  %v8787_v0 = vor.u32 %v9625_v7, %v8786_v6 }
 0x201   :  { %5273 = vst [vmem:[#allocation3 + $0x7c] sm:$0xf] %v5269_v24  ;;  %v3129_v62 = vadd.f32 %v3128_v29, %v3110_v20  ;;  %v3184_v29 = vadd.f32 %v11373_v38, %v3165_v36  ;;  %v8770_v38 = vld [vmem:[%s12688_s5 + $0x1c0] sm:$0xf] }
 0x202   :  { %6362 = vmatpush.bf16.msra.mxu3 %v8787_v0  ;;  %v8168_v20 = vld [vmem:[#allocation3 + $0x7c] sm:$0xf0] }
 0x203   :  { %v11562_v4 = vpop.f32.mrf.mxu3  ;;  %v3148_v24 = vadd.f32 %v11410_v42, %v3129_v62 }
 0x204   :  { %5119 = vmatpush.bf16.msra.mxu0 %v9515_v22  ;;  %v9458_v22 = vld [vmem:[#allocation3 + $0x14] sm:$0xf] }
 0x205   :  { %v11546_v63 = vpop.f32.mrf.mxu1  ;;  %v8135_v25 = vor.u32 %v9458_v22, %v8132_v39  ;;  %v3167_v26 = vadd.f32 %v11455_v60, %v3148_v24  ;;  %v8771_v60 = vor.u32 %v9621_v41, %v8770_v38  ;;  %v9467_v39 = vld [vmem:[#allocation3 + $0x5c] sm:$0xf]  ;;  %v8738_v22 = vld [vmem:[%s12688_s5 + $0x180] sm:$0xf] }
 0x206   :  { %v11522_v49 = vpop.f32.mrf.mxu2  ;;  %6363 = vmatpush.bf16.msra.mxu3 %v8779_v23 }
 0x207   :  { %5145 = vmatmul.bf16.gmra.mxu1 %v8175_v11  ;;  %v3186_v57 = vadd.f32 %v11425_v50, %v3167_v26  ;;  %v8754_v50 = vld [vmem:[%s12688_s5 + $0x1a0] sm:$0xf] }
 0x208   :  { %v3131_v15 = vpop.f32.mrf.mxu0  ;;  %5120 = vmatpush.bf16.msra.mxu0 %v9514_v14 }
 0x209   :  { %5164 = vmatmul.bf16.gmra.mxu2 %v8179_v44  ;;  %v3077_v44 = vadd.f32 %v9730_v2, %v11343_v34  ;;  %v3132_v5 = vadd.f32 %v3131_v15, %v3113_v10  ;;  %v8762_v34 = vld [vmem:[%s12688_s5 + $0x1b0] sm:$0xf]  ;;  %v9619_v2 = vld [vmem:[%s12688_s5 + $0x1b4] sm:$0xf0] }
 0x20a   :  { %6364 = vmatpush.bf16.msra.mxu3 %v8771_v60 }
 0x20b   :  { %v3096_v42 = vadd.f32 %v11391_v53, %v3077_v44  ;;  %v11592_v9 = vpop.f32.mrf.mxu3  ;;  %v8763_v53 = vor.u32 %v9619_v2, %v8762_v34 }
 0x20d   :  { %v11573_v59 = vpop.f32.mrf.mxu1  ;;  %v3115_v3 = vadd.f32 %v11336_v31, %v3096_v42  ;;  %v9617_v31 = vld [vmem:[%s12688_s5 + $0x1a4] sm:$0xf0] }
 0x20e   :  { %v11529_v45 = vpop.f32.mrf.mxu2  ;;  %6365 = vmatpush.bf16.msra.mxu3 %v8763_v53  ;;  %v8755_v56 = vor.u32 %v9617_v31, %v8754_v50 }
 0x20f   :  { %5050 = vmatmul.bf16.gmra.mxu0 %v8155_v40  ;;  %v3151_v40 = vadd.f32 %v11443_v30, %v3132_v5 }
 0x210   :  { %v3133_v32 = vpop.f32.mrf.mxu0 }
 0x211   :  { %v3134_v43 = vadd.f32 %v3133_v32, %v3115_v3  ;;  %v3170_v16 = vadd.f32 %v11476_v13, %v3151_v40  ;;  %v9615_v13 = vld [vmem:[%s12688_s5 + $0x194] sm:$0xf0] }
 0x212   :  { %6366 = vmatpush.bf16.msra.mxu3 %v8755_v56 }
 0x213   :  { %v3153_v32 = vadd.f32 %v11478_v47, %v3134_v43  ;;  %v3189_v36 = vadd.f32 %v11459_v51, %v3170_v16  ;;  %v11618_v47 = vpop.f32.mrf.mxu3  ;;  %v9613_v51 = vld [vmem:[%s12688_s5 + $0x184] sm:$0xf0] }
 0x214   :  { %v8739_v44 = vor.u32 %v9613_v51, %v8738_v22 }
 0x215   :  { %v11600_v58 = vpop.f32.mrf.mxu1 }
 0x216   :  { %v11550_v1 = vpop.f32.mrf.mxu2 }
 0x218   :  { %v3202_v11 = vpop.f32.mrf.mxu0 }
 0x219   :  { %v3203_v61 = vadd.f32 %v3202_v11, %v3184_v29  ;;  %v8171_v29 = vor.u32 %v9467_v39, %v8168_v20 }
 0x21b   :  { %v3222_v17 = vadd.f32 %v11494_v18, %v3203_v61  ;;  %v3172_v61 = vadd.f32 %v11492_v12, %v3153_v32  ;;  %v11631_v2 = vpop.f32.mrf.mxu3 }
 0x21d   :  { %vm3231_vm9 = vcmp.ge.f32.partialorder %v3222_v17, 0.0  ;;  %v3235_v18 = vmul.f32 0.01, %v3222_v17  ;;  %v11626_v26 = vpop.f32.mrf.mxu1 }
 0x21e   :  { %v11588_v15 = vpop.f32.mrf.mxu2 }
 0x21f   :  { %5121 = vmatmul.bf16.vlgmr.msra.gmra.mxu0 %v8135_v25  ;;  %v3239_v21 = vsel %vm3231_vm9, %v3222_v17, %v3235_v18  ;;  %v3191_v17 = vadd.f32 %v11484_v54, %v3172_v61  ;;  %v9050_v61 = vld [vmem:[%s12688_s5 + $0x3f0] sm:$0xf] }
 0x220   :  { %v3243_v14 = vpack.c.bf16 %v3239_v21, %v3239_v21  ;;  %v3204_v33 = vpop.f32.mrf.mxu0 }
 0x221   :  { %v3205_v55 = vadd.f32 %v3204_v33, %v3186_v57 }
 0x222   :  { %3247 = vst [vmem:[#allocation4 + $0x4] sm:$0xf] %v3243_v14 }
 0x223   :  { %v3224_v19 = vadd.f32 %v11510_v27, %v3205_v55  ;;  %v8746_v27 = vld [vmem:[%s12688_s5 + $0x190] sm:$0xf]  ;;  %v11645_v50 = vpop.f32.mrf.mxu3 }
 0x224   :  { %v8747_v11 = vor.u32 %v9615_v13, %v8746_v27  ;;  %v8666_v55 = vld [vmem:[%s12688_s5 + $0xf0] sm:$0xf]  ;;  %v11651_v27 = vld [vmem:[%s12687_s4] ss:$0 sm:$0xff] }
 0x225   :  { %vm3232_vm10 = vcmp.ge.f32.partialorder %v3224_v19, 0.0  ;;  %v3236_v30 = vmul.f32 0.01, %v3224_v19  ;;  %v11633_v3 = vpop.f32.mrf.mxu1  ;;  %v4073_v56 = vadd.f32 %v11651_v27, %v11505_v46  ;;  %v9593_v46 = vld [vmem:[%s12688_s5 + $0xe4] sm:$0xf0] }
 0x226   :  { %v11613_v6 = vpop.f32.mrf.mxu2  ;;  %6367 = vmatpush.bf16.msra.mxu3 %v8747_v11  ;;  %v4075_v11 = vadd.f32 %v11651_v27, %v11522_v49  ;;  %v9591_v49 = vld [vmem:[%s12688_s5 + $0xd4] sm:$0xf0] }
 0x227   :  { %v3240_v62 = vsel %vm3232_vm10, %v3224_v19, %v3236_v30 }
 0x228   :  { %v3244_v7 = vpack.c.bf16 %v3240_v62, %v3240_v62 }
 0x229   :  { %v5243_v0 = vld [vmem:[#allocation4 + $0x4] sm:$0x7] }
 0x22a   :  { %v5274_v52 = vld [vmem:[#allocation4 + $0x4] sm:$0xf]  ;;  %v5245_v23 = vrot.slane %v5243_v0, 7  ;;  %3248 = vst [vmem:[#allocation4 + $0x14] sm:$0xf] %v3244_v7  ;;  %6368 = vmatpush.bf16.msra.mxu3 %v8739_v44  ;;  %v4092_v0 = vadd.f32 %v11499_v28, %v4073_v56 }
 0x22b   :  { %5278 = vst [vmem:[#allocation3 + $0x14] sm:$0xf] %v5274_v52  ;;  %v8650_v28 = vld [vmem:[%s12688_s5 + $0xd0] sm:$0xf] }
 0x22c   :  { %v3207_v48 = vpop.f32.mrf.mxu0  ;;  %5247 = vst [vmem:[#allocation3 + $0xc] sm:$0xe] %v5245_v23  ;;  %v8658_v23 = vld [vmem:[%s12688_s5 + $0xe0] sm:$0xf] }
 0x22d   :  { %v3208_v24 = vadd.f32 %v3207_v48, %v3189_v36  ;;  %v4205_v36 = vpop.f32.mrf.mxu1  ;;  %v11655_v48 = vpop.f32.mrf.mxu3 }
 0x22f   :  { %v3227_v10 = vadd.f32 %v11526_v8, %v3208_v24  ;;  %5126 = vmatmul.bf16.gmra.mxu0 %v8171_v29  ;;  %v11628_v8 = vpop.f32.mrf.mxu2 }
 0x231   :  { %vm3233_vm11 = vcmp.ge.f32.partialorder %v3227_v10, 0.0  ;;  %v3237_v25 = vmul.f32 0.01, %v3227_v10  ;;  %v5249_v42 = vld [vmem:[#allocation4 + $0x14] sm:$0x7] }
 0x232   :  { %v5275_v18 = vld [vmem:[#allocation4 + $0x14] sm:$0xf]  ;;  %v5251_v12 = vrot.slane %v5249_v42, 7 }
 0x233   :  { %v3241_v5 = vsel %vm3233_vm11, %v3227_v10, %v3237_v25  ;;  %5279 = vst [vmem:[#allocation3 + $0x38] sm:$0xf] %v5275_v18  ;;  %v9547_v19 = vld [vmem:[#allocation3 + $0xc] sm:$0xf]  ;;  %v8659_v10 = vor.u32 %v9593_v46, %v8658_v23  ;;  %v9691_v25 = vld [vmem:[%s12688_s5 + $0x3f4] sm:$0xf0] }
 0x234   :  { %v3245_v38 = vpack.c.bf16 %v3241_v5, %v3241_v5  ;;  %v3209_v41 = vpop.f32.mrf.mxu0  ;;  %5253 = vst [vmem:[#allocation3 + $0x30] sm:$0xe] %v5251_v12  ;;  %v9051_v5 = vor.u32 %v9691_v25, %v9050_v61 }
 0x235   :  { %v3210_v34 = vadd.f32 %v3209_v41, %v3191_v17  ;;  %v11671_v51 = vpop.f32.mrf.mxu1  ;;  %v8651_v41 = vor.u32 %v9591_v49, %v8650_v28  ;;  %v11687_v42 = vpop.f32.mrf.mxu3  ;;  %v9018_v28 = vld [vmem:[%s12688_s5 + $0x3b0] sm:$0xf] }
 0x236   :  { %3249 = vst [vmem:[#allocation4 + $0x24] sm:$0xf] %v3245_v38  ;;  %6437 = vmatpush.bf16.msrb.mxu3 %v9051_v5 }
 0x237   :  { %v3229_v60 = vadd.f32 %v11546_v63, %v3210_v34  ;;  %v9595_v63 = vld [vmem:[%s12688_s5 + $0xf4] sm:$0xf0]  ;;  %v11641_v43 = vpop.f32.mrf.mxu2  ;;  %v4094_v34 = vadd.f32 %v11520_v37, %v4075_v11  ;;  %v9589_v37 = vld [vmem:[%s12688_s5 + $0xc4] sm:$0xf0] }
 0x238   :  { %v8667_v20 = vor.u32 %v9595_v63, %v8666_v55  ;;  %v9687_v63 = vld [vmem:[%s12688_s5 + $0x3d4] sm:$0xf0] }
 0x239   :  { %vm3234_vm12 = vcmp.ge.f32.partialorder %v3229_v60, 0.0  ;;  %v3238_v54 = vmul.f32 0.01, %v3229_v60 }
 0x23a   :  { %6323 = vmatpush.bf16.msrb.mxu1 %v8667_v20 }
 0x23b   :  { %v3242_v40 = vsel %vm3234_vm12, %v3229_v60, %v3238_v54  ;;  %v8484_v16 = vld [vmem:[#allocation3 + $0x2c] sm:$0xf0]  ;;  %v4078_v60 = vadd.f32 %v11651_v27, %v11529_v45 }
 0x23c   :  { %v3246_v21 = vpack.c.bf16 %v3242_v40, %v3242_v40  ;;  %v4110_v57 = vpop.f32.mrf.mxu0  ;;  %v11643_v30 = vor.u32 %v9547_v19, %v8484_v16  ;;  %v8642_v40 = vld [vmem:[%s12688_s5 + $0xc0] sm:$0xf] }
 0x23d   :  { %v5255_v14 = vld [vmem:[#allocation4 + $0x24] sm:$0x7]  ;;  %v4111_v52 = vadd.f32 %v4110_v57, %v4092_v0  ;;  %v4097_v45 = vadd.f32 %v11532_v35, %v4078_v60  ;;  %v9034_v35 = vld [vmem:[%s12688_s5 + $0x3d0] sm:$0xf]  ;;  %v11726_v56 = vpop.f32.mrf.mxu3 }
 0x23e   :  { %v5276_v33 = vld [vmem:[#allocation4 + $0x24] sm:$0xf]  ;;  %v5257_v53 = vrot.slane %v5255_v14, 7  ;;  %3250 = vst [vmem:[#allocation4 + $0x34] sm:$0xf] %v3246_v21  ;;  %6369 = vmatmul.bf16.vlgmr.msra.gmra.mxu3 %v11643_v30  ;;  %6324 = vmatpush.bf16.msrb.mxu1 %v8659_v10 }
 0x23f   :  { %5280 = vst [vmem:[#allocation3 + $0x5c] sm:$0xf] %v5276_v33  ;;  %v4224_v7 = vpop.f32.mrf.mxu2  ;;  %v4130_v44 = vadd.f32 %v11573_v59, %v4111_v52  ;;  %v8634_v14 = vld [vmem:[%s12688_s5 + $0xb0] sm:$0xf]  ;;  %v9587_v33 = vld [vmem:[%s12688_s5 + $0xb4] sm:$0xf0] }
 0x240   :  { %5259 = vst [vmem:[#allocation3 + $0x54] sm:$0xe] %v5257_v53  ;;  %v8635_v20 = vor.u32 %v9587_v33, %v8634_v14  ;;  %v8626_v52 = vld [vmem:[%s12688_s5 + $0xa0] sm:$0xf]  ;;  %v9683_v10 = vld [vmem:[%s12688_s5 + $0x3b4] sm:$0xf0] }
 0x241   :  { %v4149_v12 = vadd.f32 %v11588_v15, %v4130_v44  ;;  %v9042_v15 = vld [vmem:[%s12688_s5 + $0x3e0] sm:$0xf]  ;;  %v9679_v33 = vld [vmem:[%s12688_s5 + $0x394] sm:$0xf0] }
 0x242   :  { %6325 = vmatpush.bf16.msrb.mxu1 %v8651_v41 }
 0x243   :  { %v4168_v54 = vadd.f32 %v11592_v9, %v4149_v12  ;;  %v9689_v9 = vld [vmem:[%s12688_s5 + $0x3e4] sm:$0xf0] }
 0x244   :  { %v4112_v31 = vpop.f32.mrf.mxu0  ;;  %v11703_v21 = vpop.f32.mrf.mxu1  ;;  %v9043_v55 = vor.u32 %v9689_v9, %v9042_v15 }
 0x245   :  { %v5261_v13 = vld [vmem:[#allocation4 + $0x34] sm:$0x7]  ;;  %v4113_v18 = vadd.f32 %v4112_v31, %v4094_v34  ;;  %v9019_v34 = vor.u32 %v9683_v10, %v9018_v28  ;;  %v11762_v60 = vpop.f32.mrf.mxu3 }
 0x246   :  { %v5277_v32 = vld [vmem:[#allocation4 + $0x34] sm:$0xf]  ;;  %v5263_v62 = vrot.slane %v5261_v13, 7  ;;  %6438 = vmatpush.bf16.msrb.mxu3 %v9043_v55 }
 0x247   :  { %5281 = vst [vmem:[#allocation3 + $0x80] sm:$0xf] %v5277_v32  ;;  %v9556_v24 = vld [vmem:[#allocation3 + $0x54] sm:$0xf]  ;;  %v11684_v17 = vpop.f32.mrf.mxu2  ;;  %v4132_v59 = vadd.f32 %v11600_v58, %v4113_v18  ;;  %v8643_v58 = vor.u32 %v9589_v37, %v8642_v40  ;;  %v9035_v32 = vor.u32 %v9687_v63, %v9034_v35  ;;  %v9657_v63 = vld [vmem:[%s12688_s5 + $0x2e4] sm:$0xf0] }
 0x248   :  { %5265 = vst [vmem:[#allocation3 + $0x78] sm:$0xe] %v5263_v62  ;;  %v4080_v62 = vadd.f32 %v11651_v27, %v11550_v1  ;;  %v9685_v1 = vld [vmem:[%s12688_s5 + $0x3c4] sm:$0xf0]  ;;  %v8618_v27 = vld [vmem:[%s12688_s5 + $0x90] sm:$0xf] }
 0x249   :  { %6326 = vmatpush.bf16.msrb.mxu1 %v8643_v58  ;;  %v4151_v13 = vadd.f32 %v11613_v6, %v4132_v59  ;;  %v9026_v6 = vld [vmem:[%s12688_s5 + $0x3c0] sm:$0xf] }
 0x24a   :  { %6439 = vmatpush.bf16.msrb.mxu3 %v9035_v32  ;;  %v9027_v11 = vor.u32 %v9685_v1, %v9026_v6  ;;  %v4099_v23 = vadd.f32 %v11562_v4, %v4080_v62 }
 0x24c   :  { %v4115_v39 = vpop.f32.mrf.mxu0 }
 0x24d   :  { %v4116_v16 = vadd.f32 %v4115_v39, %v4097_v45  ;;  %v9585_v39 = vld [vmem:[%s12688_s5 + $0xa4] sm:$0xf0]  ;;  %6327 = vmatpush.bf16.msrb.mxu1 %v8635_v20  ;;  %v8922_v45 = vld [vmem:[%s12688_s5 + $0x2f0] sm:$0xf] }
 0x24e   :  { %6440 = vmatpush.bf16.msrb.mxu3 %v9027_v11  ;;  %v8898_v11 = vld [vmem:[%s12688_s5 + $0x2c0] sm:$0xf] }
 0x24f   :  { %v8520_v29 = vld [vmem:[#allocation3 + $0x74] sm:$0xf0]  ;;  %v11721_v19 = vpop.f32.mrf.mxu2 }
 0x250   :  { %v11660_v22 = vor.u32 %v9556_v24, %v8520_v29  ;;  %v8627_v24 = vor.u32 %v9585_v39, %v8626_v52  ;;  %v4170_v29 = vadd.f32 %v11618_v47, %v4151_v13  ;;  %v11755_v47 = vpop.f32.mrf.mxu1  ;;  %v8906_v52 = vld [vmem:[%s12688_s5 + $0x2d0] sm:$0xf]  ;;  %v9655_v39 = vld [vmem:[%s12688_s5 + $0x2d4] sm:$0xf0] }
 0x252   :  { %6374 = vmatmul.bf16.gmra.mxu3 %v11660_v22  ;;  %6328 = vmatpush.bf16.msrb.mxu1 %v8627_v24 }
 0x253   :  { %6441 = vmatpush.bf16.msrb.mxu3 %v9019_v34 }
 0x254   :  { %v4117_v38 = vpop.f32.mrf.mxu0 }
 0x255   :  { %v4118_v25 = vadd.f32 %v4117_v38, %v4099_v23  ;;  %v8610_v38 = vld [vmem:[%s12688_s5 + $0x80] sm:$0xf] }
 0x257   :  { %v11759_v18 = vpop.f32.mrf.mxu2  ;;  %v4137_v59 = vadd.f32 %v11633_v3, %v4118_v25  ;;  %v9681_v3 = vld [vmem:[%s12688_s5 + $0x3a4] sm:$0xf0]  ;;  %v8890_v25 = vld [vmem:[%s12688_s5 + $0x2b0] sm:$0xf] }
 0x259   :  { %v4156_v35 = vadd.f32 %v11641_v43, %v4137_v59  ;;  %v9677_v43 = vld [vmem:[%s12688_s5 + $0x384] sm:$0xf0] }
 0x25c   :  { %v4186_v57 = vpop.f32.mrf.mxu0 }
 0x25d   :  { %v4187_v53 = vadd.f32 %v4186_v57, %v4168_v54  ;;  %v9659_v57 = vld [vmem:[%s12688_s5 + $0x2f4] sm:$0xf0] }
 0x25e   :  { %v8923_v14 = vor.u32 %v9659_v57, %v8922_v45  ;;  %v9647_v45 = vld [vmem:[%s12688_s5 + $0x294] sm:$0xf0] }
 0x25f   :  { %v4206_v31 = vadd.f32 %v4205_v36, %v4187_v53  ;;  %v4135_v36 = vadd.f32 %v11626_v26, %v4116_v16  ;;  %v9583_v26 = vld [vmem:[%s12688_s5 + $0x94] sm:$0xf0]  ;;  %v8914_v53 = vld [vmem:[%s12688_s5 + $0x2e0] sm:$0xf]  ;;  %v11813_v6 = vpop.f32.mrf.mxu2 }
 0x260   :  { %v8619_v5 = vor.u32 %v9583_v26, %v8618_v27  ;;  %v8994_v16 = vld [vmem:[%s12688_s5 + $0x380] sm:$0xf]  ;;  %v8915_v62 = vor.u32 %v9657_v63, %v8914_v53  ;;  %v8907_v27 = vor.u32 %v9655_v39, %v8906_v52 }
 0x261   :  { %v4225_v0 = vadd.f32 %v4224_v7, %v4206_v31  ;;  %v4154_v4 = vadd.f32 %v11628_v8, %v4135_v36  ;;  %v9581_v8 = vld [vmem:[%s12688_s5 + $0x84] sm:$0xf0]  ;;  %v4175_v36 = vadd.f32 %v11645_v50, %v4156_v35  ;;  %v8995_v1 = vor.u32 %v9677_v43, %v8994_v16  ;;  %v9546_v50 = vld [vmem:[#allocation3 + $0x4] sm:$0xf]  ;;  %v8866_v53 = vld [vmem:[%s12688_s5 + $0x280] sm:$0xf] }
 0x262   :  { %6329 = vmatpush.bf16.msrb.mxu1 %v8619_v5  ;;  %v8611_v40 = vor.u32 %v9581_v8, %v8610_v38  ;;  %v8882_v8 = vld [vmem:[%s12688_s5 + $0x2a0] sm:$0xf] }
 0x263   :  { %vm4234_vm13 = vcmp.ge.f32.partialorder %v4225_v0, 0.0  ;;  %v4238_v7 = vmul.f32 0.01, %v4225_v0 }
 0x264   :  { %v4188_v46 = vpop.f32.mrf.mxu0 }
 0x265   :  { %v4242_v49 = vsel %vm4234_vm13, %v4225_v0, %v4238_v7  ;;  %v4189_v61 = vadd.f32 %v4188_v46, %v4170_v29  ;;  %v11804_v0 = vpop.f32.mrf.mxu1  ;;  %v11816_v7 = vpop.f32.mrf.mxu3 }
 0x266   :  { %v4246_v44 = vpack.c.bf16 %v4242_v49, %v4242_v49  ;;  %6330 = vmatpush.bf16.msrb.mxu1 %v8611_v40 }
 0x267   :  { %v4208_v41 = vadd.f32 %v11671_v51, %v4189_v61  ;;  %v9010_v51 = vld [vmem:[%s12688_s5 + $0x3a0] sm:$0xf]  ;;  %v11837_v59 = vpop.f32.mrf.mxu2 }
 0x268   :  { %4250 = vst [vmem:[#allocation4 + $0x8] sm:$0xf] %v4246_v44  ;;  %v9011_v15 = vor.u32 %v9681_v3, %v9010_v51  ;;  %v9651_v44 = vld [vmem:[%s12688_s5 + $0x2b4] sm:$0xf0] }
 0x269   :  { %v4227_v12 = vadd.f32 %v11684_v17, %v4208_v41  ;;  %v4173_v17 = vadd.f32 %v11631_v2, %v4154_v4  ;;  %v9002_v2 = vld [vmem:[%s12688_s5 + $0x390] sm:$0xf] }
 0x26a   :  { %6442 = vmatpush.bf16.msrb.mxu3 %v9011_v15  ;;  %6399 = vmatpush.bf16.msra.mxu1 %v8923_v14  ;;  %v9003_v32 = vor.u32 %v9679_v33, %v9002_v2  ;;  %v8874_v15 = vld [vmem:[%s12688_s5 + $0x290] sm:$0xf] }
 0x26b   :  { %vm4235_vm14 = vcmp.ge.f32.partialorder %v4227_v12, 0.0  ;;  %v4239_v54 = vmul.f32 0.01, %v4227_v12  ;;  %v8875_v14 = vor.u32 %v9647_v45, %v8874_v15  ;;  %v9577_v15 = vld [vmem:[%s12688_s5 + $0x64] sm:$0xf0] }
 0x26c   :  { %v4191_v37 = vpop.f32.mrf.mxu0  ;;  %v9576_v45 = vld [vmem:[%s12688_s5 + $0x64] sm:$0xf] }
 0x26d   :  { %v4243_v58 = vsel %vm4235_vm14, %v4227_v12, %v4239_v54  ;;  %v4192_v9 = vadd.f32 %v4191_v37, %v4173_v17  ;;  %v8891_v12 = vor.u32 %v9651_v44, %v8890_v25  ;;  %v11845_v54 = vpop.f32.mrf.mxu3  ;;  %vm6738_vm14 = vcmask 1024  }
 0x26e   :  { %v4247_v55 = vpack.c.bf16 %v4243_v58, %v4243_v58  ;;  %6443 = vmatpush.bf16.msrb.mxu3 %v9003_v32  ;;  %6400 = vmatpush.bf16.msra.mxu1 %v8915_v62  ;;  %v11873_v32 = vld [vmem:[%s12687_s4] ss:$0 sm:$0xff] }
 0x26f   :  { %v5229_v20 = vld [vmem:[#allocation4 + $0x8] sm:$0xf]  ;;  %v4211_v13 = vadd.f32 %v11703_v21, %v4192_v9  ;;  %v11864_v35 = vpop.f32.mrf.mxu2  ;;  %v5028_v52 = vadd.f32 %v11873_v32, %v11655_v48  ;;  %v9548_v48 = vld [vmem:[#allocation3 + $0x14] sm:$0xf] }
 0x270   :  { %v5306_v31 = vld [vmem:[#allocation4 + $0x8] sm:$0xf]  ;;  %5232 = vst [vmem:[#allocation3 + $0x28] sm:$0xf] %v5229_v20 }
 0x271   :  { %5310 = vst [vmem:[#allocation3 + $0x1c] sm:$0xf] %v5306_v31  ;;  %v4230_v21 = vadd.f32 %v11721_v19, %v4211_v13  ;;  %v9653_v19 = vld [vmem:[%s12688_s5 + $0x2c4] sm:$0xf0] }
 0x272   :  { %4251 = vst [vmem:[#allocation4 + $0x18] sm:$0xf] %v4247_v55  ;;  %6444 = vmatpush.bf16.msrb.mxu3 %v8995_v1  ;;  %6401 = vmatpush.bf16.msra.mxu1 %v8907_v27  ;;  %v8899_v49 = vor.u32 %v9653_v19, %v8898_v11  ;;  %v9645_v55 = vld [vmem:[%s12688_s5 + $0x284] sm:$0xf0] }
 0x273   :  { %vm4236_vm15 = vcmp.ge.f32.partialorder %v4230_v21, 0.0  ;;  %v4240_v24 = vmul.f32 0.01, %v4230_v21  ;;  %v8867_v20 = vor.u32 %v9645_v55, %v8866_v53 }
 0x274   :  { %v4193_v29 = vpop.f32.mrf.mxu0 }
 0x275   :  { %v4244_v26 = vsel %vm4236_vm15, %v4230_v21, %v4240_v24  ;;  %v4194_v23 = vadd.f32 %v4193_v29, %v4175_v36  ;;  %v11866_v31 = vpop.f32.mrf.mxu3 }
 0x276   :  { %v4248_v46 = vpack.c.bf16 %v4244_v26, %v4244_v26  ;;  %6402 = vmatpush.bf16.msra.mxu1 %v8899_v49  ;;  %v8492_v26 = vld [vmem:[#allocation3 + $0x34] sm:$0xf0] }
 0x277   :  { %v4213_v28 = vadd.f32 %v11755_v47, %v4194_v23  ;;  %v8476_v10 = vld [vmem:[#allocation3 + $0x24] sm:$0xf0]  ;;  %v11834_v47 = vpop.f32.mrf.mxu1  ;;  %v11880_v36 = vpop.f32.mrf.mxu2  ;;  %v5030_v23 = vadd.f32 %v11873_v32, %v11687_v42  ;;  %v8732_v42 = vld [vmem:[%s12688_s5 + $0x178] sm:$0xf0]  ;;  %v9579_v49 = vld [vmem:[%s12688_s5 + $0x74] sm:$0xf0] }
 0x278   :  { %4252 = vst [vmem:[#allocation4 + $0x28] sm:$0xf] %v4248_v46  ;;  %v11825_v61 = vor.u32 %v9546_v50, %v8476_v10  ;;  %v9549_v57 = vld [vmem:[#allocation3 + $0x1c] sm:$0xf]  ;;  %v8730_v50 = vld [vmem:[%s12688_s5 + $0x170] sm:$0xf] }
 0x279   :  { %v5230_v5 = vld [vmem:[#allocation4 + $0x18] sm:$0xf]  ;;  %v4232_v4 = vadd.f32 %v11759_v18, %v4213_v28  ;;  %v9611_v46 = vld [vmem:[%s12688_s5 + $0x174] sm:$0xf0]  ;;  %v8602_v10 = vld [vmem:[%s12688_s5 + $0x70] sm:$0xf] }
 0x27a   :  { %v5307_v41 = vld [vmem:[#allocation4 + $0x18] sm:$0xf]  ;;  %5233 = vst [vmem:[#allocation3 + $0x4c] sm:$0xf] %v5230_v5  ;;  %6331 = vmatmul.bf16.vlgmr.msrb.gmra.mxu1 %v11825_v61  ;;  %v8731_v28 = vor.u32 %v9611_v46, %v8730_v50 }
 0x27b   :  { %5311 = vst [vmem:[#allocation3 + $0x40] sm:$0xf] %v5307_v41  ;;  %vm4237_vm1 = vcmp.ge.f32.partialorder %v4232_v4, 0.0  ;;  %v4241_v34 = vmul.f32 0.01, %v4232_v4  ;;  %6403 = vmatpush.bf16.msra.mxu1 %v8891_v12  ;;  %v8603_v41 = vor.u32 %v9579_v49, %v8602_v10  ;;  %v5035_v49 = vadd.f32 %v11873_v32, %v11762_v60 }
 0x27c   :  { %v5046_v38 = vpop.f32.mrf.mxu0  ;;  %v9649_v18 = vld [vmem:[%s12688_s5 + $0x2a4] sm:$0xf0]  ;;  %v8722_v12 = vld [vmem:[%s12688_s5 + $0x160] sm:$0xf]  ;;  %6342 = vmatpush.bf16.msra.mxu2 %v8731_v28 }
 0x27d   :  { %v4245_v51 = vsel %vm4237_vm1, %v4232_v4, %v4241_v34  ;;  %v8883_v37 = vor.u32 %v9649_v18, %v8882_v8  ;;  %v5047_v21 = vadd.f32 %v5046_v38, %v5028_v52  ;;  %v11882_v27 = vpop.f32.mrf.mxu3  ;;  %v9578_v4 = vld [vmem:[%s12688_s5 + $0x74] sm:$0xf]  ;;  %v8604_v34 = vld [vmem:[%s12688_s5 + $0x78] sm:$0xf0]  ;;  %v11920_v8 = vor.u32 %v9548_v48, %v8492_v26  ;;  %6304 = vmatpush.bf16.msrb.mxu0 %v8603_v41  ;;  %v9575_v48 = vld [vmem:[%s12688_s5 + $0x54] sm:$0xf0] }
 0x27e   :  { %v4249_v17 = vpack.c.bf16 %v4245_v51, %v4245_v51  ;;  %v8607_v18 = vor.u32 %v9578_v4, %v8604_v34  ;;  %v9608_v51 = vld [vmem:[%s12688_s5 + $0x164] sm:$0xf]  ;;  %v8706_v10 = vld [vmem:[%s12688_s5 + $0x140] sm:$0xf]  ;;  %v8708_v4 = vld [vmem:[%s12688_s5 + $0x148] sm:$0xf0] }
 0x27f   :  { %v5231_v40 = vld [vmem:[#allocation4 + $0x28] sm:$0xf]  ;;  %6404 = vmatpush.bf16.msra.mxu1 %v8883_v37  ;;  %v11855_v2 = vpop.f32.mrf.mxu1  ;;  %v5066_v11 = vadd.f32 %v11804_v0, %v5047_v21  ;;  %v9610_v0 = vld [vmem:[%s12688_s5 + $0x174] sm:$0xf]  ;;  %v8594_v37 = vld [vmem:[%s12688_s5 + $0x60] sm:$0xf] }
 0x280   :  { %v5308_v3 = vld [vmem:[#allocation4 + $0x28] sm:$0xf]  ;;  %5234 = vst [vmem:[#allocation3 + $0x70] sm:$0xf] %v5231_v40  ;;  %v8735_v5 = vor.u32 %v9610_v0, %v8732_v42  ;;  %v8588_v42 = vld [vmem:[%s12688_s5 + $0x58] sm:$0xf0] }
 0x281   :  { %5312 = vst [vmem:[#allocation3 + $0x64] sm:$0xf] %v5308_v3  ;;  %v9555_v63 = vld [vmem:[#allocation3 + $0x4c] sm:$0xf]  ;;  %v5085_v44 = vadd.f32 %v11813_v6, %v5066_v11  ;;  %v9609_v6 = vld [vmem:[%s12688_s5 + $0x164] sm:$0xf0] }
 0x282   :  { %4253 = vst [vmem:[#allocation4 + $0x38] sm:$0xf] %v4249_v17  ;;  %v8500_v58 = vld [vmem:[#allocation3 + $0x3c] sm:$0xf0]  ;;  %v8724_v17 = vld [vmem:[%s12688_s5 + $0x168] sm:$0xf0]  ;;  %6513 = vmatpush.bf16.msra.mxu3 %v8735_v5  ;;  %v8723_v40 = vor.u32 %v9609_v6, %v8722_v12 }
 0x283   :  { %v11853_v9 = vor.u32 %v9549_v57, %v8500_v58  ;;  %6405 = vmatpush.bf16.msra.mxu1 %v8875_v14  ;;  %v8727_v3 = vor.u32 %v9608_v51, %v8724_v17  ;;  %v5160_v57 = vpop.f32.mrf.mxu2  ;;  %v8595_v58 = vor.u32 %v9577_v15, %v8594_v37  ;;  %v8596_v14 = vld [vmem:[%s12688_s5 + $0x68] sm:$0xf0]  ;;  %v5104_v53 = vadd.f32 %v11816_v7, %v5085_v44  ;;  %v8714_v7 = vld [vmem:[%s12688_s5 + $0x150] sm:$0xf]  ;;  %v9605_v5 = vld [vmem:[%s12688_s5 + $0x144] sm:$0xf0] }
 0x284   :  { %v5048_v33 = vpop.f32.mrf.mxu0  ;;  %v8599_v55 = vor.u32 %v9576_v45, %v8596_v14  ;;  %6343 = vmatpush.bf16.msra.mxu2 %v8723_v40  ;;  %v9604_v41 = vld [vmem:[%s12688_s5 + $0x144] sm:$0xf]  ;;  %v8707_v60 = vor.u32 %v9605_v5, %v8706_v10  ;;  %v8528_v51 = vld [vmem:[#allocation3 + $0x7c] sm:$0xf0]  ;;  %v9573_v40 = vld [vmem:[%s12688_s5 + $0x44] sm:$0xf0] }
 0x285   :  { %6445 = vmatmul.bf16.vlgmr.msrb.gmra.mxu3 %v11853_v9  ;;  %v5049_v25 = vadd.f32 %v5048_v33, %v5030_v23  ;;  %6305 = vmatpush.bf16.msrb.mxu0 %v8595_v58  ;;  %v8586_v23 = vld [vmem:[%s12688_s5 + $0x50] sm:$0xf]  ;;  %v8711_v6 = vor.u32 %v9604_v41, %v8708_v4  ;;  %v8578_v17 = vld [vmem:[%s12688_s5 + $0x40] sm:$0xf]  ;;  %v9572_v45 = vld [vmem:[%s12688_s5 + $0x44] sm:$0xf] }
 0x286   :  { %6514 = vmatpush.bf16.msra.mxu3 %v8727_v3  ;;  %v8587_v28 = vor.u32 %v9575_v48, %v8586_v23  ;;  %v8579_v15 = vor.u32 %v9573_v40, %v8578_v17  ;;  %v8698_v58 = vld [vmem:[%s12688_s5 + $0x130] sm:$0xf]  ;;  %v9600_v23 = vld [vmem:[%s12688_s5 + $0x124] sm:$0xf]  ;;  %v8692_v48 = vld [vmem:[%s12688_s5 + $0x128] sm:$0xf0] }
 0x287   :  { %v8512_v16 = vld [vmem:[#allocation3 + $0x6c] sm:$0xf0]  ;;  %6406 = vmatpush.bf16.msra.mxu1 %v8867_v20  ;;  %v11878_v39 = vpop.f32.mrf.mxu1  ;;  %v5068_v33 = vadd.f32 %v11834_v47, %v5049_v25  ;;  %v9606_v47 = vld [vmem:[%s12688_s5 + $0x154] sm:$0xf] }
 0x288   :  { %v11868_v13 = vor.u32 %v9555_v63, %v8512_v16  ;;  %v9558_v24 = vld [vmem:[#allocation3 + $0x64] sm:$0xf]  ;;  %v5033_v63 = vadd.f32 %v11873_v32, %v11726_v56  ;;  %v5179_v16 = vpop.f32.mrf.mxu3  ;;  %v9607_v56 = vld [vmem:[%s12688_s5 + $0x154] sm:$0xf0]  ;;  %v9557_v32 = vld [vmem:[#allocation3 + $0x5c] sm:$0xf] }
 0x289   :  { %v5309_v62 = vld [vmem:[#allocation4 + $0x38] sm:$0xf]  ;;  %v8715_v26 = vor.u32 %v9607_v56, %v8714_v7  ;;  %6306 = vmatpush.bf16.msrb.mxu0 %v8587_v28  ;;  %v8572_v7 = vld [vmem:[%s12688_s5 + $0x38] sm:$0xf0]  ;;  %v8690_v56 = vld [vmem:[%s12688_s5 + $0x120] sm:$0xf] }
 0x28a   :  { %5313 = vst [vmem:[#allocation3 + $0x88] sm:$0xf] %v5309_v62  ;;  %6336 = vmatmul.bf16.gmra.mxu1 %v11868_v13  ;;  %v9569_v28 = vld [vmem:[%s12688_s5 + $0x24] sm:$0xf0] }
 0x28b   :  { %6475 = vmatpush.bf16.msrb.mxu1 %v8607_v18  ;;  %v5162_v25 = vpop.f32.mrf.mxu2  ;;  %6344 = vmatpush.bf16.msra.mxu2 %v8715_v26 }
 0x28c   :  { %v5051_v43 = vpop.f32.mrf.mxu0 }
 0x28d   :  { %v5052_v52 = vadd.f32 %v5051_v43, %v5033_v63  ;;  %v9602_v63 = vld [vmem:[%s12688_s5 + $0x134] sm:$0xf]  ;;  %6307 = vmatpush.bf16.msrb.mxu0 %v8579_v15 }
 0x28f   :  { %v5141_v38 = vpop.f32.mrf.mxu1  ;;  %6476 = vmatpush.bf16.msrb.mxu1 %v8599_v55  ;;  %v5071_v43 = vadd.f32 %v11855_v2, %v5052_v52  ;;  %v9574_v2 = vld [vmem:[%s12688_s5 + $0x54] sm:$0xf]  ;;  %6345 = vmatpush.bf16.msra.mxu2 %v8707_v60  ;;  %v9603_v55 = vld [vmem:[%s12688_s5 + $0x134] sm:$0xf0]  ;;  %v8570_v52 = vld [vmem:[%s12688_s5 + $0x30] sm:$0xf] }
 0x291   :  { %v8536_v1 = vld [vmem:[#allocation3 + $0x84] sm:$0xf0] }
 0x292   :  { %v11884_v29 = vor.u32 %v9558_v24, %v8536_v1  ;;  %v5087_v24 = vadd.f32 %v11837_v59, %v5068_v33  ;;  %v8716_v59 = vld [vmem:[%s12688_s5 + $0x158] sm:$0xf0]  ;;  %v12006_v33 = vor.u32 %v9557_v32, %v8528_v51 }
 0x293   :  { %v8719_v0 = vor.u32 %v9606_v47, %v8716_v59  ;;  %v9601_v59 = vld [vmem:[%s12688_s5 + $0x124] sm:$0xf0] }
 0x294   :  { %v11887_v19 = vpop.f32.mrf.mxu0  ;;  %v5106_v46 = vadd.f32 %v11845_v54, %v5087_v24  ;;  %v8591_v54 = vor.u32 %v9574_v2, %v8588_v42  ;;  %v9570_v24 = vld [vmem:[%s12688_s5 + $0x34] sm:$0xf]  ;;  %v9568_v2 = vld [vmem:[%s12688_s5 + $0x24] sm:$0xf] }
 0x295   :  { %6450 = vmatmul.bf16.gmra.mxu3 %v11884_v29  ;;  %v5054_v18 = vadd.f32 %v11887_v19, %v5035_v49  ;;  %v8580_v19 = vld [vmem:[%s12688_s5 + $0x48] sm:$0xf0]  ;;  %v8575_v26 = vor.u32 %v9570_v24, %v8572_v7 }
 0x296   :  { %6515 = vmatpush.bf16.msra.mxu3 %v8719_v0  ;;  %6477 = vmatpush.bf16.msrb.mxu1 %v8591_v54  ;;  %v8695_v0 = vor.u32 %v9600_v23, %v8692_v48  ;;  %v8546_v23 = vld [vmem:[%s12688_s5] sm:$0xf]  ;;  %v9565_v48 = vld [vmem:[%s12688_s5 + $0x4] sm:$0xf0] }
 0x297   :  { %v5143_v11 = vpop.f32.mrf.mxu1  ;;  %v5073_v47 = vadd.f32 %v11878_v39, %v5054_v18  ;;  %v8691_v39 = vor.u32 %v9601_v59, %v8690_v56  ;;  %v9597_v56 = vld [vmem:[%s12688_s5 + $0x104] sm:$0xf0] }
 0x299   :  { %v5092_v4 = vadd.f32 %v11880_v36, %v5073_v47  ;;  %v8682_v36 = vld [vmem:[%s12688_s5 + $0x110] sm:$0xf]  ;;  %v9596_v47 = vld [vmem:[%s12688_s5 + $0x104] sm:$0xf] }
 0x29a   :  { %6407 = vmatmul.bf16.vlgmr.msra.gmra.mxu1 %v11920_v8  ;;  %6516 = vmatpush.bf16.msra.mxu3 %v8711_v6 }
 0x29c   :  { %v5122_v20 = vpop.f32.mrf.mxu0 }
 0x29d   :  { %v5123_v62 = vadd.f32 %v5122_v20, %v5104_v53  ;;  %v8583_v53 = vor.u32 %v9572_v45, %v8580_v19  ;;  %v8699_v20 = vor.u32 %v9603_v55, %v8698_v58  ;;  %v9598_v19 = vld [vmem:[%s12688_s5 + $0x114] sm:$0xf]  ;;  %v8554_v55 = vld [vmem:[%s12688_s5 + $0x10] sm:$0xf] }
 0x29f   :  { %v5142_v21 = vadd.f32 %v5141_v38, %v5123_v62  ;;  %v5181_v38 = vpop.f32.mrf.mxu3  ;;  %6478 = vmatpush.bf16.msrb.mxu1 %v8583_v53  ;;  %6346 = vmatpush.bf16.msra.mxu2 %v8699_v20 }
 0x2a1   :  { %v5161_v1 = vadd.f32 %v5160_v57, %v5142_v21  ;;  %v5090_v57 = vadd.f32 %v11864_v35, %v5071_v43  ;;  %v8700_v35 = vld [vmem:[%s12688_s5 + $0x138] sm:$0xf0]  ;;  %v9571_v21 = vld [vmem:[%s12688_s5 + $0x34] sm:$0xf0] }
 0x2a2   :  { %v8703_v62 = vor.u32 %v9602_v63, %v8700_v35  ;;  %v9567_v63 = vld [vmem:[%s12688_s5 + $0x14] sm:$0xf0] }
 0x2a3   :  { %v5180_v50 = vadd.f32 %v5179_v16, %v5161_v1  ;;  %v8571_v1 = vor.u32 %v9571_v21, %v8570_v52  ;;  %v5109_v43 = vadd.f32 %v11866_v31, %v5090_v57  ;;  %v8562_v31 = vld [vmem:[%s12688_s5 + $0x20] sm:$0xf]  ;;  %6479 = vmatpush.bf16.msrb.mxu1 %v8575_v26  ;;  %6347 = vmatpush.bf16.msra.mxu2 %v8691_v39  ;;  %v8684_v57 = vld [vmem:[%s12688_s5 + $0x118] sm:$0xf0] }
 0x2a4   :  { %v5124_v44 = vpop.f32.mrf.mxu0  ;;  %6517 = vmatpush.bf16.msra.mxu3 %v8703_v62  ;;  %v8563_v49 = vor.u32 %v9569_v28, %v8562_v31  ;;  %v8555_v20 = vor.u32 %v9567_v63, %v8554_v55  ;;  %v9566_v62 = vld [vmem:[%s12688_s5 + $0x14] sm:$0xf]  ;;  %v8556_v52 = vld [vmem:[%s12688_s5 + $0x18] sm:$0xf0]  ;;  %v8674_v21 = vld [vmem:[%s12688_s5 + $0x100] sm:$0xf]  ;;  %v8547_v39 = vor.u32 %v9565_v48, %v8546_v23 }
 0x2a5   :  { %vm5189_vm2 = vcmp.ge.f32.partialorder %v5180_v50, 0.0  ;;  %v5193_v34 = vmul.f32 0.01, %v5180_v50  ;;  %v5125_v12 = vadd.f32 %v5124_v44, %v5106_v46  ;;  %6308 = vmatpush.bf16.msrb.mxu0 %v8571_v1  ;;  %v5165_v44 = vpop.f32.mrf.mxu2  ;;  %v8559_v7 = vor.u32 %v9566_v62, %v8556_v52  ;;  %v8482_v31 = vld [vmem:[#allocation3 + $0x8] sm:$0xf] }
 0x2a6   :  { %v8675_v26 = vor.u32 %v9597_v56, %v8674_v21  ;;  %v8860_v55 = vld [vmem:[%s12688_s5 + $0x278] sm:$0xf0]  ;;  %v9672_v62 = vld [vmem:[%s12688_s5 + $0x364] sm:$0xf]  ;;  %v8980_v52 = vld [vmem:[%s12688_s5 + $0x368] sm:$0xf0] }
 0x2a7   :  { %v5197_v3 = vsel %vm5189_vm2, %v5180_v50, %v5193_v34  ;;  %v5144_v37 = vadd.f32 %v5143_v11, %v5125_v12  ;;  %v5146_v50 = vpop.f32.mrf.mxu1  ;;  %v5184_v34 = vpop.f32.mrf.mxu3  ;;  %v8983_v21 = vor.u32 %v9672_v62, %v8980_v52  ;;  %v9640_v56 = vld [vmem:[%s12688_s5 + $0x264] sm:$0xf]  ;;  %v8972_v23 = vld [vmem:[%s12688_s5 + $0x358] sm:$0xf0]  ;;  %v8948_v52 = vld [vmem:[%s12688_s5 + $0x328] sm:$0xf0] }
 0x2a8   :  { %v5201_v14 = vpack.c.bf16 %v5197_v3, %v5197_v3  ;;  %6518 = vmatpush.bf16.msra.mxu3 %v8695_v0  ;;  %v5111_v3 = vadd.f32 %v11882_v27, %v5092_v4  ;;  %v8548_v0 = vld [vmem:[%s12688_s5 + $0x8] sm:$0xf0]  ;;  %v9664_v62 = vld [vmem:[%s12688_s5 + $0x324] sm:$0xf] }
 0x2a9   :  { %v5163_v16 = vadd.f32 %v5162_v25, %v5144_v37  ;;  %v8564_v25 = vld [vmem:[%s12688_s5 + $0x28] sm:$0xf0]  ;;  %6309 = vmatpush.bf16.msrb.mxu0 %v8563_v49  ;;  %v9599_v37 = vld [vmem:[%s12688_s5 + $0x114] sm:$0xf0] }
 0x2aa   :  { %5205 = vst [vmem:[#allocation4 + $0xc] sm:$0xf] %v5201_v14  ;;  %6412 = vmatmul.bf16.gmra.mxu1 %v12006_v33  ;;  %v8567_v41 = vor.u32 %v9568_v2, %v8564_v25  ;;  %v8683_v45 = vor.u32 %v9599_v37, %v8682_v36  ;;  %v8687_v14 = vor.u32 %v9598_v19, %v8684_v57  ;;  %v9675_v49 = vld [vmem:[%s12688_s5 + $0x374] sm:$0xf0] }
 0x2ab   :  { %v5182_v11 = vadd.f32 %v5181_v38, %v5163_v16 }
 0x2ac   :  { %v5127_v46 = vpop.f32.mrf.mxu0  ;;  %6480 = vmatpush.bf16.msrb.mxu1 %v8567_v41  ;;  %6348 = vmatpush.bf16.msra.mxu2 %v8683_v45  ;;  %v8474_v41 = vld [vmem:[#allocation3] sm:$0xf] }
 0x2ad   :  { %vm5190_vm3 = vcmp.ge.f32.partialorder %v5182_v11, 0.0  ;;  %v5194_v42 = vmul.f32 0.01, %v5182_v11  ;;  %v5128_v10 = vadd.f32 %v5127_v46, %v5109_v43  ;;  %6519 = vmatpush.bf16.msra.mxu3 %v8687_v14  ;;  %v5167_v24 = vpop.f32.mrf.mxu2  ;;  %6310 = vmatpush.bf16.msrb.mxu0 %v8555_v20 }
 0x2af   :  { %v5198_v54 = vsel %vm5190_vm3, %v5182_v11, %v5194_v42  ;;  %v5147_v5 = vadd.f32 %v5146_v50, %v5128_v10  ;;  %v5148_v53 = vpop.f32.mrf.mxu1  ;;  %v8676_v11 = vld [vmem:[%s12688_s5 + $0x108] sm:$0xf0]  ;;  %v9564_v50 = vld [vmem:[%s12688_s5 + $0x4] sm:$0xf]  ;;  %v5186_v46 = vpop.f32.mrf.mxu3  ;;  %v8986_v10 = vld [vmem:[%s12688_s5 + $0x370] sm:$0xf] }
 0x2b0   :  { %v5202_v17 = vpack.c.bf16 %v5198_v54, %v5198_v54  ;;  %v8679_v59 = vor.u32 %v9596_v47, %v8676_v11  ;;  %6481 = vmatpush.bf16.msrb.mxu1 %v8559_v7  ;;  %6349 = vmatpush.bf16.msra.mxu2 %v8675_v26  ;;  %v8551_v2 = vor.u32 %v9564_v50, %v8548_v0  ;;  %v9674_v54 = vld [vmem:[%s12688_s5 + $0x374] sm:$0xf]  ;;  %v8852_v47 = vld [vmem:[%s12688_s5 + $0x268] sm:$0xf0]  ;;  %v8970_v11 = vld [vmem:[%s12688_s5 + $0x350] sm:$0xf] }
 0x2b1   :  { %v5211_v12 = vld [vmem:[#allocation4 + $0xc] sm:$0x7]  ;;  %v5166_v38 = vadd.f32 %v5165_v44, %v5147_v5  ;;  %v8987_v44 = vor.u32 %v9675_v49, %v8986_v10  ;;  %6311 = vmatpush.bf16.msrb.mxu0 %v8547_v39  ;;  %v9671_v26 = vld [vmem:[%s12688_s5 + $0x354] sm:$0xf0]  ;;  %v9638_v0 = vld [vmem:[%s12688_s5 + $0x254] sm:$0xf] }
 0x2b2   :  { %v5236_v60 = vld [vmem:[#allocation4 + $0xc] sm:$0xf]  ;;  %v5213_v18 = vrot.slane %v5211_v12, 7  ;;  %5206 = vst [vmem:[#allocation4 + $0x1c] sm:$0xf] %v5202_v17  ;;  %6520 = vmatpush.bf16.msra.mxu3 %v8679_v59  ;;  %v8971_v48 = vor.u32 %v9671_v26, %v8970_v11 }
 0x2b3   :  { %v5283_v32 = vld [vmem:[#allocation4 + $0xc] sm:$0x7]  ;;  %5239 = vst [vmem:[#allocation3 + $0x2c] sm:$0xf] %v5236_v60  ;;  %v5185_v40 = vadd.f32 %v5184_v34, %v5166_v38  ;;  %v8858_v17 = vld [vmem:[%s12688_s5 + $0x270] sm:$0xf] }
 0x2b4   :  { %v5285_v6 = vrot.slane %v5283_v32, 7  ;;  %v5314_v51 = vld [vmem:[#allocation4 + $0xc] sm:$0xf]  ;;  %5215 = vst [vmem:[#allocation3 + $0x24] sm:$0xe] %v5213_v18  ;;  %v5129_v15 = vpop.f32.mrf.mxu0  ;;  %6482 = vmatpush.bf16.msrb.mxu1 %v8551_v2  ;;  %6418 = vmatpush.bf16.msrb.mxu2 %v8987_v44 }
 0x2b5   :  { %5318 = vst [vmem:[#allocation3 + $0x20] sm:$0xf] %v5314_v51  ;;  %vm5191_vm4 = vcmp.ge.f32.partialorder %v5185_v40, 0.0  ;;  %v5195_v27 = vmul.f32 0.01, %v5185_v40  ;;  %v5130_v58 = vadd.f32 %v5129_v15, %v5111_v3 }
 0x2b6   :  { %5287 = vst [vmem:[#allocation3 + $0x18] sm:$0xe] %v5285_v6  ;;  %v8988_v5 = vld [vmem:[%s12688_s5 + $0x378] sm:$0xf0]  ;;  %v9670_v59 = vld [vmem:[%s12688_s5 + $0x354] sm:$0xf] }
 0x2b7   :  { %v5199_v35 = vsel %vm5191_vm4, %v5185_v40, %v5195_v27  ;;  %v5149_v16 = vadd.f32 %v5148_v53, %v5130_v58  ;;  %v8991_v60 = vor.u32 %v9674_v54, %v8988_v5  ;;  %v9643_v58 = vld [vmem:[%s12688_s5 + $0x274] sm:$0xf0]  ;;  %v9642_v53 = vld [vmem:[%s12688_s5 + $0x274] sm:$0xf]  ;;  %v8975_v50 = vor.u32 %v9670_v59, %v8972_v23  ;;  %v8962_v2 = vld [vmem:[%s12688_s5 + $0x340] sm:$0xf] }
 0x2b8   :  { %v5203_v1 = vpack.c.bf16 %v5199_v35, %v5199_v35  ;;  %v8859_v14 = vor.u32 %v9643_v58, %v8858_v17  ;;  %v8863_v63 = vor.u32 %v9642_v53, %v8860_v55  ;;  %v8978_v35 = vld [vmem:[%s12688_s5 + $0x360] sm:$0xf]  ;;  %v9639_v39 = vld [vmem:[%s12688_s5 + $0x254] sm:$0xf0]  ;;  %v8964_v44 = vld [vmem:[%s12688_s5 + $0x348] sm:$0xf0] }
 0x2b9   :  { %v5168_v43 = vadd.f32 %v5167_v24, %v5149_v16  ;;  %v5217_v4 = vld [vmem:[#allocation4 + $0x1c] sm:$0x7]  ;;  %6589 = vmatpush.bf16.msrb.mxu3 %v8991_v60  ;;  %v9673_v16 = vld [vmem:[%s12688_s5 + $0x364] sm:$0xf0]  ;;  %v8850_v24 = vld [vmem:[%s12688_s5 + $0x260] sm:$0xf] }
 0x2ba   :  { %5207 = vst [vmem:[#allocation4 + $0x2c] sm:$0xf] %v5203_v1  ;;  %v9551_v42 = vld [vmem:[#allocation3 + $0x28] sm:$0xf0]  ;;  %v5219_v32 = vrot.slane %v5217_v4, 7  ;;  %6380 = vmatpush.bf16.msra.mxu0 %v8859_v14  ;;  %v8979_v20 = vor.u32 %v9673_v16, %v8978_v35  ;;  %6551 = vmatpush.bf16.msra.mxu1 %v8863_v63 }
 0x2bb   :  { %v5187_v28 = vadd.f32 %v5186_v46, %v5168_v43  ;;  %v8483_v25 = vor.u32 %v9551_v42, %v8482_v31  ;;  %v5237_v34 = vld [vmem:[#allocation4 + $0x1c] sm:$0xf]  ;;  %v9550_v51 = vld [vmem:[#allocation3 + $0x20] sm:$0xf0]  ;;  %v9641_v1 = vld [vmem:[%s12688_s5 + $0x264] sm:$0xf0]  ;;  %v8855_v43 = vor.u32 %v9640_v56, %v8852_v47 }
 0x2bc   :  { %v5289_v12 = vld [vmem:[#allocation4 + $0x1c] sm:$0x7]  ;;  %5240 = vst [vmem:[#allocation3 + $0x50] sm:$0xf] %v5237_v34  ;;  %v8475_v37 = vor.u32 %v9550_v51, %v8474_v41  ;;  %6419 = vmatpush.bf16.msrb.mxu2 %v8979_v20  ;;  %v8851_v7 = vor.u32 %v9641_v1, %v8850_v24  ;;  %v8842_v46 = vld [vmem:[%s12688_s5 + $0x250] sm:$0xf]  ;;  %v8951_v24 = vor.u32 %v9664_v62, %v8948_v52 }
 0x2bd   :  { %v5291_v38 = vrot.slane %v5289_v12, 7  ;;  %v5315_v18 = vld [vmem:[#allocation4 + $0x1c] sm:$0xf]  ;;  %6350 = vmatmul.bf16.vlgmr.msra.gmra.mxu2 %v8483_v25  ;;  %vm5192_vm5 = vcmp.ge.f32.partialorder %v5187_v28, 0.0  ;;  %v5196_v6 = vmul.f32 0.01, %v5187_v28  ;;  %6521 = vmatmul.bf16.vlgmr.msra.gmra.mxu3 %v8483_v25  ;;  %v8843_v31 = vor.u32 %v9639_v39, %v8842_v46 }
 0x2be   :  { %5319 = vst [vmem:[#allocation3 + $0x44] sm:$0xf] %v5315_v18  ;;  %6312 = vmatmul.bf16.vlgmr.msrb.gmra.mxu0 %v8475_v37  ;;  %6483 = vmatmul.bf16.vlgmr.msrb.gmra.mxu1 %v8475_v37  ;;  %v9669_v42 = vld [vmem:[%s12688_s5 + $0x344] sm:$0xf0]  ;;  %v9668_v25 = vld [vmem:[%s12688_s5 + $0x344] sm:$0xf] }
 0x2bf   :  { %5221 = vst [vmem:[#allocation3 + $0x48] sm:$0xe] %v5219_v32  ;;  %v5200_v36 = vsel %vm5192_vm5, %v5187_v28, %v5196_v6  ;;  %6590 = vmatpush.bf16.msrb.mxu3 %v8983_v21  ;;  %6381 = vmatpush.bf16.msra.mxu0 %v8851_v7  ;;  %v8844_v28 = vld [vmem:[%s12688_s5 + $0x258] sm:$0xf0]  ;;  %v8963_v49 = vor.u32 %v9669_v42, %v8962_v2  ;;  %v8834_v54 = vld [vmem:[%s12688_s5 + $0x240] sm:$0xf] }
 0x2c0   :  { %5293 = vst [vmem:[#allocation3 + $0x3c] sm:$0xe] %v5291_v38  ;;  %v5204_v27 = vpack.c.bf16 %v5200_v36, %v5200_v36  ;;  %6552 = vmatpush.bf16.msra.mxu1 %v8855_v43  ;;  %6420 = vmatpush.bf16.msrb.mxu2 %v8971_v48  ;;  %v8847_v10 = vor.u32 %v9638_v0, %v8844_v28  ;;  %v9637_v41 = vld [vmem:[%s12688_s5 + $0x244] sm:$0xf0]  ;;  %v9636_v4 = vld [vmem:[%s12688_s5 + $0x244] sm:$0xf] }
 0x2c1   :  { %v5223_v40 = vld [vmem:[#allocation4 + $0x2c] sm:$0x7]  ;;  %v8967_v5 = vor.u32 %v9668_v25, %v8964_v44  ;;  %v8836_v34 = vld [vmem:[%s12688_s5 + $0x248] sm:$0xf0]  ;;  %v8835_v32 = vor.u32 %v9637_v41, %v8834_v54  ;;  %v9666_v36 = vld [vmem:[%s12688_s5 + $0x334] sm:$0xf] }
 0x2c2   :  { %v5238_v3 = vld [vmem:[#allocation4 + $0x2c] sm:$0xf]  ;;  %v5225_v15 = vrot.slane %v5223_v40, 7  ;;  %5208 = vst [vmem:[#allocation4 + $0x3c] sm:$0xf] %v5204_v27  ;;  %v8839_v6 = vor.u32 %v9636_v4, %v8836_v34 }
 0x2c3   :  { %v5295_v45 = vld [vmem:[#allocation4 + $0x2c] sm:$0x7]  ;;  %5241 = vst [vmem:[#allocation3 + $0x74] sm:$0xf] %v5238_v3  ;;  %6591 = vmatpush.bf16.msrb.mxu3 %v8975_v50  ;;  %6382 = vmatpush.bf16.msra.mxu0 %v8843_v31  ;;  %v8518_v38 = vld [vmem:[#allocation3 + $0x50] sm:$0xf] }
 0x2c4   :  { %v5316_v19 = vld [vmem:[#allocation4 + $0x2c] sm:$0xf]  ;;  %v5297_v57 = vrot.slane %v5295_v45, 7  ;;  %5227 = vst [vmem:[#allocation3 + $0x6c] sm:$0xe] %v5225_v15  ;;  %6553 = vmatpush.bf16.msra.mxu1 %v8847_v10  ;;  %6421 = vmatpush.bf16.msrb.mxu2 %v8963_v49 }
 0x2c5   :  { %5320 = vst [vmem:[#allocation3 + $0x68] sm:$0xf] %v5316_v19  ;;  %v8954_v40 = vld [vmem:[%s12688_s5 + $0x330] sm:$0xf]  ;;  %v9667_v3 = vld [vmem:[%s12688_s5 + $0x334] sm:$0xf0] }
 0x2c6   :  { %5299 = vst [vmem:[#allocation3 + $0x60] sm:$0xe] %v5297_v57  ;;  %v8955_v37 = vor.u32 %v9667_v3, %v8954_v40  ;;  %v8956_v15 = vld [vmem:[%s12688_s5 + $0x338] sm:$0xf0]  ;;  %v8510_v45 = vld [vmem:[#allocation3 + $0x48] sm:$0xf] }
 0x2c7   :  { %6592 = vmatpush.bf16.msrb.mxu3 %v8967_v5  ;;  %6383 = vmatpush.bf16.msra.mxu0 %v8835_v32  ;;  %v8959_v19 = vor.u32 %v9666_v36, %v8956_v15  ;;  %v8826_v27 = vld [vmem:[%s12688_s5 + $0x230] sm:$0xf]  ;;  %v9635_v58 = vld [vmem:[%s12688_s5 + $0x234] sm:$0xf0]  ;;  %v9634_v55 = vld [vmem:[%s12688_s5 + $0x234] sm:$0xf] }
 0x2c8   :  { %6554 = vmatpush.bf16.msra.mxu1 %v8839_v6  ;;  %v8827_v53 = vor.u32 %v9635_v58, %v8826_v27  ;;  %v8828_v63 = vld [vmem:[%s12688_s5 + $0x238] sm:$0xf0]  ;;  %v8946_v35 = vld [vmem:[%s12688_s5 + $0x320] sm:$0xf]  ;;  %6422 = vmatpush.bf16.msrb.mxu2 %v8955_v37  ;;  %v9665_v20 = vld [vmem:[%s12688_s5 + $0x324] sm:$0xf0] }
 0x2c9   :  { %v5301_v12 = vld [vmem:[#allocation4 + $0x3c] sm:$0x7]  ;;  %v8831_v16 = vor.u32 %v9634_v55, %v8828_v63  ;;  %v8947_v21 = vor.u32 %v9665_v20, %v8946_v35  ;;  %v8818_v1 = vld [vmem:[%s12688_s5 + $0x220] sm:$0xf]  ;;  %v9633_v7 = vld [vmem:[%s12688_s5 + $0x224] sm:$0xf0] }
 0x2ca   :  { %v5317_v60 = vld [vmem:[#allocation4 + $0x3c] sm:$0xf]  ;;  %v5303_v18 = vrot.slane %v5301_v12, 7  ;;  %v9560_v51 = vld [vmem:[#allocation3 + $0x70] sm:$0xf0]  ;;  %v8819_v47 = vor.u32 %v9633_v7, %v8818_v1 }
 0x2cb   :  { %5321 = vst [vmem:[#allocation3 + $0x8c] sm:$0xf] %v5317_v60  ;;  %v8519_v17 = vor.u32 %v9560_v51, %v8518_v38  ;;  %v9559_v57 = vld [vmem:[#allocation3 + $0x68] sm:$0xf0]  ;;  %6593 = vmatpush.bf16.msrb.mxu3 %v8959_v19  ;;  %v9632_v56 = vld [vmem:[%s12688_s5 + $0x224] sm:$0xf]  ;;  %6384 = vmatpush.bf16.msra.mxu0 %v8827_v53 }
 0x2cc   :  { %5305 = vst [vmem:[#allocation3 + $0x84] sm:$0xe] %v5303_v18  ;;  %v8511_v14 = vor.u32 %v9559_v57, %v8510_v45  ;;  %v8820_v11 = vld [vmem:[%s12688_s5 + $0x228] sm:$0xf0]  ;;  %v8938_v43 = vld [vmem:[%s12688_s5 + $0x310] sm:$0xf]  ;;  %6555 = vmatpush.bf16.msra.mxu1 %v8831_v16  ;;  %6423 = vmatpush.bf16.msrb.mxu2 %v8947_v21 }
 0x2cd   :  { %6355 = vmatmul.bf16.gmra.mxu2 %v8519_v17  ;;  %6526 = vmatmul.bf16.gmra.mxu3 %v8519_v17  ;;  %v9663_v26 = vld [vmem:[%s12688_s5 + $0x314] sm:$0xf0]  ;;  %v8823_v59 = vor.u32 %v9632_v56, %v8820_v11  ;;  %v9662_v23 = vld [vmem:[%s12688_s5 + $0x314] sm:$0xf]  ;;  %v8940_v48 = vld [vmem:[%s12688_s5 + $0x318] sm:$0xf0] }
 0x2ce   :  { %6317 = vmatmul.bf16.gmra.mxu0 %v8511_v14  ;;  %6488 = vmatmul.bf16.gmra.mxu1 %v8511_v14  ;;  %v8810_v50 = vld [vmem:[%s12688_s5 + $0x210] sm:$0xf]  ;;  %v8939_v46 = vor.u32 %v9663_v26, %v8938_v43  ;;  %v9631_v39 = vld [vmem:[%s12688_s5 + $0x214] sm:$0xf0]  ;;  %v9630_v0 = vld [vmem:[%s12688_s5 + $0x214] sm:$0xf]  ;;  %v8943_v28 = vor.u32 %v9662_v23, %v8940_v48 }
 0x2cf   :  { %v8812_v31 = vld [vmem:[%s12688_s5 + $0x218] sm:$0xf0]  ;;  %6594 = vmatpush.bf16.msrb.mxu3 %v8951_v24  ;;  %v8930_v2 = vld [vmem:[%s12688_s5 + $0x300] sm:$0xf]  ;;  %v9661_v42 = vld [vmem:[%s12688_s5 + $0x304] sm:$0xf0]  ;;  %6385 = vmatpush.bf16.msra.mxu0 %v8819_v47  ;;  %v8811_v10 = vor.u32 %v9631_v39, %v8810_v50 }
 0x2d0   :  { %v9660_v49 = vld [vmem:[%s12688_s5 + $0x304] sm:$0xf]  ;;  %v8932_v25 = vld [vmem:[%s12688_s5 + $0x308] sm:$0xf0]  ;;  %6556 = vmatpush.bf16.msra.mxu1 %v8823_v59  ;;  %v8815_v44 = vor.u32 %v9630_v0, %v8812_v31  ;;  %v8802_v54 = vld [vmem:[%s12688_s5 + $0x200] sm:$0xf]  ;;  %6424 = vmatpush.bf16.msrb.mxu2 %v8939_v46  ;;  %v8931_v4 = vor.u32 %v9661_v42, %v8930_v2 }
 0x2d1   :  { %v9629_v5 = vld [vmem:[%s12688_s5 + $0x204] sm:$0xf0]  ;;  %v9628_v41 = vld [vmem:[%s12688_s5 + $0x204] sm:$0xf]  ;;  %v8804_v34 = vld [vmem:[%s12688_s5 + $0x208] sm:$0xf0]  ;;  %v8935_v32 = vor.u32 %v9660_v49, %v8932_v25 }
 0x2d2   :  { %v9594_v12 = vld [vmem:[%s12688_s5 + $0xf4] sm:$0xf]  ;;  %v8668_v60 = vld [vmem:[%s12688_s5 + $0xf8] sm:$0xf0]  ;;  %v9114_v18 = vld [vmem:[%s12688_s5 + $0x470] sm:$0xf]  ;;  %v8803_v51 = vor.u32 %v9629_v5, %v8802_v54  ;;  %v8807_v36 = vor.u32 %v9628_v41, %v8804_v34 }
 0x2d3   :  { %6595 = vmatpush.bf16.msrb.mxu3 %v8943_v28  ;;  %v8671_v38 = vor.u32 %v9594_v12, %v8668_v60  ;;  %v9707_v6 = vld [vmem:[%s12688_s5 + $0x474] sm:$0xf0]  ;;  %6386 = vmatpush.bf16.msra.mxu0 %v8811_v10  ;;  %v9553_v17 = vld [vmem:[#allocation3 + $0x38] sm:$0xf0]  ;;  %v9706_v40 = vld [vmem:[%s12688_s5 + $0x474] sm:$0xf] }
 0x2d4   :  { %v9116_v3 = vld [vmem:[%s12688_s5 + $0x478] sm:$0xf0]  ;;  %6557 = vmatpush.bf16.msra.mxu1 %v8815_v44  ;;  %v9592_v37 = vld [vmem:[%s12688_s5 + $0xe4] sm:$0xf]  ;;  %v8660_v15 = vld [vmem:[%s12688_s5 + $0xe8] sm:$0xf0]  ;;  %6425 = vmatpush.bf16.msrb.mxu2 %v8931_v4  ;;  %v9115_v57 = vor.u32 %v9707_v6, %v9114_v18 }
 0x2d5   :  { %v8498_v45 = vld [vmem:[#allocation3 + $0x18] sm:$0xf]  ;;  %v9552_v19 = vld [vmem:[#allocation3 + $0x30] sm:$0xf0]  ;;  %v9119_v58 = vor.u32 %v9706_v40, %v9116_v3  ;;  %v9106_v14 = vld [vmem:[%s12688_s5 + $0x460] sm:$0xf]  ;;  %v8663_v63 = vor.u32 %v9592_v37, %v8660_v15 }
 0x2d6   :  { %v8499_v27 = vor.u32 %v9553_v17, %v8498_v45  ;;  %v9705_v53 = vld [vmem:[%s12688_s5 + $0x464] sm:$0xf0]  ;;  %v8490_v55 = vld [vmem:[#allocation3 + $0x10] sm:$0xf]  ;;  %v9704_v35 = vld [vmem:[%s12688_s5 + $0x464] sm:$0xf] }
 0x2d7   :  { %6596 = vmatpush.bf16.msrb.mxu3 %v8935_v32  ;;  %6387 = vmatpush.bf16.msra.mxu0 %v8803_v51  ;;  %v9108_v16 = vld [vmem:[%s12688_s5 + $0x468] sm:$0xf0]  ;;  %v8491_v20 = vor.u32 %v9552_v19, %v8490_v55  ;;  %v9590_v62 = vld [vmem:[%s12688_s5 + $0xd4] sm:$0xf]  ;;  %v8652_v52 = vld [vmem:[%s12688_s5 + $0xd8] sm:$0xf0]  ;;  %v9107_v21 = vor.u32 %v9705_v53, %v9106_v14 }
 0x2d8   :  { %6494 = vmatpush.bf16.msra.mxu2 %v8671_v38  ;;  %6558 = vmatpush.bf16.msra.mxu1 %v8807_v36  ;;  %v9111_v24 = vor.u32 %v9704_v35, %v9108_v16  ;;  %v9098_v1 = vld [vmem:[%s12688_s5 + $0x450] sm:$0xf]  ;;  %v9703_v7 = vld [vmem:[%s12688_s5 + $0x454] sm:$0xf0]  ;;  %v8655_v56 = vor.u32 %v9590_v62, %v8652_v52  ;;  %v9702_v47 = vld [vmem:[%s12688_s5 + $0x454] sm:$0xf] }
 0x2d9   :  { %v9100_v11 = vld [vmem:[%s12688_s5 + $0x458] sm:$0xf0]  ;;  %v9588_v43 = vld [vmem:[%s12688_s5 + $0xc4] sm:$0xf]  ;;  %v8644_v26 = vld [vmem:[%s12688_s5 + $0xc8] sm:$0xf0]  ;;  %v9099_v59 = vor.u32 %v9703_v7, %v9098_v1 }
 0x2da   :  { %v9103_v23 = vor.u32 %v9702_v47, %v9100_v11  ;;  %v9090_v48 = vld [vmem:[%s12688_s5 + $0x440] sm:$0xf]  ;;  %v9701_v50 = vld [vmem:[%s12688_s5 + $0x444] sm:$0xf0]  ;;  %v8647_v46 = vor.u32 %v9588_v43, %v8644_v26  ;;  %v9700_v39 = vld [vmem:[%s12688_s5 + $0x444] sm:$0xf] }
 0x2db   :  { %6456 = vmatpush.bf16.msrb.mxu0 %v9115_v57  ;;  %v9092_v0 = vld [vmem:[%s12688_s5 + $0x448] sm:$0xf0]  ;;  %v9586_v31 = vld [vmem:[%s12688_s5 + $0xb4] sm:$0xf]  ;;  %v8636_v28 = vld [vmem:[%s12688_s5 + $0xb8] sm:$0xf0]  ;;  %v9091_v2 = vor.u32 %v9701_v50, %v9090_v48 }
 0x2dc   :  { %6627 = vmatpush.bf16.msrb.mxu1 %v9119_v58  ;;  %6495 = vmatpush.bf16.msra.mxu2 %v8663_v63  ;;  %v9095_v42 = vor.u32 %v9700_v39, %v9092_v0  ;;  %v9082_v10 = vld [vmem:[%s12688_s5 + $0x430] sm:$0xf]  ;;  %v9699_v49 = vld [vmem:[%s12688_s5 + $0x434] sm:$0xf0]  ;;  %v9562_v25 = vld [vmem:[#allocation3 + $0x80] sm:$0xf0]  ;;  %v8639_v44 = vor.u32 %v9586_v31, %v8636_v28 }
 0x2dd   :  { %6426 = vmatmul.bf16.vlgmr.msrb.gmra.mxu2 %v8499_v27  ;;  %6597 = vmatmul.bf16.vlgmr.msrb.gmra.mxu3 %v8499_v27  ;;  %v9698_v54 = vld [vmem:[%s12688_s5 + $0x434] sm:$0xf]  ;;  %v9084_v5 = vld [vmem:[%s12688_s5 + $0x438] sm:$0xf0]  ;;  %v9584_v41 = vld [vmem:[%s12688_s5 + $0xa4] sm:$0xf]  ;;  %v9083_v60 = vor.u32 %v9699_v49, %v9082_v10 }
 0x2de   :  { %6388 = vmatmul.bf16.vlgmr.msra.gmra.mxu0 %v8491_v20  ;;  %6559 = vmatmul.bf16.vlgmr.msra.gmra.mxu1 %v8491_v20  ;;  %v8628_v4 = vld [vmem:[%s12688_s5 + $0xa8] sm:$0xf0]  ;;  %v8534_v34 = vld [vmem:[#allocation3 + $0x60] sm:$0xf]  ;;  %v9561_v12 = vld [vmem:[#allocation3 + $0x78] sm:$0xf0]  ;;  %v9087_v38 = vor.u32 %v9698_v54, %v9084_v5 }
 0x2df   :  { %6457 = vmatpush.bf16.msrb.mxu0 %v9107_v21  ;;  %v8535_v32 = vor.u32 %v9562_v25, %v8534_v34  ;;  %v9074_v18 = vld [vmem:[%s12688_s5 + $0x420] sm:$0xf]  ;;  %v9697_v6 = vld [vmem:[%s12688_s5 + $0x424] sm:$0xf0]  ;;  %v8526_v51 = vld [vmem:[#allocation3 + $0x58] sm:$0xf]  ;;  %v8631_v17 = vor.u32 %v9584_v41, %v8628_v4 }
 0x2e0   :  { %6628 = vmatpush.bf16.msrb.mxu1 %v9111_v24  ;;  %6496 = vmatpush.bf16.msra.mxu2 %v8655_v56  ;;  %v9696_v40 = vld [vmem:[%s12688_s5 + $0x424] sm:$0xf]  ;;  %v9076_v3 = vld [vmem:[%s12688_s5 + $0x428] sm:$0xf0]  ;;  %v8527_v36 = vor.u32 %v9561_v12, %v8526_v51  ;;  %v9582_v37 = vld [vmem:[%s12688_s5 + $0x94] sm:$0xf]  ;;  %v9075_v45 = vor.u32 %v9697_v6, %v9074_v18 }
 0x2e1   :  { %v8620_v15 = vld [vmem:[%s12688_s5 + $0x98] sm:$0xf0]  ;;  %v9079_v19 = vor.u32 %v9696_v40, %v9076_v3  ;;  %v9066_v57 = vld [vmem:[%s12688_s5 + $0x410] sm:$0xf]  ;;  %v9695_v27 = vld [vmem:[%s12688_s5 + $0x414] sm:$0xf0] }
 0x2e2   :  { %v8623_v58 = vor.u32 %v9582_v37, %v8620_v15  ;;  %v9694_v14 = vld [vmem:[%s12688_s5 + $0x414] sm:$0xf]  ;;  %v9068_v53 = vld [vmem:[%s12688_s5 + $0x418] sm:$0xf0]  ;;  %v9580_v63 = vld [vmem:[%s12688_s5 + $0x84] sm:$0xf]  ;;  %v9067_v16 = vor.u32 %v9695_v27, %v9066_v57 }
 0x2e3   :  { %6458 = vmatpush.bf16.msrb.mxu0 %v9099_v59  ;;  %v8612_v35 = vld [vmem:[%s12688_s5 + $0x88] sm:$0xf0]  ;;  %v9658_v20 = vld [vmem:[%s12688_s5 + $0x2f4] sm:$0xf]  ;;  %v8924_v62 = vld [vmem:[%s12688_s5 + $0x2f8] sm:$0xf0]  ;;  %v9071_v52 = vor.u32 %v9694_v14, %v9068_v53 }
 0x2e4   :  { %6629 = vmatpush.bf16.msrb.mxu1 %v9103_v23  ;;  %6497 = vmatpush.bf16.msra.mxu2 %v8647_v46  ;;  %v9058_v21 = vld [vmem:[%s12688_s5 + $0x400] sm:$0xf]  ;;  %v9693_v24 = vld [vmem:[%s12688_s5 + $0x404] sm:$0xf0]  ;;  %v9692_v1 = vld [vmem:[%s12688_s5 + $0x404] sm:$0xf]  ;;  %v8615_v7 = vor.u32 %v9580_v63, %v8612_v35  ;;  %v8927_v43 = vor.u32 %v9658_v20, %v8924_v62 }
 0x2e5   :  { %v9060_v56 = vld [vmem:[%s12688_s5 + $0x408] sm:$0xf0]  ;;  %v9626_v47 = vld [vmem:[%s12688_s5 + $0x1f4] sm:$0xf]  ;;  %v8796_v11 = vld [vmem:[%s12688_s5 + $0x1f8] sm:$0xf0]  ;;  %v9059_v26 = vor.u32 %v9693_v24, %v9058_v21 }
 0x2e6   :  { %v9063_v59 = vor.u32 %v9692_v1, %v9060_v56  ;;  %v8799_v23 = vor.u32 %v9626_v47, %v8796_v11  ;;  %v9656_v48 = vld [vmem:[%s12688_s5 + $0x2e4] sm:$0xf]  ;;  %v8916_v50 = vld [vmem:[%s12688_s5 + $0x2e8] sm:$0xf0]  ;;  %v8506_v10 = vld [vmem:[#allocation3 + $0x20] sm:$0xf] }
 0x2e7   :  { %6459 = vmatpush.bf16.msrb.mxu0 %v9091_v2  ;;  %v9624_v39 = vld [vmem:[%s12688_s5 + $0x1e4] sm:$0xf]  ;;  %v8788_v0 = vld [vmem:[%s12688_s5 + $0x1e8] sm:$0xf0]  ;;  %v8919_v28 = vor.u32 %v9656_v48, %v8916_v50  ;;  %v9654_v2 = vld [vmem:[%s12688_s5 + $0x2d4] sm:$0xf] }
 0x2e8   :  { %6630 = vmatpush.bf16.msrb.mxu1 %v9095_v42  ;;  %6498 = vmatpush.bf16.msra.mxu2 %v8639_v44  ;;  %v9554_v31 = vld [vmem:[#allocation3 + $0x40] sm:$0xf0]  ;;  %v8908_v42 = vld [vmem:[%s12688_s5 + $0x2d8] sm:$0xf0]  ;;  %v8791_v49 = vor.u32 %v9624_v39, %v8788_v0  ;;  %v9622_v44 = vld [vmem:[%s12688_s5 + $0x1d4] sm:$0xf] }
 0x2e9   :  { %v8507_v25 = vor.u32 %v9554_v31, %v8506_v10  ;;  %v8780_v54 = vld [vmem:[%s12688_s5 + $0x1d8] sm:$0xf0]  ;;  %v8911_v5 = vor.u32 %v9654_v2, %v8908_v42  ;;  %v9652_v41 = vld [vmem:[%s12688_s5 + $0x2c4] sm:$0xf]  ;;  %v9618_v51 = vld [vmem:[%s12688_s5 + $0x1b4] sm:$0xf] }
 0x2ea   :  { %v8783_v4 = vor.u32 %v9622_v44, %v8780_v54  ;;  %v9620_v12 = vld [vmem:[%s12688_s5 + $0x1c4] sm:$0xf]  ;;  %v8892_v18 = vld [vmem:[%s12688_s5 + $0x2b8] sm:$0xf0]  ;;  %v8542_v53 = vld [vmem:[#allocation3 + $0x68] sm:$0xf] }
 0x2eb   :  { %6460 = vmatpush.bf16.msrb.mxu0 %v9083_v60  ;;  %v8772_v60 = vld [vmem:[%s12688_s5 + $0x1c8] sm:$0xf0]  ;;  %v9648_v3 = vld [vmem:[%s12688_s5 + $0x2a4] sm:$0xf]  ;;  %v8876_v14 = vld [vmem:[%s12688_s5 + $0x298] sm:$0xf0] }
 0x2ec   :  { %6631 = vmatpush.bf16.msrb.mxu1 %v9087_v38  ;;  %6499 = vmatpush.bf16.msra.mxu2 %v8631_v17  ;;  %v9650_v38 = vld [vmem:[%s12688_s5 + $0x2b4] sm:$0xf]  ;;  %v8775_v6 = vor.u32 %v9620_v12, %v8772_v60  ;;  %v8764_v17 = vld [vmem:[%s12688_s5 + $0x1b8] sm:$0xf0]  ;;  %v9616_v15 = vld [vmem:[%s12688_s5 + $0x1a4] sm:$0xf] }
 0x2ed   :  { %6431 = vmatmul.bf16.gmra.mxu2 %v8535_v32  ;;  %6602 = vmatmul.bf16.gmra.mxu3 %v8535_v32  ;;  %v8895_v40 = vor.u32 %v9650_v38, %v8892_v18  ;;  %v8767_v37 = vor.u32 %v9618_v51, %v8764_v17  ;;  %v8748_v20 = vld [vmem:[%s12688_s5 + $0x198] sm:$0xf0]  ;;  %v9612_v24 = vld [vmem:[%s12688_s5 + $0x184] sm:$0xf]  ;;  %v8740_v1 = vld [vmem:[%s12688_s5 + $0x188] sm:$0xf0] }
 0x2ee   :  { %6393 = vmatmul.bf16.gmra.mxu0 %v8527_v36  ;;  %6564 = vmatmul.bf16.gmra.mxu1 %v8527_v36  ;;  %v8884_v36 = vld [vmem:[%s12688_s5 + $0x2a8] sm:$0xf0]  ;;  %v9690_v56 = vld [vmem:[%s12688_s5 + $0x3f4] sm:$0xf]  ;;  %v9052_v47 = vld [vmem:[%s12688_s5 + $0x3f8] sm:$0xf0] }
 0x2ef   :  { %6461 = vmatpush.bf16.msrb.mxu0 %v9075_v45  ;;  %v8756_v45 = vld [vmem:[%s12688_s5 + $0x1a8] sm:$0xf0]  ;;  %v8887_v27 = vor.u32 %v9648_v3, %v8884_v36  ;;  %v9686_v50 = vld [vmem:[%s12688_s5 + $0x3d4] sm:$0xf]  ;;  %v9036_v39 = vld [vmem:[%s12688_s5 + $0x3d8] sm:$0xf0] }
 0x2f0   :  { %6632 = vmatpush.bf16.msrb.mxu1 %v9079_v19  ;;  %6500 = vmatpush.bf16.msra.mxu2 %v8623_v58  ;;  %v9563_v19 = vld [vmem:[#allocation3 + $0x88] sm:$0xf0]  ;;  %v9646_v58 = vld [vmem:[%s12688_s5 + $0x294] sm:$0xf]  ;;  %v8759_v63 = vor.u32 %v9616_v15, %v8756_v45  ;;  %v9039_v0 = vor.u32 %v9686_v50, %v9036_v39  ;;  %v9020_v10 = vld [vmem:[%s12688_s5 + $0x3b8] sm:$0xf0] }
 0x2f1   :  { %v8543_v35 = vor.u32 %v9563_v19, %v8542_v53  ;;  %v8879_v62 = vor.u32 %v9646_v58, %v8876_v14  ;;  %v9028_v2 = vld [vmem:[%s12688_s5 + $0x3c8] sm:$0xf0] }
 0x2f2   :  { %v8996_v12 = vld [vmem:[%s12688_s5 + $0x388] sm:$0xf0] }
 0x2f3   :  { %6462 = vmatpush.bf16.msrb.mxu0 %v9067_v16  ;;  %v9614_v16 = vld [vmem:[%s12688_s5 + $0x194] sm:$0xf] }
 0x2f4   :  { %6633 = vmatpush.bf16.msrb.mxu1 %v9071_v52  ;;  %6501 = vmatpush.bf16.msra.mxu2 %v8615_v7  ;;  %v9644_v52 = vld [vmem:[%s12688_s5 + $0x284] sm:$0xf]  ;;  %v8751_v21 = vor.u32 %v9614_v16, %v8748_v20 }
 0x2f7   :  { %v12424_v55 = vpop.f32.mrf.mxu1  ;;  %6463 = vmatpush.bf16.msrb.mxu0 %v9059_v26  ;;  %v9055_v26 = vor.u32 %v9690_v56, %v9052_v47 }
 0x2f8   :  { %6570 = vmatpush.bf16.msrb.mxu2 %v8927_v43  ;;  %6634 = vmatpush.bf16.msrb.mxu1 %v9063_v59  ;;  %v8743_v43 = vor.u32 %v9612_v24, %v8740_v1  ;;  %v9688_v59 = vld [vmem:[%s12688_s5 + $0x3e4] sm:$0xf] }
 0x2fb   :  { %6532 = vmatpush.bf16.msra.mxu0 %v8799_v23  ;;  %v9044_v23 = vld [vmem:[%s12688_s5 + $0x3e8] sm:$0xf0] }
 0x2fc   :  { %6571 = vmatpush.bf16.msrb.mxu2 %v8919_v28  ;;  %v9047_v48 = vor.u32 %v9688_v59, %v9044_v23  ;;  %v9684_v28 = vld [vmem:[%s12688_s5 + $0x3c4] sm:$0xf] }
 0x2fd   :  { %6502 = vmatmul.bf16.vlgmr.msra.gmra.mxu2 %v11825_v61  ;;  %v8900_v61 = vld [vmem:[%s12688_s5 + $0x2c8] sm:$0xf0]  ;;  %v9031_v42 = vor.u32 %v9684_v28, %v9028_v2 }
 0x2fe   :  { %6464 = vmatmul.bf16.vlgmr.msrb.gmra.mxu0 %v8507_v25  ;;  %6635 = vmatmul.bf16.vlgmr.msrb.gmra.mxu1 %v8507_v25  ;;  %v8903_v32 = vor.u32 %v9652_v41, %v8900_v61  ;;  %v9680_v25 = vld [vmem:[%s12688_s5 + $0x3a4] sm:$0xf]  ;;  %v9004_v41 = vld [vmem:[%s12688_s5 + $0x398] sm:$0xf0] }
 0x2ff   :  { %v12462_v46 = vpop.f32.mrf.mxu1  ;;  %6533 = vmatpush.bf16.msra.mxu0 %v8791_v49 }
 0x300   :  { %6572 = vmatpush.bf16.msrb.mxu2 %v8911_v5  ;;  %v9678_v5 = vld [vmem:[%s12688_s5 + $0x394] sm:$0xf] }
 0x301   :  { %v9007_v61 = vor.u32 %v9678_v5, %v9004_v41 }
 0x303   :  { %6534 = vmatpush.bf16.msra.mxu0 %v8783_v4  ;;  %v9676_v4 = vld [vmem:[%s12688_s5 + $0x384] sm:$0xf] }
 0x304   :  { %6573 = vmatpush.bf16.msrb.mxu2 %v8903_v32  ;;  %v8999_v60 = vor.u32 %v9676_v4, %v8996_v12 }
 0x307   :  { %v12489_v34 = vpop.f32.mrf.mxu1  ;;  %6535 = vmatpush.bf16.msra.mxu0 %v8775_v6 }
 0x308   :  { %6574 = vmatpush.bf16.msrb.mxu2 %v8895_v40 }
 0x30b   :  { %6536 = vmatpush.bf16.msra.mxu0 %v8767_v37 }
 0x30c   :  { %6575 = vmatpush.bf16.msrb.mxu2 %v8887_v27 }
 0x30d   :  { %6507 = vmatmul.bf16.gmra.mxu2 %v11868_v13  ;;  %v8868_v13 = vld [vmem:[%s12688_s5 + $0x288] sm:$0xf0] }
 0x30e   :  { %6469 = vmatmul.bf16.gmra.mxu0 %v8543_v35  ;;  %6640 = vmatmul.bf16.gmra.mxu1 %v8543_v35  ;;  %v8871_v7 = vor.u32 %v9644_v52, %v8868_v13 }
 0x30f   :  { %v12521_v57 = vpop.f32.mrf.mxu1  ;;  %6537 = vmatpush.bf16.msra.mxu0 %v8759_v63 }
 0x310   :  { %6576 = vmatpush.bf16.msrb.mxu2 %v8879_v62 }
 0x313   :  { %6538 = vmatpush.bf16.msra.mxu0 %v8751_v21 }
 0x314   :  { %6577 = vmatpush.bf16.msrb.mxu2 %v8871_v7 }
 0x317   :  { %v12554_v11 = vpop.f32.mrf.mxu1  ;;  %6539 = vmatpush.bf16.msra.mxu0 %v8743_v43 }
 0x31b   :  { %6608 = vmatpush.bf16.msrb.mxu0 %v9055_v26 }
 0x31d   :  { %6578 = vmatmul.bf16.vlgmr.msrb.gmra.mxu2 %v11920_v8  ;;  %v9682_v8 = vld [vmem:[%s12688_s5 + $0x3b4] sm:$0xf] }
 0x31e   :  { %6540 = vmatmul.bf16.vlgmr.msra.gmra.mxu0 %v11643_v30  ;;  %v9023_v49 = vor.u32 %v9682_v8, %v9020_v10  ;;  %v9012_v30 = vld [vmem:[%s12688_s5 + $0x3a8] sm:$0xf0] }
 0x31f   :  { %6609 = vmatpush.bf16.msrb.mxu0 %v9047_v48  ;;  %v12569_v31 = vpop.f32.mrf.mxu1  ;;  %v9015_v54 = vor.u32 %v9680_v25, %v9012_v30 }
 0x323   :  { %6610 = vmatpush.bf16.msrb.mxu0 %v9039_v0 }
 0x327   :  { %6611 = vmatpush.bf16.msrb.mxu0 %v9031_v42  ;;  %v12590_v44 = vpop.f32.mrf.mxu1 }
 0x32b   :  { %6612 = vmatpush.bf16.msrb.mxu0 %v9023_v49 }
 0x32d   :  { %6583 = vmatmul.bf16.gmra.mxu2 %v12006_v33  ;;  %v5486_v33 = vld [vmem:[%s12689_s6] sm:$0x3] }
 0x32e   :  { %6545 = vmatmul.bf16.gmra.mxu0 %v11660_v22  ;;  %v12611_v38 = vperm.slane %v5486_v33, 1  ;;  %v6370_v22 = vpop.f32.mrf.mxu3  ;;  %v5488_v40 = vperm.slane %v5486_v33, 0 }
 0x32f   :  { %6613 = vmatpush.bf16.msrb.mxu0 %v9015_v54  ;;  %v12606_v32 = vpop.f32.mrf.mxu1 }
 0x333   :  { %6614 = vmatpush.bf16.msrb.mxu0 %v9007_v61 }
 0x336   :  { %v6372_v27 = vpop.f32.mrf.mxu3 }
 0x337   :  { %6615 = vmatpush.bf16.msrb.mxu0 %v8999_v60 }
 0x33b   :  { %v6313_v18 = vpop.f32.mrf.mxu0  ;;  %v6484_v6 = vpop.f32.mrf.mxu1 }
 0x33c   :  { %v12614_v51 = vadd.f32 %v6484_v6, %v12611_v38  ;;  %v6314_v56 = vadd.f32 %v6313_v18, %v5488_v40 }
 0x33e   :  { %6616 = vmatmul.bf16.vlgmr.msrb.gmra.mxu0 %v11853_v9  ;;  %v6375_v53 = vpop.f32.mrf.mxu3  ;;  %v6333_v48 = vadd.f32 %v12424_v55, %v6314_v56 }
 0x340   :  { %v6351_v17 = vpop.f32.mrf.mxu2 }
 0x341   :  { %v6352_v28 = vadd.f32 %v6351_v17, %v6333_v48 }
 0x343   :  { %v6315_v3 = vpop.f32.mrf.mxu0  ;;  %v6486_v36 = vpop.f32.mrf.mxu1  ;;  %v6371_v30 = vadd.f32 %v6370_v22, %v6352_v28 }
 0x344   :  { %v6316_v37 = vadd.f32 %v6315_v3, %v5488_v40  ;;  %v12618_v15 = vadd.f32 %v6486_v36, %v12611_v38 }
 0x346   :  { %v6335_v45 = vadd.f32 %v12462_v46, %v6316_v37  ;;  %v6377_v16 = vpop.f32.mrf.mxu3 }
 0x348   :  { %v6353_v19 = vpop.f32.mrf.mxu2 }
 0x349   :  { %v6354_v0 = vadd.f32 %v6353_v19, %v6335_v45 }
 0x34b   :  { %v6318_v58 = vpop.f32.mrf.mxu0  ;;  %v12623_v26 = vpop.f32.mrf.mxu1  ;;  %v6373_v8 = vadd.f32 %v6372_v27, %v6354_v0 }
 0x34c   :  { %v6319_v46 = vadd.f32 %v6318_v58, %v5488_v40 }
 0x34e   :  { %6621 = vmatmul.bf16.gmra.mxu0 %v11884_v29  ;;  %v6446_v52 = vpop.f32.mrf.mxu3  ;;  %v6338_v47 = vadd.f32 %v12489_v34, %v6319_v46 }
 0x350   :  { %v6356_v14 = vpop.f32.mrf.mxu2 }
 0x351   :  { %v6357_v50 = vadd.f32 %v6356_v14, %v6338_v47 }
 0x353   :  { %v6320_v63 = vpop.f32.mrf.mxu0  ;;  %v6376_v42 = vadd.f32 %v6375_v53, %v6357_v50  ;;  %v12627_v34 = vpop.f32.mrf.mxu1 }
 0x354   :  { %v6321_v43 = vadd.f32 %v6320_v63, %v5488_v40 }
 0x356   :  { %v6448_v24 = vpop.f32.mrf.mxu3  ;;  %v6340_v39 = vadd.f32 %v12521_v57, %v6321_v43  ;;  %v6670_v43 = vld [vmem:[%s12690_s7] sm:$0xff] }
 0x358   :  { %v6358_v35 = vpop.f32.mrf.mxu2 }
 0x359   :  { %v6359_v2 = vadd.f32 %v6358_v35, %v6340_v39 }
 0x35b   :  { %v6389_v9 = vpop.f32.mrf.mxu0  ;;  %v6378_v5 = vadd.f32 %v6377_v16, %v6359_v2  ;;  %v12637_v22 = vpop.f32.mrf.mxu1 }
 0x35c   :  { %v6390_v61 = vadd.f32 %v6389_v9, %v6371_v30  ;;  %v6676_v9 = vld [vmem:[%s12690_s7 + $0x30] sm:$0xff]  ;;  %v6490_v30 = vadd.f32 %v12623_v26, %v12611_v38 }
 0x35e   :  { %v6451_v29 = vpop.f32.mrf.mxu3  ;;  %v6409_v12 = vadd.f32 %v12554_v11, %v6390_v61 }
 0x360   :  { %v6427_v20 = vpop.f32.mrf.mxu2 }
 0x361   :  { %v6428_v40 = vadd.f32 %v6427_v20, %v6409_v12 }
 0x363   :  { %v6391_v62 = vpop.f32.mrf.mxu0  ;;  %v6447_v19 = vadd.f32 %v6446_v52, %v6428_v40  ;;  %v6562_v16 = vpop.f32.mrf.mxu1 }
 0x364   :  { %v6392_v54 = vadd.f32 %v6391_v62, %v6373_v8 }
 0x366   :  { %v6453_v49 = vpop.f32.mrf.mxu3  ;;  %v6411_v57 = vadd.f32 %v12569_v31, %v6392_v54 }
 0x368   :  { %v6429_v13 = vpop.f32.mrf.mxu2 }
 0x369   :  { %v6430_v17 = vadd.f32 %v6429_v13, %v6411_v57  ;;  %v6674_v13 = vld [vmem:[%s12690_s7 + $0x20] sm:$0xff] }
 0x36b   :  { %v6394_v21 = vpop.f32.mrf.mxu0  ;;  %v6449_v45 = vadd.f32 %v6448_v24, %v6430_v17  ;;  %v6565_v48 = vpop.f32.mrf.mxu1 }
 0x36c   :  { %v6395_v10 = vadd.f32 %v6394_v21, %v6376_v42 }
 0x36e   :  { %v6414_v55 = vadd.f32 %v12590_v44, %v6395_v10  ;;  %v12635_v18 = vpop.f32.mrf.mxu3 }
 0x370   :  { %v6432_v1 = vpop.f32.mrf.mxu2 }
 0x371   :  { %v6433_v60 = vadd.f32 %v6432_v1, %v6414_v55 }
 0x373   :  { %v6396_v7 = vpop.f32.mrf.mxu0  ;;  %v6452_v36 = vadd.f32 %v6451_v29, %v6433_v60  ;;  %v6567_v2 = vpop.f32.mrf.mxu1 }
 0x374   :  { %v6397_v4 = vadd.f32 %v6396_v7, %v6378_v5  ;;  %v6672_v7 = vld [vmem:[%s12690_s7 + $0x10] sm:$0xff] }
 0x376   :  { %v6416_v33 = vadd.f32 %v12606_v32, %v6397_v4  ;;  %v6524_v32 = vpop.f32.mrf.mxu3  ;;  %v6492_v4 = vadd.f32 %v12627_v34, %v12611_v38 }
 0x378   :  { %v6434_v59 = vpop.f32.mrf.mxu2 }
 0x379   :  { %v6435_v3 = vadd.f32 %v6434_v59, %v6416_v33 }
 0x37b   :  { %v6465_v23 = vpop.f32.mrf.mxu0  ;;  %v6454_v31 = vadd.f32 %v6453_v49, %v6435_v3  ;;  %v6636_v49 = vpop.f32.mrf.mxu1 }
 0x37c   :  { %v6466_v11 = vadd.f32 %v6465_v23, %v6447_v19 }
 0x37e   :  { %v6654_v20 = vmul.f32 0.01, %v6466_v11  ;;  %vm6646_vm9 = vcmp.ge.f32.partialorder %v6466_v11, 0.0  ;;  %v6527_v59 = vpop.f32.mrf.mxu3 }
 0x380   :  { %v12629_v41 = vpop.f32.mrf.mxu2  ;;  %v6662_v47 = vsel %vm6646_vm9, %v6466_v11, %v6654_v20 }
 0x381   :  { %v6678_v23 = vmul.f32 %v6670_v43, %v6662_v47  ;;  %v6504_v57 = vadd.f32 %v12629_v41, %v12614_v51 }
 0x383   :  { %v6467_v25 = vpop.f32.mrf.mxu0  ;;  %v6638_v60 = vpop.f32.mrf.mxu1  ;;  %v6523_v3 = vadd.f32 %v12635_v18, %v6504_v57 }
 0x384   :  { %v6468_v27 = vadd.f32 %v6467_v25, %v6449_v45 }
 0x386   :  { %v6656_v63 = vmul.f32 0.01, %v6468_v27  ;;  %vm6648_vm8 = vcmp.ge.f32.partialorder %v6468_v27, 0.0  ;;  %v6529_v0 = vpop.f32.mrf.mxu3 }
 0x388   :  { %v6505_v37 = vpop.f32.mrf.mxu2  ;;  %v6664_v1 = vsel %vm6648_vm8, %v6468_v27, %v6656_v63 }
 0x389   :  { %v6680_v29 = vmul.f32 %v6672_v7, %v6664_v1  ;;  %v6506_v61 = vadd.f32 %v6505_v37, %v12618_v15  ;;  %v6686_v15 = vld [vmem:[%s12691_s8] sm:$0xff] }
 0x38b   :  { %v6470_v6 = vpop.f32.mrf.mxu0  ;;  %v6641_v27 = vpop.f32.mrf.mxu1 }
 0x38c   :  { %v6471_v44 = vadd.f32 %v6470_v6, %v6452_v36  ;;  %v6525_v6 = vadd.f32 %v6524_v32, %v6506_v61 }
 0x38e   :  { %v6658_v14 = vmul.f32 0.01, %v6471_v44  ;;  %vm6650_vm6 = vcmp.ge.f32.partialorder %v6471_v44, 0.0  ;;  %v6598_v8 = vpop.f32.mrf.mxu3 }
 0x390   :  { %v6666_v52 = vsel %vm6650_vm6, %v6471_v44, %v6658_v14  ;;  %v6508_v21 = vpop.f32.mrf.mxu2 }
 0x391   :  { %v6682_v56 = vmul.f32 %v6674_v13, %v6666_v52  ;;  %v6509_v54 = vadd.f32 %v6508_v21, %v6490_v30 }
 0x393   :  { %v6472_v58 = vpop.f32.mrf.mxu0  ;;  %v6528_v12 = vadd.f32 %v6527_v59, %v6509_v54  ;;  %v6643_v1 = vpop.f32.mrf.mxu1 }
 0x394   :  { %v6473_v53 = vadd.f32 %v6472_v58, %v6454_v31 }
 0x396   :  { %vm6652_vm7 = vcmp.ge.f32.partialorder %v6473_v53, 0.0  ;;  %v6660_v35 = vmul.f32 0.01, %v6473_v53  ;;  %v6600_v55 = vpop.f32.mrf.mxu3 }
 0x398   :  { %v6668_v62 = vsel %vm6652_vm7, %v6473_v53, %v6660_v35  ;;  %v6510_v50 = vpop.f32.mrf.mxu2 }
 0x399   :  { %v6684_v24 = vmul.f32 %v6676_v9, %v6668_v62  ;;  %v6511_v33 = vadd.f32 %v6510_v50, %v6492_v4  ;;  %v6675_v50 = vld [vmem:[%s12690_s7 + $0x28] sm:$0xff] }
 0x39b   :  { %v6541_v46 = vpop.f32.mrf.mxu0  ;;  %6702 = vmatpush.msra.mxu2 %v6684_v24  ;;  %v6530_v38 = vadd.f32 %v6529_v0, %v6511_v33 }
 0x39c   :  { %v6542_v37 = vadd.f32 %v6541_v46, %v6523_v3 }
 0x39d   :  { %6703 = vmatpush.msra.mxu2 %v6682_v56 }
 0x39e   :  { %v6603_v41 = vpop.f32.mrf.mxu3  ;;  %v6561_v44 = vadd.f32 %v12637_v22, %v6542_v37 }
 0x39f   :  { %6704 = vmatpush.msra.mxu2 %v6680_v29  ;;  %v6677_v29 = vld [vmem:[%s12690_s7 + $0x38] sm:$0xff] }
 0x3a0   :  { %v6579_v42 = vpop.f32.mrf.mxu2 }
 0x3a1   :  { %6705 = vmatpush.msra.mxu2 %v6678_v23  ;;  %v6580_v14 = vadd.f32 %v6579_v42, %v6561_v44 }
 0x3a2   :  { %9120 = vmatmul.msk.f32.vlgmr.msra.gmra.mxu2 %vm72_vm0, %v6686_v15 }
 0x3a3   :  { %v6543_v39 = vpop.f32.mrf.mxu0  ;;  %v6599_v9 = vadd.f32 %v6598_v8, %v6580_v14  ;;  %v6671_v8 = vld [vmem:[%s12690_s7 + $0x8] sm:$0xff] }
 0x3a4   :  { %v6544_v26 = vadd.f32 %v6543_v39, %v6525_v6 }
 0x3a6   :  { %v6563_v51 = vadd.f32 %v6562_v16, %v6544_v26  ;;  %v6605_v62 = vpop.f32.mrf.mxu3 }
 0x3a8   :  { %v6581_v25 = vpop.f32.mrf.mxu2 }
 0x3a9   :  { %v6582_v31 = vadd.f32 %v6581_v25, %v6563_v51  ;;  %v15_v25 = vstv %s12692_s9 }
 0x3aa   :  { %16 = vst [vmem:[#allocation5] sm:$0x1] %v15_v25 }
 0x3ab   :  { %v6546_v28 = vpop.f32.mrf.mxu0  ;;  %v6601_v63 = vadd.f32 %v6600_v55, %v6582_v31 }
 0x3ac   :  { %v6547_v17 = vadd.f32 %v6546_v28, %v6528_v12  ;;  %v6673_v28 = vld [vmem:[%s12690_s7 + $0x18] sm:$0xff] }
 0x3ae   :  { %v6566_v45 = vadd.f32 %v6565_v48, %v6547_v17 }
 0x3b0   :  { %v6584_v40 = vpop.f32.mrf.mxu2 }
 0x3b1   :  { %v6585_v19 = vadd.f32 %v6584_v40, %v6566_v45  ;;  %v9733_v61 = vld [vmem:[#allocation5] ss:$0 sm:$0xff] }
 0x3b3   :  { %v6548_v10 = vpop.f32.mrf.mxu0  ;;  %v6604_v53 = vadd.f32 %v6603_v41, %v6585_v19 }
 0x3b4   :  { %v6549_v34 = vadd.f32 %v6548_v10, %v6530_v38 }
 0x3b6   :  { %v6568_v18 = vadd.f32 %v6567_v2, %v6549_v34 }
 0x3b8   :  { %v6586_v58 = vpop.f32.mrf.mxu2 }
 0x3b9   :  { %v6587_v32 = vadd.f32 %v6586_v58, %v6568_v18 }
 0x3bb   :  { %v6617_v5 = vpop.f32.mrf.mxu0  ;;  %v6606_v13 = vadd.f32 %v6605_v62, %v6587_v32 }
 0x3bc   :  { %v6618_v52 = vadd.f32 %v6617_v5, %v6599_v9 }
 0x3be   :  { %v6637_v7 = vadd.f32 %v6636_v49, %v6618_v52 }
 0x3c0   :  { %v6655_v59 = vmul.f32 0.01, %v6637_v7  ;;  %vm6647_vm13 = vcmp.ge.f32.partialorder %v6637_v7, 0.0 }
 0x3c2   :  { %v6663_v42 = vsel %vm6647_vm13, %v6637_v7, %v6655_v59 }
 0x3c3   :  { %v6619_v36 = vpop.f32.mrf.mxu0  ;;  %v6679_v49 = vmul.f32 %v6671_v8, %v6663_v42 }
 0x3c4   :  { %v6620_v20 = vadd.f32 %v6619_v36, %v6601_v63 }
 0x3c6   :  { %v6639_v24 = vadd.f32 %v6638_v60, %v6620_v20 }
 0x3c8   :  { %v6657_v47 = vmul.f32 0.01, %v6639_v24  ;;  %vm6649_vm12 = vcmp.ge.f32.partialorder %v6639_v24, 0.0 }
 0x3ca   :  { %v6665_v0 = vsel %vm6649_vm12, %v6639_v24, %v6657_v47 }
 0x3cb   :  { %v6622_v11 = vpop.f32.mrf.mxu0  ;;  %v6681_v10 = vmul.f32 %v6673_v28, %v6665_v0 }
 0x3cc   :  { %v6623_v35 = vadd.f32 %v6622_v11, %v6604_v53 }
 0x3ce   :  { %v6642_v16 = vadd.f32 %v6641_v27, %v6623_v35 }
 0x3d0   :  { %v6659_v46 = vmul.f32 0.01, %v6642_v16  ;;  %vm6651_vm10 = vcmp.ge.f32.partialorder %v6642_v16, 0.0 }
 0x3d2   :  { %v6667_v48 = vsel %vm6651_vm10, %v6642_v16, %v6659_v46 }
 0x3d3   :  { %v6624_v21 = vpop.f32.mrf.mxu0  ;;  %v6683_v2 = vmul.f32 %v6675_v50, %v6667_v48 }
 0x3d4   :  { %v6625_v22 = vadd.f32 %v6624_v21, %v6606_v13 }
 0x3d6   :  { %v6644_v56 = vadd.f32 %v6643_v1, %v6625_v22 }
 0x3d8   :  { %vm6653_vm11 = vcmp.ge.f32.partialorder %v6644_v56, 0.0  ;;  %v6661_v43 = vmul.f32 0.01, %v6644_v56 }
 0x3da   :  { %v6669_v23 = vsel %vm6653_vm11, %v6644_v56, %v6661_v43 }
 0x3db   :  { %v6685_v39 = vmul.f32 %v6677_v29, %v6669_v23 }
 0x3dd   :  { %6722 = vmatpush.msra.mxu3 %v6685_v39 }
 0x3df   :  { %6723 = vmatpush.msra.mxu3 %v6683_v2 }
 0x3e1   :  { %6724 = vmatpush.msra.mxu3 %v6681_v10 }
 0x3e3   :  { %6725 = vmatpush.msra.mxu3 %v6679_v49 }
 0x3e4   :  { %9121 = vmatmul.msk.f32.vlgmr.msra.gmra.mxu3 %vm72_vm0, %v6686_v15 }
 0x425   :  { %v6707_v30 = vpop.f32.mrf.mxu2 }
 0x467   :  { %v6727_v54 = vpop.f32.mrf.mxu3 }
 0x468   :  { %v6730_v5 = vadd.f32 %v6727_v54, %v6707_v30 }
 0x46a   :  { %6731 = vadd.xlane.f32.xlu0 %v6730_v5 }
 0x4dd   :  { %v6732_v55 = vpop.xlane.xlu0 %6731 }
 0x4de   :  { %v6737_v4 = vadd.f32 %v9733_v61, %v6732_v55 }
 0x4e0   :  { %6739 = vst.msk [vmem:[%s12693_s10] sm:$0x3] %vm6738_vm14, %v6737_v4 }

</bundles_post_ra>
